<compile_context>
chip_gen: v7x
topology: tpu7x:2x2x1
jax: 0.10.0
libtpu: 0.0.40
codegen_flags: <defaults>
</compile_context>

<pallas_src>
import functools

import numpy as np
import jax
import jax.numpy as jnp
from jax.experimental import pallas as pl
from jax.experimental.pallas import tpu as pltpu


# ----------------------------------------------------------------------------
# TPU generation sniff (tile heuristics only; defaults are safe everywhere)
# ----------------------------------------------------------------------------
def _tpu_generation():
    try:
        kind = jax.devices()[0].device_kind.lower()
    except Exception:
        return 6
    for g in (7, 6, 5, 4, 3):
        if f"v{g}" in kind or f"tpu{g}" in kind:
            return g
    return 6


_TPU_GEN = _tpu_generation()


def _round_up(x, m):
    return (x + m - 1) // m * m


def _choose_tiles(M, Kp, Np):
    # tn=256 fills the 256-wide MXU on v6e/v7x; v5e's MXU is 128 wide.
    tn = 256 if (_TPU_GEN >= 6 and Np % 256 == 0) else 128
    # Bigger M tile only where many row blocks remain (keeps >=2 parallel grid
    # blocks for the v7x dual-TensorCore megacore; strictly better on v5e/v6e).
    tm = 256 if (M >= 2048 and M % 256 == 0) else 128
    # Full-K single-step tile whenever the double-buffered bf16 tiles fit
    # comfortably in VMEM: the M=256 update-block GEMMs are overhead-bound, so
    # one k step kills the per-grid-step cost and the accumulate loop entirely.
    if 2 * 2 * Kp * (tm + tn) <= 8 * 1024 * 1024:
        tk = Kp
    elif Kp % 512 == 0:
        tk = 512
    elif Kp % 256 == 0:
        tk = 256
    else:
        tk = 128
    return tm, tn, tk


# ----------------------------------------------------------------------------
# Pallas fused matmul kernels:  out = act(A @ B + bias)
#   A: (Mp, Kp) bf16, B: (Kp, Np) bf16, bias: (1, Np) f32, out: (Mp, Np) f32/bf16
# ----------------------------------------------------------------------------
def _epilogue(r, bias, act):
    r = r + bias
    if act == 'relu':
        r = jnp.maximum(r, 0.0)
    elif act == 'sigmoid':
        # EUP reciprocal (approx) keeps the divide off the VPU (matters on v5e).
        r = pl.reciprocal(1.0 + jnp.exp(-r), approx=True)
    elif act == 'tanh':
        r = jnp.tanh(r)
    return r


def _mm_fused_kernel(a_ref, b_ref, bias_ref, o_ref, *, act):
    # Single reduction step: whole K resident in VMEM, bias+act fused, one store.
    r = jnp.dot(a_ref[...], b_ref[...], preferred_element_type=jnp.float32)
    o_ref[...] = _epilogue(r, bias_ref[...], act).astype(o_ref.dtype)


def _mm_fused_kacc_kernel(a_ref, b_ref, bias_ref, o_ref, acc_ref, *, act):
    # Multi-step reduction: accumulate into a VMEM f32 scratch; the output tile
    # (possibly bf16) is written exactly once in the last-k epilogue.
    k = pl.program_id(2)

    @pl.when(k == 0)
    def _():
        acc_ref[...] = jnp.zeros_like(acc_ref)

    acc_ref[...] += jnp.dot(a_ref[...], b_ref[...],
                            preferred_element_type=jnp.float32)

    @pl.when(k == pl.num_programs(2) - 1)
    def _():
        o_ref[...] = _epilogue(acc_ref[...], bias_ref[...], act).astype(o_ref.dtype)


def _pallas_mm(a, w, bias, act, n_real, out_dtype=jnp.float32):
    """a:(M,Kp) bf16, w:(Kp,Np) bf16, bias:(1,Np) f32 -> (M, n_real) out_dtype."""
    M, Kp = a.shape
    Kp2, Np = w.shape
    assert Kp == Kp2 and Np % 128 == 0
    tm, tn, tk = _choose_tiles(M, Kp, Np)
    Mp = _round_up(M, tm)
    if Mp != M:
        a = jnp.pad(a, ((0, Mp - M), (0, 0)))

    if tk == Kp:
        out = pl.pallas_call(
            functools.partial(_mm_fused_kernel, act=act),
            out_shape=jax.ShapeDtypeStruct((Mp, Np), out_dtype),
            grid_spec=pltpu.PrefetchScalarGridSpec(
                num_scalar_prefetch=0,
                grid=(Mp // tm, Np // tn),
                in_specs=[pl.BlockSpec((tm, Kp), lambda i, j: (i, 0)),
                          pl.BlockSpec((Kp, tn), lambda i, j: (0, j)),
                          pl.BlockSpec((1, tn), lambda i, j: (0, j))],
                out_specs=pl.BlockSpec((tm, tn), lambda i, j: (i, j))),
            compiler_params=pltpu.CompilerParams(
                dimension_semantics=("parallel", "parallel")),
        )(a, w, bias)
    else:
        out = pl.pallas_call(
            functools.partial(_mm_fused_kacc_kernel, act=act),
            out_shape=jax.ShapeDtypeStruct((Mp, Np), out_dtype),
            grid_spec=pltpu.PrefetchScalarGridSpec(
                num_scalar_prefetch=0,
                grid=(Mp // tm, Np // tn, Kp // tk),
                in_specs=[pl.BlockSpec((tm, tk), lambda i, j, k: (i, k)),
                          pl.BlockSpec((tk, tn), lambda i, j, k: (k, j)),
                          pl.BlockSpec((1, tn), lambda i, j, k: (0, j))],
                out_specs=pl.BlockSpec((tm, tn), lambda i, j, k: (i, j)),
                scratch_shapes=[pltpu.VMEM((tm, tn), jnp.float32)]),
            compiler_params=pltpu.CompilerParams(
                dimension_semantics=("parallel", "parallel", "arbitrary")),
        )(a, w, bias)
    return out[:M, :n_real]


def pallas_matmul(a, b, out_dtype=jnp.float32):
    """General (M,K)@(K,N) -> out_dtype via the Pallas kernel (bf16 operands)."""
    # NOTE: bf16 MXU operands with f32 accumulation (mixed-precision-style);
    # keep operands f32 here if bit-closeness to the f32 reference is required.
    M, K = a.shape
    K2, N = b.shape
    assert K == K2
    Kp, Np = _round_up(K, 128), _round_up(N, 128)
    a_p = jnp.pad(a.astype(jnp.bfloat16), ((0, 0), (0, Kp - K)))
    b_p = jnp.pad(b.astype(jnp.bfloat16), ((0, Kp - K), (0, Np - N)))
    bias = jnp.zeros((1, Np), jnp.float32)
    return _pallas_mm(a_p, b_p, bias, None, N, out_dtype=out_dtype)


# ----------------------------------------------------------------------------
# NHWC conv: Pallas (im2col + fused GEMM) for MXU-friendly shapes,
#            XLA native conv for degenerate ones.
# ----------------------------------------------------------------------------
relu = jax.nn.relu


def _apply_act(x, act):
    if act == 'relu':
        return jax.nn.relu(x)
    if act == 'sigmoid':
        return jax.nn.sigmoid(x)
    if act == 'tanh':
        return jnp.tanh(x)
    return x


def conv2d(x, p, stride=1, padding=0, act=None, out_dtype=jnp.float32):
    """x: (N, H, W, Cin) NHWC -> (N, Ho, Wo, Cout); bias+act fused when Pallas."""
    N, H, W, Cin = x.shape
    kh, kw, K, cout = p['kh'], p['kw'], p['K'], p['cout']

    if not p['use_pallas']:
        # Degenerate GEMM shapes (tiny K or Cout): XLA's native NHWC conv fuses
        # the window reads (no im2col patch matrix, no >75%-padded MXU tiles).
        out = jax.lax.conv_general_dilated(
            x.astype(jnp.float32), p['w_hwio'],
            window_strides=(stride, stride),
            padding=[(padding, padding), (padding, padding)],
            dimension_numbers=('NHWC', 'HWIO', 'NHWC'))
        return _apply_act(out + p['b'], act)

    xs = x.astype(jnp.bfloat16)
    pad_k = p['Kp'] - K
    if padding:
        xs = jnp.pad(xs, ((0, 0), (padding, padding), (padding, padding), (0, 0)))
    Hp, Wp = H + 2 * padding, W + 2 * padding
    Ho = (Hp - kh) // stride + 1
    Wo = (Wp - kw) // stride + 1
    if kh == 1 and kw == 1 and stride == 1 and padding == 0 and pad_k == 0:
        patches = xs.reshape(N * Ho * Wo, K)
    else:
        # TODO(synk): implicit-GEMM (kh*kw taps as the reduction grid axis over
        # the padded NHWC input) would avoid this kh*kw x im2col HBM inflation.
        cols = []
        for i in range(kh):
            for j in range(kw):
                cols.append(jax.lax.slice(
                    xs, (0, i, j, 0),
                    (N, i + (Ho - 1) * stride + 1, j + (Wo - 1) * stride + 1, Cin),
                    (1, stride, stride, 1)))
        if pad_k:
            cols.append(jnp.zeros((N, Ho, Wo, pad_k), xs.dtype))
        patches = jnp.concatenate(cols, axis=-1).reshape(N * Ho * Wo, K + pad_k)
    out = _pallas_mm(patches, p['w'], p['b'], act, cout, out_dtype=out_dtype)
    return out.reshape(N, Ho, Wo, cout)


def instance_norm(x, eps=1e-5):
    # nn.InstanceNorm2d default: affine=False, biased variance (NHWC: axes 1,2)
    mean = x.mean(axis=(1, 2), keepdims=True)
    var = x.var(axis=(1, 2), keepdims=True)
    return (x - mean) / jnp.sqrt(var + eps)


# ----------------------------------------------------------------------------
# Parameter init (PyTorch-style uniform) + one-time weight prep (pad + bf16)
# ----------------------------------------------------------------------------
def conv_init(key, cout, cin, kh, kw):
    k1, k2 = jax.random.split(key)
    fan_in = cin * kh * kw
    bound = 1.0 / np.sqrt(fan_in)
    w = jax.random.uniform(k1, (cout, cin, kh, kw), jnp.float32, -bound, bound)
    b = jax.random.uniform(k2, (cout,), jnp.float32, -bound, bound)
    # GEMM-ready layout matching NHWC im2col ordering (kh, kw, cin)
    wmat = jnp.transpose(w, (2, 3, 1, 0)).reshape(kh * kw * cin, cout)
    return {'wmat': wmat, 'bias': b, 'kh': kh, 'kw': kw, 'cin': cin, 'cout': cout}


def prep_conv(raw):
    """Finalize a conv: pre-pad + pre-cast its weight matrix once, outside jit."""
    K, cout = raw['wmat'].shape
    kh, kw, cin = raw['kh'], raw['kw'], raw['cin']
    use_pallas = (K >= 96 and cout >= 32)       # degenerate GEMMs -> XLA conv
    p = {'kh': kh, 'kw': kw, 'cin': cin, 'cout': cout, 'K': K,
         'use_pallas': use_pallas}
    if use_pallas:
        Kp, Np = _round_up(K, 128), _round_up(cout, 128)
        p['Kp'] = Kp
        p['w'] = jnp.pad(raw['wmat'],
                         ((0, Kp - K), (0, Np - cout))).astype(jnp.bfloat16)
        p['b'] = jnp.pad(raw['bias'], (0, Np - cout)).reshape(1, Np)
    else:
        p['Kp'] = K
        p['w_hwio'] = raw['wmat'].reshape(kh, kw, cin, cout)   # HWIO for lax.conv
        p['b'] = raw['bias']
    return p


def concat_cout(raws):
    """Merge convs that share the same input: concat along output channels."""
    kh, kw, cin = raws[0]['kh'], raws[0]['kw'], raws[0]['cin']
    for r in raws:
        assert (r['kh'], r['kw'], r['cin']) == (kh, kw, cin)
    return {'wmat': jnp.concatenate([r['wmat'] for r in raws], axis=1),
            'bias': jnp.concatenate([r['bias'] for r in raws]),
            'kh': kh, 'kw': kw, 'cin': cin,
            'cout': sum(r['cout'] for r in raws)}


def split_conv_cin(raw, sizes):
    """Split a conv along its input channels (GEMM linearity)."""
    kh, kw, cin, cout = raw['kh'], raw['kw'], raw['cin'], raw['cout']
    assert sum(sizes) == cin
    w = raw['wmat'].reshape(kh * kw, cin, cout)
    parts, start = [], 0
    for s in sizes:
        parts.append({'wmat': w[:, start:start + s, :].reshape(kh * kw * s, cout),
                      'bias': raw['bias'], 'kh': kh, 'kw': kw,
                      'cin': s, 'cout': cout})
        start += s
    return parts


def zero_bias(raw):
    r = dict(raw)
    r['bias'] = jnp.zeros_like(raw['bias'])
    return r


def bottleneck_params(key, in_planes, planes, stride):
    ks = jax.random.split(key, 4)
    p = {'conv1': prep_conv(conv_init(ks[0], planes // 4, in_planes, 1, 1)),
         'conv2': prep_conv(conv_init(ks[1], planes // 4, planes // 4, 3, 3)),
         'conv3': prep_conv(conv_init(ks[2], planes, planes // 4, 1, 1)),
         'stride': stride}
    if stride != 1:
        p['down'] = prep_conv(conv_init(ks[3], planes, in_planes, 1, 1))
    return p


def small_encoder_params(key, in_ch, output_dim):
    ks = jax.random.split(key, 8)
    return {'conv1': prep_conv(conv_init(ks[0], 32, in_ch, 7, 7)),
            'layer1': [bottleneck_params(ks[1], 32, 32, 1),
                       bottleneck_params(ks[2], 32, 32, 1)],
            'layer2': [bottleneck_params(ks[3], 32, 64, 2),
                       bottleneck_params(ks[4], 64, 64, 1)],
            'layer3': [bottleneck_params(ks[5], 64, 96, 2),
                       bottleneck_params(ks[6], 96, 96, 1)],
            'conv2': prep_conv(conv_init(ks[7], output_dim, 96, 1, 1))}


def update_block_params(key):
    ks = jax.random.split(key, 9)
    cor_planes = 4 * (2 * 3 + 1) ** 2           # corr_levels * (2*radius+1)^2 = 196
    hdim, xdim = 96, 146
    convz = conv_init(ks[4], 96, hdim + xdim, 3, 3)
    convr = conv_init(ks[5], 96, hdim + xdim, 3, 3)
    convq = conv_init(ks[6], 96, hdim + xdim, 3, 3)
    z_h, z_x = split_conv_cin(convz, [hdim, xdim])
    r_h, r_x = split_conv_cin(convr, [hdim, xdim])
    q_h, q_x = split_conv_cin(convq, [hdim, xdim])
    return {'convc1': prep_conv(conv_init(ks[0], 96, cor_planes, 1, 1)),
            'convf1': prep_conv(conv_init(ks[1], 64, 2, 7, 7)),
            'convf2': prep_conv(conv_init(ks[2], 32, 64, 3, 3)),
            'conv':   prep_conv(conv_init(ks[3], 80, 128, 3, 3)),
            # GRU by GEMM linearity: the x-contribution of z/r/q is one GEMM
            # (all biases live here); the hidden-state contributions are two
            # smaller bias-free GEMMs added before the activations.
            'convg_x':  prep_conv(concat_cout([z_x, r_x, q_x])),        # 288 out
            'convzr_h': prep_conv(concat_cout([zero_bias(z_h),
                                               zero_bias(r_h)])),       # 192 out
            'convq_h':  prep_conv(zero_bias(q_h)),                      #  96 out
            'fh1':    prep_conv(conv_init(ks[7], 128, 96, 3, 3)),
            'fh2':    prep_conv(conv_init(ks[8], 2, 128, 3, 3))}


def init_raft_params(key):
    # args.small=True: hidden_dim=96, context_dim=64, corr_levels=4, corr_radius=3
    # input has 4 channels (RGB + inverse depth concat).
    k1, k2, k3 = jax.random.split(key, 3)
    return {'fnet': small_encoder_params(k1, 4, 128),
            'cnet': small_encoder_params(k2, 4, 96 + 64),
            'update': update_block_params(k3)}


# ----------------------------------------------------------------------------
# SmallEncoder forward (BottleneckBlocks), NHWC
# ----------------------------------------------------------------------------
def bottleneck_forward(p, x, norm_fn):
    s = p['stride']
    if norm_fn == 'instance':
        y = relu(instance_norm(conv2d(x, p['conv1'])))
        y = relu(instance_norm(conv2d(y, p['conv2'], stride=s, padding=1)))
        y = relu(instance_norm(conv2d(y, p['conv3'])))
        if 'down' in p:
            x = instance_norm(conv2d(x, p['down'], stride=s))
    else:  # 'none': fuse relu into the conv epilogue / XLA conv
        y = conv2d(x, p['conv1'], act='relu')
        y = conv2d(y, p['conv2'], stride=s, padding=1, act='relu')
        y = conv2d(y, p['conv3'], act='relu')
        if 'down' in p:
            x = conv2d(x, p['down'], stride=s)
    return relu(x + y)


def small_encoder_forward(p, x, norm_fn):
    if norm_fn == 'instance':
        x = relu(instance_norm(conv2d(x, p['conv1'], stride=2, padding=3)))
    else:
        x = conv2d(x, p['conv1'], stride=2, padding=3, act='relu')
    for blk in p['layer1'] + p['layer2'] + p['layer3']:
        x = bottleneck_forward(blk, x, norm_fn)
    return conv2d(x, p['conv2'])


# ----------------------------------------------------------------------------
# Correlation pyramid (CorrBlock)
# ----------------------------------------------------------------------------
def avg_pool2(x):
    B, C, H, W = x.shape
    return x.reshape(B, C, H // 2, 2, W // 2, 2).mean(axis=(3, 5))


def build_corr_pyramid(fmap1, fmap2, num_levels=4):
    # fmaps are NHWC: (B, H, W, D); 1/sqrt(D) folded into the lhs operand.
    B, H, W, D = fmap1.shape
    f1 = fmap1.reshape(B, H * W, D) * (1.0 / jnp.sqrt(jnp.float32(D)))
    f2t = jnp.swapaxes(fmap2.reshape(B, H * W, D), 1, 2)   # single transpose
    # TODO(synk): for B > 1, fold the batch into a leading grid axis instead of
    # a Python loop of pallas_calls (B == 1 here).
    corr = jnp.stack([pallas_matmul(f1[b], f2t[b]) for b in range(B)], axis=0)
    corr = corr.reshape(B * H * W, 1, H, W)
    pyramid = [corr]
    for _ in range(num_levels - 1):
        corr = avg_pool2(corr)
        pyramid.append(corr)
    return pyramid


def bilinear_sample(img, coords):
    # RAFT's bilinear_sampler (grid_sample, align_corners=True, zero padding).
    # TODO(synk): data-dependent bilinear gather stays in plain JAX (a Pallas
    # gather kernel with scalar-prefetched indices is the next step).
    B, C, H, W = img.shape
    x = coords[..., 0]
    y = coords[..., 1]
    x0 = jnp.floor(x)
    y0 = jnp.floor(y)
    x1 = x0 + 1
    y1 = y0 + 1
    wa = (x1 - x) * (y1 - y)
    wb = (x1 - x) * (y - y0)
    wc = (x - x0) * (y1 - y)
    wd = (x - x0) * (y - y0)
    flat = img.reshape(B, C, H * W)

    def gather(ix, iy):
        valid = (ix >= 0) & (ix <= W - 1) & (iy >= 0) & (iy <= H - 1)
        ixc = jnp.clip(ix, 0, W - 1).astype(jnp.int32)
        iyc = jnp.clip(iy, 0, H - 1).astype(jnp.int32)
        idx = (iyc * W + ixc).reshape(B, 1, -1)
        g = jnp.take_along_axis(flat, idx, axis=2).reshape(B, C, *ix.shape[1:])
        return g * valid[:, None].astype(img.dtype)

    return (wa[:, None] * gather(x0, y0) + wb[:, None] * gather(x0, y1)
            + wc[:, None] * gather(x1, y0) + wd[:, None] * gather(x1, y1))


def corr_lookup(pyramid, coords, radius=3):
    # coords: (B, h1, w1, 2) NHWC, channels (x, y)
    B, h1, w1, _ = coords.shape
    r = radius
    dx = jnp.linspace(-r, r, 2 * r + 1)
    dy = jnp.linspace(-r, r, 2 * r + 1)
    dyg, dxg = jnp.meshgrid(dy, dx, indexing='ij')
    delta = jnp.stack([dyg, dxg], axis=-1)                 # RAFT's (dy, dx) quirk
    out_pyramid = []
    for i, corr in enumerate(pyramid):
        centroid = coords.reshape(B * h1 * w1, 1, 1, 2) / (2 ** i)
        coords_lvl = centroid + delta[None]
        sampled = bilinear_sample(corr, coords_lvl)        # (B*h1*w1, 1, 2r+1, 2r+1)
        out_pyramid.append(sampled.reshape(B, h1, w1, -1))
    return jnp.concatenate(out_pyramid, axis=-1).astype(jnp.float32)   # (B,h1,w1,196)


# ----------------------------------------------------------------------------
# SmallUpdateBlock (motion encoder + ConvGRU + flow head), NHWC
# ----------------------------------------------------------------------------
def small_update_block(p, net, inp, corr, flow):
    # motion encoder: intermediates emitted as bf16 straight from the kernel
    # (their only consumers are further bf16 GEMM operands / concats).
    cor = conv2d(corr, p['convc1'], act='relu', out_dtype=jnp.bfloat16)
    flo = conv2d(flow, p['convf1'], padding=3, act='relu', out_dtype=jnp.bfloat16)
    flo = conv2d(flo, p['convf2'], padding=1, act='relu', out_dtype=jnp.bfloat16)
    out = conv2d(jnp.concatenate([cor, flo], axis=-1), p['conv'],
                 padding=1, act='relu', out_dtype=jnp.bfloat16)
    motion_features = jnp.concatenate([out.astype(jnp.float32), flow], axis=-1)

    x = jnp.concatenate([inp, motion_features], axis=-1)   # 64 + 82 = 146 ch

    # ConvGRU: shared x-contribution (one GEMM) + hidden-state GEMMs.
    gx = conv2d(x, p['convg_x'], padding=1)                # (.., 288) = [z|r|q]+bias
    h_zr = conv2d(net, p['convzr_h'], padding=1)           # 192, bias-free
    zr = jax.nn.sigmoid(gx[..., :192] + h_zr)
    z, r = zr[..., :96], zr[..., 96:]
    h_q = conv2d(r * net, p['convq_h'], padding=1)         # 96, bias-free
    q = jnp.tanh(gx[..., 192:] + h_q)
    net = (1.0 - z) * net + z * q

    d = conv2d(net, p['fh1'], padding=1, act='relu')
    delta_flow = conv2d(d, p['fh2'], padding=1)            # cout=2 -> XLA conv
    return net, None, delta_flow                           # no up_mask (small)


# ----------------------------------------------------------------------------
# Flow helpers (NHWC)
# ----------------------------------------------------------------------------
def coords_grid(batch, ht, wd):
    ygrid, xgrid = jnp.meshgrid(jnp.arange(ht), jnp.arange(wd), indexing='ij')
    coords = jnp.stack([xgrid, ygrid], axis=-1).astype(jnp.float32)   # (..., (x,y))
    return jnp.broadcast_to(coords[None], (batch, ht, wd, 2))


def _interp_matrix(n_out, n_in):
    # align_corners=True bilinear interpolation matrix (static numpy)
    if n_in == 1:
        return jnp.ones((n_out, 1), jnp.float32)
    pos = np.arange(n_out) * (n_in - 1) / (n_out - 1)
    lo = np.clip(np.floor(pos).astype(np.int64), 0, n_in - 2)
    frac = (pos - lo).astype(np.float32)
    M = np.zeros((n_out, n_in), np.float32)
    M[np.arange(n_out), lo] += 1.0 - frac
    M[np.arange(n_out), lo + 1] += frac
    return jnp.asarray(M)


def upflow8(flow):
    # 8 * F.interpolate(flow, 8x, mode='bilinear', align_corners=True), NHWC.
    # Degenerate (2-channel) GEMMs: plain einsum, not the padded MXU path.
    N, H, W, C = flow.shape
    Ah = _interp_matrix(8 * H, H)
    Aw = _interp_matrix(8 * W, W)
    t = jnp.einsum('hH,nHWc->nhWc', Ah, flow)
    t = jnp.einsum('wW,nhWc->nhwc', Aw, t)
    return 8.0 * t


# ----------------------------------------------------------------------------
# RAFT forward (args.small=True: hdim=96, cdim=64, corr_levels=4, corr_radius=3)
# ----------------------------------------------------------------------------
def raft_forward(params, image1, depth1, image2, depth2, iters=12, flow_init=None):
    # Module-boundary tensors follow PyTorch NCHW; internals run NHWC.
    image1 = 2.0 * (image1 / 255.0) - 1.0
    image2 = 2.0 * (image2 / 255.0) - 1.0
    depth1_inv = jnp.where(depth1 != 0, 1.0 / depth1, 0.0)
    depth2_inv = jnp.where(depth2 != 0, 1.0 / depth2, 0.0)
    x1 = jnp.concatenate([image1, depth1_inv], axis=1).transpose(0, 2, 3, 1)
    x2 = jnp.concatenate([image2, depth2_inv], axis=1).transpose(0, 2, 3, 1)

    hdim, cdim = 96, 64
    N, H, W, _ = x1.shape

    # fnet on [image1, image2] (concatenated along batch, like the list path)
    fmaps = small_encoder_forward(params['fnet'],
                                  jnp.concatenate([x1, x2], axis=0),
                                  norm_fn='instance').astype(jnp.float32)
    fmap1, fmap2 = fmaps[:N], fmaps[N:]
    pyramid = build_corr_pyramid(fmap1, fmap2, num_levels=4)

    cnet = small_encoder_forward(params['cnet'], x1, norm_fn='none')
    net = jnp.tanh(cnet[..., :hdim])
    inp = jax.nn.relu(cnet[..., hdim:hdim + cdim])

    coords0 = coords_grid(N, H // 8, W // 8)
    coords1 = coords_grid(N, H // 8, W // 8)
    if flow_init is not None:
        coords1 = coords1 + flow_init

    flow_predictions = []
    for _ in range(iters):
        corr = corr_lookup(pyramid, coords1, radius=3)
        flow = coords1 - coords0
        net, up_mask, delta_flow = small_update_block(params['update'],
                                                      net, inp, corr, flow)
        coords1 = coords1 + delta_flow
        # SmallUpdateBlock never produces an up_mask, so the convex-combination
        # upsampling branch of the reference module is never taken.
        flow_up = upflow8(coords1 - coords0)
        flow_predictions.append(jnp.transpose(flow_up, (0, 3, 1, 2)))   # NCHW out
    return flow_predictions


# ----------------------------------------------------------------------------
# Main
# ----------------------------------------------------------------------------
if __name__ == "__main__":
    key = jax.random.PRNGKey(0)
    kp, k1, k2, k3, k4 = jax.random.split(key, 5)
    params = init_raft_params(kp)

    N, H, W = 1, 128, 128   # H, W divisible by 8; H/8 large enough for 4 corr levels
    image1 = jax.random.uniform(k1, (N, 3, H, W), jnp.float32, 0.0, 255.0)
    image2 = jax.random.uniform(k2, (N, 3, H, W), jnp.float32, 0.0, 255.0)
    depth1 = jax.random.uniform(k3, (N, 1, H, W), jnp.float32, 0.5, 10.0)
    depth2 = jax.random.uniform(k4, (N, 1, H, W), jnp.float32, 0.5, 10.0)

    # Whole forward jitted; params closed over so Python-int metadata stays
    # static and pre-padded bf16 weights become compile-time constants.
    run = jax.jit(lambda im1, d1, im2, d2:
                  raft_forward(params, im1, d1, im2, d2, iters=2))
    flow_predictions = run(image1, depth1, image2, depth2)
    jax.block_until_ready(flow_predictions)
    assert flow_predictions[-1].shape == (N, 2, H, W)
    assert bool(jnp.all(jnp.isfinite(flow_predictions[-1])))
    print("KERNEL_OK")
</pallas_src>

<mosaic_0001>
module attributes {stable_mosaic.version = 11 : i64} {
  func.func private @main(%arg0: i32) attributes {dimension_semantics = [#tpu.dimension_semantics<core_parallel>], iteration_bounds = array<i64: 2>, tpu.core_type = #tpu.core_type<sc_scalar_subcore>, window_params = []} {
    return
  }
}

module attributes {stable_mosaic.version = 11 : i64} {
  func.func private @main(%arg0: i32) attributes {dimension_semantics = [#tpu.dimension_semantics<core_parallel>], iteration_bounds = array<i64: 2>, tpu.core_type = #tpu.core_type<sc_scalar_subcore>, window_params = []} {
    return
  }
}

module attributes {stable_mosaic.version = 11 : i64} {
  func.func @_mm_fused_kernel(%arg0: i32, %arg1: i32, %arg2: memref<256x256xbf16, #tpu.memory_space<vmem>>, %arg3: memref<256x128xbf16, #tpu.memory_space<vmem>>, %arg4: memref<1x128xf32, #tpu.memory_space<vmem>>, %arg5: memref<256x128xf32, #tpu.memory_space<vmem>>) attributes {dimension_semantics = [#tpu.dimension_semantics<parallel>, #tpu.dimension_semantics<parallel>], iteration_bounds = array<i64: 32, 1>, scalar_prefetch = 0 : i64, scratch_operands = 0 : i64, tpu.core_type = #tpu.core_type<tc>, window_params = [{transform_indices = @transform_0, window_bounds = array<i64: 256, 256>}, {transform_indices = @transform_1, window_bounds = array<i64: 256, 128>}, {transform_indices = @transform_2, window_bounds = array<i64: 1, 128>}, {transform_indices = @transform_3, window_bounds = array<i64: 256, 128>}]} {
    %c0 = arith.constant 0 : index
    %c0_0 = arith.constant 0 : index
    %0 = vector.load %arg2[%c0, %c0_0] : memref<256x256xbf16, #tpu.memory_space<vmem>>, vector<256x256xbf16>
    %c0_1 = arith.constant 0 : index
    %c0_2 = arith.constant 0 : index
    %1 = vector.load %arg3[%c0_1, %c0_2] : memref<256x128xbf16, #tpu.memory_space<vmem>>, vector<256x128xbf16>
    %cst = arith.constant dense<0.000000e+00> : vector<256x128xf32>
    %2 = tpu.matmul %0, %1, %cst {dimension_numbers = #tpu.dot_dimension_numbers<[1], [0], [0], [1], [0, 0, 1, 1], [], []>} : vector<256x256xbf16>, vector<256x128xbf16>, vector<256x128xf32> -> vector<256x128xf32>
    %c0_3 = arith.constant 0 : index
    %c0_4 = arith.constant 0 : index
    %3 = vector.load %arg4[%c0_3, %c0_4] : memref<1x128xf32, #tpu.memory_space<vmem>>, vector<1x128xf32>
    %4 = vector.broadcast %3 : vector<1x128xf32> to vector<256x128xf32>
    %5 = arith.addf %2, %4 : vector<256x128xf32>
    %c0_5 = arith.constant 0 : index
    %c0_6 = arith.constant 0 : index
    %6 = vector.load %arg5[%c0_5, %c0_6] : memref<256x128xf32, #tpu.memory_space<vmem>>, vector<256x128xf32>
    tpu.vector_store %arg5[%c0_5, %c0_6], %5 {strides = array<i32>} : memref<256x128xf32, #tpu.memory_space<vmem>>, vector<256x128xf32>,
    return
  }
  func.func @transform_0(%arg0: i32, %arg1: i32) -> (i32, i32) {
    %c0_i32 = arith.constant 0 : i32
    %c0_i32_0 = arith.constant 0 : i32
    return %arg0, %c0_i32 : i32, i32
  }
  func.func @transform_1(%arg0: i32, %arg1: i32) -> (i32, i32) {
    %c0_i32 = arith.constant 0 : i32
    %c0_i32_0 = arith.constant 0 : i32
    return %c0_i32, %arg1 : i32, i32
  }
  func.func @transform_2(%arg0: i32, %arg1: i32) -> (i32, i32) {
    %c0_i32 = arith.constant 0 : i32
    %c0_i32_0 = arith.constant 0 : i32
    return %c0_i32, %arg1 : i32, i32
  }
  func.func @transform_3(%arg0: i32, %arg1: i32) -> (i32, i32) {
    %c0_i32 = arith.constant 0 : i32
    return %arg0, %arg1 : i32, i32
  }
}

module attributes {stable_mosaic.version = 11 : i64} {
  func.func @_mm_fused_kernel(%arg0: i32, %arg1: i32, %arg2: memref<128x128xbf16, #tpu.memory_space<vmem>>, %arg3: memref<128x128xbf16, #tpu.memory_space<vmem>>, %arg4: memref<1x128xf32, #tpu.memory_space<vmem>>, %arg5: memref<128x128xf32, #tpu.memory_space<vmem>>) attributes {dimension_semantics = [#tpu.dimension_semantics<parallel>, #tpu.dimension_semantics<parallel>], iteration_bounds = array<i64: 4, 1>, scalar_prefetch = 0 : i64, scratch_operands = 0 : i64, tpu.core_type = #tpu.core_type<tc>, window_params = [{transform_indices = @transform_0, window_bounds = array<i64: 128, 128>}, {transform_indices = @transform_1, window_bounds = array<i64: 128, 128>}, {transform_indices = @transform_2, window_bounds = array<i64: 1, 128>}, {transform_indices = @transform_3, window_bounds = array<i64: 128, 128>}]} {
    %c0 = arith.constant 0 : index
    %c0_0 = arith.constant 0 : index
    %0 = vector.load %arg2[%c0, %c0_0] : memref<128x128xbf16, #tpu.memory_space<vmem>>, vector<128x128xbf16>
    %c0_1 = arith.constant 0 : index
    %c0_2 = arith.constant 0 : index
    %1 = vector.load %arg3[%c0_1, %c0_2] : memref<128x128xbf16, #tpu.memory_space<vmem>>, vector<128x128xbf16>
    %cst = arith.constant dense<0.000000e+00> : vector<128x128xf32>
    %2 = tpu.matmul %0, %1, %cst {dimension_numbers = #tpu.dot_dimension_numbers<[1], [0], [0], [1], [0, 0, 1, 1], [], []>} : vector<128x128xbf16>, vector<128x128xbf16>, vector<128x128xf32> -> vector<128x128xf32>
    %c0_3 = arith.constant 0 : index
    %c0_4 = arith.constant 0 : index
    %3 = vector.load %arg4[%c0_3, %c0_4] : memref<1x128xf32, #tpu.memory_space<vmem>>, vector<1x128xf32>
    %4 = vector.broadcast %3 : vector<1x128xf32> to vector<128x128xf32>
    %5 = arith.addf %2, %4 : vector<128x128xf32>
    %c0_5 = arith.constant 0 : index
    %c0_6 = arith.constant 0 : index
    %6 = vector.load %arg5[%c0_5, %c0_6] : memref<128x128xf32, #tpu.memory_space<vmem>>, vector<128x128xf32>
    tpu.vector_store %arg5[%c0_5, %c0_6], %5 {strides = array<i32>} : memref<128x128xf32, #tpu.memory_space<vmem>>, vector<128x128xf32>,
    return
  }
  func.func @transform_0(%arg0: i32, %arg1: i32) -> (i32, i32) {
    %c0_i32 = arith.constant 0 : i32
    %c0_i32_0 = arith.constant 0 : i32
    return %arg0, %c0_i32 : i32, i32
  }
  func.func @transform_1(%arg0: i32, %arg1: i32) -> (i32, i32) {
    %c0_i32 = arith.constant 0 : i32
    %c0_i32_0 = arith.constant 0 : i32
    return %c0_i32, %arg1 : i32, i32
  }
  func.func @transform_2(%arg0: i32, %arg1: i32) -> (i32, i32) {
    %c0_i32 = arith.constant 0 : i32
    %c0_i32_0 = arith.constant 0 : i32
    return %c0_i32, %arg1 : i32, i32
  }
  func.func @transform_3(%arg0: i32, %arg1: i32) -> (i32, i32) {
    %c0_i32 = arith.constant 0 : i32
    return %arg0, %arg1 : i32, i32
  }
}

module attributes {stable_mosaic.version = 11 : i64} {
  func.func @_mm_fused_kernel(%arg0: i32, %arg1: i32, %arg2: memref<128x128xbf16, #tpu.memory_space<vmem>>, %arg3: memref<128x256xbf16, #tpu.memory_space<vmem>>, %arg4: memref<1x256xf32, #tpu.memory_space<vmem>>, %arg5: memref<128x256xf32, #tpu.memory_space<vmem>>) attributes {dimension_semantics = [#tpu.dimension_semantics<parallel>, #tpu.dimension_semantics<parallel>], iteration_bounds = array<i64: 2, 1>, scalar_prefetch = 0 : i64, scratch_operands = 0 : i64, tpu.core_type = #tpu.core_type<tc>, window_params = [{transform_indices = @transform_0, window_bounds = array<i64: 128, 128>}, {transform_indices = @transform_1, window_bounds = array<i64: 128, 256>}, {transform_indices = @transform_2, window_bounds = array<i64: 1, 256>}, {transform_indices = @transform_3, window_bounds = array<i64: 128, 256>}]} {
    %c0 = arith.constant 0 : index
    %c0_0 = arith.constant 0 : index
    %0 = vector.load %arg2[%c0, %c0_0] : memref<128x128xbf16, #tpu.memory_space<vmem>>, vector<128x128xbf16>
    %c0_1 = arith.constant 0 : index
    %c0_2 = arith.constant 0 : index
    %1 = vector.load %arg3[%c0_1, %c0_2] : memref<128x256xbf16, #tpu.memory_space<vmem>>, vector<128x256xbf16>
    %cst = arith.constant dense<0.000000e+00> : vector<128x256xf32>
    %2 = tpu.matmul %0, %1, %cst {dimension_numbers = #tpu.dot_dimension_numbers<[1], [0], [0], [1], [0, 0, 1, 1], [], []>} : vector<128x128xbf16>, vector<128x256xbf16>, vector<128x256xf32> -> vector<128x256xf32>
    %c0_3 = arith.constant 0 : index
    %c0_4 = arith.constant 0 : index
    %3 = vector.load %arg4[%c0_3, %c0_4] : memref<1x256xf32, #tpu.memory_space<vmem>>, vector<1x256xf32>
    %4 = vector.broadcast %3 : vector<1x256xf32> to vector<128x256xf32>
    %5 = arith.addf %2, %4 : vector<128x256xf32>
    %c0_5 = arith.constant 0 : index
    %c0_6 = arith.constant 0 : index
    %6 = vector.load %arg5[%c0_5, %c0_6] : memref<128x256xf32, #tpu.memory_space<vmem>>, vector<128x256xf32>
    tpu.vector_store %arg5[%c0_5, %c0_6], %5 {strides = array<i32>} : memref<128x256xf32, #tpu.memory_space<vmem>>, vector<128x256xf32>,
    return
  }
  func.func @transform_0(%arg0: i32, %arg1: i32) -> (i32, i32) {
    %c0_i32 = arith.constant 0 : i32
    %c0_i32_0 = arith.constant 0 : i32
    return %arg0, %c0_i32 : i32, i32
  }
  func.func @transform_1(%arg0: i32, %arg1: i32) -> (i32, i32) {
    %c0_i32 = arith.constant 0 : i32
    %c0_i32_0 = arith.constant 0 : i32
    return %c0_i32, %arg1 : i32, i32
  }
  func.func @transform_2(%arg0: i32, %arg1: i32) -> (i32, i32) {
    %c0_i32 = arith.constant 0 : i32
    %c0_i32_0 = arith.constant 0 : i32
    return %c0_i32, %arg1 : i32, i32
  }
  func.func @transform_3(%arg0: i32, %arg1: i32) -> (i32, i32) {
    %c0_i32 = arith.constant 0 : i32
    return %arg0, %arg1 : i32, i32
  }
}

module attributes {stable_mosaic.version = 11 : i64} {
  func.func @_mm_fused_kernel(%arg0: i32, %arg1: i32, %arg2: memref<256x256xbf16, #tpu.memory_space<vmem>>, %arg3: memref<256x128xbf16, #tpu.memory_space<vmem>>, %arg4: memref<1x128xf32, #tpu.memory_space<vmem>>, %arg5: memref<256x128xf32, #tpu.memory_space<vmem>>) attributes {dimension_semantics = [#tpu.dimension_semantics<parallel>, #tpu.dimension_semantics<parallel>], iteration_bounds = array<i64: 16, 1>, scalar_prefetch = 0 : i64, scratch_operands = 0 : i64, tpu.core_type = #tpu.core_type<tc>, window_params = [{transform_indices = @transform_0, window_bounds = array<i64: 256, 256>}, {transform_indices = @transform_1, window_bounds = array<i64: 256, 128>}, {transform_indices = @transform_2, window_bounds = array<i64: 1, 128>}, {transform_indices = @transform_3, window_bounds = array<i64: 256, 128>}]} {
    %c0 = arith.constant 0 : index
    %c0_0 = arith.constant 0 : index
    %0 = vector.load %arg2[%c0, %c0_0] : memref<256x256xbf16, #tpu.memory_space<vmem>>, vector<256x256xbf16>
    %c0_1 = arith.constant 0 : index
    %c0_2 = arith.constant 0 : index
    %1 = vector.load %arg3[%c0_1, %c0_2] : memref<256x128xbf16, #tpu.memory_space<vmem>>, vector<256x128xbf16>
    %cst = arith.constant dense<0.000000e+00> : vector<256x128xf32>
    %2 = tpu.matmul %0, %1, %cst {dimension_numbers = #tpu.dot_dimension_numbers<[1], [0], [0], [1], [0, 0, 1, 1], [], []>} : vector<256x256xbf16>, vector<256x128xbf16>, vector<256x128xf32> -> vector<256x128xf32>
    %c0_3 = arith.constant 0 : index
    %c0_4 = arith.constant 0 : index
    %3 = vector.load %arg4[%c0_3, %c0_4] : memref<1x128xf32, #tpu.memory_space<vmem>>, vector<1x128xf32>
    %4 = vector.broadcast %3 : vector<1x128xf32> to vector<256x128xf32>
    %5 = arith.addf %2, %4 : vector<256x128xf32>
    %cst_5 = arith.constant 0.000000e+00 : f32
    %6 = vector.broadcast %cst_5 : f32 to vector<256x128xf32>
    %7 = arith.maximumf %5, %6 : vector<256x128xf32>
    %c0_6 = arith.constant 0 : index
    %c0_7 = arith.constant 0 : index
    %8 = vector.load %arg5[%c0_6, %c0_7] : memref<256x128xf32, #tpu.memory_space<vmem>>, vector<256x128xf32>
    tpu.vector_store %arg5[%c0_6, %c0_7], %7 {strides = array<i32>} : memref<256x128xf32, #tpu.memory_space<vmem>>, vector<256x128xf32>,
    return
  }
  func.func @transform_0(%arg0: i32, %arg1: i32) -> (i32, i32) {
    %c0_i32 = arith.constant 0 : i32
    %c0_i32_0 = arith.constant 0 : i32
    return %arg0, %c0_i32 : i32, i32
  }
  func.func @transform_1(%arg0: i32, %arg1: i32) -> (i32, i32) {
    %c0_i32 = arith.constant 0 : i32
    %c0_i32_0 = arith.constant 0 : i32
    return %c0_i32, %arg1 : i32, i32
  }
  func.func @transform_2(%arg0: i32, %arg1: i32) -> (i32, i32) {
    %c0_i32 = arith.constant 0 : i32
    %c0_i32_0 = arith.constant 0 : i32
    return %c0_i32, %arg1 : i32, i32
  }
  func.func @transform_3(%arg0: i32, %arg1: i32) -> (i32, i32) {
    %c0_i32 = arith.constant 0 : i32
    return %arg0, %arg1 : i32, i32
  }
}

module attributes {stable_mosaic.version = 11 : i64} {
  func.func @_mm_fused_kernel(%arg0: i32, %arg1: i32, %arg2: memref<128x128xbf16, #tpu.memory_space<vmem>>, %arg3: memref<128x256xbf16, #tpu.memory_space<vmem>>, %arg4: memref<1x256xf32, #tpu.memory_space<vmem>>, %arg5: memref<128x256xf32, #tpu.memory_space<vmem>>) attributes {dimension_semantics = [#tpu.dimension_semantics<parallel>, #tpu.dimension_semantics<parallel>], iteration_bounds = array<i64: 2, 1>, scalar_prefetch = 0 : i64, scratch_operands = 0 : i64, tpu.core_type = #tpu.core_type<tc>, window_params = [{transform_indices = @transform_0, window_bounds = array<i64: 128, 128>}, {transform_indices = @transform_1, window_bounds = array<i64: 128, 256>}, {transform_indices = @transform_2, window_bounds = array<i64: 1, 256>}, {transform_indices = @transform_3, window_bounds = array<i64: 128, 256>}]} {
    %c0 = arith.constant 0 : index
    %c0_0 = arith.constant 0 : index
    %0 = vector.load %arg2[%c0, %c0_0] : memref<128x128xbf16, #tpu.memory_space<vmem>>, vector<128x128xbf16>
    %c0_1 = arith.constant 0 : index
    %c0_2 = arith.constant 0 : index
    %1 = vector.load %arg3[%c0_1, %c0_2] : memref<128x256xbf16, #tpu.memory_space<vmem>>, vector<128x256xbf16>
    %cst = arith.constant dense<0.000000e+00> : vector<128x256xf32>
    %2 = tpu.matmul %0, %1, %cst {dimension_numbers = #tpu.dot_dimension_numbers<[1], [0], [0], [1], [0, 0, 1, 1], [], []>} : vector<128x128xbf16>, vector<128x256xbf16>, vector<128x256xf32> -> vector<128x256xf32>
    %c0_3 = arith.constant 0 : index
    %c0_4 = arith.constant 0 : index
    %3 = vector.load %arg4[%c0_3, %c0_4] : memref<1x256xf32, #tpu.memory_space<vmem>>, vector<1x256xf32>
    %4 = vector.broadcast %3 : vector<1x256xf32> to vector<128x256xf32>
    %5 = arith.addf %2, %4 : vector<128x256xf32>
    %c0_5 = arith.constant 0 : index
    %c0_6 = arith.constant 0 : index
    %6 = vector.load %arg5[%c0_5, %c0_6] : memref<128x256xf32, #tpu.memory_space<vmem>>, vector<128x256xf32>
    tpu.vector_store %arg5[%c0_5, %c0_6], %5 {strides = array<i32>} : memref<128x256xf32, #tpu.memory_space<vmem>>, vector<128x256xf32>,
    return
  }
  func.func @transform_0(%arg0: i32, %arg1: i32) -> (i32, i32) {
    %c0_i32 = arith.constant 0 : i32
    %c0_i32_0 = arith.constant 0 : i32
    return %arg0, %c0_i32 : i32, i32
  }
  func.func @transform_1(%arg0: i32, %arg1: i32) -> (i32, i32) {
    %c0_i32 = arith.constant 0 : i32
    %c0_i32_0 = arith.constant 0 : i32
    return %c0_i32, %arg1 : i32, i32
  }
  func.func @transform_2(%arg0: i32, %arg1: i32) -> (i32, i32) {
    %c0_i32 = arith.constant 0 : i32
    %c0_i32_0 = arith.constant 0 : i32
    return %c0_i32, %arg1 : i32, i32
  }
  func.func @transform_3(%arg0: i32, %arg1: i32) -> (i32, i32) {
    %c0_i32 = arith.constant 0 : i32
    return %arg0, %arg1 : i32, i32
  }
}

module attributes {stable_mosaic.version = 11 : i64} {
  func.func @_mm_fused_kernel(%arg0: i32, %arg1: i32, %arg2: memref<128x128xbf16, #tpu.memory_space<vmem>>, %arg3: memref<128x128xbf16, #tpu.memory_space<vmem>>, %arg4: memref<1x128xf32, #tpu.memory_space<vmem>>, %arg5: memref<128x128xbf16, #tpu.memory_space<vmem>>) attributes {dimension_semantics = [#tpu.dimension_semantics<parallel>, #tpu.dimension_semantics<parallel>], iteration_bounds = array<i64: 2, 1>, scalar_prefetch = 0 : i64, scratch_operands = 0 : i64, tpu.core_type = #tpu.core_type<tc>, window_params = [{transform_indices = @transform_0, window_bounds = array<i64: 128, 128>}, {transform_indices = @transform_1, window_bounds = array<i64: 128, 128>}, {transform_indices = @transform_2, window_bounds = array<i64: 1, 128>}, {transform_indices = @transform_3, window_bounds = array<i64: 128, 128>}]} {
    %c0 = arith.constant 0 : index
    %c0_0 = arith.constant 0 : index
    %0 = vector.load %arg2[%c0, %c0_0] : memref<128x128xbf16, #tpu.memory_space<vmem>>, vector<128x128xbf16>
    %c0_1 = arith.constant 0 : index
    %c0_2 = arith.constant 0 : index
    %1 = vector.load %arg3[%c0_1, %c0_2] : memref<128x128xbf16, #tpu.memory_space<vmem>>, vector<128x128xbf16>
    %cst = arith.constant dense<0.000000e+00> : vector<128x128xf32>
    %2 = tpu.matmul %0, %1, %cst {dimension_numbers = #tpu.dot_dimension_numbers<[1], [0], [0], [1], [0, 0, 1, 1], [], []>} : vector<128x128xbf16>, vector<128x128xbf16>, vector<128x128xf32> -> vector<128x128xf32>
    %c0_3 = arith.constant 0 : index
    %c0_4 = arith.constant 0 : index
    %3 = vector.load %arg4[%c0_3, %c0_4] : memref<1x128xf32, #tpu.memory_space<vmem>>, vector<1x128xf32>
    %4 = vector.broadcast %3 : vector<1x128xf32> to vector<128x128xf32>
    %5 = arith.addf %2, %4 : vector<128x128xf32>
    %cst_5 = arith.constant 0.000000e+00 : f32
    %6 = vector.broadcast %cst_5 : f32 to vector<128x128xf32>
    %7 = arith.maximumf %5, %6 : vector<128x128xf32>
    %8 = arith.truncf %7 : vector<128x128xf32> to vector<128x128xbf16>
    %c0_6 = arith.constant 0 : index
    %c0_7 = arith.constant 0 : index
    %9 = vector.load %arg5[%c0_6, %c0_7] : memref<128x128xbf16, #tpu.memory_space<vmem>>, vector<128x128xbf16>
    tpu.vector_store %arg5[%c0_6, %c0_7], %8 {strides = array<i32>} : memref<128x128xbf16, #tpu.memory_space<vmem>>, vector<128x128xbf16>,
    return
  }
  func.func @transform_0(%arg0: i32, %arg1: i32) -> (i32, i32) {
    %c0_i32 = arith.constant 0 : i32
    %c0_i32_0 = arith.constant 0 : i32
    return %arg0, %c0_i32 : i32, i32
  }
  func.func @transform_1(%arg0: i32, %arg1: i32) -> (i32, i32) {
    %c0_i32 = arith.constant 0 : i32
    %c0_i32_0 = arith.constant 0 : i32
    return %c0_i32, %arg1 : i32, i32
  }
  func.func @transform_2(%arg0: i32, %arg1: i32) -> (i32, i32) {
    %c0_i32 = arith.constant 0 : i32
    %c0_i32_0 = arith.constant 0 : i32
    return %c0_i32, %arg1 : i32, i32
  }
  func.func @transform_3(%arg0: i32, %arg1: i32) -> (i32, i32) {
    %c0_i32 = arith.constant 0 : i32
    return %arg0, %arg1 : i32, i32
  }
}

module attributes {stable_mosaic.version = 11 : i64} {
  func.func @_mm_fused_kernel(%arg0: i32, %arg1: i32, %arg2: memref<128x896xbf16, #tpu.memory_space<vmem>>, %arg3: memref<896x256xbf16, #tpu.memory_space<vmem>>, %arg4: memref<1x256xf32, #tpu.memory_space<vmem>>, %arg5: memref<128x256xf32, #tpu.memory_space<vmem>>) attributes {dimension_semantics = [#tpu.dimension_semantics<parallel>, #tpu.dimension_semantics<parallel>], iteration_bounds = array<i64: 2, 1>, scalar_prefetch = 0 : i64, scratch_operands = 0 : i64, tpu.core_type = #tpu.core_type<tc>, window_params = [{transform_indices = @transform_0, window_bounds = array<i64: 128, 896>}, {transform_indices = @transform_1, window_bounds = array<i64: 896, 256>}, {transform_indices = @transform_2, window_bounds = array<i64: 1, 256>}, {transform_indices = @transform_3, window_bounds = array<i64: 128, 256>}]} {
    %c0 = arith.constant 0 : index
    %c0_0 = arith.constant 0 : index
    %0 = vector.load %arg2[%c0, %c0_0] : memref<128x896xbf16, #tpu.memory_space<vmem>>, vector<128x896xbf16>
    %c0_1 = arith.constant 0 : index
    %c0_2 = arith.constant 0 : index
    %1 = vector.load %arg3[%c0_1, %c0_2] : memref<896x256xbf16, #tpu.memory_space<vmem>>, vector<896x256xbf16>
    %cst = arith.constant dense<0.000000e+00> : vector<128x256xf32>
    %2 = tpu.matmul %0, %1, %cst {dimension_numbers = #tpu.dot_dimension_numbers<[1], [0], [0], [1], [0, 0, 1, 1], [], []>} : vector<128x896xbf16>, vector<896x256xbf16>, vector<128x256xf32> -> vector<128x256xf32>
    %c0_3 = arith.constant 0 : index
    %c0_4 = arith.constant 0 : index
    %3 = vector.load %arg4[%c0_3, %c0_4] : memref<1x256xf32, #tpu.memory_space<vmem>>, vector<1x256xf32>
    %4 = vector.broadcast %3 : vector<1x256xf32> to vector<128x256xf32>
    %5 = arith.addf %2, %4 : vector<128x256xf32>
    %c0_5 = arith.constant 0 : index
    %c0_6 = arith.constant 0 : index
    %6 = vector.load %arg5[%c0_5, %c0_6] : memref<128x256xf32, #tpu.memory_space<vmem>>, vector<128x256xf32>
    tpu.vector_store %arg5[%c0_5, %c0_6], %5 {strides = array<i32>} : memref<128x256xf32, #tpu.memory_space<vmem>>, vector<128x256xf32>,
    return
  }
  func.func @transform_0(%arg0: i32, %arg1: i32) -> (i32, i32) {
    %c0_i32 = arith.constant 0 : i32
    %c0_i32_0 = arith.constant 0 : i32
    return %arg0, %c0_i32 : i32, i32
  }
  func.func @transform_1(%arg0: i32, %arg1: i32) -> (i32, i32) {
    %c0_i32 = arith.constant 0 : i32
    %c0_i32_0 = arith.constant 0 : i32
    return %c0_i32, %arg1 : i32, i32
  }
  func.func @transform_2(%arg0: i32, %arg1: i32) -> (i32, i32) {
    %c0_i32 = arith.constant 0 : i32
    %c0_i32_0 = arith.constant 0 : i32
    return %c0_i32, %arg1 : i32, i32
  }
  func.func @transform_3(%arg0: i32, %arg1: i32) -> (i32, i32) {
    %c0_i32 = arith.constant 0 : i32
    return %arg0, %arg1 : i32, i32
  }
}

module attributes {stable_mosaic.version = 11 : i64} {
  func.func @_mm_fused_kernel(%arg0: i32, %arg1: i32, %arg2: memref<128x640xbf16, #tpu.memory_space<vmem>>, %arg3: memref<640x128xbf16, #tpu.memory_space<vmem>>, %arg4: memref<1x128xf32, #tpu.memory_space<vmem>>, %arg5: memref<128x128xbf16, #tpu.memory_space<vmem>>) attributes {dimension_semantics = [#tpu.dimension_semantics<parallel>, #tpu.dimension_semantics<parallel>], iteration_bounds = array<i64: 2, 1>, scalar_prefetch = 0 : i64, scratch_operands = 0 : i64, tpu.core_type = #tpu.core_type<tc>, window_params = [{transform_indices = @transform_0, window_bounds = array<i64: 128, 640>}, {transform_indices = @transform_1, window_bounds = array<i64: 640, 128>}, {transform_indices = @transform_2, window_bounds = array<i64: 1, 128>}, {transform_indices = @transform_3, window_bounds = array<i64: 128, 128>}]} {
    %c0 = arith.constant 0 : index
    %c0_0 = arith.constant 0 : index
    %0 = vector.load %arg2[%c0, %c0_0] : memref<128x640xbf16, #tpu.memory_space<vmem>>, vector<128x640xbf16>
    %c0_1 = arith.constant 0 : index
    %c0_2 = arith.constant 0 : index
    %1 = vector.load %arg3[%c0_1, %c0_2] : memref<640x128xbf16, #tpu.memory_space<vmem>>, vector<640x128xbf16>
    %cst = arith.constant dense<0.000000e+00> : vector<128x128xf32>
    %2 = tpu.matmul %0, %1, %cst {dimension_numbers = #tpu.dot_dimension_numbers<[1], [0], [0], [1], [0, 0, 1, 1], [], []>} : vector<128x640xbf16>, vector<640x128xbf16>, vector<128x128xf32> -> vector<128x128xf32>
    %c0_3 = arith.constant 0 : index
    %c0_4 = arith.constant 0 : index
    %3 = vector.load %arg4[%c0_3, %c0_4] : memref<1x128xf32, #tpu.memory_space<vmem>>, vector<1x128xf32>
    %4 = vector.broadcast %3 : vector<1x128xf32> to vector<128x128xf32>
    %5 = arith.addf %2, %4 : vector<128x128xf32>
    %cst_5 = arith.constant 0.000000e+00 : f32
    %6 = vector.broadcast %cst_5 : f32 to vector<128x128xf32>
    %7 = arith.maximumf %5, %6 : vector<128x128xf32>
    %8 = arith.truncf %7 : vector<128x128xf32> to vector<128x128xbf16>
    %c0_6 = arith.constant 0 : index
    %c0_7 = arith.constant 0 : index
    %9 = vector.load %arg5[%c0_6, %c0_7] : memref<128x128xbf16, #tpu.memory_space<vmem>>, vector<128x128xbf16>
    tpu.vector_store %arg5[%c0_6, %c0_7], %8 {strides = array<i32>} : memref<128x128xbf16, #tpu.memory_space<vmem>>, vector<128x128xbf16>,
    return
  }
  func.func @transform_0(%arg0: i32, %arg1: i32) -> (i32, i32) {
    %c0_i32 = arith.constant 0 : i32
    %c0_i32_0 = arith.constant 0 : i32
    return %arg0, %c0_i32 : i32, i32
  }
  func.func @transform_1(%arg0: i32, %arg1: i32) -> (i32, i32) {
    %c0_i32 = arith.constant 0 : i32
    %c0_i32_0 = arith.constant 0 : i32
    return %c0_i32, %arg1 : i32, i32
  }
  func.func @transform_2(%arg0: i32, %arg1: i32) -> (i32, i32) {
    %c0_i32 = arith.constant 0 : i32
    %c0_i32_0 = arith.constant 0 : i32
    return %c0_i32, %arg1 : i32, i32
  }
  func.func @transform_3(%arg0: i32, %arg1: i32) -> (i32, i32) {
    %c0_i32 = arith.constant 0 : i32
    return %arg0, %arg1 : i32, i32
  }
}

module attributes {stable_mosaic.version = 11 : i64} {
  func.func @_mm_fused_kernel(%arg0: i32, %arg1: i32, %arg2: memref<128x256xbf16, #tpu.memory_space<vmem>>, %arg3: memref<256x128xbf16, #tpu.memory_space<vmem>>, %arg4: memref<1x128xf32, #tpu.memory_space<vmem>>, %arg5: memref<128x128xbf16, #tpu.memory_space<vmem>>) attributes {dimension_semantics = [#tpu.dimension_semantics<parallel>, #tpu.dimension_semantics<parallel>], iteration_bounds = array<i64: 2, 1>, scalar_prefetch = 0 : i64, scratch_operands = 0 : i64, tpu.core_type = #tpu.core_type<tc>, window_params = [{transform_indices = @transform_0, window_bounds = array<i64: 128, 256>}, {transform_indices = @transform_1, window_bounds = array<i64: 256, 128>}, {transform_indices = @transform_2, window_bounds = array<i64: 1, 128>}, {transform_indices = @transform_3, window_bounds = array<i64: 128, 128>}]} {
    %c0 = arith.constant 0 : index
    %c0_0 = arith.constant 0 : index
    %0 = vector.load %arg2[%c0, %c0_0] : memref<128x256xbf16, #tpu.memory_space<vmem>>, vector<128x256xbf16>
    %c0_1 = arith.constant 0 : index
    %c0_2 = arith.constant 0 : index
    %1 = vector.load %arg3[%c0_1, %c0_2] : memref<256x128xbf16, #tpu.memory_space<vmem>>, vector<256x128xbf16>
    %cst = arith.constant dense<0.000000e+00> : vector<128x128xf32>
    %2 = tpu.matmul %0, %1, %cst {dimension_numbers = #tpu.dot_dimension_numbers<[1], [0], [0], [1], [0, 0, 1, 1], [], []>} : vector<128x256xbf16>, vector<256x128xbf16>, vector<128x128xf32> -> vector<128x128xf32>
    %c0_3 = arith.constant 0 : index
    %c0_4 = arith.constant 0 : index
    %3 = vector.load %arg4[%c0_3, %c0_4] : memref<1x128xf32, #tpu.memory_space<vmem>>, vector<1x128xf32>
    %4 = vector.broadcast %3 : vector<1x128xf32> to vector<128x128xf32>
    %5 = arith.addf %2, %4 : vector<128x128xf32>
    %cst_5 = arith.constant 0.000000e+00 : f32
    %6 = vector.broadcast %cst_5 : f32 to vector<128x128xf32>
    %7 = arith.maximumf %5, %6 : vector<128x128xf32>
    %8 = arith.truncf %7 : vector<128x128xf32> to vector<128x128xbf16>
    %c0_6 = arith.constant 0 : index
    %c0_7 = arith.constant 0 : index
    %9 = vector.load %arg5[%c0_6, %c0_7] : memref<128x128xbf16, #tpu.memory_space<vmem>>, vector<128x128xbf16>
    tpu.vector_store %arg5[%c0_6, %c0_7], %8 {strides = array<i32>} : memref<128x128xbf16, #tpu.memory_space<vmem>>, vector<128x128xbf16>,
    return
  }
  func.func @transform_0(%arg0: i32, %arg1: i32) -> (i32, i32) {
    %c0_i32 = arith.constant 0 : i32
    %c0_i32_0 = arith.constant 0 : i32
    return %arg0, %c0_i32 : i32, i32
  }
  func.func @transform_1(%arg0: i32, %arg1: i32) -> (i32, i32) {
    %c0_i32 = arith.constant 0 : i32
    %c0_i32_0 = arith.constant 0 : i32
    return %c0_i32, %arg1 : i32, i32
  }
  func.func @transform_2(%arg0: i32, %arg1: i32) -> (i32, i32) {
    %c0_i32 = arith.constant 0 : i32
    %c0_i32_0 = arith.constant 0 : i32
    return %c0_i32, %arg1 : i32, i32
  }
  func.func @transform_3(%arg0: i32, %arg1: i32) -> (i32, i32) {
    %c0_i32 = arith.constant 0 : i32
    return %arg0, %arg1 : i32, i32
  }
}

module attributes {stable_mosaic.version = 11 : i64} {
  func.func @_mm_fused_kernel(%arg0: i32, %arg1: i32, %arg2: memref<128x1152xbf16, #tpu.memory_space<vmem>>, %arg3: memref<1152x128xbf16, #tpu.memory_space<vmem>>, %arg4: memref<1x128xf32, #tpu.memory_space<vmem>>, %arg5: memref<128x128xbf16, #tpu.memory_space<vmem>>) attributes {dimension_semantics = [#tpu.dimension_semantics<parallel>, #tpu.dimension_semantics<parallel>], iteration_bounds = array<i64: 2, 1>, scalar_prefetch = 0 : i64, scratch_operands = 0 : i64, tpu.core_type = #tpu.core_type<tc>, window_params = [{transform_indices = @transform_0, window_bounds = array<i64: 128, 1152>}, {transform_indices = @transform_1, window_bounds = array<i64: 1152, 128>}, {transform_indices = @transform_2, window_bounds = array<i64: 1, 128>}, {transform_indices = @transform_3, window_bounds = array<i64: 128, 128>}]} {
    %c0 = arith.constant 0 : index
    %c0_0 = arith.constant 0 : index
    %0 = vector.load %arg2[%c0, %c0_0] : memref<128x1152xbf16, #tpu.memory_space<vmem>>, vector<128x1152xbf16>
    %c0_1 = arith.constant 0 : index
    %c0_2 = arith.constant 0 : index
    %1 = vector.load %arg3[%c0_1, %c0_2] : memref<1152x128xbf16, #tpu.memory_space<vmem>>, vector<1152x128xbf16>
    %cst = arith.constant dense<0.000000e+00> : vector<128x128xf32>
    %2 = tpu.matmul %0, %1, %cst {dimension_numbers = #tpu.dot_dimension_numbers<[1], [0], [0], [1], [0, 0, 1, 1], [], []>} : vector<128x1152xbf16>, vector<1152x128xbf16>, vector<128x128xf32> -> vector<128x128xf32>
    %c0_3 = arith.constant 0 : index
    %c0_4 = arith.constant 0 : index
    %3 = vector.load %arg4[%c0_3, %c0_4] : memref<1x128xf32, #tpu.memory_space<vmem>>, vector<1x128xf32>
    %4 = vector.broadcast %3 : vector<1x128xf32> to vector<128x128xf32>
    %5 = arith.addf %2, %4 : vector<128x128xf32>
    %cst_5 = arith.constant 0.000000e+00 : f32
    %6 = vector.broadcast %cst_5 : f32 to vector<128x128xf32>
    %7 = arith.maximumf %5, %6 : vector<128x128xf32>
    %8 = arith.truncf %7 : vector<128x128xf32> to vector<128x128xbf16>
    %c0_6 = arith.constant 0 : index
    %c0_7 = arith.constant 0 : index
    %9 = vector.load %arg5[%c0_6, %c0_7] : memref<128x128xbf16, #tpu.memory_space<vmem>>, vector<128x128xbf16>
    tpu.vector_store %arg5[%c0_6, %c0_7], %8 {strides = array<i32>} : memref<128x128xbf16, #tpu.memory_space<vmem>>, vector<128x128xbf16>,
    return
  }
  func.func @transform_0(%arg0: i32, %arg1: i32) -> (i32, i32) {
    %c0_i32 = arith.constant 0 : i32
    %c0_i32_0 = arith.constant 0 : i32
    return %arg0, %c0_i32 : i32, i32
  }
  func.func @transform_1(%arg0: i32, %arg1: i32) -> (i32, i32) {
    %c0_i32 = arith.constant 0 : i32
    %c0_i32_0 = arith.constant 0 : i32
    return %c0_i32, %arg1 : i32, i32
  }
  func.func @transform_2(%arg0: i32, %arg1: i32) -> (i32, i32) {
    %c0_i32 = arith.constant 0 : i32
    %c0_i32_0 = arith.constant 0 : i32
    return %c0_i32, %arg1 : i32, i32
  }
  func.func @transform_3(%arg0: i32, %arg1: i32) -> (i32, i32) {
    %c0_i32 = arith.constant 0 : i32
    return %arg0, %arg1 : i32, i32
  }
}

module attributes {stable_mosaic.version = 11 : i64} {
  func.func @_mm_fused_kernel(%arg0: i32, %arg1: i32, %arg2: memref<128x1408xbf16, #tpu.memory_space<vmem>>, %arg3: memref<1408x128xbf16, #tpu.memory_space<vmem>>, %arg4: memref<1x128xf32, #tpu.memory_space<vmem>>, %arg5: memref<128x128xf32, #tpu.memory_space<vmem>>) attributes {dimension_semantics = [#tpu.dimension_semantics<parallel>, #tpu.dimension_semantics<parallel>], iteration_bounds = array<i64: 2, 3>, scalar_prefetch = 0 : i64, scratch_operands = 0 : i64, tpu.core_type = #tpu.core_type<tc>, window_params = [{transform_indices = @transform_0, window_bounds = array<i64: 128, 1408>}, {transform_indices = @transform_1, window_bounds = array<i64: 1408, 128>}, {transform_indices = @transform_2, window_bounds = array<i64: 1, 128>}, {transform_indices = @transform_3, window_bounds = array<i64: 128, 128>}]} {
    %c0 = arith.constant 0 : index
    %c0_0 = arith.constant 0 : index
    %0 = vector.load %arg2[%c0, %c0_0] : memref<128x1408xbf16, #tpu.memory_space<vmem>>, vector<128x1408xbf16>
    %c0_1 = arith.constant 0 : index
    %c0_2 = arith.constant 0 : index
    %1 = vector.load %arg3[%c0_1, %c0_2] : memref<1408x128xbf16, #tpu.memory_space<vmem>>, vector<1408x128xbf16>
    %cst = arith.constant dense<0.000000e+00> : vector<128x128xf32>
    %2 = tpu.matmul %0, %1, %cst {dimension_numbers = #tpu.dot_dimension_numbers<[1], [0], [0], [1], [0, 0, 1, 1], [], []>} : vector<128x1408xbf16>, vector<1408x128xbf16>, vector<128x128xf32> -> vector<128x128xf32>
    %c0_3 = arith.constant 0 : index
    %c0_4 = arith.constant 0 : index
    %3 = vector.load %arg4[%c0_3, %c0_4] : memref<1x128xf32, #tpu.memory_space<vmem>>, vector<1x128xf32>
    %4 = vector.broadcast %3 : vector<1x128xf32> to vector<128x128xf32>
    %5 = arith.addf %2, %4 : vector<128x128xf32>
    %c0_5 = arith.constant 0 : index
    %c0_6 = arith.constant 0 : index
    %6 = vector.load %arg5[%c0_5, %c0_6] : memref<128x128xf32, #tpu.memory_space<vmem>>, vector<128x128xf32>
    tpu.vector_store %arg5[%c0_5, %c0_6], %5 {strides = array<i32>} : memref<128x128xf32, #tpu.memory_space<vmem>>, vector<128x128xf32>,
    return
  }
  func.func @transform_0(%arg0: i32, %arg1: i32) -> (i32, i32) {
    %c0_i32 = arith.constant 0 : i32
    %c0_i32_0 = arith.constant 0 : i32
    return %arg0, %c0_i32 : i32, i32
  }
  func.func @transform_1(%arg0: i32, %arg1: i32) -> (i32, i32) {
    %c0_i32 = arith.constant 0 : i32
    %c0_i32_0 = arith.constant 0 : i32
    return %c0_i32, %arg1 : i32, i32
  }
  func.func @transform_2(%arg0: i32, %arg1: i32) -> (i32, i32) {
    %c0_i32 = arith.constant 0 : i32
    %c0_i32_0 = arith.constant 0 : i32
    return %c0_i32, %arg1 : i32, i32
  }
  func.func @transform_3(%arg0: i32, %arg1: i32) -> (i32, i32) {
    %c0_i32 = arith.constant 0 : i32
    return %arg0, %arg1 : i32, i32
  }
}

module attributes {stable_mosaic.version = 11 : i64} {
  func.func @_mm_fused_kernel(%arg0: i32, %arg1: i32, %arg2: memref<128x896xbf16, #tpu.memory_space<vmem>>, %arg3: memref<896x128xbf16, #tpu.memory_space<vmem>>, %arg4: memref<1x128xf32, #tpu.memory_space<vmem>>, %arg5: memref<128x128xf32, #tpu.memory_space<vmem>>) attributes {dimension_semantics = [#tpu.dimension_semantics<parallel>, #tpu.dimension_semantics<parallel>], iteration_bounds = array<i64: 2, 1>, scalar_prefetch = 0 : i64, scratch_operands = 0 : i64, tpu.core_type = #tpu.core_type<tc>, window_params = [{transform_indices = @transform_0, window_bounds = array<i64: 128, 896>}, {transform_indices = @transform_1, window_bounds = array<i64: 896, 128>}, {transform_indices = @transform_2, window_bounds = array<i64: 1, 128>}, {transform_indices = @transform_3, window_bounds = array<i64: 128, 128>}]} {
    %c0 = arith.constant 0 : index
    %c0_0 = arith.constant 0 : index
    %0 = vector.load %arg2[%c0, %c0_0] : memref<128x896xbf16, #tpu.memory_space<vmem>>, vector<128x896xbf16>
    %c0_1 = arith.constant 0 : index
    %c0_2 = arith.constant 0 : index
    %1 = vector.load %arg3[%c0_1, %c0_2] : memref<896x128xbf16, #tpu.memory_space<vmem>>, vector<896x128xbf16>
    %cst = arith.constant dense<0.000000e+00> : vector<128x128xf32>
    %2 = tpu.matmul %0, %1, %cst {dimension_numbers = #tpu.dot_dimension_numbers<[1], [0], [0], [1], [0, 0, 1, 1], [], []>} : vector<128x896xbf16>, vector<896x128xbf16>, vector<128x128xf32> -> vector<128x128xf32>
    %c0_3 = arith.constant 0 : index
    %c0_4 = arith.constant 0 : index
    %3 = vector.load %arg4[%c0_3, %c0_4] : memref<1x128xf32, #tpu.memory_space<vmem>>, vector<1x128xf32>
    %4 = vector.broadcast %3 : vector<1x128xf32> to vector<128x128xf32>
    %5 = arith.addf %2, %4 : vector<128x128xf32>
    %c0_5 = arith.constant 0 : index
    %c0_6 = arith.constant 0 : index
    %6 = vector.load %arg5[%c0_5, %c0_6] : memref<128x128xf32, #tpu.memory_space<vmem>>, vector<128x128xf32>
    tpu.vector_store %arg5[%c0_5, %c0_6], %5 {strides = array<i32>} : memref<128x128xf32, #tpu.memory_space<vmem>>, vector<128x128xf32>,
    return
  }
  func.func @transform_0(%arg0: i32, %arg1: i32) -> (i32, i32) {
    %c0_i32 = arith.constant 0 : i32
    %c0_i32_0 = arith.constant 0 : i32
    return %arg0, %c0_i32 : i32, i32
  }
  func.func @transform_1(%arg0: i32, %arg1: i32) -> (i32, i32) {
    %c0_i32 = arith.constant 0 : i32
    %c0_i32_0 = arith.constant 0 : i32
    return %c0_i32, %arg1 : i32, i32
  }
  func.func @transform_2(%arg0: i32, %arg1: i32) -> (i32, i32) {
    %c0_i32 = arith.constant 0 : i32
    %c0_i32_0 = arith.constant 0 : i32
    return %c0_i32, %arg1 : i32, i32
  }
  func.func @transform_3(%arg0: i32, %arg1: i32) -> (i32, i32) {
    %c0_i32 = arith.constant 0 : i32
    return %arg0, %arg1 : i32, i32
  }
}

module attributes {stable_mosaic.version = 11 : i64} {
  func.func @_mm_fused_kernel(%arg0: i32, %arg1: i32, %arg2: memref<128x896xbf16, #tpu.memory_space<vmem>>, %arg3: memref<896x128xbf16, #tpu.memory_space<vmem>>, %arg4: memref<1x128xf32, #tpu.memory_space<vmem>>, %arg5: memref<128x128xf32, #tpu.memory_space<vmem>>) attributes {dimension_semantics = [#tpu.dimension_semantics<parallel>, #tpu.dimension_semantics<parallel>], iteration_bounds = array<i64: 2, 1>, scalar_prefetch = 0 : i64, scratch_operands = 0 : i64, tpu.core_type = #tpu.core_type<tc>, window_params = [{transform_indices = @transform_0, window_bounds = array<i64: 128, 896>}, {transform_indices = @transform_1, window_bounds = array<i64: 896, 128>}, {transform_indices = @transform_2, window_bounds = array<i64: 1, 128>}, {transform_indices = @transform_3, window_bounds = array<i64: 128, 128>}]} {
    %c0 = arith.constant 0 : index
    %c0_0 = arith.constant 0 : index
    %0 = vector.load %arg2[%c0, %c0_0] : memref<128x896xbf16, #tpu.memory_space<vmem>>, vector<128x896xbf16>
    %c0_1 = arith.constant 0 : index
    %c0_2 = arith.constant 0 : index
    %1 = vector.load %arg3[%c0_1, %c0_2] : memref<896x128xbf16, #tpu.memory_space<vmem>>, vector<896x128xbf16>
    %cst = arith.constant dense<0.000000e+00> : vector<128x128xf32>
    %2 = tpu.matmul %0, %1, %cst {dimension_numbers = #tpu.dot_dimension_numbers<[1], [0], [0], [1], [0, 0, 1, 1], [], []>} : vector<128x896xbf16>, vector<896x128xbf16>, vector<128x128xf32> -> vector<128x128xf32>
    %c0_3 = arith.constant 0 : index
    %c0_4 = arith.constant 0 : index
    %3 = vector.load %arg4[%c0_3, %c0_4] : memref<1x128xf32, #tpu.memory_space<vmem>>, vector<1x128xf32>
    %4 = vector.broadcast %3 : vector<1x128xf32> to vector<128x128xf32>
    %5 = arith.addf %2, %4 : vector<128x128xf32>
    %cst_5 = arith.constant 0.000000e+00 : f32
    %6 = vector.broadcast %cst_5 : f32 to vector<128x128xf32>
    %7 = arith.maximumf %5, %6 : vector<128x128xf32>
    %c0_6 = arith.constant 0 : index
    %c0_7 = arith.constant 0 : index
    %8 = vector.load %arg5[%c0_6, %c0_7] : memref<128x128xf32, #tpu.memory_space<vmem>>, vector<128x128xf32>
    tpu.vector_store %arg5[%c0_6, %c0_7], %7 {strides = array<i32>} : memref<128x128xf32, #tpu.memory_space<vmem>>, vector<128x128xf32>,
    return
  }
  func.func @transform_0(%arg0: i32, %arg1: i32) -> (i32, i32) {
    %c0_i32 = arith.constant 0 : i32
    %c0_i32_0 = arith.constant 0 : i32
    return %arg0, %c0_i32 : i32, i32
  }
  func.func @transform_1(%arg0: i32, %arg1: i32) -> (i32, i32) {
    %c0_i32 = arith.constant 0 : i32
    %c0_i32_0 = arith.constant 0 : i32
    return %c0_i32, %arg1 : i32, i32
  }
  func.func @transform_2(%arg0: i32, %arg1: i32) -> (i32, i32) {
    %c0_i32 = arith.constant 0 : i32
    %c0_i32_0 = arith.constant 0 : i32
    return %c0_i32, %arg1 : i32, i32
  }
  func.func @transform_3(%arg0: i32, %arg1: i32) -> (i32, i32) {
    %c0_i32 = arith.constant 0 : i32
    return %arg0, %arg1 : i32, i32
  }
}

module attributes {stable_mosaic.version = 11 : i64} {
  func.func @_mm_fused_kernel(%arg0: i32, %arg1: i32, %arg2: memref<128x896xbf16, #tpu.memory_space<vmem>>, %arg3: memref<896x256xbf16, #tpu.memory_space<vmem>>, %arg4: memref<1x256xf32, #tpu.memory_space<vmem>>, %arg5: memref<128x256xf32, #tpu.memory_space<vmem>>) attributes {dimension_semantics = [#tpu.dimension_semantics<parallel>, #tpu.dimension_semantics<parallel>], iteration_bounds = array<i64: 2, 1>, scalar_prefetch = 0 : i64, scratch_operands = 0 : i64, tpu.core_type = #tpu.core_type<tc>, window_params = [{transform_indices = @transform_0, window_bounds = array<i64: 128, 896>}, {transform_indices = @transform_1, window_bounds = array<i64: 896, 256>}, {transform_indices = @transform_2, window_bounds = array<i64: 1, 256>}, {transform_indices = @transform_3, window_bounds = array<i64: 128, 256>}]} {
    %c0 = arith.constant 0 : index
    %c0_0 = arith.constant 0 : index
    %0 = vector.load %arg2[%c0, %c0_0] : memref<128x896xbf16, #tpu.memory_space<vmem>>, vector<128x896xbf16>
    %c0_1 = arith.constant 0 : index
    %c0_2 = arith.constant 0 : index
    %1 = vector.load %arg3[%c0_1, %c0_2] : memref<896x256xbf16, #tpu.memory_space<vmem>>, vector<896x256xbf16>
    %cst = arith.constant dense<0.000000e+00> : vector<128x256xf32>
    %2 = tpu.matmul %0, %1, %cst {dimension_numbers = #tpu.dot_dimension_numbers<[1], [0], [0], [1], [0, 0, 1, 1], [], []>} : vector<128x896xbf16>, vector<896x256xbf16>, vector<128x256xf32> -> vector<128x256xf32>
    %c0_3 = arith.constant 0 : index
    %c0_4 = arith.constant 0 : index
    %3 = vector.load %arg4[%c0_3, %c0_4] : memref<1x256xf32, #tpu.memory_space<vmem>>, vector<1x256xf32>
    %4 = vector.broadcast %3 : vector<1x256xf32> to vector<128x256xf32>
    %5 = arith.addf %2, %4 : vector<128x256xf32>
    %c0_5 = arith.constant 0 : index
    %c0_6 = arith.constant 0 : index
    %6 = vector.load %arg5[%c0_5, %c0_6] : memref<128x256xf32, #tpu.memory_space<vmem>>, vector<128x256xf32>
    tpu.vector_store %arg5[%c0_5, %c0_6], %5 {strides = array<i32>} : memref<128x256xf32, #tpu.memory_space<vmem>>, vector<128x256xf32>,
    return
  }
  func.func @transform_0(%arg0: i32, %arg1: i32) -> (i32, i32) {
    %c0_i32 = arith.constant 0 : i32
    %c0_i32_0 = arith.constant 0 : i32
    return %arg0, %c0_i32 : i32, i32
  }
  func.func @transform_1(%arg0: i32, %arg1: i32) -> (i32, i32) {
    %c0_i32 = arith.constant 0 : i32
    %c0_i32_0 = arith.constant 0 : i32
    return %c0_i32, %arg1 : i32, i32
  }
  func.func @transform_2(%arg0: i32, %arg1: i32) -> (i32, i32) {
    %c0_i32 = arith.constant 0 : i32
    %c0_i32_0 = arith.constant 0 : i32
    return %c0_i32, %arg1 : i32, i32
  }
  func.func @transform_3(%arg0: i32, %arg1: i32) -> (i32, i32) {
    %c0_i32 = arith.constant 0 : i32
    return %arg0, %arg1 : i32, i32
  }
}

</mosaic_0001>

<bundles_post_ra>
// kernel: _lambda_.21
= control target key start
LH: loop header
LB: loop body
LE: loop exit
PB: predicated region body
PF: predicated region fallthrough
CT: control target
= control target key end

     0   :  { %8 = vsyncpa [#allocation3], 0  ;;  %s1500_s0 = inlined_call_operand.vmem [shape: bf16[8192,256], index: 0, kind: input, shape index: {}]   ;;  %s1501_s1 = inlined_call_operand.hbm [shape: bf16[256,128], index: 1, kind: input, shape index: {}]   ;;  %s1502_s2 = inlined_call_operand.hbm [shape: f32[1,128], index: 2, kind: input, shape index: {}]   ;;  %s1503_s3 = inlined_call_operand.vmem [shape: f32[8192,128], index: 3, kind: output, shape index: {}]  }
   0x1   :  { %9 = vsyncpa [#allocation5], 0  ;;  %s1278_s12 = smov 0   ;;  %s1280_s13 = smov 0  }
   0x2   :  { %s1282_s14 = smov 0  }
   0x3 LB: > { %s861_s15 = sadd.s32 4294967295, %s1252_s14   ;;  %s27_s16 = sadd.s32 1, %s1248_s13  ;;  %s1252_s14 = sphi %s1282_s14, %s15_s14   ;;  %s1248_s13 = sphi %s1280_s13, %s1513_s13   ;;  %s1244_s12 = sphi %s1278_s12, %s1512_s12  }
   0x4   : > { %p29_p0 = scmp.ge.s32.totalorder %s27_s16, 32  ;;  %p863_p1 = scmp.ge.s32.totalorder %s1252_s14, 1 }
   0x5   : > { %p138_p2 = scmp.lt.s32.totalorder %s1252_s14, 33  ;;  %p1303_p4 = scmp.eq.s32.totalorder %s861_s15, 0 }
   0x6   : > { %s1515_s16 = smov (%p29_p0, %s27_s16), 0  ;;  %s1254_s19 = smov [#allocation2]  }
   0x7   : > { %p1299_p3 = pnand %p863_p1, %p138_p2  ;;  %s152_s20 = sshll.u32 %s1254_s19, 4  ;;  %s153_s20 = int_to_ptr.vmem [resolvable:$true] %s152_s20 }
   0x8   : > { %s1508_s18 = scalar_select %p1303_p4, 1, 0 }
   0x9   : > { %s1507_s17 = scalar_select %p1299_p3, 1, 0 }
   0xa   : > { %p1063_p5 = pneg %p1299_p3  ;;  %s1255_s22 = smov [#allocation4]  }
   0xb   : > { %s168_s23 = sshll.u32 %s1255_s22, 4  ;;  %s1166_s26 = scalar_lea.hbm %s1501_s1, 2048  ;;  %s1315_s23 = int_to_ptr.vmem [resolvable:$true] %s168_s23 }
   0xc   : > { %p1311_p6 = pnand %p1303_p4, %p1063_p5  ;;  %p1167_p7 = scmp.ne.s32.totalorder %s1501_s1, %s1166_s26 }
   0xd   : > { %p1173_p11 = scmp.lt.u32.totalorder %s1166_s26, %s1501_s1 }
   0xe   : > { %p1168_p8 = pneg %p1311_p6 }
  0x10   : > { %p1169_p9 = pnand %p1168_p8, %p1167_p7 }
  0x12   : > { %p1170_p10 = pneg %p1169_p9 }
  0x14   : > { %p1175_p12 = pnand %p1173_p11, %p1170_p10 }
  0x16   : > { %1178 = shalt.err (!%p1175_p12)
}
  0x17   : > { %s1179_s4 = scalar_lea.vmem %s153_s20, 2048  ;;  %p1187_p2 = scmp.lt.s32.totalorder %s153_s20, %s153_s20 }
  0x18   : > { %p1180_p13 = scmp.ne.s32.totalorder %s153_s20, %s1179_s4  ;;  %p1188_p5 = scmp.lt.s32.totalorder %s1179_s4, %s1179_s4 }
  0x1a   : > { %p1182_p0 = pnand %p1180_p13, %p1168_p8  ;;  %p1189_p4 = por %p1188_p5, %p1187_p2 }
  0x1c   : > { %p1183_p1 = pneg %p1182_p0 }
  0x1e   : > { %p1190_p3 = pnand %p1189_p4, %p1183_p1 }
  0x20   : > { %1193 = shalt.err (!%p1190_p3)
}
  0x21   : > { %s1256_s5 = smov 64   ;;  %s1257_s6 = smov 4  }
  0x22   : > { %1066 = dma.hbm_to_vmem [thread:$0]  (!%p1311_p6), %s1501_s1, 2048, %s153_s20, [#allocation3], %s1256_s5, %s1256_s5, %s1257_s6  }
  0x23   : > { %s1194_s11 = scalar_lea.hbm %s1502_s2, 16 }
  0x24   : > { %p1195_p7 = scmp.ne.s32.totalorder %s1502_s2, %s1194_s11  ;;  %p1201_p9 = scmp.lt.u32.totalorder %s1194_s11, %s1502_s2 }
  0x26   : > { %p1197_p3 = pnand %p1195_p7, %p1168_p8 }
  0x28   : > { %p1198_p4 = pneg %p1197_p3 }
  0x2a   : > { %p1203_p10 = pnand %p1201_p9, %p1198_p4 }
  0x2c   : > { %1206 = shalt.err (!%p1203_p10)
}
  0x2d   : > { %s1207_s20 = scalar_lea.vmem %s1315_s23, 16  ;;  %s1214_s25 = scalar_lea.vmem %s1315_s23, 32 }
  0x2e   : > { %p1208_p11 = scmp.ne.s32.totalorder %s1315_s23, %s1207_s20  ;;  %p1215_p0 = scmp.lt.s32.totalorder %s1315_s23, %s1315_s23 }
  0x2f   : > { %p1216_p1 = scmp.lt.s32.totalorder %s1214_s25, %s1207_s20 }
  0x30   : > { %p1210_p12 = pnand %p1208_p11, %p1168_p8 }
  0x31   : > { %p1217_p2 = por %p1216_p1, %p1215_p0 }
  0x32   : > { %p1211_p13 = pneg %p1210_p12 }
  0x34   : > { %p1218_p5 = pnand %p1217_p2, %p1211_p13 }
  0x36   : > { %1221 = shalt.err (!%p1218_p5)
}
  0x37   : > { %1069 = dma.hbm_to_vmem [thread:$0]  (!%p1311_p6), %s1502_s2, 16, %s1315_s23, [#allocation5]  }
  0x38   : > { %p1510_p7 = scmp.ne.s32.totalorder %s1507_s17, 0 }
  0x39   : > { %p1511_p8 = scmp.ne.s32.totalorder (!%p1510_p7), %s1508_s18, 0 }
  0x3a   : > { %191 = sbr.rel (%p1510_p7) target bundleno = 377 (0x179), region = 32 }
  0x41   : > { %1235 = dma.done.wait (%p1511_p8), [#allocation3], 2048  }
  0x42   : > { %1237 = vsyncadd (%p1511_p8), [#allocation3], 4294965248 }
  0x43   : > { %1239 = dma.done.wait (%p1511_p8), [#allocation5], 16  }
  0x44   : > { %1241 = vsyncadd (%p1511_p8), [#allocation5], 4294967280  ;;  %v1102_v0 = vld [vmem:[#allocation2 + $0x40] sm:$0xff]   ;;  %s870_s21 = sshll.u32 %s1244_s12, 5  ;;  %v1104_v2 = vld [vmem:[#allocation2 + $0x48] sm:$0xff]  }
  0x45   : > { %v1103_v1 = vld [vmem:[#allocation2] sm:$0xff]   ;;  %927 = vmatprep.subr.bf16.mxu0 %v1102_v0  ;;  %1039 = vmatprep.subr.bf16.mxu1 %v1102_v0  ;;  %v1105_v3 = vld [vmem:[#allocation2 + $0x8] sm:$0xff]   ;;  %p224_p6 = scmp.lt.s32.totalorder %s870_s21, 1023  ;;  %v1106_v4 = vld [vmem:[#allocation2 + $0x50] sm:$0xff]  }
  0x46   : > { %928 = vmatpush3.bf16.msra.mxu0 %v1103_v1  ;;  %1047 = vmatpush3.bf16.msra.mxu1 %v1103_v1  ;;  %v1107_v5 = vld [vmem:[#allocation2 + $0x10] sm:$0xff]   ;;  %v1108_v6 = vld [vmem:[#allocation2 + $0x58] sm:$0xff]   ;;  %v1110_v8 = vld [vmem:[#allocation2 + $0x60] sm:$0xff]  }
  0x47   : > { %929 = vmatprep.subr.bf16.mxu0 %v1104_v2  ;;  %1040 = vmatprep.subr.bf16.mxu1 %v1104_v2  ;;  %s1517_s21 = smov (!%p224_p6, %s870_s21), 1023  ;;  %v1109_v7 = vld [vmem:[#allocation2 + $0x18] sm:$0xff]   ;;  %v1111_v9 = vld [vmem:[#allocation2 + $0x20] sm:$0xff]   ;;  %v1112_v10 = vld [vmem:[#allocation2 + $0x68] sm:$0xff]  }
  0x48   : > { %s926_s12 = sshll.u32 %s1517_s21, 3  ;;  %v1113_v13 = vld [vmem:[#allocation2 + $0x28] sm:$0xff]   ;;  %v1114_v14 = vld [vmem:[#allocation2 + $0x70] sm:$0xff]   ;;  %v1116_v16 = vld [vmem:[#allocation2 + $0x78] sm:$0xff]  }
  0x49   : > { %s1384_s23 = scalar_lea.vmem %s1500_s0, %s926_s12  ;;  %v1115_v15 = vld [vmem:[#allocation2 + $0x30] sm:$0xff]   ;;  %v1117_v17 = vld [vmem:[#allocation2 + $0x38] sm:$0xff]   ;;  %v1418_v50 = vld [vmem:[#allocation4] ss:$0 sm:$0xff]  ;;  %s1425_s30 = scalar_lea.vmem %s1503_s3, %s926_s12 }
  0x4a   : > { %930 = vmatpush3.bf16.msra.mxu0 %v1105_v3  ;;  %1048 = vmatpush3.bf16.msra.mxu1 %v1105_v3  ;;  %v1120_v11 = vld [vmem:[%s1384_s23 + $0x4] ss:$8 sps:$4 sm:$0xff]   ;;  %v1118_v18 = vld [vmem:[%s1384_s23] ss:$8 sps:$4 sm:$0xff]   ;;  %v1124_v20 = vld [vmem:[%s1384_s23 + $0x14] ss:$8 sps:$4 sm:$0xff]  }
  0x4b   : > { %931 = vmatprep.subr.bf16.mxu0 %v1106_v4  ;;  %1041 = vmatprep.subr.bf16.mxu1 %v1106_v4  ;;  %v1123_v12 = vld [vmem:[%s1384_s23 + $0x84] ss:$8 sps:$4 sm:$0xff]   ;;  %v1121_v19 = vld [vmem:[%s1384_s23 + $0x80] ss:$8 sps:$4 sm:$0xff]   ;;  %v1126_v21 = vld [vmem:[%s1384_s23 + $0x94] ss:$8 sps:$4 sm:$0xff]  }
  0x4c   : > { %599 = vmatprep.mubr.bf16.mxu0 %v1120_v11  ;;  %663 = vmatprep.mubr.bf16.mxu1 %v1123_v12  ;;  %v1128_v22 = vld [vmem:[%s1384_s23 + $0x10] ss:$8 sps:$4 sm:$0xff]   ;;  %v1130_v24 = vld [vmem:[%s1384_s23 + $0x24] ss:$8 sps:$4 sm:$0xff]   ;;  %v1134_v26 = vld [vmem:[%s1384_s23 + $0x20] ss:$8 sps:$4 sm:$0xff]  }
  0x4d   : > { %v1129_v23 = vld [vmem:[%s1384_s23 + $0x90] ss:$8 sps:$4 sm:$0xff]   ;;  %v1132_v25 = vld [vmem:[%s1384_s23 + $0xa4] ss:$8 sps:$4 sm:$0xff]   ;;  %v1135_v27 = vld [vmem:[%s1384_s23 + $0xa0] ss:$8 sps:$4 sm:$0xff]  }
  0x4e   : > { %932 = vmatpush3.bf16.msra.mxu0 %v1107_v5  ;;  %1049 = vmatpush3.bf16.msra.mxu1 %v1107_v5  ;;  %v1136_v28 = vld [vmem:[%s1384_s23 + $0x34] ss:$8 sps:$4 sm:$0xff]   ;;  %v1140_v30 = vld [vmem:[%s1384_s23 + $0x30] ss:$8 sps:$4 sm:$0xff]   ;;  %v1142_v32 = vld [vmem:[%s1384_s23 + $0x44] ss:$8 sps:$4 sm:$0xff]  }
  0x4f   : > { %933 = vmatprep.subr.bf16.mxu0 %v1108_v6  ;;  %1042 = vmatprep.subr.bf16.mxu1 %v1108_v6  ;;  %v1138_v29 = vld [vmem:[%s1384_s23 + $0xb4] ss:$8 sps:$4 sm:$0xff]   ;;  %v1141_v31 = vld [vmem:[%s1384_s23 + $0xb0] ss:$8 sps:$4 sm:$0xff]   ;;  %v1144_v33 = vld [vmem:[%s1384_s23 + $0xc4] ss:$8 sps:$4 sm:$0xff]  }
  0x50   : > { %v1146_v34 = vld [vmem:[%s1384_s23 + $0x40] ss:$8 sps:$4 sm:$0xff]   ;;  %v1148_v36 = vld [vmem:[%s1384_s23 + $0x54] ss:$8 sps:$4 sm:$0xff]   ;;  %v1152_v38 = vld [vmem:[%s1384_s23 + $0x50] ss:$8 sps:$4 sm:$0xff]  }
  0x51   : > { %v1147_v35 = vld [vmem:[%s1384_s23 + $0xc0] ss:$8 sps:$4 sm:$0xff]   ;;  %v1150_v37 = vld [vmem:[%s1384_s23 + $0xd4] ss:$8 sps:$4 sm:$0xff]   ;;  %v1153_v39 = vld [vmem:[%s1384_s23 + $0xd0] ss:$8 sps:$4 sm:$0xff]  }
  0x52   : > { %934 = vmatpush3.bf16.msra.mxu0 %v1109_v7  ;;  %1050 = vmatpush3.bf16.msra.mxu1 %v1109_v7  ;;  %v1154_v40 = vld [vmem:[%s1384_s23 + $0x64] ss:$8 sps:$4 sm:$0xff]   ;;  %v1158_v42 = vld [vmem:[%s1384_s23 + $0x60] ss:$8 sps:$4 sm:$0xff]   ;;  %v1160_v44 = vld [vmem:[%s1384_s23 + $0x74] ss:$8 sps:$4 sm:$0xff]  }
  0x53   : > { %935 = vmatprep.subr.bf16.mxu0 %v1110_v8  ;;  %1043 = vmatprep.subr.bf16.mxu1 %v1110_v8  ;;  %v1156_v41 = vld [vmem:[%s1384_s23 + $0xe4] ss:$8 sps:$4 sm:$0xff]   ;;  %v1159_v43 = vld [vmem:[%s1384_s23 + $0xe0] ss:$8 sps:$4 sm:$0xff]   ;;  %v1162_v45 = vld [vmem:[%s1384_s23 + $0xf4] ss:$8 sps:$4 sm:$0xff]  }
  0x54   : > { %v1164_v46 = vld [vmem:[%s1384_s23 + $0x70] ss:$8 sps:$4 sm:$0xff]  }
  0x55   : > { %v1165_v47 = vld [vmem:[%s1384_s23 + $0xf0] ss:$8 sps:$4 sm:$0xff]  }
  0x56   : > { %936 = vmatpush3.bf16.msra.mxu0 %v1111_v9  ;;  %1051 = vmatpush3.bf16.msra.mxu1 %v1111_v9 }
  0x57   : > { %937 = vmatprep.subr.bf16.mxu0 %v1112_v10  ;;  %1044 = vmatprep.subr.bf16.mxu1 %v1112_v10 }
  0x5a   : > { %938 = vmatpush3.bf16.msra.mxu0 %v1113_v13  ;;  %1052 = vmatpush3.bf16.msra.mxu1 %v1113_v13 }
  0x5b   : > { %939 = vmatprep.subr.bf16.mxu0 %v1114_v14  ;;  %1045 = vmatprep.subr.bf16.mxu1 %v1114_v14 }
  0x5e   : > { %940 = vmatpush3.bf16.msra.mxu0 %v1115_v15  ;;  %1053 = vmatpush3.bf16.msra.mxu1 %v1115_v15 }
  0x5f   : > { %941 = vmatprep.subr.bf16.mxu0 %v1116_v16  ;;  %1046 = vmatprep.subr.bf16.mxu1 %v1116_v16 }
  0x62   : > { %942 = vmatpush3.bf16.msra.mxu0 %v1117_v17  ;;  %1054 = vmatpush3.bf16.msra.mxu1 %v1117_v17 }
  0x65   : > { %600 = vmatmul.mubr.bf16.vlgmr.msra.gmra.mrb[0].mxu0 %v1118_v18  ;;  %664 = vmatmul.mubr.bf16.vlgmr.msra.gmra.mrb[0].mxu1 %v1121_v19 }
  0x66   : > { %607 = vmatprep.mubr.bf16.mxu0 %v1124_v20  ;;  %671 = vmatprep.mubr.bf16.mxu1 %v1126_v21 }
  0x6d   : > { %608 = vmatmul.mubr.bf16.gmra.mrb[4].mxu0 %v1128_v22  ;;  %672 = vmatmul.mubr.bf16.gmra.mrb[4].mxu1 %v1129_v23 }
  0x6e   : > { %615 = vmatprep.mubr.bf16.mxu0 %v1130_v24  ;;  %679 = vmatprep.mubr.bf16.mxu1 %v1132_v25 }
  0x75   : > { %616 = vmatmul.mubr.bf16.gmra.mrb[8].mxu0 %v1134_v26  ;;  %680 = vmatmul.mubr.bf16.gmra.mrb[8].mxu1 %v1135_v27 }
  0x76   : > { %623 = vmatprep.mubr.bf16.mxu0 %v1136_v28  ;;  %687 = vmatprep.mubr.bf16.mxu1 %v1138_v29 }
  0x7d   : > { %624 = vmatmul.mubr.bf16.gmra.mrb[12].mxu0 %v1140_v30  ;;  %688 = vmatmul.mubr.bf16.gmra.mrb[12].mxu1 %v1141_v31 }
  0x7e   : > { %631 = vmatprep.mubr.bf16.mxu0 %v1142_v32  ;;  %695 = vmatprep.mubr.bf16.mxu1 %v1144_v33 }
  0x85   : > { %632 = vmatmul.mubr.bf16.gmra.mrb[16].mxu0 %v1146_v34  ;;  %696 = vmatmul.mubr.bf16.gmra.mrb[16].mxu1 %v1147_v35 }
  0x86   : > { %639 = vmatprep.mubr.bf16.mxu0 %v1148_v36  ;;  %703 = vmatprep.mubr.bf16.mxu1 %v1150_v37 }
  0x8d   : > { %640 = vmatmul.mubr.bf16.gmra.mrb[20].mxu0 %v1152_v38  ;;  %704 = vmatmul.mubr.bf16.gmra.mrb[20].mxu1 %v1153_v39 }
  0x8e   : > { %647 = vmatprep.mubr.bf16.mxu0 %v1154_v40  ;;  %711 = vmatprep.mubr.bf16.mxu1 %v1156_v41 }
  0x95   : > { %648 = vmatmul.mubr.bf16.gmra.mrb[24].mxu0 %v1158_v42  ;;  %712 = vmatmul.mubr.bf16.gmra.mrb[24].mxu1 %v1159_v43 }
  0x96   : > { %655 = vmatprep.mubr.bf16.mxu0 %v1160_v44  ;;  %719 = vmatprep.mubr.bf16.mxu1 %v1162_v45 }
  0x9d   : > { %656 = vmatmul.mubr.bf16.gmra.mrb[28].mxu0 %v1164_v46  ;;  %720 = vmatmul.mubr.bf16.gmra.mrb[28].mxu1 %v1165_v47 }
 0x138   : > { %v943_v48 = vpop.f32.mrb[0].mxu0  ;;  %v991_v49 = vpop.f32.mrb[0].mxu1 }
 0x139   : > { %v944_v51 = vpop.f32.mrb[1].mxu0  ;;  %v992_v52 = vpop.f32.mrb[1].mxu1 }
 0x13a   : > { %v945_v53 = vadd.f32 %v944_v51, %v943_v48  ;;  %v993_v54 = vadd.f32 %v992_v52, %v991_v49  ;;  %v946_v55 = vpop.f32.mrb[2].mxu0  ;;  %v994_v56 = vpop.f32.mrb[2].mxu1 }
 0x13b   : > { %v947_v57 = vpop.f32.mrb[3].mxu0  ;;  %v995_v58 = vpop.f32.mrb[3].mxu1 }
 0x13c   : > { %v602_v59 = vadd.f32 %v945_v53, %v1418_v50  ;;  %v666_v60 = vadd.f32 %v993_v54, %v1418_v50  ;;  %v948_v61 = vadd.f32 %v947_v57, %v946_v55  ;;  %v996_v62 = vadd.f32 %v995_v58, %v994_v56 }
 0x13e   : > { %728 = vst [vmem:[%s1425_s30] sm:$0xff] %v602_v59  ;;  %744 = vst [vmem:[%s1425_s30 + $0x80] sm:$0xff] %v666_v60  ;;  %v605_v63 = vadd.f32 %v948_v61, %v1418_v50  ;;  %v669_v0 = vadd.f32 %v996_v62, %v1418_v50 }
 0x140   : > { %729 = vst [vmem:[%s1425_s30 + $0x8] sm:$0xff] %v605_v63  ;;  %745 = vst [vmem:[%s1425_s30 + $0x88] sm:$0xff] %v669_v0  ;;  %v949_v1 = vpop.f32.mrb[4].mxu0  ;;  %v997_v2 = vpop.f32.mrb[4].mxu1 }
 0x141   : > { %v950_v3 = vpop.f32.mrb[5].mxu0  ;;  %v998_v4 = vpop.f32.mrb[5].mxu1 }
 0x142   : > { %v951_v5 = vadd.f32 %v950_v3, %v949_v1  ;;  %v999_v6 = vadd.f32 %v998_v4, %v997_v2  ;;  %v952_v7 = vpop.f32.mrb[6].mxu0  ;;  %v1000_v8 = vpop.f32.mrb[6].mxu1 }
 0x143   : > { %v953_v9 = vpop.f32.mrb[7].mxu0  ;;  %v1001_v10 = vpop.f32.mrb[7].mxu1 }
 0x144   : > { %v610_v11 = vadd.f32 %v951_v5, %v1418_v50  ;;  %v674_v12 = vadd.f32 %v999_v6, %v1418_v50  ;;  %v954_v13 = vadd.f32 %v953_v9, %v952_v7  ;;  %v1002_v14 = vadd.f32 %v1001_v10, %v1000_v8 }
 0x146   : > { %730 = vst [vmem:[%s1425_s30 + $0x10] sm:$0xff] %v610_v11  ;;  %746 = vst [vmem:[%s1425_s30 + $0x90] sm:$0xff] %v674_v12  ;;  %v613_v15 = vadd.f32 %v954_v13, %v1418_v50  ;;  %v677_v16 = vadd.f32 %v1002_v14, %v1418_v50 }
 0x148   : > { %731 = vst [vmem:[%s1425_s30 + $0x18] sm:$0xff] %v613_v15  ;;  %747 = vst [vmem:[%s1425_s30 + $0x98] sm:$0xff] %v677_v16  ;;  %v955_v17 = vpop.f32.mrb[8].mxu0  ;;  %v1003_v18 = vpop.f32.mrb[8].mxu1 }
 0x149   : > { %v956_v19 = vpop.f32.mrb[9].mxu0  ;;  %v1004_v20 = vpop.f32.mrb[9].mxu1 }
 0x14a   : > { %v957_v21 = vadd.f32 %v956_v19, %v955_v17  ;;  %v1005_v22 = vadd.f32 %v1004_v20, %v1003_v18  ;;  %v958_v23 = vpop.f32.mrb[10].mxu0  ;;  %v1006_v24 = vpop.f32.mrb[10].mxu1 }
 0x14b   : > { %v959_v25 = vpop.f32.mrb[11].mxu0  ;;  %v1007_v26 = vpop.f32.mrb[11].mxu1 }
 0x14c   : > { %v618_v27 = vadd.f32 %v957_v21, %v1418_v50  ;;  %v682_v28 = vadd.f32 %v1005_v22, %v1418_v50  ;;  %v960_v29 = vadd.f32 %v959_v25, %v958_v23  ;;  %v1008_v30 = vadd.f32 %v1007_v26, %v1006_v24 }
 0x14e   : > { %732 = vst [vmem:[%s1425_s30 + $0x20] sm:$0xff] %v618_v27  ;;  %748 = vst [vmem:[%s1425_s30 + $0xa0] sm:$0xff] %v682_v28  ;;  %v621_v31 = vadd.f32 %v960_v29, %v1418_v50  ;;  %v685_v32 = vadd.f32 %v1008_v30, %v1418_v50 }
 0x150   : > { %733 = vst [vmem:[%s1425_s30 + $0x28] sm:$0xff] %v621_v31  ;;  %749 = vst [vmem:[%s1425_s30 + $0xa8] sm:$0xff] %v685_v32  ;;  %v961_v33 = vpop.f32.mrb[12].mxu0  ;;  %v1009_v34 = vpop.f32.mrb[12].mxu1 }
 0x151   : > { %v962_v35 = vpop.f32.mrb[13].mxu0  ;;  %v1010_v36 = vpop.f32.mrb[13].mxu1 }
 0x152   : > { %v963_v37 = vadd.f32 %v962_v35, %v961_v33  ;;  %v1011_v38 = vadd.f32 %v1010_v36, %v1009_v34  ;;  %v964_v39 = vpop.f32.mrb[14].mxu0  ;;  %v1012_v40 = vpop.f32.mrb[14].mxu1 }
 0x153   : > { %v965_v41 = vpop.f32.mrb[15].mxu0  ;;  %v1013_v42 = vpop.f32.mrb[15].mxu1 }
 0x154   : > { %v626_v43 = vadd.f32 %v963_v37, %v1418_v50  ;;  %v690_v44 = vadd.f32 %v1011_v38, %v1418_v50  ;;  %v966_v45 = vadd.f32 %v965_v41, %v964_v39  ;;  %v1014_v46 = vadd.f32 %v1013_v42, %v1012_v40 }
 0x156   : > { %734 = vst [vmem:[%s1425_s30 + $0x30] sm:$0xff] %v626_v43  ;;  %750 = vst [vmem:[%s1425_s30 + $0xb0] sm:$0xff] %v690_v44  ;;  %v629_v47 = vadd.f32 %v966_v45, %v1418_v50  ;;  %v693_v48 = vadd.f32 %v1014_v46, %v1418_v50 }
 0x158   : > { %735 = vst [vmem:[%s1425_s30 + $0x38] sm:$0xff] %v629_v47  ;;  %751 = vst [vmem:[%s1425_s30 + $0xb8] sm:$0xff] %v693_v48  ;;  %v967_v49 = vpop.f32.mrb[16].mxu0  ;;  %v1015_v51 = vpop.f32.mrb[16].mxu1 }
 0x159   : > { %v968_v52 = vpop.f32.mrb[17].mxu0  ;;  %v1016_v53 = vpop.f32.mrb[17].mxu1 }
 0x15a   : > { %v969_v54 = vadd.f32 %v968_v52, %v967_v49  ;;  %v1017_v55 = vadd.f32 %v1016_v53, %v1015_v51  ;;  %v970_v56 = vpop.f32.mrb[18].mxu0  ;;  %v1018_v57 = vpop.f32.mrb[18].mxu1 }
 0x15b   : > { %v971_v58 = vpop.f32.mrb[19].mxu0  ;;  %v1019_v59 = vpop.f32.mrb[19].mxu1 }
 0x15c   : > { %v634_v60 = vadd.f32 %v969_v54, %v1418_v50  ;;  %v698_v61 = vadd.f32 %v1017_v55, %v1418_v50  ;;  %v972_v62 = vadd.f32 %v971_v58, %v970_v56  ;;  %v1020_v63 = vadd.f32 %v1019_v59, %v1018_v57 }
 0x15e   : > { %736 = vst [vmem:[%s1425_s30 + $0x40] sm:$0xff] %v634_v60  ;;  %752 = vst [vmem:[%s1425_s30 + $0xc0] sm:$0xff] %v698_v61  ;;  %v637_v0 = vadd.f32 %v972_v62, %v1418_v50  ;;  %v701_v1 = vadd.f32 %v1020_v63, %v1418_v50 }
 0x160   : > { %737 = vst [vmem:[%s1425_s30 + $0x48] sm:$0xff] %v637_v0  ;;  %753 = vst [vmem:[%s1425_s30 + $0xc8] sm:$0xff] %v701_v1  ;;  %v973_v2 = vpop.f32.mrb[20].mxu0  ;;  %v1021_v3 = vpop.f32.mrb[20].mxu1 }
 0x161   : > { %v974_v4 = vpop.f32.mrb[21].mxu0  ;;  %v1022_v5 = vpop.f32.mrb[21].mxu1 }
 0x162   : > { %v975_v6 = vadd.f32 %v974_v4, %v973_v2  ;;  %v1023_v7 = vadd.f32 %v1022_v5, %v1021_v3  ;;  %v976_v8 = vpop.f32.mrb[22].mxu0  ;;  %v1024_v9 = vpop.f32.mrb[22].mxu1 }
 0x163   : > { %v977_v10 = vpop.f32.mrb[23].mxu0  ;;  %v1025_v11 = vpop.f32.mrb[23].mxu1 }
 0x164   : > { %v642_v12 = vadd.f32 %v975_v6, %v1418_v50  ;;  %v706_v13 = vadd.f32 %v1023_v7, %v1418_v50  ;;  %v978_v14 = vadd.f32 %v977_v10, %v976_v8  ;;  %v1026_v15 = vadd.f32 %v1025_v11, %v1024_v9 }
 0x166   : > { %738 = vst [vmem:[%s1425_s30 + $0x50] sm:$0xff] %v642_v12  ;;  %754 = vst [vmem:[%s1425_s30 + $0xd0] sm:$0xff] %v706_v13  ;;  %v645_v16 = vadd.f32 %v978_v14, %v1418_v50  ;;  %v709_v17 = vadd.f32 %v1026_v15, %v1418_v50 }
 0x168   : > { %739 = vst [vmem:[%s1425_s30 + $0x58] sm:$0xff] %v645_v16  ;;  %755 = vst [vmem:[%s1425_s30 + $0xd8] sm:$0xff] %v709_v17  ;;  %v979_v18 = vpop.f32.mrb[24].mxu0  ;;  %v1027_v19 = vpop.f32.mrb[24].mxu1 }
 0x169   : > { %v980_v20 = vpop.f32.mrb[25].mxu0  ;;  %v1028_v21 = vpop.f32.mrb[25].mxu1 }
 0x16a   : > { %v981_v22 = vadd.f32 %v980_v20, %v979_v18  ;;  %v1029_v23 = vadd.f32 %v1028_v21, %v1027_v19  ;;  %v982_v24 = vpop.f32.mrb[26].mxu0  ;;  %v1030_v25 = vpop.f32.mrb[26].mxu1 }
 0x16b   : > { %v983_v26 = vpop.f32.mrb[27].mxu0  ;;  %v1031_v27 = vpop.f32.mrb[27].mxu1 }
 0x16c   : > { %v650_v28 = vadd.f32 %v981_v22, %v1418_v50  ;;  %v714_v29 = vadd.f32 %v1029_v23, %v1418_v50  ;;  %v984_v30 = vadd.f32 %v983_v26, %v982_v24  ;;  %v1032_v31 = vadd.f32 %v1031_v27, %v1030_v25 }
 0x16e   : > { %740 = vst [vmem:[%s1425_s30 + $0x60] sm:$0xff] %v650_v28  ;;  %756 = vst [vmem:[%s1425_s30 + $0xe0] sm:$0xff] %v714_v29  ;;  %v653_v32 = vadd.f32 %v984_v30, %v1418_v50  ;;  %v717_v33 = vadd.f32 %v1032_v31, %v1418_v50 }
 0x170   : > { %741 = vst [vmem:[%s1425_s30 + $0x68] sm:$0xff] %v653_v32  ;;  %757 = vst [vmem:[%s1425_s30 + $0xe8] sm:$0xff] %v717_v33  ;;  %v985_v34 = vpop.f32.mrb[28].mxu0  ;;  %v1033_v35 = vpop.f32.mrb[28].mxu1 }
 0x171   : > { %v986_v36 = vpop.f32.mrb[29].mxu0  ;;  %v1034_v37 = vpop.f32.mrb[29].mxu1 }
 0x172   : > { %v987_v38 = vadd.f32 %v986_v36, %v985_v34  ;;  %v1035_v39 = vadd.f32 %v1034_v37, %v1033_v35  ;;  %v988_v40 = vpop.f32.mrb[30].mxu0  ;;  %v1036_v41 = vpop.f32.mrb[30].mxu1 }
 0x173   : > { %v989_v42 = vpop.f32.mrb[31].mxu0  ;;  %v1037_v43 = vpop.f32.mrb[31].mxu1 }
 0x174   : > { %v658_v44 = vadd.f32 %v987_v38, %v1418_v50  ;;  %v722_v45 = vadd.f32 %v1035_v39, %v1418_v50  ;;  %v990_v46 = vadd.f32 %v989_v42, %v988_v40  ;;  %v1038_v47 = vadd.f32 %v1037_v43, %v1036_v41 }
 0x176   : > { %742 = vst [vmem:[%s1425_s30 + $0x70] sm:$0xff] %v658_v44  ;;  %758 = vst [vmem:[%s1425_s30 + $0xf0] sm:$0xff] %v722_v45  ;;  %v661_v48 = vadd.f32 %v990_v46, %v1418_v50  ;;  %v725_v49 = vadd.f32 %v1038_v47, %v1418_v50 }
 0x178   : > { %743 = vst [vmem:[%s1425_s30 + $0x78] sm:$0xff] %v661_v48  ;;  %759 = vst [vmem:[%s1425_s30 + $0xf8] sm:$0xff] %v725_v49 }
 0x179 PF: > { %s15_s14 = sadd.s32 1, %s1252_s14   ;;  %s1512_s12 = smov %s1248_s13 }
 0x17a   : > { %p12_p3 = scmp.ge.s32.totalorder %s15_s14, 34   ;;  %s1513_s13 = smov %s1515_s16 }
 0x17c   :  { %14 = sbr.rel (!%p12_p3) target bundleno = 3 (0x3), region = 73 }
 0x183   :  { %788 = vsyncpa [#allocation3], 1 }
 0x184   :  { %790 = vsyncpa [#allocation3 + $0x1], 1 }
 0x185   :  { %791 = vsyncpa [#allocation5], 1 }

// kernel: _lambda_.22
= control target key start
LH: loop header
LB: loop body
LE: loop exit
PB: predicated region body
PF: predicated region fallthrough
CT: control target
= control target key end

     0   :  { %s754_s12 = smov 0   ;;  %s756_s13 = smov 0   ;;  %s846_s0 = inlined_call_operand.vmem [shape: bf16[512,128], index: 0, kind: input, shape index: {}]   ;;  %s847_s1 = inlined_call_operand.vmem [shape: bf16[128,128], index: 1, kind: input, shape index: {}]   ;;  %s848_s2 = inlined_call_operand.vmem [shape: f32[1,128], index: 2, kind: input, shape index: {}]   ;;  %s849_s3 = inlined_call_operand.vmem [shape: f32[512,128], index: 3, kind: output, shape index: {}]  }
   0x1   :  { %s758_s14 = smov 0  }
   0x2 LB: > { %s25_s15 = sadd.s32 1, %s728_s13  ;;  %p582_p0 = scmp.ge.s32.totalorder %s732_s14, 1  ;;  %s732_s14 = sphi %s758_s14, %s13_s14   ;;  %s728_s13 = sphi %s756_s13, %s851_s13   ;;  %s724_s12 = sphi %s754_s12, %s850_s12  }
   0x3   : > { %p27_p1 = scmp.ge.s32.totalorder %s25_s15, 4  ;;  %p169_p2 = scmp.lt.s32.totalorder %s732_s14, 5 }
   0x5   : > { %s853_s15 = smov (%p27_p1, %s25_s15), 0  ;;  %p170_p3 = pnand %p582_p0, %p169_p2 }
   0x6   : > { %v694_v0 = vld [vmem:[%s847_s1] sm:$0xff] (!%p170_p3)   ;;  %s583_s18 = sshll.u32 (!%p170_p3), %s724_s12, 4  ;;  %v695_v1 = vld [vmem:[%s847_s1 + $0x8] sm:$0xff] (!%p170_p3)   ;;  %v696_v2 = vld [vmem:[%s847_s1 + $0x10] sm:$0xff] (!%p170_p3)  }
   0x7   : > { %173 = sbr.rel (%p170_p3) target bundleno = 265 (0x109), region = 32  ;;  %p204_p4 = scmp.lt.s32.totalorder (!%p170_p3), %s583_s18, 63  ;;  %622 = vmatprep.subr.bf16.mxu0 (!%p170_p3), %v694_v0  ;;  %654 = vmatprep.subr.bf16.mxu1 (!%p170_p3), %v694_v0  ;;  %v697_v3 = vld [vmem:[%s847_s1 + $0x18] sm:$0xff] (!%p170_p3)   ;;  %v698_v6 = vld [vmem:[%s847_s1 + $0x20] sm:$0xff] (!%p170_p3)   ;;  %v699_v7 = vld [vmem:[%s847_s1 + $0x28] sm:$0xff] (!%p170_p3)  }
   0x8   : > { %623 = vmatpush3.bf16.msra.mxu0 (!%p170_p3), %v694_v0  ;;  %662 = vmatpush3.bf16.msra.mxu1 (!%p170_p3), %v694_v0  ;;  %v700_v8 = vld [vmem:[%s847_s1 + $0x30] sm:$0xff] (!%p170_p3)   ;;  %v701_v9 = vld [vmem:[%s847_s1 + $0x38] sm:$0xff] (!%p170_p3)   ;;  %v587_v16 = vld [vmem:[%s848_s2] ss:$0 sm:$0xff] (!%p170_p3) }
   0x9   : > { %624 = vmatprep.subr.bf16.mxu0 (!%p170_p3), %v695_v1  ;;  %655 = vmatprep.subr.bf16.mxu1 (!%p170_p3), %v695_v1 }
   0xc   : > { %625 = vmatpush3.bf16.msra.mxu0 (!%p170_p3), %v695_v1  ;;  %663 = vmatpush3.bf16.msra.mxu1 (!%p170_p3), %v695_v1 }
   0xd   : > { %626 = vmatprep.subr.bf16.mxu0 (!%p170_p3), %v696_v2  ;;  %656 = vmatprep.subr.bf16.mxu1 (!%p170_p3), %v696_v2 }
   0xe   : > { %s855_s18 = smov (!%p204_p4, %s583_s18), 63 }
   0xf   : > { %s584_s23 = sshll.u32 %s855_s18, 2  ;;  %s586_s10 = sshll.u32 %s855_s18, 3 }
  0x10   : > { %s787_s26 = scalar_lea.vmem %s846_s0, %s584_s23  ;;  %627 = vmatpush3.bf16.msra.mxu0 %v696_v2  ;;  %664 = vmatpush3.bf16.msra.mxu1 %v696_v2  ;;  %s819_s19 = scalar_lea.vmem %s849_s3, %s586_s10 }
  0x11   : > { %v702_v4 = vld [vmem:[%s787_s26] sm:$0xff]   ;;  %628 = vmatprep.subr.bf16.mxu0 %v697_v3  ;;  %657 = vmatprep.subr.bf16.mxu1 %v697_v3  ;;  %v704_v10 = vld [vmem:[%s787_s26 + $0x8] sm:$0xff]   ;;  %v706_v12 = vld [vmem:[%s787_s26 + $0x10] sm:$0xff]  }
  0x12   : > { %v703_v5 = vld [vmem:[%s787_s26 + $0x20] sm:$0xff]   ;;  %638 = vmatprep.mubr.bf16.mxu0 %v702_v4  ;;  %v705_v11 = vld [vmem:[%s787_s26 + $0x28] sm:$0xff]   ;;  %v707_v13 = vld [vmem:[%s787_s26 + $0x30] sm:$0xff]  }
  0x13   : > { %646 = vmatprep.mubr.bf16.mxu1 %v703_v5  ;;  %v708_v14 = vld [vmem:[%s787_s26 + $0x18] sm:$0xff]  }
  0x14   : > { %629 = vmatpush3.bf16.msra.mxu0 %v697_v3  ;;  %665 = vmatpush3.bf16.msra.mxu1 %v697_v3  ;;  %v709_v15 = vld [vmem:[%s787_s26 + $0x38] sm:$0xff]  }
  0x15   : > { %630 = vmatprep.subr.bf16.mxu0 %v698_v6  ;;  %658 = vmatprep.subr.bf16.mxu1 %v698_v6 }
  0x18   : > { %631 = vmatpush3.bf16.msra.mxu0 %v698_v6  ;;  %666 = vmatpush3.bf16.msra.mxu1 %v698_v6 }
  0x19   : > { %632 = vmatprep.subr.bf16.mxu0 %v699_v7  ;;  %659 = vmatprep.subr.bf16.mxu1 %v699_v7 }
  0x1c   : > { %633 = vmatpush3.bf16.msra.mxu0 %v699_v7  ;;  %667 = vmatpush3.bf16.msra.mxu1 %v699_v7 }
  0x1d   : > { %634 = vmatprep.subr.bf16.mxu0 %v700_v8  ;;  %660 = vmatprep.subr.bf16.mxu1 %v700_v8 }
  0x20   : > { %635 = vmatpush3.bf16.msra.mxu0 %v700_v8  ;;  %668 = vmatpush3.bf16.msra.mxu1 %v700_v8 }
  0x21   : > { %636 = vmatprep.subr.bf16.mxu0 %v701_v9  ;;  %661 = vmatprep.subr.bf16.mxu1 %v701_v9 }
  0x24   : > { %637 = vmatpush3.bf16.msra.mxu0 %v701_v9  ;;  %669 = vmatpush3.bf16.msra.mxu1 %v701_v9 }
  0x27   : > { %639 = vmatmul.mubr.bf16.vlgmr.msra.gmra.mrb[0].mxu0 %v704_v10  ;;  %647 = vmatmul.mubr.bf16.vlgmr.msra.gmra.mrb[0].mxu1 %v705_v11 }
  0x28   : > { %642 = vmatprep.mubr.bf16.mxu0 %v706_v12  ;;  %650 = vmatprep.mubr.bf16.mxu1 %v707_v13 }
  0x2f   : > { %643 = vmatmul.mubr.bf16.gmra.mrb[4].mxu0 %v708_v14  ;;  %651 = vmatmul.mubr.bf16.gmra.mrb[4].mxu1 %v709_v15 }
  0xfa   : > { %v640_v17 = vpop.f32.mrb[0].mxu0  ;;  %v648_v18 = vpop.f32.mrb[0].mxu1 }
  0xfb   : > { %v404_v19 = vadd.f32 %v640_v17, %v587_v16  ;;  %v436_v20 = vadd.f32 %v648_v18, %v587_v16  ;;  %v395_v21 = vpop.f32.mrb[1].mxu0  ;;  %v427_v22 = vpop.f32.mrb[1].mxu1 }
  0xfc   : > { %v396_v23 = vadd.f32 %v587_v16, %v395_v21  ;;  %v428_v24 = vadd.f32 %v587_v16, %v427_v22  ;;  %v641_v25 = vpop.f32.mrb[2].mxu0  ;;  %v649_v26 = vpop.f32.mrb[2].mxu1 }
  0xfd   : > { %460 = vst [vmem:[%s819_s19 + $0x10] sm:$0xff] %v404_v19  ;;  %468 = vst [vmem:[%s819_s19 + $0x50] sm:$0xff] %v436_v20  ;;  %v407_v27 = vadd.f32 %v641_v25, %v587_v16  ;;  %v439_v28 = vadd.f32 %v649_v26, %v587_v16  ;;  %v398_v29 = vpop.f32.mrb[3].mxu0  ;;  %v430_v30 = vpop.f32.mrb[3].mxu1 }
  0xfe   : > { %458 = vst [vmem:[%s819_s19] sm:$0xff] %v396_v23  ;;  %466 = vst [vmem:[%s819_s19 + $0x40] sm:$0xff] %v428_v24  ;;  %v399_v31 = vadd.f32 %v587_v16, %v398_v29  ;;  %v431_v32 = vadd.f32 %v587_v16, %v430_v30 }
  0xff   : > { %461 = vst [vmem:[%s819_s19 + $0x18] sm:$0xff] %v407_v27  ;;  %469 = vst [vmem:[%s819_s19 + $0x58] sm:$0xff] %v439_v28 }
 0x100   : > { %459 = vst [vmem:[%s819_s19 + $0x8] sm:$0xff] %v399_v31  ;;  %467 = vst [vmem:[%s819_s19 + $0x48] sm:$0xff] %v431_v32 }
 0x102   : > { %v644_v33 = vpop.f32.mrb[4].mxu0  ;;  %v652_v34 = vpop.f32.mrb[4].mxu1 }
 0x103   : > { %v420_v35 = vadd.f32 %v644_v33, %v587_v16  ;;  %v452_v36 = vadd.f32 %v652_v34, %v587_v16  ;;  %v411_v37 = vpop.f32.mrb[5].mxu0  ;;  %v443_v38 = vpop.f32.mrb[5].mxu1 }
 0x104   : > { %v412_v39 = vadd.f32 %v587_v16, %v411_v37  ;;  %v444_v40 = vadd.f32 %v587_v16, %v443_v38  ;;  %v645_v41 = vpop.f32.mrb[6].mxu0  ;;  %v653_v42 = vpop.f32.mrb[6].mxu1 }
 0x105   : > { %464 = vst [vmem:[%s819_s19 + $0x30] sm:$0xff] %v420_v35  ;;  %472 = vst [vmem:[%s819_s19 + $0x70] sm:$0xff] %v452_v36  ;;  %v423_v43 = vadd.f32 %v645_v41, %v587_v16  ;;  %v455_v44 = vadd.f32 %v653_v42, %v587_v16  ;;  %v414_v45 = vpop.f32.mrb[7].mxu0  ;;  %v446_v46 = vpop.f32.mrb[7].mxu1 }
 0x106   : > { %462 = vst [vmem:[%s819_s19 + $0x20] sm:$0xff] %v412_v39  ;;  %470 = vst [vmem:[%s819_s19 + $0x60] sm:$0xff] %v444_v40  ;;  %v415_v47 = vadd.f32 %v587_v16, %v414_v45  ;;  %v447_v48 = vadd.f32 %v587_v16, %v446_v46 }
 0x107   : > { %465 = vst [vmem:[%s819_s19 + $0x38] sm:$0xff] %v423_v43  ;;  %473 = vst [vmem:[%s819_s19 + $0x78] sm:$0xff] %v455_v44 }
 0x108   : > { %463 = vst [vmem:[%s819_s19 + $0x28] sm:$0xff] %v415_v47  ;;  %471 = vst [vmem:[%s819_s19 + $0x68] sm:$0xff] %v447_v48 }
 0x109 PF: > { %s13_s14 = sadd.s32 1, %s732_s14   ;;  %s850_s12 = smov %s728_s13 }
 0x10a   : > { %p10_p5 = scmp.ge.s32.totalorder %s13_s14, 6   ;;  %s851_s13 = smov %s853_s15 }
 0x10c   :  { %12 = sbr.rel (!%p10_p5) target bundleno = 2 (0x2), region = 68 }

// kernel: _lambda_.23
= control target key start
LH: loop header
LB: loop body
LE: loop exit
PB: predicated region body
PF: predicated region fallthrough
CT: control target
= control target key end

     0   :  { %8 = vsyncpa [#allocation3], 0  ;;  %s1173_s0 = inlined_call_operand.vmem [shape: bf16[256,128], index: 0, kind: input, shape index: {}]   ;;  %s1174_s1 = inlined_call_operand.vmem [shape: bf16[128,256], index: 1, kind: input, shape index: {}]   ;;  %s1175_s2 = inlined_call_operand.vmem [shape: f32[1,256], index: 2, kind: input, shape index: {}]   ;;  %s1176_s3 = inlined_call_operand.hbm [shape: f32[256,256], index: 3, kind: output, shape index: {}]  }
   0x1   :  { %10 = vsyncpa [#allocation3 + $0x1], 0  ;;  %s915_s12 = smov 0   ;;  %s917_s13 = smov 0  }
   0x2   :  { %s919_s14 = smov 0   ;;  %s921_s15 = smov 0  }
   0x3   :  { %s923_s16 = smov 0   ;;  %s925_s17 = smov 0  }
   0x4 LB: > { %s663_s18 = sadd.s32 4294967295, %s889_s17   ;;  %s664_s19 = sadd.s32 4294967294, %s889_s17   ;;  %s889_s17 = sphi %s925_s17, %s16_s17   ;;  %s885_s16 = sphi %s923_s16, %s1183_s16   ;;  %s881_s15 = sphi %s921_s15, %s1182_s15   ;;  %s877_s14 = sphi %s919_s14, %s1181_s14   ;;  %s873_s13 = sphi %s917_s13, %s1180_s13   ;;  %s869_s12 = sphi %s915_s12, %s1179_s12  }
   0x5   : > { %s28_s20 = sadd.s32 1, %s885_s16  ;;  %s115_s21 = sadd.s32 1, %s877_s14 }
   0x6   : > { %p30_p0 = scmp.ge.s32.totalorder %s28_s20, 2  ;;  %p125_p1 = scmp.ne.s32.totalorder %s877_s14, %s873_s13 }
   0x7   : > { %p126_p2 = scmp.eq.s32.totalorder %s663_s18, 1  ;;  %p131_p3 = scmp.ne.s32.totalorder %s873_s13, %s869_s12 }
   0x8   : > { %s1185_s20 = smov (%p30_p0, %s28_s20), 0  ;;  %p132_p5 = scmp.eq.s32.totalorder %s664_s19, 1 }
   0x9   : > { %p955_p4 = por %p126_p2, %p125_p1  ;;  %s110_s23 = ssub.s32 %s885_s16, %s1185_s20 }
   0xa   : > { %p669_p6 = scmp.ge.s32.totalorder %s889_s17, 1  ;;  %p113_p7 = scmp.eq.s32.totalorder %s110_s23, 0 }
   0xb   : > { %p962_p8 = por %p132_p5, %p131_p3  ;;  %p176_p9 = scmp.lt.s32.totalorder %s889_s17, 3 }
   0xc   : > { %s968_s25 = scalar_select %p113_p7, %s877_s14, %s115_s21  }
   0xd   : > { %p177_p10 = pnand %p669_p6, %p176_p9 }
   0xe   : > { %v779_v0 = vld [vmem:[%s1174_s1 + $0x4] ss:$8 sps:$4 sm:$0xff] (!%p177_p10)   ;;  %s671_s28 = sshll.u32 (!%p177_p10), %s881_s15, 4  ;;  %v781_v1 = vld [vmem:[%s1174_s1] ss:$8 sps:$4 sm:$0xff] (!%p177_p10)   ;;  %v891_v2 = vmov (!%p177_p10), 0   ;;  %v263_v25 = vlaneseq (!%p177_p10) }
   0xf   : > { %180 = sbr.rel (%p177_p10) target bundleno = 304 (0x130), region = 32  ;;  %433 = vmatprep.mubr.bf16.mxu0 (!%p177_p10), %v891_v2  ;;  %473 = vmatprep.mubr.bf16.mxu1 (!%p177_p10), %v891_v2  ;;  %p210_p11 = scmp.lt.s32.totalorder (!%p177_p10), %s671_s28, 31  ;;  %v782_v3 = vld [vmem:[%s1174_s1 + $0x14] ss:$8 sps:$4 sm:$0xff] (!%p177_p10)   ;;  %v784_v4 = vld [vmem:[%s1174_s1 + $0x10] ss:$8 sps:$4 sm:$0xff] (!%p177_p10)  }
  0x10   : > { %401 = vmatprep.subr.bf16.mxu0 (!%p177_p10), %v779_v0  ;;  %705 = vmatprep.subr.bf16.mxu1 (!%p177_p10), %v779_v0  ;;  %v785_v5 = vld [vmem:[%s1174_s1 + $0x24] ss:$8 sps:$4 sm:$0xff] (!%p177_p10)   ;;  %v787_v6 = vld [vmem:[%s1174_s1 + $0x20] ss:$8 sps:$4 sm:$0xff] (!%p177_p10)   ;;  %v788_v7 = vld [vmem:[%s1174_s1 + $0x34] ss:$8 sps:$4 sm:$0xff] (!%p177_p10)  }
  0x11   : > { %402 = vmatpush1.bf16.msra.mxu0 (!%p177_p10), %v781_v1  ;;  %713 = vmatpush1.bf16.msra.mxu1 (!%p177_p10), %v781_v1  ;;  %v790_v8 = vld [vmem:[%s1174_s1 + $0x30] ss:$8 sps:$4 sm:$0xff] (!%p177_p10)   ;;  %v791_v9 = vld [vmem:[%s1174_s1 + $0x44] ss:$8 sps:$4 sm:$0xff] (!%p177_p10)   ;;  %v793_v10 = vld [vmem:[%s1174_s1 + $0x40] ss:$8 sps:$4 sm:$0xff] (!%p177_p10)  }
  0x12   : > { %403 = vmatprep.subr.bf16.mxu0 (!%p177_p10), %v782_v3  ;;  %706 = vmatprep.subr.bf16.mxu1 (!%p177_p10), %v782_v3  ;;  %v794_v11 = vld [vmem:[%s1174_s1 + $0x54] ss:$8 sps:$4 sm:$0xff] (!%p177_p10)   ;;  %v796_v12 = vld [vmem:[%s1174_s1 + $0x50] ss:$8 sps:$4 sm:$0xff] (!%p177_p10)   ;;  %v797_v13 = vld [vmem:[%s1174_s1 + $0x64] ss:$8 sps:$4 sm:$0xff] (!%p177_p10)  }
  0x13   : > { %v799_v14 = vld [vmem:[%s1174_s1 + $0x60] ss:$8 sps:$4 sm:$0xff] (!%p177_p10)   ;;  %v800_v15 = vld [vmem:[%s1174_s1 + $0x74] ss:$8 sps:$4 sm:$0xff] (!%p177_p10)   ;;  %v802_v16 = vld [vmem:[%s1174_s1 + $0x70] ss:$8 sps:$4 sm:$0xff] (!%p177_p10)  }
  0x14   : > { %v264_v26 = vshrl.u32 (!%p177_p10), %v263_v25, 7  ;;  %s206_s30 = sand.u32 (!%p177_p10), 1, %s873_s13   ;;  %v261_v28 = vld [vmem:[%s1175_s2] sm:$0x3] (!%p177_p10)  ;;  %s704_s7 = sshll.u32 (!%p177_p10), %s881_s15, 12 }
  0x15   : > { %404 = vmatpush1.bf16.msra.mxu0 (!%p177_p10), %v784_v4  ;;  %714 = vmatpush1.bf16.msra.mxu1 (!%p177_p10), %v784_v4  ;;  %s670_s6 = sshll.u32 (!%p177_p10), %s206_s30, 8  ;;  %s1127_s11 = scalar_lea.sflag (!%p177_p10), [#allocation3], %s206_s30 }
  0x16   : > { %s1187_s28 = smov (!%p210_p11, %s671_s28), 31  ;;  %405 = vmatprep.subr.bf16.mxu0 %v785_v5  ;;  %707 = vmatprep.subr.bf16.mxu1 %v785_v5  ;;  %v265_v27 = vsub.s32 0, %v264_v26  ;;  %v269_v29 = vsub.s32 1, %v264_v26  ;;  %s892_s19 = smov [#allocation2]  }
  0x17   : > { %s672_s10 = sshll.u32 %s1187_s28, 2  ;;  %s815_s21 = sshll.u32 %s892_s19, 4  ;;  %s816_s21 = int_to_ptr.vmem [resolvable:$false] %s815_s21 }
  0x18   : > { %s997_s27 = scalar_lea.vmem %s1173_s0, %s672_s10  ;;  %v1046_v30 = vrot.slane %v261_v28, %v265_v27  ;;  %v1048_v31 = vrot.slane %v261_v28, %v269_v29  ;;  %s1113_s10 = scalar_lea.hbm %s1176_s3, %s704_s7 }
  0x19   : > { %406 = vmatpush1.bf16.msra.mxu0 %v787_v6  ;;  %715 = vmatpush1.bf16.msra.mxu1 %v787_v6  ;;  %v803_v17 = vld [vmem:[%s997_s27] sm:$0xff]   ;;  %v805_v19 = vld [vmem:[%s997_s27 + $0x8] sm:$0xff]   ;;  %v807_v21 = vld [vmem:[%s997_s27 + $0x10] sm:$0xff]   ;;  %s817_s23 = scalar_lea.vmem %s816_s21, 8192 }
  0x1a   : > { %407 = vmatprep.subr.bf16.mxu0 %v788_v7  ;;  %708 = vmatprep.subr.bf16.mxu1 %v788_v7  ;;  %v804_v18 = vld [vmem:[%s997_s27 + $0x20] sm:$0xff]   ;;  %v806_v20 = vld [vmem:[%s997_s27 + $0x28] sm:$0xff]   ;;  %v808_v22 = vld [vmem:[%s997_s27 + $0x30] sm:$0xff]  }
  0x1b   : > { %v809_v23 = vld [vmem:[%s997_s27 + $0x18] sm:$0xff]  }
  0x1c   : > { %v810_v24 = vld [vmem:[%s997_s27 + $0x38] sm:$0xff]   ;;  %s1054_s27 = scalar_lea.vmem [#allocation2], %s670_s6 }
  0x1d   : > { %408 = vmatpush1.bf16.msra.mxu0 %v790_v8  ;;  %716 = vmatpush1.bf16.msra.mxu1 %v790_v8  ;;  %s563_s8 = sshll.u32 %s1054_s27, 4  ;;  %s1115_s8 = int_to_ptr.vmem [resolvable:$true] %s563_s8 }
  0x1e   : > { %409 = vmatprep.subr.bf16.mxu0 %v791_v9  ;;  %709 = vmatprep.subr.bf16.mxu1 %v791_v9  ;;  %s811_s18 = scalar_lea.vmem %s1115_s8, 4096  ;;  %p818_p1 = scmp.lt.s32.totalorder %s1115_s8, %s816_s21 }
  0x1f   : > { %p812_p12 = scmp.ne.s32.totalorder %s1115_s8, %s811_s18  ;;  %p819_p2 = scmp.lt.s32.totalorder %s817_s23, %s811_s18 }
  0x21   : > { %410 = vmatpush1.bf16.msra.mxu0 %v793_v10  ;;  %717 = vmatpush1.bf16.msra.mxu1 %v793_v10  ;;  %p813_p13 = pnand %p812_p12, %p955_p4  ;;  %p820_p3 = por %p819_p2, %p818_p1 }
  0x22   : > { %411 = vmatprep.subr.bf16.mxu0 %v794_v11  ;;  %710 = vmatprep.subr.bf16.mxu1 %v794_v11 }
  0x23   : > { %p814_p0 = pneg %p813_p13 }
  0x25   : > { %412 = vmatpush1.bf16.msra.mxu0 %v796_v12  ;;  %718 = vmatpush1.bf16.msra.mxu1 %v796_v12  ;;  %p821_p5 = pnand %p820_p3, %p814_p0 }
  0x26   : > { %413 = vmatprep.subr.bf16.mxu0 %v797_v13  ;;  %711 = vmatprep.subr.bf16.mxu1 %v797_v13 }
  0x29   : > { %414 = vmatpush1.bf16.msra.mxu0 %v799_v14  ;;  %719 = vmatpush1.bf16.msra.mxu1 %v799_v14 }
  0x2a   : > { %415 = vmatprep.subr.bf16.mxu0 %v800_v15  ;;  %712 = vmatprep.subr.bf16.mxu1 %v800_v15 }
  0x2d   : > { %416 = vmatpush1.bf16.msra.mxu0 %v802_v16  ;;  %720 = vmatpush1.bf16.msra.mxu1 %v802_v16 }
  0x30   : > { %434 = vmatmul.mubr.bf16.vlgmr.msra.gmra.mrb[0].mxu0 %v803_v17  ;;  %474 = vmatmul.mubr.bf16.vlgmr.msra.gmra.mrb[0].mxu1 %v804_v18 }
  0x31   : > { %443 = vmatprep.mubr.bf16.mxu0 %v891_v2  ;;  %483 = vmatprep.mubr.bf16.mxu1 %v891_v2 }
  0x38   : > { %444 = vmatmul.mubr.bf16.gmra.mrb[4].mxu0 %v805_v19  ;;  %484 = vmatmul.mubr.bf16.gmra.mrb[4].mxu1 %v806_v20 }
  0x39   : > { %453 = vmatprep.mubr.bf16.mxu0 %v891_v2  ;;  %493 = vmatprep.mubr.bf16.mxu1 %v891_v2 }
  0x40   : > { %454 = vmatmul.mubr.bf16.gmra.mrb[8].mxu0 %v807_v21  ;;  %494 = vmatmul.mubr.bf16.gmra.mrb[8].mxu1 %v808_v22 }
  0x41   : > { %463 = vmatprep.mubr.bf16.mxu0 %v891_v2  ;;  %503 = vmatprep.mubr.bf16.mxu1 %v891_v2 }
  0x48   : > { %464 = vmatmul.mubr.bf16.gmra.mrb[12].mxu0 %v809_v23  ;;  %504 = vmatmul.mubr.bf16.gmra.mrb[12].mxu1 %v810_v24 }
 0x103   : > { %v435_v32 = vpop.f32.mrb[0].mxu0  ;;  %v475_v33 = vpop.f32.mrb[0].mxu1 }
 0x104   : > { %v436_v34 = vadd.f32 %v435_v32, %v1046_v30  ;;  %v476_v35 = vadd.f32 %v475_v33, %v1046_v30  ;;  %v437_v36 = vpop.f32.mrb[1].mxu0  ;;  %v477_v37 = vpop.f32.mrb[1].mxu1 }
 0x105   : > { %v438_v38 = vadd.f32 %v437_v36, %v1048_v31  ;;  %v478_v39 = vadd.f32 %v477_v37, %v1048_v31  ;;  %v439_v40 = vpop.f32.mrb[2].mxu0  ;;  %v479_v41 = vpop.f32.mrb[2].mxu1 }
 0x106   : > { %514 = vst [vmem:[%s1054_s27] sm:$0xff] %v436_v34  ;;  %530 = vst [vmem:[%s1054_s27 + $0x80] sm:$0xff] %v476_v35  ;;  %v440_v42 = vadd.f32 %v439_v40, %v1046_v30  ;;  %v480_v43 = vadd.f32 %v479_v41, %v1046_v30  ;;  %v441_v44 = vpop.f32.mrb[3].mxu0  ;;  %v481_v45 = vpop.f32.mrb[3].mxu1 }
 0x107   : > { %515 = vst [vmem:[%s1054_s27 + $0x8] sm:$0xff] %v438_v38  ;;  %531 = vst [vmem:[%s1054_s27 + $0x88] sm:$0xff] %v478_v39  ;;  %v442_v46 = vadd.f32 %v441_v44, %v1048_v31  ;;  %v482_v47 = vadd.f32 %v481_v45, %v1048_v31 }
 0x108   : > { %516 = vst [vmem:[%s1054_s27 + $0x10] sm:$0xff] %v440_v42  ;;  %532 = vst [vmem:[%s1054_s27 + $0x90] sm:$0xff] %v480_v43 }
 0x109   : > { %517 = vst [vmem:[%s1054_s27 + $0x18] sm:$0xff] %v442_v46  ;;  %533 = vst [vmem:[%s1054_s27 + $0x98] sm:$0xff] %v482_v47 }
 0x10b   : > { %v445_v48 = vpop.f32.mrb[4].mxu0  ;;  %v485_v49 = vpop.f32.mrb[4].mxu1 }
 0x10c   : > { %v446_v50 = vadd.f32 %v445_v48, %v1046_v30  ;;  %v486_v51 = vadd.f32 %v485_v49, %v1046_v30  ;;  %v447_v52 = vpop.f32.mrb[5].mxu0  ;;  %v487_v53 = vpop.f32.mrb[5].mxu1 }
 0x10d   : > { %v448_v54 = vadd.f32 %v447_v52, %v1048_v31  ;;  %v488_v55 = vadd.f32 %v487_v53, %v1048_v31  ;;  %v449_v56 = vpop.f32.mrb[6].mxu0  ;;  %v489_v57 = vpop.f32.mrb[6].mxu1 }
 0x10e   : > { %518 = vst [vmem:[%s1054_s27 + $0x20] sm:$0xff] %v446_v50  ;;  %534 = vst [vmem:[%s1054_s27 + $0xa0] sm:$0xff] %v486_v51  ;;  %v450_v58 = vadd.f32 %v449_v56, %v1046_v30  ;;  %v490_v59 = vadd.f32 %v489_v57, %v1046_v30  ;;  %v451_v60 = vpop.f32.mrb[7].mxu0  ;;  %v491_v61 = vpop.f32.mrb[7].mxu1 }
 0x10f   : > { %519 = vst [vmem:[%s1054_s27 + $0x28] sm:$0xff] %v448_v54  ;;  %535 = vst [vmem:[%s1054_s27 + $0xa8] sm:$0xff] %v488_v55  ;;  %v452_v62 = vadd.f32 %v451_v60, %v1048_v31  ;;  %v492_v63 = vadd.f32 %v491_v61, %v1048_v31 }
 0x110   : > { %520 = vst [vmem:[%s1054_s27 + $0x30] sm:$0xff] %v450_v58  ;;  %536 = vst [vmem:[%s1054_s27 + $0xb0] sm:$0xff] %v490_v59 }
 0x111   : > { %521 = vst [vmem:[%s1054_s27 + $0x38] sm:$0xff] %v452_v62  ;;  %537 = vst [vmem:[%s1054_s27 + $0xb8] sm:$0xff] %v492_v63 }
 0x113   : > { %v455_v0 = vpop.f32.mrb[8].mxu0  ;;  %v495_v1 = vpop.f32.mrb[8].mxu1 }
 0x114   : > { %v456_v2 = vadd.f32 %v455_v0, %v1046_v30  ;;  %v496_v3 = vadd.f32 %v495_v1, %v1046_v30  ;;  %v457_v4 = vpop.f32.mrb[9].mxu0  ;;  %v497_v5 = vpop.f32.mrb[9].mxu1 }
 0x115   : > { %v458_v6 = vadd.f32 %v457_v4, %v1048_v31  ;;  %v498_v7 = vadd.f32 %v497_v5, %v1048_v31  ;;  %v459_v8 = vpop.f32.mrb[10].mxu0  ;;  %v499_v9 = vpop.f32.mrb[10].mxu1 }
 0x116   : > { %522 = vst [vmem:[%s1054_s27 + $0x40] sm:$0xff] %v456_v2  ;;  %538 = vst [vmem:[%s1054_s27 + $0xc0] sm:$0xff] %v496_v3  ;;  %v460_v10 = vadd.f32 %v459_v8, %v1046_v30  ;;  %v500_v11 = vadd.f32 %v499_v9, %v1046_v30  ;;  %v461_v12 = vpop.f32.mrb[11].mxu0  ;;  %v501_v13 = vpop.f32.mrb[11].mxu1 }
 0x117   : > { %523 = vst [vmem:[%s1054_s27 + $0x48] sm:$0xff] %v458_v6  ;;  %539 = vst [vmem:[%s1054_s27 + $0xc8] sm:$0xff] %v498_v7  ;;  %v462_v14 = vadd.f32 %v461_v12, %v1048_v31  ;;  %v502_v15 = vadd.f32 %v501_v13, %v1048_v31 }
 0x118   : > { %524 = vst [vmem:[%s1054_s27 + $0x50] sm:$0xff] %v460_v10  ;;  %540 = vst [vmem:[%s1054_s27 + $0xd0] sm:$0xff] %v500_v11 }
 0x119   : > { %525 = vst [vmem:[%s1054_s27 + $0x58] sm:$0xff] %v462_v14  ;;  %541 = vst [vmem:[%s1054_s27 + $0xd8] sm:$0xff] %v502_v15 }
 0x11b   : > { %v465_v16 = vpop.f32.mrb[12].mxu0  ;;  %v505_v17 = vpop.f32.mrb[12].mxu1 }
 0x11c   : > { %v466_v18 = vadd.f32 %v465_v16, %v1046_v30  ;;  %v506_v19 = vadd.f32 %v505_v17, %v1046_v30  ;;  %v467_v20 = vpop.f32.mrb[13].mxu0  ;;  %v507_v21 = vpop.f32.mrb[13].mxu1 }
 0x11d   : > { %v468_v22 = vadd.f32 %v467_v20, %v1048_v31  ;;  %v508_v23 = vadd.f32 %v507_v21, %v1048_v31  ;;  %v469_v24 = vpop.f32.mrb[14].mxu0  ;;  %v509_v25 = vpop.f32.mrb[14].mxu1 }
 0x11e   : > { %526 = vst [vmem:[%s1054_s27 + $0x60] sm:$0xff] %v466_v18  ;;  %542 = vst [vmem:[%s1054_s27 + $0xe0] sm:$0xff] %v506_v19  ;;  %v470_v26 = vadd.f32 %v469_v24, %v1046_v30  ;;  %v510_v27 = vadd.f32 %v509_v25, %v1046_v30  ;;  %v471_v28 = vpop.f32.mrb[15].mxu0  ;;  %v511_v29 = vpop.f32.mrb[15].mxu1 }
 0x11f   : > { %527 = vst [vmem:[%s1054_s27 + $0x68] sm:$0xff] %v468_v22  ;;  %543 = vst [vmem:[%s1054_s27 + $0xe8] sm:$0xff] %v508_v23  ;;  %v472_v32 = vadd.f32 %v471_v28, %v1048_v31  ;;  %v512_v33 = vadd.f32 %v511_v29, %v1048_v31 }
 0x120   : > { %528 = vst [vmem:[%s1054_s27 + $0x70] sm:$0xff] %v470_v26  ;;  %544 = vst [vmem:[%s1054_s27 + $0xf0] sm:$0xff] %v510_v27 }
 0x121   : > { %529 = vst [vmem:[%s1054_s27 + $0x78] sm:$0xff] %v472_v32  ;;  %545 = vst [vmem:[%s1054_s27 + $0xf8] sm:$0xff] %v512_v33 }
 0x122   : > { %824 = shalt.err (!%p821_p5)
}
 0x123   : > { %s825_s26 = scalar_lea.hbm %s1113_s10, 4096  ;;  %s829_s30 = scalar_lea.hbm %s1176_s3, 8192 }
 0x124   : > { %p826_p6 = scmp.ne.s32.totalorder %s1113_s10, %s825_s26  ;;  %p830_p10 = scmp.lt.u32.totalorder %s1113_s10, %s1176_s3 }
 0x125   : > { %p831_p11 = scmp.lt.u32.totalorder %s829_s30, %s825_s26  ;;  %p833_p13 = scmp.lt.u32.totalorder %s825_s26, %s1113_s10 }
 0x126   : > { %p827_p7 = pnand %p826_p6, %p955_p4 }
 0x127   : > { %p832_p12 = por %p831_p11, %p830_p10 }
 0x128   : > { %p828_p9 = pneg %p827_p7 }
 0x129   : > { %p834_p0 = por %p833_p13, %p832_p12 }
 0x12b   : > { %p835_p1 = pnand %p834_p0, %p828_p9 }
 0x12d   : > { %838 = shalt.err (!%p835_p1)
}
 0x12e   : > { %s893_s6 = smov 256   ;;  %s894_s27 = smov 16  }
 0x12f   : > { %721 = dma.vmem_to_hbm [thread:$0]  (%p955_p4), %s1115_s8, 4096, %s1113_s10, %s1127_s11, %s893_s6, %s893_s6, %s894_s27  }
 0x130 PF: > { %p727_p2 = scmp.ge.s32.totalorder %s889_s17, 2  ;;  %s578_s7 = sand.u32 1, %s869_s12  }
 0x131   : > { %s579_s15 = scalar_lea.sflag [#allocation3], %s578_s7 }
 0x132   : > { %p724_p3 = pnand %p727_p2, %p962_p8 }
 0x134   : > { %864 = dma.done.wait (!%p724_p3), %s579_s15, 4096  }
 0x135   : > { %866 = vsyncadd (!%p724_p3), %s579_s15, 4294963200  ;;  %s16_s17 = sadd.s32 1, %s889_s17   ;;  %s1179_s12 = smov %s873_s13 }
 0x136   : > { %p13_p5 = scmp.ge.s32.totalorder %s16_s17, 4   ;;  %s1180_s13 = smov %s877_s14 }
 0x137   : > { %s1181_s14 = smov %s968_s25  ;;  %s1182_s15 = smov %s885_s16 }
 0x138   : > { %s1183_s16 = smov %s1185_s20  ;;  %15 = sbr.rel (!%p13_p5) target bundleno = 4 (0x4), region = 73 }
 0x13f   :  { %584 = vsyncpa [#allocation3], 1 }
 0x140   :  { %586 = vsyncpa [#allocation3 + $0x1], 1 }

// kernel: _lambda_.24
= control target key start
LH: loop header
LB: loop body
LE: loop exit
PB: predicated region body
PF: predicated region fallthrough
CT: control target
= control target key end

     0   :  { %8 = vsyncpa [#allocation3], 0  ;;  %s1532_s0 = inlined_call_operand.vmem [shape: bf16[4096,256], index: 0, kind: input, shape index: {}]   ;;  %s1533_s1 = inlined_call_operand.hbm [shape: bf16[256,128], index: 1, kind: input, shape index: {}]   ;;  %s1534_s2 = inlined_call_operand.hbm [shape: f32[1,128], index: 2, kind: input, shape index: {}]   ;;  %s1535_s3 = inlined_call_operand.vmem [shape: f32[4096,128], index: 3, kind: output, shape index: {}]  }
   0x1   :  { %9 = vsyncpa [#allocation5], 0  ;;  %s1310_s12 = smov 0   ;;  %s1312_s13 = smov 0  }
   0x2   :  { %s1314_s14 = smov 0  }
   0x3 LB: > { %s893_s15 = sadd.s32 4294967295, %s1284_s14   ;;  %s27_s16 = sadd.s32 1, %s1280_s13  ;;  %s1284_s14 = sphi %s1314_s14, %s15_s14   ;;  %s1280_s13 = sphi %s1312_s13, %s1545_s13   ;;  %s1276_s12 = sphi %s1310_s12, %s1544_s12  }
   0x4   : > { %p29_p0 = scmp.ge.s32.totalorder %s27_s16, 16  ;;  %p895_p1 = scmp.ge.s32.totalorder %s1284_s14, 1 }
   0x5   : > { %p138_p2 = scmp.lt.s32.totalorder %s1284_s14, 17  ;;  %p1335_p4 = scmp.eq.s32.totalorder %s893_s15, 0 }
   0x6   : > { %s1547_s16 = smov (%p29_p0, %s27_s16), 0  ;;  %s1286_s19 = smov [#allocation2]  }
   0x7   : > { %p1331_p3 = pnand %p895_p1, %p138_p2  ;;  %s152_s20 = sshll.u32 %s1286_s19, 4  ;;  %s153_s20 = int_to_ptr.vmem [resolvable:$true] %s152_s20 }
   0x8   : > { %s1540_s18 = scalar_select %p1335_p4, 1, 0 }
   0x9   : > { %s1539_s17 = scalar_select %p1331_p3, 1, 0 }
   0xa   : > { %p1095_p5 = pneg %p1331_p3  ;;  %s1287_s22 = smov [#allocation4]  }
   0xb   : > { %s168_s23 = sshll.u32 %s1287_s22, 4  ;;  %s1198_s26 = scalar_lea.hbm %s1533_s1, 2048  ;;  %s1347_s23 = int_to_ptr.vmem [resolvable:$true] %s168_s23 }
   0xc   : > { %p1343_p6 = pnand %p1335_p4, %p1095_p5  ;;  %p1199_p7 = scmp.ne.s32.totalorder %s1533_s1, %s1198_s26 }
   0xd   : > { %p1205_p11 = scmp.lt.u32.totalorder %s1198_s26, %s1533_s1 }
   0xe   : > { %p1200_p8 = pneg %p1343_p6 }
  0x10   : > { %p1201_p9 = pnand %p1200_p8, %p1199_p7 }
  0x12   : > { %p1202_p10 = pneg %p1201_p9 }
  0x14   : > { %p1207_p12 = pnand %p1205_p11, %p1202_p10 }
  0x16   : > { %1210 = shalt.err (!%p1207_p12)
}
  0x17   : > { %s1211_s4 = scalar_lea.vmem %s153_s20, 2048  ;;  %p1219_p2 = scmp.lt.s32.totalorder %s153_s20, %s153_s20 }
  0x18   : > { %p1212_p13 = scmp.ne.s32.totalorder %s153_s20, %s1211_s4  ;;  %p1220_p5 = scmp.lt.s32.totalorder %s1211_s4, %s1211_s4 }
  0x1a   : > { %p1214_p0 = pnand %p1212_p13, %p1200_p8  ;;  %p1221_p4 = por %p1220_p5, %p1219_p2 }
  0x1c   : > { %p1215_p1 = pneg %p1214_p0 }
  0x1e   : > { %p1222_p3 = pnand %p1221_p4, %p1215_p1 }
  0x20   : > { %1225 = shalt.err (!%p1222_p3)
}
  0x21   : > { %s1288_s5 = smov 64   ;;  %s1289_s6 = smov 4  }
  0x22   : > { %1098 = dma.hbm_to_vmem [thread:$0]  (!%p1343_p6), %s1533_s1, 2048, %s153_s20, [#allocation3], %s1288_s5, %s1288_s5, %s1289_s6  }
  0x23   : > { %s1226_s11 = scalar_lea.hbm %s1534_s2, 16 }
  0x24   : > { %p1227_p7 = scmp.ne.s32.totalorder %s1534_s2, %s1226_s11  ;;  %p1233_p9 = scmp.lt.u32.totalorder %s1226_s11, %s1534_s2 }
  0x26   : > { %p1229_p3 = pnand %p1227_p7, %p1200_p8 }
  0x28   : > { %p1230_p4 = pneg %p1229_p3 }
  0x2a   : > { %p1235_p10 = pnand %p1233_p9, %p1230_p4 }
  0x2c   : > { %1238 = shalt.err (!%p1235_p10)
}
  0x2d   : > { %s1239_s20 = scalar_lea.vmem %s1347_s23, 16  ;;  %s1246_s25 = scalar_lea.vmem %s1347_s23, 32 }
  0x2e   : > { %p1240_p11 = scmp.ne.s32.totalorder %s1347_s23, %s1239_s20  ;;  %p1247_p0 = scmp.lt.s32.totalorder %s1347_s23, %s1347_s23 }
  0x2f   : > { %p1248_p1 = scmp.lt.s32.totalorder %s1246_s25, %s1239_s20 }
  0x30   : > { %p1242_p12 = pnand %p1240_p11, %p1200_p8 }
  0x31   : > { %p1249_p2 = por %p1248_p1, %p1247_p0 }
  0x32   : > { %p1243_p13 = pneg %p1242_p12 }
  0x34   : > { %p1250_p5 = pnand %p1249_p2, %p1243_p13 }
  0x36   : > { %1253 = shalt.err (!%p1250_p5)
}
  0x37   : > { %1101 = dma.hbm_to_vmem [thread:$0]  (!%p1343_p6), %s1534_s2, 16, %s1347_s23, [#allocation5]  }
  0x38   : > { %p1542_p7 = scmp.ne.s32.totalorder %s1539_s17, 0 }
  0x39   : > { %p1543_p8 = scmp.ne.s32.totalorder (!%p1542_p7), %s1540_s18, 0 }
  0x3a   : > { %191 = sbr.rel (%p1542_p7) target bundleno = 379 (0x17b), region = 32 }
  0x41   : > { %1267 = dma.done.wait (%p1543_p8), [#allocation3], 2048  }
  0x42   : > { %1269 = vsyncadd (%p1543_p8), [#allocation3], 4294965248 }
  0x43   : > { %1271 = dma.done.wait (%p1543_p8), [#allocation5], 16  }
  0x44   : > { %1273 = vsyncadd (%p1543_p8), [#allocation5], 4294967280  ;;  %v1134_v0 = vld [vmem:[#allocation2 + $0x40] sm:$0xff]   ;;  %s902_s21 = sshll.u32 %s1276_s12, 5  ;;  %v1136_v2 = vld [vmem:[#allocation2 + $0x48] sm:$0xff]  }
  0x45   : > { %v1135_v1 = vld [vmem:[#allocation2] sm:$0xff]   ;;  %959 = vmatprep.subr.bf16.mxu0 %v1134_v0  ;;  %1071 = vmatprep.subr.bf16.mxu1 %v1134_v0  ;;  %v1137_v3 = vld [vmem:[#allocation2 + $0x8] sm:$0xff]   ;;  %p224_p6 = scmp.lt.s32.totalorder %s902_s21, 511  ;;  %v1138_v4 = vld [vmem:[#allocation2 + $0x50] sm:$0xff]  }
  0x46   : > { %960 = vmatpush3.bf16.msra.mxu0 %v1135_v1  ;;  %1079 = vmatpush3.bf16.msra.mxu1 %v1135_v1  ;;  %v1139_v5 = vld [vmem:[#allocation2 + $0x10] sm:$0xff]   ;;  %v1140_v6 = vld [vmem:[#allocation2 + $0x58] sm:$0xff]   ;;  %v1142_v8 = vld [vmem:[#allocation2 + $0x60] sm:$0xff]  }
  0x47   : > { %961 = vmatprep.subr.bf16.mxu0 %v1136_v2  ;;  %1072 = vmatprep.subr.bf16.mxu1 %v1136_v2  ;;  %s1549_s21 = smov (!%p224_p6, %s902_s21), 511  ;;  %v1141_v7 = vld [vmem:[#allocation2 + $0x18] sm:$0xff]   ;;  %v1143_v9 = vld [vmem:[#allocation2 + $0x20] sm:$0xff]   ;;  %v1144_v10 = vld [vmem:[#allocation2 + $0x68] sm:$0xff]  }
  0x48   : > { %s958_s12 = sshll.u32 %s1549_s21, 3  ;;  %v1145_v13 = vld [vmem:[#allocation2 + $0x28] sm:$0xff]   ;;  %v1146_v14 = vld [vmem:[#allocation2 + $0x70] sm:$0xff]   ;;  %v1148_v16 = vld [vmem:[#allocation2 + $0x78] sm:$0xff]  }
  0x49   : > { %s1416_s23 = scalar_lea.vmem %s1532_s0, %s958_s12  ;;  %v1147_v15 = vld [vmem:[#allocation2 + $0x30] sm:$0xff]   ;;  %v1149_v17 = vld [vmem:[#allocation2 + $0x38] sm:$0xff]   ;;  %v1450_v50 = vld [vmem:[#allocation4] ss:$0 sm:$0xff]  ;;  %s1459_s30 = scalar_lea.vmem %s1535_s3, %s958_s12 }
  0x4a   : > { %962 = vmatpush3.bf16.msra.mxu0 %v1137_v3  ;;  %1080 = vmatpush3.bf16.msra.mxu1 %v1137_v3  ;;  %v1152_v11 = vld [vmem:[%s1416_s23 + $0x4] ss:$8 sps:$4 sm:$0xff]   ;;  %v1150_v18 = vld [vmem:[%s1416_s23] ss:$8 sps:$4 sm:$0xff]   ;;  %v1156_v20 = vld [vmem:[%s1416_s23 + $0x14] ss:$8 sps:$4 sm:$0xff]  }
  0x4b   : > { %963 = vmatprep.subr.bf16.mxu0 %v1138_v4  ;;  %1073 = vmatprep.subr.bf16.mxu1 %v1138_v4  ;;  %v1155_v12 = vld [vmem:[%s1416_s23 + $0x84] ss:$8 sps:$4 sm:$0xff]   ;;  %v1153_v19 = vld [vmem:[%s1416_s23 + $0x80] ss:$8 sps:$4 sm:$0xff]   ;;  %v1158_v21 = vld [vmem:[%s1416_s23 + $0x94] ss:$8 sps:$4 sm:$0xff]  }
  0x4c   : > { %599 = vmatprep.mubr.bf16.mxu0 %v1152_v11  ;;  %663 = vmatprep.mubr.bf16.mxu1 %v1155_v12  ;;  %v1160_v22 = vld [vmem:[%s1416_s23 + $0x10] ss:$8 sps:$4 sm:$0xff]   ;;  %v1162_v24 = vld [vmem:[%s1416_s23 + $0x24] ss:$8 sps:$4 sm:$0xff]   ;;  %v1166_v26 = vld [vmem:[%s1416_s23 + $0x20] ss:$8 sps:$4 sm:$0xff]  }
  0x4d   : > { %v1161_v23 = vld [vmem:[%s1416_s23 + $0x90] ss:$8 sps:$4 sm:$0xff]   ;;  %v1164_v25 = vld [vmem:[%s1416_s23 + $0xa4] ss:$8 sps:$4 sm:$0xff]   ;;  %v1167_v27 = vld [vmem:[%s1416_s23 + $0xa0] ss:$8 sps:$4 sm:$0xff]  }
  0x4e   : > { %964 = vmatpush3.bf16.msra.mxu0 %v1139_v5  ;;  %1081 = vmatpush3.bf16.msra.mxu1 %v1139_v5  ;;  %v1168_v28 = vld [vmem:[%s1416_s23 + $0x34] ss:$8 sps:$4 sm:$0xff]   ;;  %v1172_v30 = vld [vmem:[%s1416_s23 + $0x30] ss:$8 sps:$4 sm:$0xff]   ;;  %v1174_v32 = vld [vmem:[%s1416_s23 + $0x44] ss:$8 sps:$4 sm:$0xff]  }
  0x4f   : > { %965 = vmatprep.subr.bf16.mxu0 %v1140_v6  ;;  %1074 = vmatprep.subr.bf16.mxu1 %v1140_v6  ;;  %v1170_v29 = vld [vmem:[%s1416_s23 + $0xb4] ss:$8 sps:$4 sm:$0xff]   ;;  %v1173_v31 = vld [vmem:[%s1416_s23 + $0xb0] ss:$8 sps:$4 sm:$0xff]   ;;  %v1176_v33 = vld [vmem:[%s1416_s23 + $0xc4] ss:$8 sps:$4 sm:$0xff]  }
  0x50   : > { %v1178_v34 = vld [vmem:[%s1416_s23 + $0x40] ss:$8 sps:$4 sm:$0xff]   ;;  %v1180_v36 = vld [vmem:[%s1416_s23 + $0x54] ss:$8 sps:$4 sm:$0xff]   ;;  %v1184_v38 = vld [vmem:[%s1416_s23 + $0x50] ss:$8 sps:$4 sm:$0xff]  }
  0x51   : > { %v1179_v35 = vld [vmem:[%s1416_s23 + $0xc0] ss:$8 sps:$4 sm:$0xff]   ;;  %v1182_v37 = vld [vmem:[%s1416_s23 + $0xd4] ss:$8 sps:$4 sm:$0xff]   ;;  %v1185_v39 = vld [vmem:[%s1416_s23 + $0xd0] ss:$8 sps:$4 sm:$0xff]  }
  0x52   : > { %966 = vmatpush3.bf16.msra.mxu0 %v1141_v7  ;;  %1082 = vmatpush3.bf16.msra.mxu1 %v1141_v7  ;;  %v1186_v40 = vld [vmem:[%s1416_s23 + $0x64] ss:$8 sps:$4 sm:$0xff]   ;;  %v1190_v42 = vld [vmem:[%s1416_s23 + $0x60] ss:$8 sps:$4 sm:$0xff]   ;;  %v1192_v44 = vld [vmem:[%s1416_s23 + $0x74] ss:$8 sps:$4 sm:$0xff]  }
  0x53   : > { %967 = vmatprep.subr.bf16.mxu0 %v1142_v8  ;;  %1075 = vmatprep.subr.bf16.mxu1 %v1142_v8  ;;  %v1188_v41 = vld [vmem:[%s1416_s23 + $0xe4] ss:$8 sps:$4 sm:$0xff]   ;;  %v1191_v43 = vld [vmem:[%s1416_s23 + $0xe0] ss:$8 sps:$4 sm:$0xff]   ;;  %v1194_v45 = vld [vmem:[%s1416_s23 + $0xf4] ss:$8 sps:$4 sm:$0xff]  }
  0x54   : > { %v1196_v46 = vld [vmem:[%s1416_s23 + $0x70] ss:$8 sps:$4 sm:$0xff]  }
  0x55   : > { %v1197_v47 = vld [vmem:[%s1416_s23 + $0xf0] ss:$8 sps:$4 sm:$0xff]  }
  0x56   : > { %968 = vmatpush3.bf16.msra.mxu0 %v1143_v9  ;;  %1083 = vmatpush3.bf16.msra.mxu1 %v1143_v9 }
  0x57   : > { %969 = vmatprep.subr.bf16.mxu0 %v1144_v10  ;;  %1076 = vmatprep.subr.bf16.mxu1 %v1144_v10 }
  0x5a   : > { %970 = vmatpush3.bf16.msra.mxu0 %v1145_v13  ;;  %1084 = vmatpush3.bf16.msra.mxu1 %v1145_v13 }
  0x5b   : > { %971 = vmatprep.subr.bf16.mxu0 %v1146_v14  ;;  %1077 = vmatprep.subr.bf16.mxu1 %v1146_v14 }
  0x5e   : > { %972 = vmatpush3.bf16.msra.mxu0 %v1147_v15  ;;  %1085 = vmatpush3.bf16.msra.mxu1 %v1147_v15 }
  0x5f   : > { %973 = vmatprep.subr.bf16.mxu0 %v1148_v16  ;;  %1078 = vmatprep.subr.bf16.mxu1 %v1148_v16 }
  0x62   : > { %974 = vmatpush3.bf16.msra.mxu0 %v1149_v17  ;;  %1086 = vmatpush3.bf16.msra.mxu1 %v1149_v17 }
  0x65   : > { %600 = vmatmul.mubr.bf16.vlgmr.msra.gmra.mrb[0].mxu0 %v1150_v18  ;;  %664 = vmatmul.mubr.bf16.vlgmr.msra.gmra.mrb[0].mxu1 %v1153_v19 }
  0x66   : > { %607 = vmatprep.mubr.bf16.mxu0 %v1156_v20  ;;  %671 = vmatprep.mubr.bf16.mxu1 %v1158_v21 }
  0x6d   : > { %608 = vmatmul.mubr.bf16.gmra.mrb[4].mxu0 %v1160_v22  ;;  %672 = vmatmul.mubr.bf16.gmra.mrb[4].mxu1 %v1161_v23 }
  0x6e   : > { %615 = vmatprep.mubr.bf16.mxu0 %v1162_v24  ;;  %679 = vmatprep.mubr.bf16.mxu1 %v1164_v25 }
  0x75   : > { %616 = vmatmul.mubr.bf16.gmra.mrb[8].mxu0 %v1166_v26  ;;  %680 = vmatmul.mubr.bf16.gmra.mrb[8].mxu1 %v1167_v27 }
  0x76   : > { %623 = vmatprep.mubr.bf16.mxu0 %v1168_v28  ;;  %687 = vmatprep.mubr.bf16.mxu1 %v1170_v29 }
  0x7d   : > { %624 = vmatmul.mubr.bf16.gmra.mrb[12].mxu0 %v1172_v30  ;;  %688 = vmatmul.mubr.bf16.gmra.mrb[12].mxu1 %v1173_v31 }
  0x7e   : > { %631 = vmatprep.mubr.bf16.mxu0 %v1174_v32  ;;  %695 = vmatprep.mubr.bf16.mxu1 %v1176_v33 }
  0x85   : > { %632 = vmatmul.mubr.bf16.gmra.mrb[16].mxu0 %v1178_v34  ;;  %696 = vmatmul.mubr.bf16.gmra.mrb[16].mxu1 %v1179_v35 }
  0x86   : > { %639 = vmatprep.mubr.bf16.mxu0 %v1180_v36  ;;  %703 = vmatprep.mubr.bf16.mxu1 %v1182_v37 }
  0x8d   : > { %640 = vmatmul.mubr.bf16.gmra.mrb[20].mxu0 %v1184_v38  ;;  %704 = vmatmul.mubr.bf16.gmra.mrb[20].mxu1 %v1185_v39 }
  0x8e   : > { %647 = vmatprep.mubr.bf16.mxu0 %v1186_v40  ;;  %711 = vmatprep.mubr.bf16.mxu1 %v1188_v41 }
  0x95   : > { %648 = vmatmul.mubr.bf16.gmra.mrb[24].mxu0 %v1190_v42  ;;  %712 = vmatmul.mubr.bf16.gmra.mrb[24].mxu1 %v1191_v43 }
  0x96   : > { %655 = vmatprep.mubr.bf16.mxu0 %v1192_v44  ;;  %719 = vmatprep.mubr.bf16.mxu1 %v1194_v45 }
  0x9d   : > { %656 = vmatmul.mubr.bf16.gmra.mrb[28].mxu0 %v1196_v46  ;;  %720 = vmatmul.mubr.bf16.gmra.mrb[28].mxu1 %v1197_v47 }
 0x138   : > { %v975_v48 = vpop.f32.mrb[0].mxu0  ;;  %v1023_v49 = vpop.f32.mrb[0].mxu1 }
 0x139   : > { %v976_v51 = vpop.f32.mrb[1].mxu0  ;;  %v1024_v52 = vpop.f32.mrb[1].mxu1 }
 0x13a   : > { %v977_v53 = vadd.f32 %v976_v51, %v975_v48  ;;  %v1025_v54 = vadd.f32 %v1024_v52, %v1023_v49  ;;  %v978_v55 = vpop.f32.mrb[2].mxu0  ;;  %v1026_v56 = vpop.f32.mrb[2].mxu1 }
 0x13b   : > { %v979_v57 = vpop.f32.mrb[3].mxu0  ;;  %v1027_v58 = vpop.f32.mrb[3].mxu1 }
 0x13c   : > { %v602_v59 = vadd.f32 %v977_v53, %v1450_v50  ;;  %v666_v60 = vadd.f32 %v1025_v54, %v1450_v50  ;;  %v980_v61 = vadd.f32 %v979_v57, %v978_v55  ;;  %v1028_v62 = vadd.f32 %v1027_v58, %v1026_v56 }
 0x13e   : > { %v728_v63 = vmax.f32 %v602_v59, 0.0  ;;  %v744_v0 = vmax.f32 %v666_v60, 0.0  ;;  %v605_v1 = vadd.f32 %v980_v61, %v1450_v50  ;;  %v669_v2 = vadd.f32 %v1028_v62, %v1450_v50 }
 0x140   : > { %760 = vst [vmem:[%s1459_s30] sm:$0xff] %v728_v63  ;;  %776 = vst [vmem:[%s1459_s30 + $0x80] sm:$0xff] %v744_v0  ;;  %v729_v3 = vmax.f32 %v605_v1, 0.0  ;;  %v745_v4 = vmax.f32 %v669_v2, 0.0  ;;  %v981_v5 = vpop.f32.mrb[4].mxu0  ;;  %v1029_v6 = vpop.f32.mrb[4].mxu1 }
 0x141   : > { %v982_v7 = vpop.f32.mrb[5].mxu0  ;;  %v1030_v8 = vpop.f32.mrb[5].mxu1 }
 0x142   : > { %761 = vst [vmem:[%s1459_s30 + $0x8] sm:$0xff] %v729_v3  ;;  %777 = vst [vmem:[%s1459_s30 + $0x88] sm:$0xff] %v745_v4  ;;  %v983_v9 = vadd.f32 %v982_v7, %v981_v5  ;;  %v1031_v10 = vadd.f32 %v1030_v8, %v1029_v6  ;;  %v984_v11 = vpop.f32.mrb[6].mxu0  ;;  %v1032_v12 = vpop.f32.mrb[6].mxu1 }
 0x143   : > { %v985_v13 = vpop.f32.mrb[7].mxu0  ;;  %v1033_v14 = vpop.f32.mrb[7].mxu1 }
 0x144   : > { %v610_v15 = vadd.f32 %v983_v9, %v1450_v50  ;;  %v674_v16 = vadd.f32 %v1031_v10, %v1450_v50  ;;  %v986_v17 = vadd.f32 %v985_v13, %v984_v11  ;;  %v1034_v18 = vadd.f32 %v1033_v14, %v1032_v12 }
 0x146   : > { %v730_v19 = vmax.f32 %v610_v15, 0.0  ;;  %v746_v20 = vmax.f32 %v674_v16, 0.0  ;;  %v613_v21 = vadd.f32 %v986_v17, %v1450_v50  ;;  %v677_v22 = vadd.f32 %v1034_v18, %v1450_v50 }
 0x148   : > { %762 = vst [vmem:[%s1459_s30 + $0x10] sm:$0xff] %v730_v19  ;;  %778 = vst [vmem:[%s1459_s30 + $0x90] sm:$0xff] %v746_v20  ;;  %v731_v23 = vmax.f32 %v613_v21, 0.0  ;;  %v747_v24 = vmax.f32 %v677_v22, 0.0  ;;  %v987_v25 = vpop.f32.mrb[8].mxu0  ;;  %v1035_v26 = vpop.f32.mrb[8].mxu1 }
 0x149   : > { %v988_v27 = vpop.f32.mrb[9].mxu0  ;;  %v1036_v28 = vpop.f32.mrb[9].mxu1 }
 0x14a   : > { %763 = vst [vmem:[%s1459_s30 + $0x18] sm:$0xff] %v731_v23  ;;  %779 = vst [vmem:[%s1459_s30 + $0x98] sm:$0xff] %v747_v24  ;;  %v989_v29 = vadd.f32 %v988_v27, %v987_v25  ;;  %v1037_v30 = vadd.f32 %v1036_v28, %v1035_v26  ;;  %v990_v31 = vpop.f32.mrb[10].mxu0  ;;  %v1038_v32 = vpop.f32.mrb[10].mxu1 }
 0x14b   : > { %v991_v33 = vpop.f32.mrb[11].mxu0  ;;  %v1039_v34 = vpop.f32.mrb[11].mxu1 }
 0x14c   : > { %v618_v35 = vadd.f32 %v989_v29, %v1450_v50  ;;  %v682_v36 = vadd.f32 %v1037_v30, %v1450_v50  ;;  %v992_v37 = vadd.f32 %v991_v33, %v990_v31  ;;  %v1040_v38 = vadd.f32 %v1039_v34, %v1038_v32 }
 0x14e   : > { %v732_v39 = vmax.f32 %v618_v35, 0.0  ;;  %v748_v40 = vmax.f32 %v682_v36, 0.0  ;;  %v621_v41 = vadd.f32 %v992_v37, %v1450_v50  ;;  %v685_v42 = vadd.f32 %v1040_v38, %v1450_v50 }
 0x150   : > { %764 = vst [vmem:[%s1459_s30 + $0x20] sm:$0xff] %v732_v39  ;;  %780 = vst [vmem:[%s1459_s30 + $0xa0] sm:$0xff] %v748_v40  ;;  %v733_v43 = vmax.f32 %v621_v41, 0.0  ;;  %v749_v44 = vmax.f32 %v685_v42, 0.0  ;;  %v993_v45 = vpop.f32.mrb[12].mxu0  ;;  %v1041_v46 = vpop.f32.mrb[12].mxu1 }
 0x151   : > { %v994_v47 = vpop.f32.mrb[13].mxu0  ;;  %v1042_v48 = vpop.f32.mrb[13].mxu1 }
 0x152   : > { %765 = vst [vmem:[%s1459_s30 + $0x28] sm:$0xff] %v733_v43  ;;  %781 = vst [vmem:[%s1459_s30 + $0xa8] sm:$0xff] %v749_v44  ;;  %v995_v49 = vadd.f32 %v994_v47, %v993_v45  ;;  %v1043_v51 = vadd.f32 %v1042_v48, %v1041_v46  ;;  %v996_v52 = vpop.f32.mrb[14].mxu0  ;;  %v1044_v53 = vpop.f32.mrb[14].mxu1 }
 0x153   : > { %v997_v54 = vpop.f32.mrb[15].mxu0  ;;  %v1045_v55 = vpop.f32.mrb[15].mxu1 }
 0x154   : > { %v626_v56 = vadd.f32 %v995_v49, %v1450_v50  ;;  %v690_v57 = vadd.f32 %v1043_v51, %v1450_v50  ;;  %v998_v58 = vadd.f32 %v997_v54, %v996_v52  ;;  %v1046_v59 = vadd.f32 %v1045_v55, %v1044_v53 }
 0x156   : > { %v734_v60 = vmax.f32 %v626_v56, 0.0  ;;  %v750_v61 = vmax.f32 %v690_v57, 0.0  ;;  %v629_v62 = vadd.f32 %v998_v58, %v1450_v50  ;;  %v693_v63 = vadd.f32 %v1046_v59, %v1450_v50 }
 0x158   : > { %766 = vst [vmem:[%s1459_s30 + $0x30] sm:$0xff] %v734_v60  ;;  %782 = vst [vmem:[%s1459_s30 + $0xb0] sm:$0xff] %v750_v61  ;;  %v735_v0 = vmax.f32 %v629_v62, 0.0  ;;  %v751_v1 = vmax.f32 %v693_v63, 0.0  ;;  %v999_v2 = vpop.f32.mrb[16].mxu0  ;;  %v1047_v3 = vpop.f32.mrb[16].mxu1 }
 0x159   : > { %v1000_v4 = vpop.f32.mrb[17].mxu0  ;;  %v1048_v5 = vpop.f32.mrb[17].mxu1 }
 0x15a   : > { %767 = vst [vmem:[%s1459_s30 + $0x38] sm:$0xff] %v735_v0  ;;  %783 = vst [vmem:[%s1459_s30 + $0xb8] sm:$0xff] %v751_v1  ;;  %v1001_v6 = vadd.f32 %v1000_v4, %v999_v2  ;;  %v1049_v7 = vadd.f32 %v1048_v5, %v1047_v3  ;;  %v1002_v8 = vpop.f32.mrb[18].mxu0  ;;  %v1050_v9 = vpop.f32.mrb[18].mxu1 }
 0x15b   : > { %v1003_v10 = vpop.f32.mrb[19].mxu0  ;;  %v1051_v11 = vpop.f32.mrb[19].mxu1 }
 0x15c   : > { %v634_v12 = vadd.f32 %v1001_v6, %v1450_v50  ;;  %v698_v13 = vadd.f32 %v1049_v7, %v1450_v50  ;;  %v1004_v14 = vadd.f32 %v1003_v10, %v1002_v8  ;;  %v1052_v15 = vadd.f32 %v1051_v11, %v1050_v9 }
 0x15e   : > { %v736_v16 = vmax.f32 %v634_v12, 0.0  ;;  %v752_v17 = vmax.f32 %v698_v13, 0.0  ;;  %v637_v18 = vadd.f32 %v1004_v14, %v1450_v50  ;;  %v701_v19 = vadd.f32 %v1052_v15, %v1450_v50 }
 0x160   : > { %768 = vst [vmem:[%s1459_s30 + $0x40] sm:$0xff] %v736_v16  ;;  %784 = vst [vmem:[%s1459_s30 + $0xc0] sm:$0xff] %v752_v17  ;;  %v737_v20 = vmax.f32 %v637_v18, 0.0  ;;  %v753_v21 = vmax.f32 %v701_v19, 0.0  ;;  %v1005_v22 = vpop.f32.mrb[20].mxu0  ;;  %v1053_v23 = vpop.f32.mrb[20].mxu1 }
 0x161   : > { %v1006_v24 = vpop.f32.mrb[21].mxu0  ;;  %v1054_v25 = vpop.f32.mrb[21].mxu1 }
 0x162   : > { %769 = vst [vmem:[%s1459_s30 + $0x48] sm:$0xff] %v737_v20  ;;  %785 = vst [vmem:[%s1459_s30 + $0xc8] sm:$0xff] %v753_v21  ;;  %v1007_v26 = vadd.f32 %v1006_v24, %v1005_v22  ;;  %v1055_v27 = vadd.f32 %v1054_v25, %v1053_v23  ;;  %v1008_v28 = vpop.f32.mrb[22].mxu0  ;;  %v1056_v29 = vpop.f32.mrb[22].mxu1 }
 0x163   : > { %v1009_v30 = vpop.f32.mrb[23].mxu0  ;;  %v1057_v31 = vpop.f32.mrb[23].mxu1 }
 0x164   : > { %v642_v32 = vadd.f32 %v1007_v26, %v1450_v50  ;;  %v706_v33 = vadd.f32 %v1055_v27, %v1450_v50  ;;  %v1010_v34 = vadd.f32 %v1009_v30, %v1008_v28  ;;  %v1058_v35 = vadd.f32 %v1057_v31, %v1056_v29 }
 0x166   : > { %v738_v36 = vmax.f32 %v642_v32, 0.0  ;;  %v754_v37 = vmax.f32 %v706_v33, 0.0  ;;  %v645_v38 = vadd.f32 %v1010_v34, %v1450_v50  ;;  %v709_v39 = vadd.f32 %v1058_v35, %v1450_v50 }
 0x168   : > { %770 = vst [vmem:[%s1459_s30 + $0x50] sm:$0xff] %v738_v36  ;;  %786 = vst [vmem:[%s1459_s30 + $0xd0] sm:$0xff] %v754_v37  ;;  %v739_v40 = vmax.f32 %v645_v38, 0.0  ;;  %v755_v41 = vmax.f32 %v709_v39, 0.0  ;;  %v1011_v42 = vpop.f32.mrb[24].mxu0  ;;  %v1059_v43 = vpop.f32.mrb[24].mxu1 }
 0x169   : > { %v1012_v44 = vpop.f32.mrb[25].mxu0  ;;  %v1060_v45 = vpop.f32.mrb[25].mxu1 }
 0x16a   : > { %771 = vst [vmem:[%s1459_s30 + $0x58] sm:$0xff] %v739_v40  ;;  %787 = vst [vmem:[%s1459_s30 + $0xd8] sm:$0xff] %v755_v41  ;;  %v1013_v46 = vadd.f32 %v1012_v44, %v1011_v42  ;;  %v1061_v47 = vadd.f32 %v1060_v45, %v1059_v43  ;;  %v1014_v48 = vpop.f32.mrb[26].mxu0  ;;  %v1062_v49 = vpop.f32.mrb[26].mxu1 }
 0x16b   : > { %v1015_v51 = vpop.f32.mrb[27].mxu0  ;;  %v1063_v52 = vpop.f32.mrb[27].mxu1 }
 0x16c   : > { %v650_v53 = vadd.f32 %v1013_v46, %v1450_v50  ;;  %v714_v54 = vadd.f32 %v1061_v47, %v1450_v50  ;;  %v1016_v55 = vadd.f32 %v1015_v51, %v1014_v48  ;;  %v1064_v56 = vadd.f32 %v1063_v52, %v1062_v49 }
 0x16e   : > { %v740_v57 = vmax.f32 %v650_v53, 0.0  ;;  %v756_v58 = vmax.f32 %v714_v54, 0.0  ;;  %v653_v59 = vadd.f32 %v1016_v55, %v1450_v50  ;;  %v717_v60 = vadd.f32 %v1064_v56, %v1450_v50 }
 0x170   : > { %772 = vst [vmem:[%s1459_s30 + $0x60] sm:$0xff] %v740_v57  ;;  %788 = vst [vmem:[%s1459_s30 + $0xe0] sm:$0xff] %v756_v58  ;;  %v741_v61 = vmax.f32 %v653_v59, 0.0  ;;  %v757_v62 = vmax.f32 %v717_v60, 0.0  ;;  %v1017_v63 = vpop.f32.mrb[28].mxu0  ;;  %v1065_v0 = vpop.f32.mrb[28].mxu1 }
 0x171   : > { %v1018_v1 = vpop.f32.mrb[29].mxu0  ;;  %v1066_v2 = vpop.f32.mrb[29].mxu1 }
 0x172   : > { %773 = vst [vmem:[%s1459_s30 + $0x68] sm:$0xff] %v741_v61  ;;  %789 = vst [vmem:[%s1459_s30 + $0xe8] sm:$0xff] %v757_v62  ;;  %v1019_v3 = vadd.f32 %v1018_v1, %v1017_v63  ;;  %v1067_v4 = vadd.f32 %v1066_v2, %v1065_v0  ;;  %v1020_v5 = vpop.f32.mrb[30].mxu0  ;;  %v1068_v6 = vpop.f32.mrb[30].mxu1 }
 0x173   : > { %v1021_v7 = vpop.f32.mrb[31].mxu0  ;;  %v1069_v8 = vpop.f32.mrb[31].mxu1 }
 0x174   : > { %v658_v9 = vadd.f32 %v1019_v3, %v1450_v50  ;;  %v722_v10 = vadd.f32 %v1067_v4, %v1450_v50  ;;  %v1022_v11 = vadd.f32 %v1021_v7, %v1020_v5  ;;  %v1070_v12 = vadd.f32 %v1069_v8, %v1068_v6 }
 0x176   : > { %v742_v13 = vmax.f32 %v658_v9, 0.0  ;;  %v758_v14 = vmax.f32 %v722_v10, 0.0  ;;  %v661_v15 = vadd.f32 %v1022_v11, %v1450_v50  ;;  %v725_v16 = vadd.f32 %v1070_v12, %v1450_v50 }
 0x178   : > { %774 = vst [vmem:[%s1459_s30 + $0x70] sm:$0xff] %v742_v13  ;;  %790 = vst [vmem:[%s1459_s30 + $0xf0] sm:$0xff] %v758_v14  ;;  %v743_v17 = vmax.f32 %v661_v15, 0.0  ;;  %v759_v18 = vmax.f32 %v725_v16, 0.0 }
 0x17a   : > { %775 = vst [vmem:[%s1459_s30 + $0x78] sm:$0xff] %v743_v17  ;;  %791 = vst [vmem:[%s1459_s30 + $0xf8] sm:$0xff] %v759_v18 }
 0x17b PF: > { %s15_s14 = sadd.s32 1, %s1284_s14   ;;  %s1544_s12 = smov %s1280_s13 }
 0x17c   : > { %p12_p3 = scmp.ge.s32.totalorder %s15_s14, 18   ;;  %s1545_s13 = smov %s1547_s16 }
 0x17e   :  { %14 = sbr.rel (!%p12_p3) target bundleno = 3 (0x3), region = 73 }
 0x185   :  { %820 = vsyncpa [#allocation3], 1 }
 0x186   :  { %822 = vsyncpa [#allocation3 + $0x1], 1 }
 0x187   :  { %823 = vsyncpa [#allocation5], 1 }

// kernel: _lambda_.25
= control target key start
LH: loop header
LB: loop body
LE: loop exit
PB: predicated region body
PF: predicated region fallthrough
CT: control target
= control target key end

     0   :  { %s826_s12 = smov 0   ;;  %s828_s13 = smov 0   ;;  %s1002_s0 = inlined_call_operand.vmem [shape: bf16[256,128], index: 0, kind: input, shape index: {}]   ;;  %s1003_s1 = inlined_call_operand.vmem [shape: bf16[128,256], index: 1, kind: input, shape index: {}]   ;;  %s1004_s2 = inlined_call_operand.vmem [shape: f32[1,256], index: 2, kind: input, shape index: {}]   ;;  %s1005_s3 = inlined_call_operand.vmem [shape: f32[256,256], index: 3, kind: output, shape index: {}]  }
   0x1   :  { %s830_s14 = smov 0  }
   0x2 LB: > { %s25_s15 = sadd.s32 1, %s799_s13  ;;  %p675_p0 = scmp.ge.s32.totalorder %s803_s14, 1  ;;  %s803_s14 = sphi %s830_s14, %s13_s14   ;;  %s799_s13 = sphi %s828_s13, %s1007_s13   ;;  %s795_s12 = sphi %s826_s12, %s1006_s12  }
   0x3   : > { %p27_p1 = scmp.ge.s32.totalorder %s25_s15, 2  ;;  %p173_p2 = scmp.lt.s32.totalorder %s803_s14, 3 }
   0x5   : > { %s1009_s15 = smov (%p27_p1, %s25_s15), 0  ;;  %p174_p3 = pnand %p675_p0, %p173_p2 }
   0x6   : > { %v749_v0 = vld [vmem:[%s1003_s1 + $0x4] ss:$8 sps:$4 sm:$0xff] (!%p174_p3)   ;;  %s676_s18 = sshll.u32 (!%p174_p3), %s795_s12, 4  ;;  %v751_v1 = vld [vmem:[%s1003_s1] ss:$8 sps:$4 sm:$0xff] (!%p174_p3)   ;;  %v805_v2 = vmov (!%p174_p3), 0   ;;  %v275_v25 = vlaneseq (!%p174_p3) }
   0x7   : > { %177 = sbr.rel (%p174_p3) target bundleno = 282 (0x11a), region = 32  ;;  %445 = vmatprep.mubr.bf16.mxu0 (!%p174_p3), %v805_v2  ;;  %485 = vmatprep.mubr.bf16.mxu1 (!%p174_p3), %v805_v2  ;;  %p212_p4 = scmp.lt.s32.totalorder (!%p174_p3), %s676_s18, 31  ;;  %v752_v3 = vld [vmem:[%s1003_s1 + $0x14] ss:$8 sps:$4 sm:$0xff] (!%p174_p3)   ;;  %v754_v4 = vld [vmem:[%s1003_s1 + $0x10] ss:$8 sps:$4 sm:$0xff] (!%p174_p3)  }
   0x8   : > { %413 = vmatprep.subr.bf16.mxu0 (!%p174_p3), %v749_v0  ;;  %708 = vmatprep.subr.bf16.mxu1 (!%p174_p3), %v749_v0  ;;  %v755_v5 = vld [vmem:[%s1003_s1 + $0x24] ss:$8 sps:$4 sm:$0xff] (!%p174_p3)   ;;  %v757_v6 = vld [vmem:[%s1003_s1 + $0x20] ss:$8 sps:$4 sm:$0xff] (!%p174_p3)   ;;  %v758_v7 = vld [vmem:[%s1003_s1 + $0x34] ss:$8 sps:$4 sm:$0xff] (!%p174_p3)  }
   0x9   : > { %414 = vmatpush1.bf16.msra.mxu0 (!%p174_p3), %v751_v1  ;;  %716 = vmatpush1.bf16.msra.mxu1 (!%p174_p3), %v751_v1  ;;  %v760_v8 = vld [vmem:[%s1003_s1 + $0x30] ss:$8 sps:$4 sm:$0xff] (!%p174_p3)   ;;  %v761_v9 = vld [vmem:[%s1003_s1 + $0x44] ss:$8 sps:$4 sm:$0xff] (!%p174_p3)   ;;  %v763_v10 = vld [vmem:[%s1003_s1 + $0x40] ss:$8 sps:$4 sm:$0xff] (!%p174_p3)  }
   0xa   : > { %415 = vmatprep.subr.bf16.mxu0 (!%p174_p3), %v752_v3  ;;  %709 = vmatprep.subr.bf16.mxu1 (!%p174_p3), %v752_v3  ;;  %v764_v11 = vld [vmem:[%s1003_s1 + $0x54] ss:$8 sps:$4 sm:$0xff] (!%p174_p3)   ;;  %v766_v12 = vld [vmem:[%s1003_s1 + $0x50] ss:$8 sps:$4 sm:$0xff] (!%p174_p3)   ;;  %v767_v13 = vld [vmem:[%s1003_s1 + $0x64] ss:$8 sps:$4 sm:$0xff] (!%p174_p3)  }
   0xb   : > { %v769_v14 = vld [vmem:[%s1003_s1 + $0x60] ss:$8 sps:$4 sm:$0xff] (!%p174_p3)   ;;  %v770_v15 = vld [vmem:[%s1003_s1 + $0x74] ss:$8 sps:$4 sm:$0xff] (!%p174_p3)   ;;  %v772_v16 = vld [vmem:[%s1003_s1 + $0x70] ss:$8 sps:$4 sm:$0xff] (!%p174_p3)  }
   0xc   : > { %v276_v26 = vshrl.u32 (!%p174_p3), %v275_v25, 7  ;;  %v273_v28 = vld [vmem:[%s1004_s2] sm:$0x3] (!%p174_p3) }
   0xd   : > { %416 = vmatpush1.bf16.msra.mxu0 (!%p174_p3), %v754_v4  ;;  %717 = vmatpush1.bf16.msra.mxu1 (!%p174_p3), %v754_v4 }
   0xe   : > { %s1011_s18 = smov (!%p212_p4, %s676_s18), 31  ;;  %417 = vmatprep.subr.bf16.mxu0 %v755_v5  ;;  %710 = vmatprep.subr.bf16.mxu1 %v755_v5  ;;  %v277_v27 = vsub.s32 0, %v276_v26  ;;  %v281_v29 = vsub.s32 1, %v276_v26 }
   0xf   : > { %s677_s27 = sshll.u32 %s1011_s18, 2  ;;  %s707_s5 = sshll.u32 %s1011_s18, 4 }
  0x10   : > { %s873_s7 = scalar_lea.vmem %s1002_s0, %s677_s27  ;;  %v920_v30 = vrot.slane %v273_v28, %v277_v27  ;;  %v922_v31 = vrot.slane %v273_v28, %v281_v29  ;;  %s927_s9 = scalar_lea.vmem %s1005_s3, %s707_s5 }
  0x11   : > { %418 = vmatpush1.bf16.msra.mxu0 %v757_v6  ;;  %718 = vmatpush1.bf16.msra.mxu1 %v757_v6  ;;  %v773_v17 = vld [vmem:[%s873_s7] sm:$0xff]   ;;  %v775_v19 = vld [vmem:[%s873_s7 + $0x8] sm:$0xff]   ;;  %v777_v21 = vld [vmem:[%s873_s7 + $0x10] sm:$0xff]  }
  0x12   : > { %419 = vmatprep.subr.bf16.mxu0 %v758_v7  ;;  %711 = vmatprep.subr.bf16.mxu1 %v758_v7  ;;  %v774_v18 = vld [vmem:[%s873_s7 + $0x20] sm:$0xff]   ;;  %v776_v20 = vld [vmem:[%s873_s7 + $0x28] sm:$0xff]   ;;  %v778_v22 = vld [vmem:[%s873_s7 + $0x30] sm:$0xff]  }
  0x13   : > { %v779_v23 = vld [vmem:[%s873_s7 + $0x18] sm:$0xff]  }
  0x14   : > { %v780_v24 = vld [vmem:[%s873_s7 + $0x38] sm:$0xff]  }
  0x15   : > { %420 = vmatpush1.bf16.msra.mxu0 %v760_v8  ;;  %719 = vmatpush1.bf16.msra.mxu1 %v760_v8 }
  0x16   : > { %421 = vmatprep.subr.bf16.mxu0 %v761_v9  ;;  %712 = vmatprep.subr.bf16.mxu1 %v761_v9 }
  0x19   : > { %422 = vmatpush1.bf16.msra.mxu0 %v763_v10  ;;  %720 = vmatpush1.bf16.msra.mxu1 %v763_v10 }
  0x1a   : > { %423 = vmatprep.subr.bf16.mxu0 %v764_v11  ;;  %713 = vmatprep.subr.bf16.mxu1 %v764_v11 }
  0x1d   : > { %424 = vmatpush1.bf16.msra.mxu0 %v766_v12  ;;  %721 = vmatpush1.bf16.msra.mxu1 %v766_v12 }
  0x1e   : > { %425 = vmatprep.subr.bf16.mxu0 %v767_v13  ;;  %714 = vmatprep.subr.bf16.mxu1 %v767_v13 }
  0x21   : > { %426 = vmatpush1.bf16.msra.mxu0 %v769_v14  ;;  %722 = vmatpush1.bf16.msra.mxu1 %v769_v14 }
  0x22   : > { %427 = vmatprep.subr.bf16.mxu0 %v770_v15  ;;  %715 = vmatprep.subr.bf16.mxu1 %v770_v15 }
  0x25   : > { %428 = vmatpush1.bf16.msra.mxu0 %v772_v16  ;;  %723 = vmatpush1.bf16.msra.mxu1 %v772_v16 }
  0x28   : > { %446 = vmatmul.mubr.bf16.vlgmr.msra.gmra.mrb[0].mxu0 %v773_v17  ;;  %486 = vmatmul.mubr.bf16.vlgmr.msra.gmra.mrb[0].mxu1 %v774_v18 }
  0x29   : > { %455 = vmatprep.mubr.bf16.mxu0 %v805_v2  ;;  %495 = vmatprep.mubr.bf16.mxu1 %v805_v2 }
  0x30   : > { %456 = vmatmul.mubr.bf16.gmra.mrb[4].mxu0 %v775_v19  ;;  %496 = vmatmul.mubr.bf16.gmra.mrb[4].mxu1 %v776_v20 }
  0x31   : > { %465 = vmatprep.mubr.bf16.mxu0 %v805_v2  ;;  %505 = vmatprep.mubr.bf16.mxu1 %v805_v2 }
  0x38   : > { %466 = vmatmul.mubr.bf16.gmra.mrb[8].mxu0 %v777_v21  ;;  %506 = vmatmul.mubr.bf16.gmra.mrb[8].mxu1 %v778_v22 }
  0x39   : > { %475 = vmatprep.mubr.bf16.mxu0 %v805_v2  ;;  %515 = vmatprep.mubr.bf16.mxu1 %v805_v2 }
  0x40   : > { %476 = vmatmul.mubr.bf16.gmra.mrb[12].mxu0 %v779_v23  ;;  %516 = vmatmul.mubr.bf16.gmra.mrb[12].mxu1 %v780_v24 }
  0xfb   : > { %v447_v32 = vpop.f32.mrb[0].mxu0  ;;  %v487_v33 = vpop.f32.mrb[0].mxu1 }
  0xfc   : > { %v448_v34 = vadd.f32 %v447_v32, %v920_v30  ;;  %v488_v35 = vadd.f32 %v487_v33, %v920_v30  ;;  %v449_v36 = vpop.f32.mrb[1].mxu0  ;;  %v489_v37 = vpop.f32.mrb[1].mxu1 }
  0xfd   : > { %v450_v38 = vadd.f32 %v449_v36, %v922_v31  ;;  %v490_v39 = vadd.f32 %v489_v37, %v922_v31  ;;  %v451_v40 = vpop.f32.mrb[2].mxu0  ;;  %v491_v41 = vpop.f32.mrb[2].mxu1 }
  0xfe   : > { %526 = vst [vmem:[%s927_s9] sm:$0xff] %v448_v34  ;;  %542 = vst [vmem:[%s927_s9 + $0x80] sm:$0xff] %v488_v35  ;;  %v452_v42 = vadd.f32 %v451_v40, %v920_v30  ;;  %v492_v43 = vadd.f32 %v491_v41, %v920_v30  ;;  %v453_v44 = vpop.f32.mrb[3].mxu0  ;;  %v493_v45 = vpop.f32.mrb[3].mxu1 }
  0xff   : > { %527 = vst [vmem:[%s927_s9 + $0x8] sm:$0xff] %v450_v38  ;;  %543 = vst [vmem:[%s927_s9 + $0x88] sm:$0xff] %v490_v39  ;;  %v454_v46 = vadd.f32 %v453_v44, %v922_v31  ;;  %v494_v47 = vadd.f32 %v493_v45, %v922_v31 }
 0x100   : > { %528 = vst [vmem:[%s927_s9 + $0x10] sm:$0xff] %v452_v42  ;;  %544 = vst [vmem:[%s927_s9 + $0x90] sm:$0xff] %v492_v43 }
 0x101   : > { %529 = vst [vmem:[%s927_s9 + $0x18] sm:$0xff] %v454_v46  ;;  %545 = vst [vmem:[%s927_s9 + $0x98] sm:$0xff] %v494_v47 }
 0x103   : > { %v457_v48 = vpop.f32.mrb[4].mxu0  ;;  %v497_v49 = vpop.f32.mrb[4].mxu1 }
 0x104   : > { %v458_v50 = vadd.f32 %v457_v48, %v920_v30  ;;  %v498_v51 = vadd.f32 %v497_v49, %v920_v30  ;;  %v459_v52 = vpop.f32.mrb[5].mxu0  ;;  %v499_v53 = vpop.f32.mrb[5].mxu1 }
 0x105   : > { %v460_v54 = vadd.f32 %v459_v52, %v922_v31  ;;  %v500_v55 = vadd.f32 %v499_v53, %v922_v31  ;;  %v461_v56 = vpop.f32.mrb[6].mxu0  ;;  %v501_v57 = vpop.f32.mrb[6].mxu1 }
 0x106   : > { %530 = vst [vmem:[%s927_s9 + $0x20] sm:$0xff] %v458_v50  ;;  %546 = vst [vmem:[%s927_s9 + $0xa0] sm:$0xff] %v498_v51  ;;  %v462_v58 = vadd.f32 %v461_v56, %v920_v30  ;;  %v502_v59 = vadd.f32 %v501_v57, %v920_v30  ;;  %v463_v60 = vpop.f32.mrb[7].mxu0  ;;  %v503_v61 = vpop.f32.mrb[7].mxu1 }
 0x107   : > { %531 = vst [vmem:[%s927_s9 + $0x28] sm:$0xff] %v460_v54  ;;  %547 = vst [vmem:[%s927_s9 + $0xa8] sm:$0xff] %v500_v55  ;;  %v464_v62 = vadd.f32 %v463_v60, %v922_v31  ;;  %v504_v63 = vadd.f32 %v503_v61, %v922_v31 }
 0x108   : > { %532 = vst [vmem:[%s927_s9 + $0x30] sm:$0xff] %v462_v58  ;;  %548 = vst [vmem:[%s927_s9 + $0xb0] sm:$0xff] %v502_v59 }
 0x109   : > { %533 = vst [vmem:[%s927_s9 + $0x38] sm:$0xff] %v464_v62  ;;  %549 = vst [vmem:[%s927_s9 + $0xb8] sm:$0xff] %v504_v63 }
 0x10b   : > { %v467_v0 = vpop.f32.mrb[8].mxu0  ;;  %v507_v1 = vpop.f32.mrb[8].mxu1 }
 0x10c   : > { %v468_v2 = vadd.f32 %v467_v0, %v920_v30  ;;  %v508_v3 = vadd.f32 %v507_v1, %v920_v30  ;;  %v469_v4 = vpop.f32.mrb[9].mxu0  ;;  %v509_v5 = vpop.f32.mrb[9].mxu1 }
 0x10d   : > { %v470_v6 = vadd.f32 %v469_v4, %v922_v31  ;;  %v510_v7 = vadd.f32 %v509_v5, %v922_v31  ;;  %v471_v8 = vpop.f32.mrb[10].mxu0  ;;  %v511_v9 = vpop.f32.mrb[10].mxu1 }
 0x10e   : > { %534 = vst [vmem:[%s927_s9 + $0x40] sm:$0xff] %v468_v2  ;;  %550 = vst [vmem:[%s927_s9 + $0xc0] sm:$0xff] %v508_v3  ;;  %v472_v10 = vadd.f32 %v471_v8, %v920_v30  ;;  %v512_v11 = vadd.f32 %v511_v9, %v920_v30  ;;  %v473_v12 = vpop.f32.mrb[11].mxu0  ;;  %v513_v13 = vpop.f32.mrb[11].mxu1 }
 0x10f   : > { %535 = vst [vmem:[%s927_s9 + $0x48] sm:$0xff] %v470_v6  ;;  %551 = vst [vmem:[%s927_s9 + $0xc8] sm:$0xff] %v510_v7  ;;  %v474_v14 = vadd.f32 %v473_v12, %v922_v31  ;;  %v514_v15 = vadd.f32 %v513_v13, %v922_v31 }
 0x110   : > { %536 = vst [vmem:[%s927_s9 + $0x50] sm:$0xff] %v472_v10  ;;  %552 = vst [vmem:[%s927_s9 + $0xd0] sm:$0xff] %v512_v11 }
 0x111   : > { %537 = vst [vmem:[%s927_s9 + $0x58] sm:$0xff] %v474_v14  ;;  %553 = vst [vmem:[%s927_s9 + $0xd8] sm:$0xff] %v514_v15 }
 0x113   : > { %v477_v16 = vpop.f32.mrb[12].mxu0  ;;  %v517_v17 = vpop.f32.mrb[12].mxu1 }
 0x114   : > { %v478_v18 = vadd.f32 %v477_v16, %v920_v30  ;;  %v518_v19 = vadd.f32 %v517_v17, %v920_v30  ;;  %v479_v20 = vpop.f32.mrb[13].mxu0  ;;  %v519_v21 = vpop.f32.mrb[13].mxu1 }
 0x115   : > { %v480_v22 = vadd.f32 %v479_v20, %v922_v31  ;;  %v520_v23 = vadd.f32 %v519_v21, %v922_v31  ;;  %v481_v24 = vpop.f32.mrb[14].mxu0  ;;  %v521_v25 = vpop.f32.mrb[14].mxu1 }
 0x116   : > { %538 = vst [vmem:[%s927_s9 + $0x60] sm:$0xff] %v478_v18  ;;  %554 = vst [vmem:[%s927_s9 + $0xe0] sm:$0xff] %v518_v19  ;;  %v482_v26 = vadd.f32 %v481_v24, %v920_v30  ;;  %v522_v27 = vadd.f32 %v521_v25, %v920_v30  ;;  %v483_v28 = vpop.f32.mrb[15].mxu0  ;;  %v523_v29 = vpop.f32.mrb[15].mxu1 }
 0x117   : > { %539 = vst [vmem:[%s927_s9 + $0x68] sm:$0xff] %v480_v22  ;;  %555 = vst [vmem:[%s927_s9 + $0xe8] sm:$0xff] %v520_v23  ;;  %v484_v32 = vadd.f32 %v483_v28, %v922_v31  ;;  %v524_v33 = vadd.f32 %v523_v29, %v922_v31 }
 0x118   : > { %540 = vst [vmem:[%s927_s9 + $0x70] sm:$0xff] %v482_v26  ;;  %556 = vst [vmem:[%s927_s9 + $0xf0] sm:$0xff] %v522_v27 }
 0x119   : > { %541 = vst [vmem:[%s927_s9 + $0x78] sm:$0xff] %v484_v32  ;;  %557 = vst [vmem:[%s927_s9 + $0xf8] sm:$0xff] %v524_v33 }
 0x11a PF: > { %s13_s14 = sadd.s32 1, %s803_s14   ;;  %s1006_s12 = smov %s799_s13 }
 0x11b   : > { %p10_p5 = scmp.ge.s32.totalorder %s13_s14, 4   ;;  %s1007_s13 = smov %s1009_s15 }
 0x11d   :  { %12 = sbr.rel (!%p10_p5) target bundleno = 2 (0x2), region = 68 }

// kernel: _lambda_.27
= control target key start
LH: loop header
LB: loop body
LE: loop exit
PB: predicated region body
PF: predicated region fallthrough
CT: control target
= control target key end

     0   :  { %s913_s12 = smov 0   ;;  %s915_s13 = smov 0   ;;  %s1000_s0 = inlined_call_operand.vmem [shape: bf16[256,128], index: 0, kind: input, shape index: {}]   ;;  %s1001_s1 = inlined_call_operand.vmem [shape: bf16[128,128], index: 1, kind: input, shape index: {}]   ;;  %s1002_s2 = inlined_call_operand.vmem [shape: f32[1,128], index: 2, kind: input, shape index: {}]   ;;  %s1003_s3 = inlined_call_operand.vmem [shape: bf16[256,128], index: 3, kind: output, shape index: {}]  }
   0x1   :  { %s917_s14 = smov 0  }
   0x2 LB: > { %s25_s15 = sadd.s32 1, %s887_s13  ;;  %p662_p0 = scmp.ge.s32.totalorder %s891_s14, 1  ;;  %s891_s14 = sphi %s917_s14, %s13_s14   ;;  %s887_s13 = sphi %s915_s13, %s1005_s13   ;;  %s883_s12 = sphi %s913_s12, %s1004_s12  }
   0x3   : > { %p27_p1 = scmp.ge.s32.totalorder %s25_s15, 2  ;;  %p169_p2 = scmp.lt.s32.totalorder %s891_s14, 3 }
   0x5   : > { %s1007_s15 = smov (%p27_p1, %s25_s15), 0  ;;  %p170_p3 = pnand %p662_p0, %p169_p2 }
   0x6   : > { %v853_v0 = vld [vmem:[%s1001_s1] sm:$0xff] (!%p170_p3)   ;;  %s663_s18 = sshll.u32 (!%p170_p3), %s883_s12, 4  ;;  %v854_v1 = vld [vmem:[%s1001_s1 + $0x8] sm:$0xff] (!%p170_p3)   ;;  %v855_v2 = vld [vmem:[%s1001_s1 + $0x10] sm:$0xff] (!%p170_p3)  }
   0x7   : > { %173 = sbr.rel (%p170_p3) target bundleno = 269 (0x10d), region = 32  ;;  %p204_p4 = scmp.lt.s32.totalorder (!%p170_p3), %s663_s18, 31  ;;  %781 = vmatprep.subr.bf16.mxu0 (!%p170_p3), %v853_v0  ;;  %813 = vmatprep.subr.bf16.mxu1 (!%p170_p3), %v853_v0  ;;  %v856_v3 = vld [vmem:[%s1001_s1 + $0x18] sm:$0xff] (!%p170_p3)   ;;  %v857_v6 = vld [vmem:[%s1001_s1 + $0x20] sm:$0xff] (!%p170_p3)   ;;  %v858_v7 = vld [vmem:[%s1001_s1 + $0x28] sm:$0xff] (!%p170_p3)  }
   0x8   : > { %782 = vmatpush3.bf16.msra.mxu0 (!%p170_p3), %v853_v0  ;;  %821 = vmatpush3.bf16.msra.mxu1 (!%p170_p3), %v853_v0  ;;  %v859_v8 = vld [vmem:[%s1001_s1 + $0x30] sm:$0xff] (!%p170_p3)   ;;  %v860_v9 = vld [vmem:[%s1001_s1 + $0x38] sm:$0xff] (!%p170_p3)   ;;  %v667_v16 = vld [vmem:[%s1002_s2] ss:$0 sm:$0xff] (!%p170_p3) }
   0x9   : > { %783 = vmatprep.subr.bf16.mxu0 (!%p170_p3), %v854_v1  ;;  %814 = vmatprep.subr.bf16.mxu1 (!%p170_p3), %v854_v1 }
   0xc   : > { %784 = vmatpush3.bf16.msra.mxu0 (!%p170_p3), %v854_v1  ;;  %822 = vmatpush3.bf16.msra.mxu1 (!%p170_p3), %v854_v1 }
   0xd   : > { %785 = vmatprep.subr.bf16.mxu0 (!%p170_p3), %v855_v2  ;;  %815 = vmatprep.subr.bf16.mxu1 (!%p170_p3), %v855_v2 }
   0xe   : > { %s1009_s18 = smov (!%p204_p4, %s663_s18), 31 }
   0xf   : > { %s664_s23 = sshll.u32 %s1009_s18, 2 }
  0x10   : > { %s948_s26 = scalar_lea.vmem %s1000_s0, %s664_s23  ;;  %786 = vmatpush3.bf16.msra.mxu0 %v855_v2  ;;  %823 = vmatpush3.bf16.msra.mxu1 %v855_v2  ;;  %s981_s17 = scalar_lea.vmem %s1003_s3, %s664_s23 }
  0x11   : > { %v861_v4 = vld [vmem:[%s948_s26] sm:$0xff]   ;;  %787 = vmatprep.subr.bf16.mxu0 %v856_v3  ;;  %816 = vmatprep.subr.bf16.mxu1 %v856_v3  ;;  %v863_v10 = vld [vmem:[%s948_s26 + $0x8] sm:$0xff]   ;;  %v865_v12 = vld [vmem:[%s948_s26 + $0x10] sm:$0xff]  }
  0x12   : > { %v862_v5 = vld [vmem:[%s948_s26 + $0x20] sm:$0xff]   ;;  %797 = vmatprep.mubr.bf16.mxu0 %v861_v4  ;;  %v864_v11 = vld [vmem:[%s948_s26 + $0x28] sm:$0xff]   ;;  %v866_v13 = vld [vmem:[%s948_s26 + $0x30] sm:$0xff]  }
  0x13   : > { %805 = vmatprep.mubr.bf16.mxu1 %v862_v5  ;;  %v867_v14 = vld [vmem:[%s948_s26 + $0x18] sm:$0xff]  }
  0x14   : > { %788 = vmatpush3.bf16.msra.mxu0 %v856_v3  ;;  %824 = vmatpush3.bf16.msra.mxu1 %v856_v3  ;;  %v868_v15 = vld [vmem:[%s948_s26 + $0x38] sm:$0xff]  }
  0x15   : > { %789 = vmatprep.subr.bf16.mxu0 %v857_v6  ;;  %817 = vmatprep.subr.bf16.mxu1 %v857_v6 }
  0x18   : > { %790 = vmatpush3.bf16.msra.mxu0 %v857_v6  ;;  %825 = vmatpush3.bf16.msra.mxu1 %v857_v6 }
  0x19   : > { %791 = vmatprep.subr.bf16.mxu0 %v858_v7  ;;  %818 = vmatprep.subr.bf16.mxu1 %v858_v7 }
  0x1c   : > { %792 = vmatpush3.bf16.msra.mxu0 %v858_v7  ;;  %826 = vmatpush3.bf16.msra.mxu1 %v858_v7 }
  0x1d   : > { %793 = vmatprep.subr.bf16.mxu0 %v859_v8  ;;  %819 = vmatprep.subr.bf16.mxu1 %v859_v8 }
  0x20   : > { %794 = vmatpush3.bf16.msra.mxu0 %v859_v8  ;;  %827 = vmatpush3.bf16.msra.mxu1 %v859_v8 }
  0x21   : > { %795 = vmatprep.subr.bf16.mxu0 %v860_v9  ;;  %820 = vmatprep.subr.bf16.mxu1 %v860_v9 }
  0x24   : > { %796 = vmatpush3.bf16.msra.mxu0 %v860_v9  ;;  %828 = vmatpush3.bf16.msra.mxu1 %v860_v9 }
  0x27   : > { %798 = vmatmul.mubr.bf16.vlgmr.msra.gmra.mrb[0].mxu0 %v863_v10  ;;  %806 = vmatmul.mubr.bf16.vlgmr.msra.gmra.mrb[0].mxu1 %v864_v11 }
  0x28   : > { %801 = vmatprep.mubr.bf16.mxu0 %v865_v12  ;;  %809 = vmatprep.mubr.bf16.mxu1 %v866_v13 }
  0x2f   : > { %802 = vmatmul.mubr.bf16.gmra.mrb[4].mxu0 %v867_v14  ;;  %810 = vmatmul.mubr.bf16.gmra.mrb[4].mxu1 %v868_v15 }
  0xfa   : > { %v799_v17 = vpop.f32.mrb[0].mxu0  ;;  %v807_v18 = vpop.f32.mrb[0].mxu1 }
  0xfb   : > { %v404_v19 = vadd.f32 %v799_v17, %v667_v16  ;;  %v436_v20 = vadd.f32 %v807_v18, %v667_v16  ;;  %v395_v21 = vpop.f32.mrb[1].mxu0  ;;  %v427_v22 = vpop.f32.mrb[1].mxu1 }
  0xfc   : > { %v396_v23 = vadd.f32 %v667_v16, %v395_v21  ;;  %v428_v24 = vadd.f32 %v667_v16, %v427_v22  ;;  %v800_v25 = vpop.f32.mrb[2].mxu0  ;;  %v808_v26 = vpop.f32.mrb[2].mxu1 }
  0xfd   : > { %v407_v27 = vadd.f32 %v800_v25, %v667_v16  ;;  %v439_v28 = vadd.f32 %v808_v26, %v667_v16  ;;  %v398_v29 = vpop.f32.mrb[3].mxu0  ;;  %v430_v30 = vpop.f32.mrb[3].mxu1  ;;  %v460_v33 = vmax.f32 %v404_v19, 0.0  ;;  %v468_v34 = vmax.f32 %v436_v20, 0.0 }
  0xfe   : > { %v399_v31 = vadd.f32 %v667_v16, %v398_v29  ;;  %v431_v32 = vadd.f32 %v667_v16, %v430_v30  ;;  %v458_v37 = vmax.f32 %v396_v23, 0.0  ;;  %v466_v38 = vmax.f32 %v428_v24, 0.0 }
  0xff   : > { %v461_v35 = vmax.f32 %v407_v27, 0.0  ;;  %v469_v36 = vmax.f32 %v439_v28, 0.0 }
 0x100   : > { %v459_v39 = vmax.f32 %v399_v31, 0.0  ;;  %v467_v40 = vmax.f32 %v431_v32, 0.0 }
 0x101   : > { %v726_v41 = vpack.c.bf16 %v461_v35, %v460_v33  ;;  %v746_v42 = vpack.c.bf16 %v469_v36, %v468_v34 }
 0x102   : > { %v721_v43 = vpack.c.bf16 %v459_v39, %v458_v37  ;;  %v741_v44 = vpack.c.bf16 %v467_v40, %v466_v38  ;;  %v803_v45 = vpop.f32.mrb[4].mxu0  ;;  %v811_v46 = vpop.f32.mrb[4].mxu1 }
 0x103   : > { %758 = vst [vmem:[%s981_s17 + $0x8] sm:$0xff] %v726_v41   ;;  %762 = vst [vmem:[%s981_s17 + $0x28] sm:$0xff] %v746_v42   ;;  %v420_v47 = vadd.f32 %v803_v45, %v667_v16  ;;  %v452_v48 = vadd.f32 %v811_v46, %v667_v16  ;;  %v411_v49 = vpop.f32.mrb[5].mxu0  ;;  %v443_v50 = vpop.f32.mrb[5].mxu1 }
 0x104   : > { %722 = vst [vmem:[%s981_s17] sm:$0xff] %v721_v43   ;;  %761 = vst [vmem:[%s981_s17 + $0x20] sm:$0xff] %v741_v44   ;;  %v412_v51 = vadd.f32 %v667_v16, %v411_v49  ;;  %v444_v52 = vadd.f32 %v667_v16, %v443_v50  ;;  %v804_v53 = vpop.f32.mrb[6].mxu0  ;;  %v812_v54 = vpop.f32.mrb[6].mxu1 }
 0x105   : > { %v423_v55 = vadd.f32 %v804_v53, %v667_v16  ;;  %v455_v56 = vadd.f32 %v812_v54, %v667_v16  ;;  %v414_v57 = vpop.f32.mrb[7].mxu0  ;;  %v446_v58 = vpop.f32.mrb[7].mxu1  ;;  %v464_v61 = vmax.f32 %v420_v47, 0.0  ;;  %v472_v62 = vmax.f32 %v452_v48, 0.0 }
 0x106   : > { %v415_v59 = vadd.f32 %v667_v16, %v414_v57  ;;  %v447_v60 = vadd.f32 %v667_v16, %v446_v58  ;;  %v462_v1 = vmax.f32 %v412_v51, 0.0  ;;  %v470_v2 = vmax.f32 %v444_v52, 0.0 }
 0x107   : > { %v465_v63 = vmax.f32 %v423_v55, 0.0  ;;  %v473_v0 = vmax.f32 %v455_v56, 0.0 }
 0x108   : > { %v463_v3 = vmax.f32 %v415_v59, 0.0  ;;  %v471_v4 = vmax.f32 %v447_v60, 0.0 }
 0x109   : > { %v736_v5 = vpack.c.bf16 %v465_v63, %v464_v61  ;;  %v756_v6 = vpack.c.bf16 %v473_v0, %v472_v62 }
 0x10a   : > { %v731_v7 = vpack.c.bf16 %v463_v3, %v462_v1  ;;  %v751_v8 = vpack.c.bf16 %v471_v4, %v470_v2 }
 0x10b   : > { %760 = vst [vmem:[%s981_s17 + $0x18] sm:$0xff] %v736_v5   ;;  %764 = vst [vmem:[%s981_s17 + $0x38] sm:$0xff] %v756_v6  }
 0x10c   : > { %759 = vst [vmem:[%s981_s17 + $0x10] sm:$0xff] %v731_v7   ;;  %763 = vst [vmem:[%s981_s17 + $0x30] sm:$0xff] %v751_v8  }
 0x10d PF: > { %s13_s14 = sadd.s32 1, %s891_s14   ;;  %s1004_s12 = smov %s887_s13 }
 0x10e   : > { %p10_p5 = scmp.ge.s32.totalorder %s13_s14, 4   ;;  %s1005_s13 = smov %s1007_s15 }
 0x110   :  { %12 = sbr.rel (!%p10_p5) target bundleno = 2 (0x2), region = 68 }

// kernel: _lambda_.31
= control target key start
LH: loop header
LB: loop body
LE: loop exit
PB: predicated region body
PF: predicated region fallthrough
CT: control target
= control target key end

     0   :  { %s2505_s12 = smov 0   ;;  %s2507_s13 = smov 0   ;;  %s3012_s0 = inlined_call_operand.vmem [shape: bf16[256,896], index: 0, kind: input, shape index: {}]   ;;  %s3013_s1 = inlined_call_operand.vmem [shape: bf16[896,256], index: 1, kind: input, shape index: {}]   ;;  %s3014_s2 = inlined_call_operand.vmem [shape: f32[1,256], index: 2, kind: input, shape index: {}]   ;;  %s3015_s3 = inlined_call_operand.vmem [shape: f32[256,256], index: 3, kind: output, shape index: {}]  }
   0x1   :  { %s2509_s14 = smov 0  }
   0x2 LB: > { %s25_s15 = sadd.s32 1, %s2478_s13  ;;  %p1881_p0 = scmp.ge.s32.totalorder %s2482_s14, 1  ;;  %s2482_s14 = sphi %s2509_s14, %s13_s14   ;;  %s2478_s13 = sphi %s2507_s13, %s3017_s13   ;;  %s2474_s12 = sphi %s2505_s12, %s3016_s12  }
   0x3   : > { %p27_p1 = scmp.ge.s32.totalorder %s25_s15, 2  ;;  %p174_p2 = scmp.lt.s32.totalorder %s2482_s14, 3 }
   0x5   : > { %s3019_s15 = smov (%p27_p1, %s25_s15), 0  ;;  %p175_p3 = pnand %p1881_p0, %p174_p2 }
   0x6   : > { %v2212_v0 = vld [vmem:[%s3013_s1 + $0x4] ss:$8 sps:$4 sm:$0xff] (!%p175_p3)   ;;  %v2216_v2 = vld [vmem:[%s3013_s1] ss:$8 sps:$4 sm:$0xff] (!%p175_p3)   ;;  %v2218_v4 = vld [vmem:[%s3013_s1 + $0x14] ss:$8 sps:$4 sm:$0xff] (!%p175_p3)  }
   0x7   : > { %178 = sbr.rel (%p175_p3) target bundleno = 411 (0x19b), region = 32  ;;  %v2214_v1 = vld [vmem:[%s3013_s1 + $0x204] ss:$8 sps:$4 sm:$0xff] (!%p175_p3)   ;;  %1280 = vmatprep.subr.bf16.mxu1 (!%p175_p3), %v2212_v0  ;;  %v2217_v3 = vld [vmem:[%s3013_s1 + $0x200] ss:$8 sps:$4 sm:$0xff] (!%p175_p3)   ;;  %s1882_s30 = sshll.u32 (!%p175_p3), %s2474_s12, 4 }
   0x8   : > { %1506 = vmatprep.subr.bf16.mxu0 (!%p175_p3), %v2214_v1  ;;  %1281 = vmatpush1.bf16.msra.mxu1 (!%p175_p3), %v2216_v2  ;;  %v2220_v5 = vld [vmem:[%s3013_s1 + $0x214] ss:$8 sps:$4 sm:$0xff] (!%p175_p3)   ;;  %v2222_v6 = vld [vmem:[%s3013_s1 + $0x10] ss:$8 sps:$4 sm:$0xff] (!%p175_p3)   ;;  %v2224_v8 = vld [vmem:[%s3013_s1 + $0x24] ss:$8 sps:$4 sm:$0xff] (!%p175_p3)  }
   0x9   : > { %1507 = vmatpush1.bf16.msra.mxu0 (!%p175_p3), %v2217_v3  ;;  %1282 = vmatprep.subr.bf16.mxu1 (!%p175_p3), %v2218_v4  ;;  %v2223_v7 = vld [vmem:[%s3013_s1 + $0x210] ss:$8 sps:$4 sm:$0xff] (!%p175_p3)   ;;  %v2226_v9 = vld [vmem:[%s3013_s1 + $0x224] ss:$8 sps:$4 sm:$0xff] (!%p175_p3)   ;;  %v2228_v10 = vld [vmem:[%s3013_s1 + $0x20] ss:$8 sps:$4 sm:$0xff] (!%p175_p3)  }
   0xa   : > { %1508 = vmatprep.subr.bf16.mxu0 (!%p175_p3), %v2220_v5  ;;  %v2229_v11 = vld [vmem:[%s3013_s1 + $0x220] ss:$8 sps:$4 sm:$0xff] (!%p175_p3)   ;;  %v2230_v12 = vld [vmem:[%s3013_s1 + $0x34] ss:$8 sps:$4 sm:$0xff] (!%p175_p3)   ;;  %v2234_v14 = vld [vmem:[%s3013_s1 + $0x30] ss:$8 sps:$4 sm:$0xff] (!%p175_p3)  }
   0xb   : > { %v2232_v13 = vld [vmem:[%s3013_s1 + $0x234] ss:$8 sps:$4 sm:$0xff] (!%p175_p3)   ;;  %v2235_v15 = vld [vmem:[%s3013_s1 + $0x230] ss:$8 sps:$4 sm:$0xff] (!%p175_p3)   ;;  %v2236_v16 = vld [vmem:[%s3013_s1 + $0x44] ss:$8 sps:$4 sm:$0xff] (!%p175_p3)  }
   0xc   : > { %1283 = vmatpush1.bf16.msra.mxu1 (!%p175_p3), %v2222_v6  ;;  %v2238_v17 = vld [vmem:[%s3013_s1 + $0x244] ss:$8 sps:$4 sm:$0xff] (!%p175_p3)   ;;  %v2240_v18 = vld [vmem:[%s3013_s1 + $0x40] ss:$8 sps:$4 sm:$0xff] (!%p175_p3)   ;;  %v2242_v20 = vld [vmem:[%s3013_s1 + $0x54] ss:$8 sps:$4 sm:$0xff] (!%p175_p3)  }
   0xd   : > { %1509 = vmatpush1.bf16.msra.mxu0 (!%p175_p3), %v2223_v7  ;;  %1284 = vmatprep.subr.bf16.mxu1 (!%p175_p3), %v2224_v8  ;;  %v2241_v19 = vld [vmem:[%s3013_s1 + $0x240] ss:$8 sps:$4 sm:$0xff] (!%p175_p3)   ;;  %v2244_v21 = vld [vmem:[%s3013_s1 + $0x254] ss:$8 sps:$4 sm:$0xff] (!%p175_p3)   ;;  %v2246_v22 = vld [vmem:[%s3013_s1 + $0x50] ss:$8 sps:$4 sm:$0xff] (!%p175_p3)  }
   0xe   : > { %1510 = vmatprep.subr.bf16.mxu0 %v2226_v9  ;;  %v2247_v23 = vld [vmem:[%s3013_s1 + $0x250] ss:$8 sps:$4 sm:$0xff]   ;;  %v2248_v24 = vld [vmem:[%s3013_s1 + $0x64] ss:$8 sps:$4 sm:$0xff]   ;;  %v2252_v26 = vld [vmem:[%s3013_s1 + $0x60] ss:$8 sps:$4 sm:$0xff]  }
   0xf   : > { %v2250_v25 = vld [vmem:[%s3013_s1 + $0x264] ss:$8 sps:$4 sm:$0xff]   ;;  %v2253_v27 = vld [vmem:[%s3013_s1 + $0x260] ss:$8 sps:$4 sm:$0xff]   ;;  %v2254_v28 = vld [vmem:[%s3013_s1 + $0x74] ss:$8 sps:$4 sm:$0xff]  }
  0x10   : > { %1285 = vmatpush1.bf16.msra.mxu1 %v2228_v10  ;;  %v2256_v29 = vld [vmem:[%s3013_s1 + $0x274] ss:$8 sps:$4 sm:$0xff]   ;;  %v2258_v30 = vld [vmem:[%s3013_s1 + $0x70] ss:$8 sps:$4 sm:$0xff]   ;;  %v2260_v32 = vld [vmem:[%s3013_s1 + $0x84] ss:$8 sps:$4 sm:$0xff]  }
  0x11   : > { %1511 = vmatpush1.bf16.msra.mxu0 %v2229_v11  ;;  %1286 = vmatprep.subr.bf16.mxu1 %v2230_v12  ;;  %v2259_v31 = vld [vmem:[%s3013_s1 + $0x270] ss:$8 sps:$4 sm:$0xff]   ;;  %p214_p4 = scmp.lt.s32.totalorder %s1882_s30, 31  ;;  %v2262_v33 = vld [vmem:[%s3013_s1 + $0x284] ss:$8 sps:$4 sm:$0xff]  }
  0x12   : > { %1512 = vmatprep.subr.bf16.mxu0 %v2232_v13  ;;  %v2264_v34 = vld [vmem:[%s3013_s1 + $0x80] ss:$8 sps:$4 sm:$0xff]   ;;  %v2266_v36 = vld [vmem:[%s3013_s1 + $0x94] ss:$8 sps:$4 sm:$0xff]   ;;  %v2270_v38 = vld [vmem:[%s3013_s1 + $0x90] ss:$8 sps:$4 sm:$0xff]  }
  0x13   : > { %v2265_v35 = vld [vmem:[%s3013_s1 + $0x280] ss:$8 sps:$4 sm:$0xff]   ;;  %s3021_s30 = smov (!%p214_p4, %s1882_s30), 31  ;;  %v2268_v37 = vld [vmem:[%s3013_s1 + $0x294] ss:$8 sps:$4 sm:$0xff]  }
  0x14   : > { %1287 = vmatpush1.bf16.msra.mxu1 %v2234_v14  ;;  %v2271_v39 = vld [vmem:[%s3013_s1 + $0x290] ss:$8 sps:$4 sm:$0xff]   ;;  %v2272_v40 = vld [vmem:[%s3013_s1 + $0xa4] ss:$8 sps:$4 sm:$0xff]   ;;  %s2186_s29 = smul.u32 28, %s3021_s30  ;;  %s2057_s22 = sshll.u32 %s3021_s30, 4 }
  0x15   : > { %1513 = vmatpush1.bf16.msra.mxu0 %v2235_v15  ;;  %1288 = vmatprep.subr.bf16.mxu1 %v2236_v16  ;;  %v2274_v41 = vld [vmem:[%s3013_s1 + $0x2a4] ss:$8 sps:$4 sm:$0xff]   ;;  %v2276_v42 = vld [vmem:[%s3013_s1 + $0xa0] ss:$8 sps:$4 sm:$0xff]   ;;  %v2278_v44 = vld [vmem:[%s3013_s1 + $0xb4] ss:$8 sps:$4 sm:$0xff]   ;;  %s2938_s24 = scalar_lea.vmem %s3015_s3, %s2057_s22 }
  0x16   : > { %1514 = vmatprep.subr.bf16.mxu0 %v2238_v17  ;;  %v2277_v43 = vld [vmem:[%s3013_s1 + $0x2a0] ss:$8 sps:$4 sm:$0xff]   ;;  %s2667_s17 = scalar_lea.vmem %s3012_s0, %s2186_s29  ;;  %v2280_v45 = vld [vmem:[%s3013_s1 + $0x2b4] ss:$8 sps:$4 sm:$0xff]   ;;  %v2282_v46 = vld [vmem:[%s3013_s1 + $0xb0] ss:$8 sps:$4 sm:$0xff]  }
  0x17   : > { %v2283_v47 = vld [vmem:[%s3013_s1 + $0x2b0] ss:$8 sps:$4 sm:$0xff]   ;;  %v2284_v48 = vld [vmem:[%s3013_s1 + $0xc4] ss:$8 sps:$4 sm:$0xff]   ;;  %v2288_v52 = vld [vmem:[%s3013_s1 + $0xc0] ss:$8 sps:$4 sm:$0xff]  }
  0x18   : > { %1289 = vmatpush1.bf16.msra.mxu1 %v2240_v18  ;;  %v2310_v49 = vld [vmem:[%s2667_s17 + $0x4] ss:$28 sps:$4 sm:$0xff]   ;;  %v2313_v51 = vld [vmem:[%s2667_s17 + $0x14] ss:$28 sps:$4 sm:$0xff]   ;;  %v2323_v9 = vld [vmem:[%s2667_s17 + $0x3c] ss:$28 sps:$4 sm:$0xff]  }
  0x19   : > { %1515 = vmatpush1.bf16.msra.mxu0 %v2241_v19  ;;  %1290 = vmatprep.subr.bf16.mxu1 %v2242_v20  ;;  %v2286_v50 = vld [vmem:[%s3013_s1 + $0x2c4] ss:$8 sps:$4 sm:$0xff]   ;;  %v2289_v53 = vld [vmem:[%s3013_s1 + $0x2c0] ss:$8 sps:$4 sm:$0xff]   ;;  %v2290_v54 = vld [vmem:[%s3013_s1 + $0xd4] ss:$8 sps:$4 sm:$0xff]  }
  0x1a   : > { %1516 = vmatprep.subr.bf16.mxu0 %v2244_v21  ;;  %1312 = vmatprep.mubr.bf16.mxu1 %v2310_v49  ;;  %v2292_v55 = vld [vmem:[%s3013_s1 + $0x2d4] ss:$8 sps:$4 sm:$0xff]   ;;  %v2294_v56 = vld [vmem:[%s3013_s1 + $0xd0] ss:$8 sps:$4 sm:$0xff]   ;;  %v2296_v58 = vld [vmem:[%s3013_s1 + $0xe4] ss:$8 sps:$4 sm:$0xff]  }
  0x1b   : > { %1538 = vmatprep.mubr.bf16.mxu0 %v2313_v51  ;;  %v2295_v57 = vld [vmem:[%s3013_s1 + $0x2d0] ss:$8 sps:$4 sm:$0xff]   ;;  %v2298_v59 = vld [vmem:[%s3013_s1 + $0x2e4] ss:$8 sps:$4 sm:$0xff]   ;;  %v2300_v60 = vld [vmem:[%s3013_s1 + $0xe0] ss:$8 sps:$4 sm:$0xff]  }
  0x1c   : > { %1291 = vmatpush1.bf16.msra.mxu1 %v2246_v22  ;;  %v2301_v61 = vld [vmem:[%s3013_s1 + $0x2e0] ss:$8 sps:$4 sm:$0xff]   ;;  %v2302_v62 = vld [vmem:[%s3013_s1 + $0xf4] ss:$8 sps:$4 sm:$0xff]   ;;  %v2306_v0 = vld [vmem:[%s3013_s1 + $0xf0] ss:$8 sps:$4 sm:$0xff]  }
  0x1d   : > { %1517 = vmatpush1.bf16.msra.mxu0 %v2247_v23  ;;  %1292 = vmatprep.subr.bf16.mxu1 %v2248_v24  ;;  %v2304_v63 = vld [vmem:[%s3013_s1 + $0x2f4] ss:$8 sps:$4 sm:$0xff]   ;;  %v2307_v1 = vld [vmem:[%s3013_s1 + $0x2f0] ss:$8 sps:$4 sm:$0xff]   ;;  %v2316_v2 = vld [vmem:[%s3013_s1 + $0x104] ss:$8 sps:$4 sm:$0xff]  }
  0x1e   : > { %1518 = vmatprep.subr.bf16.mxu0 %v2250_v25  ;;  %v2319_v3 = vld [vmem:[%s3013_s1 + $0x304] ss:$8 sps:$4 sm:$0xff]   ;;  %v2308_v4 = vld [vmem:[%s2667_s17] ss:$28 sps:$4 sm:$0xff]   ;;  %v2320_v12 = vld [vmem:[%s3013_s1 + $0x110] ss:$8 sps:$4 sm:$0xff]  }
  0x1f   : > { %v2311_v5 = vld [vmem:[%s2667_s17 + $0x10] ss:$28 sps:$4 sm:$0xff]   ;;  %v2314_v6 = vld [vmem:[%s3013_s1 + $0x100] ss:$8 sps:$4 sm:$0xff]   ;;  %v2322_v8 = vld [vmem:[%s3013_s1 + $0x114] ss:$8 sps:$4 sm:$0xff]  }
  0x20   : > { %1293 = vmatpush1.bf16.msra.mxu1 %v2252_v26  ;;  %v2317_v7 = vld [vmem:[%s3013_s1 + $0x300] ss:$8 sps:$4 sm:$0xff]   ;;  %v2334_v11 = vld [vmem:[%s3013_s1 + $0x314] ss:$8 sps:$4 sm:$0xff]   ;;  %v2330_v13 = vld [vmem:[%s3013_s1 + $0x124] ss:$8 sps:$4 sm:$0xff]  }
  0x21   : > { %1519 = vmatpush1.bf16.msra.mxu0 %v2253_v27  ;;  %1294 = vmatprep.subr.bf16.mxu1 %v2254_v28  ;;  %v2325_v10 = vld [vmem:[%s2667_s17 + $0x4c] ss:$28 sps:$4 sm:$0xff]   ;;  %v2332_v14 = vld [vmem:[%s3013_s1 + $0x310] ss:$8 sps:$4 sm:$0xff]   ;;  %v2337_v19 = vld [vmem:[%s3013_s1 + $0x134] ss:$8 sps:$4 sm:$0xff]  }
  0x22   : > { %1520 = vmatprep.subr.bf16.mxu0 %v2256_v29  ;;  %v2349_v15 = vld [vmem:[%s3013_s1 + $0x324] ss:$8 sps:$4 sm:$0xff]   ;;  %v2327_v16 = vld [vmem:[%s2667_s17 + $0x38] ss:$28 sps:$4 sm:$0xff]   ;;  %v2328_v17 = vld [vmem:[%s3013_s1 + $0x120] ss:$8 sps:$4 sm:$0xff]  }
  0x23   : > { %v2331_v18 = vld [vmem:[%s2667_s17 + $0x48] ss:$28 sps:$4 sm:$0xff]   ;;  %v2338_v20 = vld [vmem:[%s2667_s17 + $0x74] ss:$28 sps:$4 sm:$0xff]   ;;  %v2346_v29 = vld [vmem:[%s2667_s17 + $0x80] ss:$28 sps:$4 sm:$0xff]  }
  0x24   : > { %1295 = vmatpush1.bf16.msra.mxu1 %v2258_v30  ;;  %v2340_v21 = vld [vmem:[%s2667_s17 + $0x84] ss:$28 sps:$4 sm:$0xff]   ;;  %v2364_v23 = vld [vmem:[%s3013_s1 + $0x334] ss:$8 sps:$4 sm:$0xff]   ;;  %v2335_v24 = vld [vmem:[%s3013_s1 + $0x130] ss:$8 sps:$4 sm:$0xff]  }
  0x25   : > { %1521 = vmatpush1.bf16.msra.mxu0 %v2259_v31  ;;  %1296 = vmatprep.subr.bf16.mxu1 %v2260_v32  ;;  %v2347_v22 = vld [vmem:[%s3013_s1 + $0x320] ss:$8 sps:$4 sm:$0xff]   ;;  %v2342_v25 = vld [vmem:[%s2667_s17 + $0x70] ss:$28 sps:$4 sm:$0xff]   ;;  %v2352_v30 = vld [vmem:[%s3013_s1 + $0x154] ss:$8 sps:$4 sm:$0xff]  }
  0x26   : > { %1522 = vmatprep.subr.bf16.mxu0 %v2262_v33  ;;  %v2345_v26 = vld [vmem:[%s3013_s1 + $0x144] ss:$8 sps:$4 sm:$0xff]   ;;  %v2362_v27 = vld [vmem:[%s3013_s1 + $0x330] ss:$8 sps:$4 sm:$0xff]   ;;  %v2343_v28 = vld [vmem:[%s3013_s1 + $0x140] ss:$8 sps:$4 sm:$0xff]  }
  0x27   : > { %v2353_v31 = vld [vmem:[%s2667_s17 + $0xac] ss:$28 sps:$4 sm:$0xff]   ;;  %v2355_v32 = vld [vmem:[%s2667_s17 + $0xbc] ss:$28 sps:$4 sm:$0xff]  }
  0x28   : > { %1297 = vmatpush1.bf16.msra.mxu1 %v2264_v34  ;;  %v2379_v33 = vld [vmem:[%s3013_s1 + $0x344] ss:$8 sps:$4 sm:$0xff]   ;;  %v2377_v34 = vld [vmem:[%s3013_s1 + $0x340] ss:$8 sps:$4 sm:$0xff]  }
  0x29   : > { %1523 = vmatpush1.bf16.msra.mxu0 %v2265_v35  ;;  %1298 = vmatprep.subr.bf16.mxu1 %v2266_v36  ;;  %v2350_v35 = vld [vmem:[%s3013_s1 + $0x150] ss:$8 sps:$4 sm:$0xff]   ;;  %v2394_v36 = vld [vmem:[%s3013_s1 + $0x354] ss:$8 sps:$4 sm:$0xff]   ;;  %v2373_v49 = vld [vmem:[%s3013_s1 + $0x180] ss:$8 sps:$4 sm:$0xff]  }
  0x2a   : > { %1524 = vmatprep.subr.bf16.mxu0 %v2268_v37  ;;  %v2360_v37 = vld [vmem:[%s3013_s1 + $0x164] ss:$8 sps:$4 sm:$0xff]  }
  0x2b   : > { %v2376_v51 = vld [vmem:[%s2667_s17 + $0xf0] ss:$28 sps:$4 sm:$0xff]  }
  0x2c   : > { %1299 = vmatpush1.bf16.msra.mxu1 %v2270_v38  ;;  %v2357_v38 = vld [vmem:[%s2667_s17 + $0xa8] ss:$28 sps:$4 sm:$0xff]  }
  0x2d   : > { %1525 = vmatpush1.bf16.msra.mxu0 %v2271_v39  ;;  %1300 = vmatprep.subr.bf16.mxu1 %v2272_v40  ;;  %v2358_v39 = vld [vmem:[%s3013_s1 + $0x160] ss:$8 sps:$4 sm:$0xff]   ;;  %v2361_v40 = vld [vmem:[%s2667_s17 + $0xb8] ss:$28 sps:$4 sm:$0xff]  }
  0x2e   : > { %1526 = vmatprep.subr.bf16.mxu0 %v2274_v41  ;;  %v2367_v41 = vld [vmem:[%s3013_s1 + $0x174] ss:$8 sps:$4 sm:$0xff]  }
  0x30   : > { %1301 = vmatpush1.bf16.msra.mxu1 %v2276_v42  ;;  %v2368_v42 = vld [vmem:[%s2667_s17 + $0xe4] ss:$28 sps:$4 sm:$0xff]  }
  0x31   : > { %1527 = vmatpush1.bf16.msra.mxu0 %v2277_v43  ;;  %1302 = vmatprep.subr.bf16.mxu1 %v2278_v44  ;;  %v2370_v43 = vld [vmem:[%s2667_s17 + $0xf4] ss:$28 sps:$4 sm:$0xff]  }
  0x32   : > { %1528 = vmatprep.subr.bf16.mxu0 %v2280_v45  ;;  %v2392_v44 = vld [vmem:[%s3013_s1 + $0x350] ss:$8 sps:$4 sm:$0xff]   ;;  %v2409_v45 = vld [vmem:[%s3013_s1 + $0x364] ss:$8 sps:$4 sm:$0xff]  }
  0x34   : > { %1303 = vmatpush1.bf16.msra.mxu1 %v2282_v46  ;;  %v2365_v46 = vld [vmem:[%s3013_s1 + $0x170] ss:$8 sps:$4 sm:$0xff]  }
  0x35   : > { %1529 = vmatpush1.bf16.msra.mxu0 %v2283_v47  ;;  %1304 = vmatprep.subr.bf16.mxu1 %v2284_v48  ;;  %v2372_v47 = vld [vmem:[%s2667_s17 + $0xe0] ss:$28 sps:$4 sm:$0xff]   ;;  %v2375_v48 = vld [vmem:[%s3013_s1 + $0x184] ss:$8 sps:$4 sm:$0xff]  }
  0x36   : > { %1530 = vmatprep.subr.bf16.mxu0 %v2286_v50  ;;  %v2407_v50 = vld [vmem:[%s3013_s1 + $0x360] ss:$8 sps:$4 sm:$0xff]  }
  0x38   : > { %1305 = vmatpush1.bf16.msra.mxu1 %v2288_v52  ;;  %v2382_v52 = vld [vmem:[%s3013_s1 + $0x194] ss:$8 sps:$4 sm:$0xff]  }
  0x39   : > { %1531 = vmatpush1.bf16.msra.mxu0 %v2289_v53  ;;  %1306 = vmatprep.subr.bf16.mxu1 %v2290_v54  ;;  %v2383_v53 = vld [vmem:[%s2667_s17 + $0x11c] ss:$28 sps:$4 sm:$0xff]   ;;  %v2385_v54 = vld [vmem:[%s2667_s17 + $0x12c] ss:$28 sps:$4 sm:$0xff]  }
  0x3a   : > { %1532 = vmatprep.subr.bf16.mxu0 %v2292_v55  ;;  %v2424_v55 = vld [vmem:[%s3013_s1 + $0x374] ss:$8 sps:$4 sm:$0xff]  }
  0x3c   : > { %1307 = vmatpush1.bf16.msra.mxu1 %v2294_v56  ;;  %v2422_v56 = vld [vmem:[%s3013_s1 + $0x370] ss:$8 sps:$4 sm:$0xff]  }
  0x3d   : > { %1533 = vmatpush1.bf16.msra.mxu0 %v2295_v57  ;;  %1308 = vmatprep.subr.bf16.mxu1 %v2296_v58  ;;  %v2380_v57 = vld [vmem:[%s3013_s1 + $0x190] ss:$8 sps:$4 sm:$0xff]  }
  0x3e   : > { %1534 = vmatprep.subr.bf16.mxu0 %v2298_v59  ;;  %v2387_v58 = vld [vmem:[%s2667_s17 + $0x118] ss:$28 sps:$4 sm:$0xff]   ;;  %v2390_v59 = vld [vmem:[%s3013_s1 + $0x1a4] ss:$8 sps:$4 sm:$0xff]  }
  0x40   : > { %1309 = vmatpush1.bf16.msra.mxu1 %v2300_v60  ;;  %v2388_v60 = vld [vmem:[%s3013_s1 + $0x1a0] ss:$8 sps:$4 sm:$0xff]  }
  0x41   : > { %1535 = vmatpush1.bf16.msra.mxu0 %v2301_v61  ;;  %1310 = vmatprep.subr.bf16.mxu1 %v2302_v62  ;;  %v2391_v61 = vld [vmem:[%s2667_s17 + $0x128] ss:$28 sps:$4 sm:$0xff]   ;;  %v2397_v62 = vld [vmem:[%s3013_s1 + $0x1b4] ss:$8 sps:$4 sm:$0xff]  }
  0x42   : > { %1536 = vmatprep.subr.bf16.mxu0 %v2304_v63  ;;  %v2398_v63 = vld [vmem:[%s2667_s17 + $0x154] ss:$28 sps:$4 sm:$0xff]  }
  0x44   : > { %1311 = vmatpush1.bf16.msra.mxu1 %v2306_v0  ;;  %v2400_v0 = vld [vmem:[%s2667_s17 + $0x164] ss:$28 sps:$4 sm:$0xff]  }
  0x45   : > { %1537 = vmatpush1.bf16.msra.mxu0 %v2307_v1  ;;  %1393 = vmatprep.subr.bf16.mxu1 %v2316_v2  ;;  %v2395_v1 = vld [vmem:[%s3013_s1 + $0x1b0] ss:$8 sps:$4 sm:$0xff]  }
  0x46   : > { %1619 = vmatprep.subr.bf16.mxu0 %v2319_v3  ;;  %v2402_v2 = vld [vmem:[%s2667_s17 + $0x150] ss:$28 sps:$4 sm:$0xff]  }
  0x47   : > { %1313 = vmatmul.mubr.bf16.vlgmr.msra.gmra.mrb[0].mxu1 %v2308_v4  ;;  %v2405_v3 = vld [vmem:[%s3013_s1 + $0x1c4] ss:$8 sps:$4 sm:$0xff]   ;;  %v2403_v4 = vld [vmem:[%s3013_s1 + $0x1c0] ss:$8 sps:$4 sm:$0xff]  }
  0x48   : > { %1539 = vmatmul.mubr.bf16.vlgmr.msra.gmra.mrb[0].mxu0 %v2311_v5  ;;  %1394 = vmatpush1.bf16.msra.mxu1 %v2314_v6  ;;  %v2406_v5 = vld [vmem:[%s2667_s17 + $0x160] ss:$28 sps:$4 sm:$0xff]   ;;  %v2413_v6 = vld [vmem:[%s2667_s17 + $0x18c] ss:$28 sps:$4 sm:$0xff]  }
  0x49   : > { %1620 = vmatpush1.bf16.msra.mxu0 %v2317_v7  ;;  %1395 = vmatprep.subr.bf16.mxu1 %v2322_v8  ;;  %v2412_v7 = vld [vmem:[%s3013_s1 + $0x1d4] ss:$8 sps:$4 sm:$0xff]  }
  0x4a   : > { %1322 = vmatprep.mubr.bf16.mxu1 %v2323_v9  ;;  %1548 = vmatprep.mubr.bf16.mxu0 %v2325_v10  ;;  %v2415_v8 = vld [vmem:[%s2667_s17 + $0x19c] ss:$28 sps:$4 sm:$0xff]   ;;  %v2420_v10 = vld [vmem:[%s3013_s1 + $0x1e4] ss:$8 sps:$4 sm:$0xff]  }
  0x4b   : > { %1621 = vmatprep.subr.bf16.mxu0 %v2334_v11  ;;  %v2410_v9 = vld [vmem:[%s3013_s1 + $0x1d0] ss:$8 sps:$4 sm:$0xff]   ;;  %v2417_v11 = vld [vmem:[%s2667_s17 + $0x188] ss:$28 sps:$4 sm:$0xff]  }
  0x4c   : > { %1396 = vmatpush1.bf16.msra.mxu1 %v2320_v12  ;;  %v2421_v12 = vld [vmem:[%s2667_s17 + $0x198] ss:$28 sps:$4 sm:$0xff]  }
  0x4d   : > { %1622 = vmatpush1.bf16.msra.mxu0 %v2332_v14  ;;  %1397 = vmatprep.subr.bf16.mxu1 %v2330_v13  ;;  %v2418_v13 = vld [vmem:[%s3013_s1 + $0x1e0] ss:$8 sps:$4 sm:$0xff]  }
  0x4e   : > { %1623 = vmatprep.subr.bf16.mxu0 %v2349_v15  ;;  %v2430_v14 = vld [vmem:[%s2667_s17 + $0xc] ss:$28 sps:$4 sm:$0xff]   ;;  %v2427_v15 = vld [vmem:[%s3013_s1 + $0x1f4] ss:$8 sps:$4 sm:$0xff]  }
  0x4f   : > { %1323 = vmatmul.mubr.bf16.gmra.mrb[4].mxu1 %v2327_v16  ;;  %v2425_v16 = vld [vmem:[%s3013_s1 + $0x1f0] ss:$8 sps:$4 sm:$0xff]  }
  0x50   : > { %1549 = vmatmul.mubr.bf16.gmra.mrb[4].mxu0 %v2331_v18  ;;  %1398 = vmatpush1.bf16.msra.mxu1 %v2328_v17  ;;  %v2484_v17 = vmov 0   ;;  %v2428_v18 = vld [vmem:[%s2667_s17 + $0x8] ss:$28 sps:$4 sm:$0xff]  }
  0x51   : > { %1332 = vmatprep.mubr.bf16.mxu1 %v2338_v20  ;;  %1399 = vmatprep.subr.bf16.mxu1 %v2337_v19  ;;  %v2431_v19 = vld [vmem:[%s2667_s17 + $0x18] ss:$28 sps:$4 sm:$0xff]   ;;  %v2432_v20 = vld [vmem:[%s2667_s17 + $0x44] ss:$28 sps:$4 sm:$0xff]  }
  0x52   : > { %1558 = vmatprep.mubr.bf16.mxu0 %v2340_v21  ;;  %1624 = vmatpush1.bf16.msra.mxu0 %v2347_v22  ;;  %v2434_v21 = vld [vmem:[%s2667_s17 + $0x40] ss:$28 sps:$4 sm:$0xff]   ;;  %v2435_v22 = vld [vmem:[%s2667_s17 + $0x50] ss:$28 sps:$4 sm:$0xff]  }
  0x53   : > { %1625 = vmatprep.subr.bf16.mxu0 %v2364_v23  ;;  %v2436_v23 = vld [vmem:[%s2667_s17 + $0x7c] ss:$28 sps:$4 sm:$0xff]  }
  0x54   : > { %1400 = vmatpush1.bf16.msra.mxu1 %v2335_v24  ;;  %v2438_v24 = vld [vmem:[%s2667_s17 + $0x78] ss:$28 sps:$4 sm:$0xff]  }
  0x55   : > { %1401 = vmatprep.subr.bf16.mxu1 %v2345_v26  ;;  %v2440_v26 = vld [vmem:[%s2667_s17 + $0xb4] ss:$28 sps:$4 sm:$0xff]  }
  0x56   : > { %1626 = vmatpush1.bf16.msra.mxu0 %v2362_v27  ;;  %v2442_v27 = vld [vmem:[%s2667_s17 + $0xb0] ss:$28 sps:$4 sm:$0xff]  }
  0x57   : > { %1333 = vmatmul.mubr.bf16.gmra.mrb[8].mxu1 %v2342_v25  ;;  %1627 = vmatprep.subr.bf16.mxu0 %v2379_v33  ;;  %v2439_v25 = vld [vmem:[%s2667_s17 + $0x88] ss:$28 sps:$4 sm:$0xff]   ;;  %v2450_v33 = vld [vmem:[%s2667_s17 + $0x120] ss:$28 sps:$4 sm:$0xff]  }
  0x58   : > { %1559 = vmatmul.mubr.bf16.gmra.mrb[8].mxu0 %v2346_v29  ;;  %1402 = vmatpush1.bf16.msra.mxu1 %v2343_v28  ;;  %v2443_v28 = vld [vmem:[%s2667_s17 + $0xc0] ss:$28 sps:$4 sm:$0xff]   ;;  %v2444_v29 = vld [vmem:[%s2667_s17 + $0xec] ss:$28 sps:$4 sm:$0xff]  }
  0x59   : > { %1342 = vmatprep.mubr.bf16.mxu1 %v2353_v31  ;;  %1403 = vmatprep.subr.bf16.mxu1 %v2352_v30  ;;  %v2446_v30 = vld [vmem:[%s2667_s17 + $0xe8] ss:$28 sps:$4 sm:$0xff]   ;;  %v2447_v31 = vld [vmem:[%s2667_s17 + $0xf8] ss:$28 sps:$4 sm:$0xff]  }
  0x5a   : > { %1568 = vmatprep.mubr.bf16.mxu0 %v2355_v32  ;;  %1628 = vmatpush1.bf16.msra.mxu0 %v2377_v34  ;;  %v2448_v32 = vld [vmem:[%s2667_s17 + $0x124] ss:$28 sps:$4 sm:$0xff]   ;;  %v2451_v34 = vld [vmem:[%s2667_s17 + $0x130] ss:$28 sps:$4 sm:$0xff]  }
  0x5b   : > { %1629 = vmatprep.subr.bf16.mxu0 %v2394_v36  ;;  %v2454_v36 = vld [vmem:[%s2667_s17 + $0x158] ss:$28 sps:$4 sm:$0xff]  }
  0x5c   : > { %1404 = vmatpush1.bf16.msra.mxu1 %v2350_v35  ;;  %v2452_v35 = vld [vmem:[%s2667_s17 + $0x15c] ss:$28 sps:$4 sm:$0xff]  }
  0x5d   : > { %1405 = vmatprep.subr.bf16.mxu1 %v2360_v37  ;;  %v2455_v37 = vld [vmem:[%s2667_s17 + $0x168] ss:$28 sps:$4 sm:$0xff]  }
  0x5e   : > { %1630 = vmatpush1.bf16.msra.mxu0 %v2392_v44  ;;  %v420_v44 = vld [vmem:[%s3014_s2] sm:$0x3] }
  0x5f   : > { %1343 = vmatmul.mubr.bf16.gmra.mrb[12].mxu1 %v2357_v38  ;;  %1631 = vmatprep.subr.bf16.mxu0 %v2409_v45  ;;  %v2456_v38 = vld [vmem:[%s2667_s17 + $0x194] ss:$28 sps:$4 sm:$0xff]  }
  0x60   : > { %1569 = vmatmul.mubr.bf16.gmra.mrb[12].mxu0 %v2361_v40  ;;  %1406 = vmatpush1.bf16.msra.mxu1 %v2358_v39  ;;  %v2458_v39 = vld [vmem:[%s2667_s17 + $0x190] ss:$28 sps:$4 sm:$0xff]   ;;  %v2459_v40 = vld [vmem:[%s2667_s17 + $0x1a0] ss:$28 sps:$4 sm:$0xff]  }
  0x61   : > { %1352 = vmatprep.mubr.bf16.mxu1 %v2368_v42  ;;  %1407 = vmatprep.subr.bf16.mxu1 %v2367_v41  ;;  %v422_v41 = vlaneseq }
  0x62   : > { %1578 = vmatprep.mubr.bf16.mxu0 %v2370_v43  ;;  %1632 = vmatpush1.bf16.msra.mxu0 %v2407_v50 }
  0x63   : > { %1633 = vmatprep.subr.bf16.mxu0 %v2424_v55  ;;  %v423_v42 = vshrl.u32 %v422_v41, 7 }
  0x64   : > { %1408 = vmatpush1.bf16.msra.mxu1 %v2365_v46 }
  0x65   : > { %1409 = vmatprep.subr.bf16.mxu1 %v2375_v48  ;;  %v424_v43 = vsub.s32 0, %v423_v42  ;;  %v428_v45 = vsub.s32 1, %v423_v42 }
  0x66   : > { %1634 = vmatpush1.bf16.msra.mxu0 %v2422_v56 }
  0x67   : > { %1353 = vmatmul.mubr.bf16.gmra.mrb[16].mxu1 %v2372_v47  ;;  %v2929_v46 = vrot.slane %v420_v44, %v424_v43  ;;  %v2931_v47 = vrot.slane %v420_v44, %v428_v45 }
  0x68   : > { %1579 = vmatmul.mubr.bf16.gmra.mrb[16].mxu0 %v2376_v51  ;;  %1410 = vmatpush1.bf16.msra.mxu1 %v2373_v49 }
  0x69   : > { %1362 = vmatprep.mubr.bf16.mxu1 %v2383_v53  ;;  %1411 = vmatprep.subr.bf16.mxu1 %v2382_v52 }
  0x6a   : > { %1588 = vmatprep.mubr.bf16.mxu0 %v2385_v54 }
  0x6c   : > { %1412 = vmatpush1.bf16.msra.mxu1 %v2380_v57 }
  0x6d   : > { %1413 = vmatprep.subr.bf16.mxu1 %v2390_v59 }
  0x6f   : > { %1363 = vmatmul.mubr.bf16.gmra.mrb[20].mxu1 %v2387_v58 }
  0x70   : > { %1589 = vmatmul.mubr.bf16.gmra.mrb[20].mxu0 %v2391_v61  ;;  %1414 = vmatpush1.bf16.msra.mxu1 %v2388_v60 }
  0x71   : > { %1372 = vmatprep.mubr.bf16.mxu1 %v2398_v63  ;;  %1415 = vmatprep.subr.bf16.mxu1 %v2397_v62 }
  0x72   : > { %1598 = vmatprep.mubr.bf16.mxu0 %v2400_v0 }
  0x74   : > { %1416 = vmatpush1.bf16.msra.mxu1 %v2395_v1 }
  0x75   : > { %1417 = vmatprep.subr.bf16.mxu1 %v2405_v3 }
  0x77   : > { %1373 = vmatmul.mubr.bf16.gmra.mrb[24].mxu1 %v2402_v2 }
  0x78   : > { %1599 = vmatmul.mubr.bf16.gmra.mrb[24].mxu0 %v2406_v5  ;;  %1418 = vmatpush1.bf16.msra.mxu1 %v2403_v4 }
  0x79   : > { %1382 = vmatprep.mubr.bf16.mxu1 %v2413_v6  ;;  %1419 = vmatprep.subr.bf16.mxu1 %v2412_v7 }
  0x7a   : > { %1608 = vmatprep.mubr.bf16.mxu0 %v2415_v8 }
  0x7c   : > { %1420 = vmatpush1.bf16.msra.mxu1 %v2410_v9 }
  0x7d   : > { %1421 = vmatprep.subr.bf16.mxu1 %v2420_v10 }
  0x7f   : > { %1383 = vmatmul.mubr.bf16.gmra.mrb[28].mxu1 %v2417_v11 }
  0x80   : > { %1609 = vmatmul.mubr.bf16.gmra.mrb[28].mxu0 %v2421_v12  ;;  %1422 = vmatpush1.bf16.msra.mxu1 %v2418_v13 }
  0x81   : > { %1425 = vmatprep.mubr.bf16.mxu1 %v2430_v14  ;;  %1423 = vmatprep.subr.bf16.mxu1 %v2427_v15 }
  0x82   : > { %1651 = vmatprep.mubr.bf16.mxu0 %v2484_v17 }
  0x84   : > { %1424 = vmatpush1.bf16.msra.mxu1 %v2425_v16 }
  0x87   : > { %1426 = vmatmul.mubr.bf16.vlgmr.msra.gmra.mrb[0].mxu1 %v2428_v18 }
  0x88   : > { %1652 = vmatmul.mubr.bf16.vlgmr.msra.gmra.mrb[0].mxu0 %v2431_v19  ;;  %1435 = vmatprep.mubr.bf16.mxu1 %v2432_v20 }
  0x89   : > { %1661 = vmatprep.mubr.bf16.mxu0 %v2484_v17 }
  0x8f   : > { %1436 = vmatmul.mubr.bf16.gmra.mrb[4].mxu1 %v2434_v21 }
  0x90   : > { %1662 = vmatmul.mubr.bf16.gmra.mrb[4].mxu0 %v2435_v22  ;;  %1445 = vmatprep.mubr.bf16.mxu1 %v2436_v23 }
  0x91   : > { %1671 = vmatprep.mubr.bf16.mxu0 %v2484_v17 }
  0x97   : > { %1446 = vmatmul.mubr.bf16.gmra.mrb[8].mxu1 %v2438_v24 }
  0x98   : > { %1672 = vmatmul.mubr.bf16.gmra.mrb[8].mxu0 %v2439_v25  ;;  %1455 = vmatprep.mubr.bf16.mxu1 %v2440_v26 }
  0x99   : > { %1681 = vmatprep.mubr.bf16.mxu0 %v2484_v17 }
  0x9f   : > { %1456 = vmatmul.mubr.bf16.gmra.mrb[12].mxu1 %v2442_v27 }
  0xa0   : > { %1682 = vmatmul.mubr.bf16.gmra.mrb[12].mxu0 %v2443_v28  ;;  %1465 = vmatprep.mubr.bf16.mxu1 %v2444_v29 }
  0xa1   : > { %1691 = vmatprep.mubr.bf16.mxu0 %v2484_v17 }
  0xa7   : > { %1466 = vmatmul.mubr.bf16.gmra.mrb[16].mxu1 %v2446_v30 }
  0xa8   : > { %1692 = vmatmul.mubr.bf16.gmra.mrb[16].mxu0 %v2447_v31  ;;  %1475 = vmatprep.mubr.bf16.mxu1 %v2448_v32 }
  0xa9   : > { %1701 = vmatprep.mubr.bf16.mxu0 %v2484_v17 }
  0xaf   : > { %1476 = vmatmul.mubr.bf16.gmra.mrb[20].mxu1 %v2450_v33 }
  0xb0   : > { %1702 = vmatmul.mubr.bf16.gmra.mrb[20].mxu0 %v2451_v34  ;;  %1485 = vmatprep.mubr.bf16.mxu1 %v2452_v35 }
  0xb1   : > { %1711 = vmatprep.mubr.bf16.mxu0 %v2484_v17 }
  0xb7   : > { %1486 = vmatmul.mubr.bf16.gmra.mrb[24].mxu1 %v2454_v36 }
  0xb8   : > { %1712 = vmatmul.mubr.bf16.gmra.mrb[24].mxu0 %v2455_v37  ;;  %1495 = vmatprep.mubr.bf16.mxu1 %v2456_v38 }
  0xb9   : > { %1721 = vmatprep.mubr.bf16.mxu0 %v2484_v17 }
  0xbf   : > { %1496 = vmatmul.mubr.bf16.gmra.mrb[28].mxu1 %v2458_v39 }
  0xc0   : > { %1722 = vmatmul.mubr.bf16.gmra.mrb[28].mxu0 %v2459_v40 }
 0x15a   : > { %v1427_v48 = vpop.f32.mrb[0].mxu1 }
 0x15b   : > { %v1653_v49 = vpop.f32.mrb[0].mxu0  ;;  %v2058_v50 = vadd.f32 %v1427_v48, %v2929_v46  ;;  %v1429_v51 = vpop.f32.mrb[1].mxu1 }
 0x15c   : > { %v1655_v52 = vpop.f32.mrb[1].mxu0  ;;  %v2060_v53 = vadd.f32 %v1429_v51, %v2931_v47  ;;  %v1431_v54 = vpop.f32.mrb[2].mxu1 }
 0x15d   : > { %v1657_v55 = vpop.f32.mrb[2].mxu0  ;;  %v2059_v56 = vadd.f32 %v2058_v50, %v1653_v49  ;;  %v2062_v57 = vadd.f32 %v1431_v54, %v2929_v46  ;;  %v1433_v58 = vpop.f32.mrb[3].mxu1 }
 0x15e   : > { %v1659_v59 = vpop.f32.mrb[3].mxu0  ;;  %v2061_v60 = vadd.f32 %v2060_v53, %v1655_v52  ;;  %v2064_v61 = vadd.f32 %v1433_v58, %v2931_v47 }
 0x15f   : > { %1732 = vst [vmem:[%s2938_s24] sm:$0xff] %v2059_v56  ;;  %v2063_v62 = vadd.f32 %v2062_v57, %v1657_v55 }
 0x160   : > { %1733 = vst [vmem:[%s2938_s24 + $0x8] sm:$0xff] %v2061_v60  ;;  %v2065_v63 = vadd.f32 %v2064_v61, %v1659_v59 }
 0x161   : > { %1734 = vst [vmem:[%s2938_s24 + $0x10] sm:$0xff] %v2063_v62 }
 0x162   : > { %1735 = vst [vmem:[%s2938_s24 + $0x18] sm:$0xff] %v2065_v63  ;;  %v1437_v0 = vpop.f32.mrb[4].mxu1 }
 0x163   : > { %v1663_v1 = vpop.f32.mrb[4].mxu0  ;;  %v2066_v2 = vadd.f32 %v1437_v0, %v2929_v46  ;;  %v1439_v3 = vpop.f32.mrb[5].mxu1 }
 0x164   : > { %v1665_v4 = vpop.f32.mrb[5].mxu0  ;;  %v2068_v5 = vadd.f32 %v1439_v3, %v2931_v47  ;;  %v1441_v6 = vpop.f32.mrb[6].mxu1 }
 0x165   : > { %v1667_v7 = vpop.f32.mrb[6].mxu0  ;;  %v2067_v8 = vadd.f32 %v2066_v2, %v1663_v1  ;;  %v2070_v9 = vadd.f32 %v1441_v6, %v2929_v46  ;;  %v1443_v10 = vpop.f32.mrb[7].mxu1 }
 0x166   : > { %v1669_v11 = vpop.f32.mrb[7].mxu0  ;;  %v2069_v12 = vadd.f32 %v2068_v5, %v1665_v4  ;;  %v2072_v13 = vadd.f32 %v1443_v10, %v2931_v47 }
 0x167   : > { %1736 = vst [vmem:[%s2938_s24 + $0x20] sm:$0xff] %v2067_v8  ;;  %v2071_v14 = vadd.f32 %v2070_v9, %v1667_v7 }
 0x168   : > { %1737 = vst [vmem:[%s2938_s24 + $0x28] sm:$0xff] %v2069_v12  ;;  %v2073_v15 = vadd.f32 %v2072_v13, %v1669_v11 }
 0x169   : > { %1738 = vst [vmem:[%s2938_s24 + $0x30] sm:$0xff] %v2071_v14 }
 0x16a   : > { %1739 = vst [vmem:[%s2938_s24 + $0x38] sm:$0xff] %v2073_v15  ;;  %v1447_v16 = vpop.f32.mrb[8].mxu1 }
 0x16b   : > { %v1673_v17 = vpop.f32.mrb[8].mxu0  ;;  %v2074_v18 = vadd.f32 %v1447_v16, %v2929_v46  ;;  %v1449_v19 = vpop.f32.mrb[9].mxu1 }
 0x16c   : > { %v1675_v20 = vpop.f32.mrb[9].mxu0  ;;  %v2076_v21 = vadd.f32 %v1449_v19, %v2931_v47  ;;  %v1451_v22 = vpop.f32.mrb[10].mxu1 }
 0x16d   : > { %v1677_v23 = vpop.f32.mrb[10].mxu0  ;;  %v2075_v24 = vadd.f32 %v2074_v18, %v1673_v17  ;;  %v2078_v25 = vadd.f32 %v1451_v22, %v2929_v46  ;;  %v1453_v26 = vpop.f32.mrb[11].mxu1 }
 0x16e   : > { %v1679_v27 = vpop.f32.mrb[11].mxu0  ;;  %v2077_v28 = vadd.f32 %v2076_v21, %v1675_v20  ;;  %v2080_v29 = vadd.f32 %v1453_v26, %v2931_v47 }
 0x16f   : > { %1740 = vst [vmem:[%s2938_s24 + $0x40] sm:$0xff] %v2075_v24  ;;  %v2079_v30 = vadd.f32 %v2078_v25, %v1677_v23 }
 0x170   : > { %1741 = vst [vmem:[%s2938_s24 + $0x48] sm:$0xff] %v2077_v28  ;;  %v2081_v31 = vadd.f32 %v2080_v29, %v1679_v27 }
 0x171   : > { %1742 = vst [vmem:[%s2938_s24 + $0x50] sm:$0xff] %v2079_v30 }
 0x172   : > { %1743 = vst [vmem:[%s2938_s24 + $0x58] sm:$0xff] %v2081_v31  ;;  %v1457_v32 = vpop.f32.mrb[12].mxu1 }
 0x173   : > { %v1683_v33 = vpop.f32.mrb[12].mxu0  ;;  %v2082_v34 = vadd.f32 %v1457_v32, %v2929_v46  ;;  %v1459_v35 = vpop.f32.mrb[13].mxu1 }
 0x174   : > { %v1685_v36 = vpop.f32.mrb[13].mxu0  ;;  %v2084_v37 = vadd.f32 %v1459_v35, %v2931_v47  ;;  %v1461_v38 = vpop.f32.mrb[14].mxu1 }
 0x175   : > { %v1687_v39 = vpop.f32.mrb[14].mxu0  ;;  %v2083_v40 = vadd.f32 %v2082_v34, %v1683_v33  ;;  %v2086_v41 = vadd.f32 %v1461_v38, %v2929_v46  ;;  %v1463_v42 = vpop.f32.mrb[15].mxu1 }
 0x176   : > { %v1689_v43 = vpop.f32.mrb[15].mxu0  ;;  %v2085_v44 = vadd.f32 %v2084_v37, %v1685_v36  ;;  %v2088_v45 = vadd.f32 %v1463_v42, %v2931_v47 }
 0x177   : > { %1744 = vst [vmem:[%s2938_s24 + $0x60] sm:$0xff] %v2083_v40  ;;  %v2087_v48 = vadd.f32 %v2086_v41, %v1687_v39 }
 0x178   : > { %1745 = vst [vmem:[%s2938_s24 + $0x68] sm:$0xff] %v2085_v44  ;;  %v2089_v49 = vadd.f32 %v2088_v45, %v1689_v43 }
 0x179   : > { %1746 = vst [vmem:[%s2938_s24 + $0x70] sm:$0xff] %v2087_v48 }
 0x17a   : > { %1747 = vst [vmem:[%s2938_s24 + $0x78] sm:$0xff] %v2089_v49  ;;  %v1467_v50 = vpop.f32.mrb[16].mxu1 }
 0x17b   : > { %v1693_v51 = vpop.f32.mrb[16].mxu0  ;;  %v2090_v52 = vadd.f32 %v1467_v50, %v2929_v46  ;;  %v1469_v53 = vpop.f32.mrb[17].mxu1 }
 0x17c   : > { %v1695_v54 = vpop.f32.mrb[17].mxu0  ;;  %v2092_v55 = vadd.f32 %v1469_v53, %v2931_v47  ;;  %v1471_v56 = vpop.f32.mrb[18].mxu1 }
 0x17d   : > { %v1697_v57 = vpop.f32.mrb[18].mxu0  ;;  %v2091_v58 = vadd.f32 %v2090_v52, %v1693_v51  ;;  %v2094_v59 = vadd.f32 %v1471_v56, %v2929_v46  ;;  %v1473_v60 = vpop.f32.mrb[19].mxu1 }
 0x17e   : > { %v1699_v61 = vpop.f32.mrb[19].mxu0  ;;  %v2093_v62 = vadd.f32 %v2092_v55, %v1695_v54  ;;  %v2096_v63 = vadd.f32 %v1473_v60, %v2931_v47 }
 0x17f   : > { %1748 = vst [vmem:[%s2938_s24 + $0x80] sm:$0xff] %v2091_v58  ;;  %v2095_v0 = vadd.f32 %v2094_v59, %v1697_v57 }
 0x180   : > { %1749 = vst [vmem:[%s2938_s24 + $0x88] sm:$0xff] %v2093_v62  ;;  %v2097_v1 = vadd.f32 %v2096_v63, %v1699_v61 }
 0x181   : > { %1750 = vst [vmem:[%s2938_s24 + $0x90] sm:$0xff] %v2095_v0 }
 0x182   : > { %1751 = vst [vmem:[%s2938_s24 + $0x98] sm:$0xff] %v2097_v1  ;;  %v1477_v2 = vpop.f32.mrb[20].mxu1 }
 0x183   : > { %v1703_v3 = vpop.f32.mrb[20].mxu0  ;;  %v2098_v4 = vadd.f32 %v1477_v2, %v2929_v46  ;;  %v1479_v5 = vpop.f32.mrb[21].mxu1 }
 0x184   : > { %v1705_v6 = vpop.f32.mrb[21].mxu0  ;;  %v2100_v7 = vadd.f32 %v1479_v5, %v2931_v47  ;;  %v1481_v8 = vpop.f32.mrb[22].mxu1 }
 0x185   : > { %v1707_v9 = vpop.f32.mrb[22].mxu0  ;;  %v2099_v10 = vadd.f32 %v2098_v4, %v1703_v3  ;;  %v2102_v11 = vadd.f32 %v1481_v8, %v2929_v46  ;;  %v1483_v12 = vpop.f32.mrb[23].mxu1 }
 0x186   : > { %v1709_v13 = vpop.f32.mrb[23].mxu0  ;;  %v2101_v14 = vadd.f32 %v2100_v7, %v1705_v6  ;;  %v2104_v15 = vadd.f32 %v1483_v12, %v2931_v47 }
 0x187   : > { %1752 = vst [vmem:[%s2938_s24 + $0xa0] sm:$0xff] %v2099_v10  ;;  %v2103_v16 = vadd.f32 %v2102_v11, %v1707_v9 }
 0x188   : > { %1753 = vst [vmem:[%s2938_s24 + $0xa8] sm:$0xff] %v2101_v14  ;;  %v2105_v17 = vadd.f32 %v2104_v15, %v1709_v13 }
 0x189   : > { %1754 = vst [vmem:[%s2938_s24 + $0xb0] sm:$0xff] %v2103_v16 }
 0x18a   : > { %1755 = vst [vmem:[%s2938_s24 + $0xb8] sm:$0xff] %v2105_v17  ;;  %v1487_v18 = vpop.f32.mrb[24].mxu1 }
 0x18b   : > { %v1713_v19 = vpop.f32.mrb[24].mxu0  ;;  %v2106_v20 = vadd.f32 %v1487_v18, %v2929_v46  ;;  %v1489_v21 = vpop.f32.mrb[25].mxu1 }
 0x18c   : > { %v1715_v22 = vpop.f32.mrb[25].mxu0  ;;  %v2108_v23 = vadd.f32 %v1489_v21, %v2931_v47  ;;  %v1491_v24 = vpop.f32.mrb[26].mxu1 }
 0x18d   : > { %v1717_v25 = vpop.f32.mrb[26].mxu0  ;;  %v2107_v26 = vadd.f32 %v2106_v20, %v1713_v19  ;;  %v2110_v27 = vadd.f32 %v1491_v24, %v2929_v46  ;;  %v1493_v28 = vpop.f32.mrb[27].mxu1 }
 0x18e   : > { %v1719_v29 = vpop.f32.mrb[27].mxu0  ;;  %v2109_v30 = vadd.f32 %v2108_v23, %v1715_v22  ;;  %v2112_v31 = vadd.f32 %v1493_v28, %v2931_v47 }
 0x18f   : > { %1756 = vst [vmem:[%s2938_s24 + $0xc0] sm:$0xff] %v2107_v26  ;;  %v2111_v32 = vadd.f32 %v2110_v27, %v1717_v25 }
 0x190   : > { %1757 = vst [vmem:[%s2938_s24 + $0xc8] sm:$0xff] %v2109_v30  ;;  %v2113_v33 = vadd.f32 %v2112_v31, %v1719_v29 }
 0x191   : > { %1758 = vst [vmem:[%s2938_s24 + $0xd0] sm:$0xff] %v2111_v32 }
 0x192   : > { %1759 = vst [vmem:[%s2938_s24 + $0xd8] sm:$0xff] %v2113_v33  ;;  %v1497_v34 = vpop.f32.mrb[28].mxu1 }
 0x193   : > { %v1723_v35 = vpop.f32.mrb[28].mxu0  ;;  %v2114_v36 = vadd.f32 %v1497_v34, %v2929_v46  ;;  %v1499_v37 = vpop.f32.mrb[29].mxu1 }
 0x194   : > { %v1725_v38 = vpop.f32.mrb[29].mxu0  ;;  %v2116_v39 = vadd.f32 %v1499_v37, %v2931_v47  ;;  %v1501_v40 = vpop.f32.mrb[30].mxu1 }
 0x195   : > { %v1727_v41 = vpop.f32.mrb[30].mxu0  ;;  %v2115_v42 = vadd.f32 %v2114_v36, %v1723_v35  ;;  %v2118_v43 = vadd.f32 %v1501_v40, %v2929_v46  ;;  %v1503_v44 = vpop.f32.mrb[31].mxu1 }
 0x196   : > { %v1729_v45 = vpop.f32.mrb[31].mxu0  ;;  %v2117_v48 = vadd.f32 %v2116_v39, %v1725_v38  ;;  %v2120_v49 = vadd.f32 %v1503_v44, %v2931_v47 }
 0x197   : > { %1760 = vst [vmem:[%s2938_s24 + $0xe0] sm:$0xff] %v2115_v42  ;;  %v2119_v50 = vadd.f32 %v2118_v43, %v1727_v41 }
 0x198   : > { %1761 = vst [vmem:[%s2938_s24 + $0xe8] sm:$0xff] %v2117_v48  ;;  %v2121_v51 = vadd.f32 %v2120_v49, %v1729_v45 }
 0x199   : > { %1762 = vst [vmem:[%s2938_s24 + $0xf0] sm:$0xff] %v2119_v50 }
 0x19a   : > { %1763 = vst [vmem:[%s2938_s24 + $0xf8] sm:$0xff] %v2121_v51 }
 0x19b PF: > { %s13_s14 = sadd.s32 1, %s2482_s14   ;;  %s3016_s12 = smov %s2478_s13 }
 0x19c   : > { %p10_p5 = scmp.ge.s32.totalorder %s13_s14, 4   ;;  %s3017_s13 = smov %s3019_s15 }
 0x19e   :  { %12 = sbr.rel (!%p10_p5) target bundleno = 2 (0x2), region = 68 }

// kernel: _lambda_.28
= control target key start
LH: loop header
LB: loop body
LE: loop exit
PB: predicated region body
PF: predicated region fallthrough
CT: control target
= control target key end

     0   :  { %s1831_s12 = smov 0   ;;  %s1833_s13 = smov 0   ;;  %s2094_s0 = inlined_call_operand.vmem [shape: bf16[256,640], index: 0, kind: input, shape index: {}]   ;;  %s2095_s1 = inlined_call_operand.vmem [shape: bf16[640,128], index: 1, kind: input, shape index: {}]   ;;  %s2096_s2 = inlined_call_operand.vmem [shape: f32[1,128], index: 2, kind: input, shape index: {}]   ;;  %s2097_s3 = inlined_call_operand.vmem [shape: bf16[256,128], index: 3, kind: output, shape index: {}]  }
   0x1   :  { %s1835_s14 = smov 0  }
   0x2 LB: > { %s25_s15 = sadd.s32 1, %s1805_s13  ;;  %p1307_p0 = scmp.ge.s32.totalorder %s1809_s14, 1  ;;  %s1809_s14 = sphi %s1835_s14, %s13_s14   ;;  %s1805_s13 = sphi %s1833_s13, %s2099_s13   ;;  %s1801_s12 = sphi %s1831_s12, %s2098_s12  }
   0x3   : > { %p27_p1 = scmp.ge.s32.totalorder %s25_s15, 2  ;;  %p170_p2 = scmp.lt.s32.totalorder %s1809_s14, 3 }
   0x5   : > { %s2101_s15 = smov (%p27_p1, %s25_s15), 0  ;;  %p171_p3 = pnand %p1307_p0, %p170_p2 }
   0x6   : > { %v1691_v0 = vld [vmem:[%s2095_s1 + $0x40] sm:$0xff] (!%p171_p3)   ;;  %v1695_v4 = vld [vmem:[%s2095_s1 + $0x48] sm:$0xff] (!%p171_p3)   ;;  %v1699_v8 = vld [vmem:[%s2095_s1 + $0x50] sm:$0xff] (!%p171_p3)   ;;  %s1308_s23 = sshll.u32 (!%p171_p3), %s1801_s12, 4 }
   0x7   : > { %174 = sbr.rel (%p171_p3) target bundleno = 335 (0x14f), region = 32  ;;  %v1692_v1 = vld [vmem:[%s2095_s1 + $0xc0] sm:$0xff] (!%p171_p3)   ;;  %1474 = vmatprep.subr.bf16.mxu0 (!%p171_p3), %v1691_v0  ;;  %v1696_v5 = vld [vmem:[%s2095_s1 + $0xc8] sm:$0xff] (!%p171_p3)   ;;  %v1700_v9 = vld [vmem:[%s2095_s1 + $0xd0] sm:$0xff] (!%p171_p3)   ;;  %p206_p4 = scmp.lt.s32.totalorder (!%p171_p3), %s1308_s23, 31 }
   0x8   : > { %v1693_v2 = vld [vmem:[%s2095_s1] sm:$0xff] (!%p171_p3)   ;;  %1538 = vmatprep.subr.bf16.mxu1 (!%p171_p3), %v1692_v1  ;;  %v1697_v6 = vld [vmem:[%s2095_s1 + $0x8] sm:$0xff] (!%p171_p3)   ;;  %v1701_v10 = vld [vmem:[%s2095_s1 + $0x10] sm:$0xff] (!%p171_p3)  }
   0x9   : > { %v1694_v3 = vld [vmem:[%s2095_s1 + $0x80] sm:$0xff] (!%p171_p3)   ;;  %1475 = vmatpush3.bf16.msra.mxu0 (!%p171_p3), %v1693_v2  ;;  %v1698_v7 = vld [vmem:[%s2095_s1 + $0x88] sm:$0xff] (!%p171_p3)   ;;  %v1702_v11 = vld [vmem:[%s2095_s1 + $0x90] sm:$0xff] (!%p171_p3)  }
   0xa   : > { %1539 = vmatpush3.bf16.msra.mxu1 (!%p171_p3), %v1694_v3  ;;  %1476 = vmatprep.subr.bf16.mxu0 (!%p171_p3), %v1695_v4  ;;  %v1703_v12 = vld [vmem:[%s2095_s1 + $0x58] sm:$0xff] (!%p171_p3)   ;;  %v1707_v16 = vld [vmem:[%s2095_s1 + $0x60] sm:$0xff] (!%p171_p3)   ;;  %v1711_v20 = vld [vmem:[%s2095_s1 + $0x68] sm:$0xff] (!%p171_p3)  }
   0xb   : > { %1540 = vmatprep.subr.bf16.mxu1 (!%p171_p3), %v1696_v5  ;;  %v1704_v13 = vld [vmem:[%s2095_s1 + $0xd8] sm:$0xff] (!%p171_p3)   ;;  %v1708_v17 = vld [vmem:[%s2095_s1 + $0xe0] sm:$0xff] (!%p171_p3)   ;;  %v1712_v21 = vld [vmem:[%s2095_s1 + $0xe8] sm:$0xff] (!%p171_p3)  }
   0xc   : > { %v1705_v14 = vld [vmem:[%s2095_s1 + $0x18] sm:$0xff] (!%p171_p3)   ;;  %v1709_v18 = vld [vmem:[%s2095_s1 + $0x20] sm:$0xff] (!%p171_p3)   ;;  %v1713_v22 = vld [vmem:[%s2095_s1 + $0x28] sm:$0xff] (!%p171_p3)  }
   0xd   : > { %1477 = vmatpush3.bf16.msra.mxu0 (!%p171_p3), %v1697_v6  ;;  %v1706_v15 = vld [vmem:[%s2095_s1 + $0x98] sm:$0xff] (!%p171_p3)   ;;  %v1710_v19 = vld [vmem:[%s2095_s1 + $0xa0] sm:$0xff] (!%p171_p3)   ;;  %v1714_v23 = vld [vmem:[%s2095_s1 + $0xa8] sm:$0xff] (!%p171_p3)  }
   0xe   : > { %1541 = vmatpush3.bf16.msra.mxu1 %v1698_v7  ;;  %1478 = vmatprep.subr.bf16.mxu0 %v1699_v8  ;;  %s2103_s23 = smov (!%p206_p4, %s1308_s23), 31  ;;  %v1715_v24 = vld [vmem:[%s2095_s1 + $0x70] sm:$0xff]   ;;  %v1719_v28 = vld [vmem:[%s2095_s1 + $0x78] sm:$0xff]   ;;  %v1729_v36 = vld [vmem:[%s2095_s1 + $0x100] sm:$0xff]  }
   0xf   : > { %1542 = vmatprep.subr.bf16.mxu1 %v1700_v9  ;;  %v1716_v25 = vld [vmem:[%s2095_s1 + $0xf0] sm:$0xff]   ;;  %s1666_s22 = smul.u32 20, %s2103_s23  ;;  %v1720_v29 = vld [vmem:[%s2095_s1 + $0xf8] sm:$0xff]   ;;  %v1736_v39 = vld [vmem:[%s2095_s1 + $0x108] sm:$0xff]  }
  0x10   : > { %v1717_v26 = vld [vmem:[%s2095_s1 + $0x30] sm:$0xff]   ;;  %v1721_v30 = vld [vmem:[%s2095_s1 + $0x38] sm:$0xff]   ;;  %v1757_v50 = vld [vmem:[%s2095_s1 + $0x120] sm:$0xff]  }
  0x11   : > { %1479 = vmatpush3.bf16.msra.mxu0 %v1701_v10  ;;  %v1718_v27 = vld [vmem:[%s2095_s1 + $0xb0] sm:$0xff]   ;;  %s1948_s6 = scalar_lea.vmem %s2094_s0, %s1666_s22  ;;  %v1722_v31 = vld [vmem:[%s2095_s1 + $0xb8] sm:$0xff]   ;;  %v1764_v51 = vld [vmem:[%s2095_s1 + $0x128] sm:$0xff]  }
  0x12   : > { %1543 = vmatpush3.bf16.msra.mxu1 %v1702_v11  ;;  %1480 = vmatprep.subr.bf16.mxu0 %v1703_v12  ;;  %v1723_v32 = vld [vmem:[%s1948_s6] ss:$20 sps:$4 sm:$0xff]   ;;  %v1725_v33 = vld [vmem:[%s1948_s6 + $0x4] ss:$20 sps:$4 sm:$0xff]   ;;  %v1726_v34 = vld [vmem:[%s1948_s6 + $0x8] ss:$20 sps:$4 sm:$0xff]  }
  0x13   : > { %1544 = vmatprep.subr.bf16.mxu1 %v1704_v13  ;;  %v1728_v35 = vld [vmem:[%s1948_s6 + $0xc] ss:$20 sps:$4 sm:$0xff]   ;;  %844 = vmatprep.mubr.bf16.mxu0 %v1725_v33  ;;  %v1732_v38 = vld [vmem:[%s1948_s6 + $0x34] ss:$20 sps:$4 sm:$0xff]   ;;  %v1735_v41 = vld [vmem:[%s1948_s6 + $0x30] ss:$20 sps:$4 sm:$0xff]  }
  0x14   : > { %941 = vmatprep.mubr.bf16.mxu1 %v1728_v35  ;;  %v1730_v37 = vld [vmem:[%s1948_s6 + $0x2c] ss:$20 sps:$4 sm:$0xff]   ;;  %v1734_v40 = vld [vmem:[%s1948_s6 + $0x28] ss:$20 sps:$4 sm:$0xff]   ;;  %v1743_v44 = vld [vmem:[%s2095_s1 + $0x110] sm:$0xff]  }
  0x15   : > { %1481 = vmatpush3.bf16.msra.mxu0 %v1705_v14  ;;  %v1737_v42 = vld [vmem:[%s1948_s6 + $0x54] ss:$20 sps:$4 sm:$0xff]   ;;  %v1739_v43 = vld [vmem:[%s1948_s6 + $0x5c] ss:$20 sps:$4 sm:$0xff]   ;;  %v1742_v47 = vld [vmem:[%s1948_s6 + $0x58] ss:$20 sps:$4 sm:$0xff]  }
  0x16   : > { %1545 = vmatpush3.bf16.msra.mxu1 %v1706_v15  ;;  %1482 = vmatprep.subr.bf16.mxu0 %v1707_v16  ;;  %v1750_v45 = vld [vmem:[%s2095_s1 + $0x118] sm:$0xff]   ;;  %v1741_v46 = vld [vmem:[%s1948_s6 + $0x50] ss:$20 sps:$4 sm:$0xff]   ;;  %v1749_v53 = vld [vmem:[%s1948_s6 + $0x80] ss:$20 sps:$4 sm:$0xff]  }
  0x17   : > { %1546 = vmatprep.subr.bf16.mxu1 %v1708_v17  ;;  %v1744_v48 = vld [vmem:[%s1948_s6 + $0x7c] ss:$20 sps:$4 sm:$0xff]   ;;  %v1746_v49 = vld [vmem:[%s1948_s6 + $0x84] ss:$20 sps:$4 sm:$0xff]   ;;  %v1753_v56 = vld [vmem:[%s1948_s6 + $0xac] ss:$20 sps:$4 sm:$0xff]  }
  0x18   : > { %v1748_v52 = vld [vmem:[%s1948_s6 + $0x78] ss:$20 sps:$4 sm:$0xff]   ;;  %v1771_v55 = vld [vmem:[%s2095_s1 + $0x130] sm:$0xff]   ;;  %v1756_v59 = vld [vmem:[%s1948_s6 + $0xa8] ss:$20 sps:$4 sm:$0xff]  }
  0x19   : > { %1483 = vmatpush3.bf16.msra.mxu0 %v1709_v18  ;;  %v1751_v54 = vld [vmem:[%s1948_s6 + $0xa4] ss:$20 sps:$4 sm:$0xff]   ;;  %v1755_v58 = vld [vmem:[%s1948_s6 + $0xa0] ss:$20 sps:$4 sm:$0xff]   ;;  %v1762_v62 = vld [vmem:[%s1948_s6 + $0xc8] ss:$20 sps:$4 sm:$0xff]  }
  0x1a   : > { %1547 = vmatpush3.bf16.msra.mxu1 %v1710_v19  ;;  %1484 = vmatprep.subr.bf16.mxu0 %v1711_v20  ;;  %v1778_v57 = vld [vmem:[%s2095_s1 + $0x138] sm:$0xff]   ;;  %v1758_v60 = vld [vmem:[%s1948_s6 + $0xcc] ss:$20 sps:$4 sm:$0xff]   ;;  %v1760_v61 = vld [vmem:[%s1948_s6 + $0xd4] ss:$20 sps:$4 sm:$0xff]  }
  0x1b   : > { %1548 = vmatprep.subr.bf16.mxu1 %v1712_v21  ;;  %v1763_v63 = vld [vmem:[%s1948_s6 + $0xd0] ss:$20 sps:$4 sm:$0xff]   ;;  %v1765_v0 = vld [vmem:[%s1948_s6 + $0xf4] ss:$20 sps:$4 sm:$0xff]   ;;  %v1770_v3 = vld [vmem:[%s1948_s6 + $0xf8] ss:$20 sps:$4 sm:$0xff]  }
  0x1c   : > { %v1767_v1 = vld [vmem:[%s1948_s6 + $0xfc] ss:$20 sps:$4 sm:$0xff]   ;;  %v1774_v5 = vld [vmem:[%s1948_s6 + $0x124] ss:$20 sps:$4 sm:$0xff]   ;;  %v1777_v7 = vld [vmem:[%s1948_s6 + $0x120] ss:$20 sps:$4 sm:$0xff]  }
  0x1d   : > { %1485 = vmatpush3.bf16.msra.mxu0 %v1713_v22  ;;  %v1769_v2 = vld [vmem:[%s1948_s6 + $0xf0] ss:$20 sps:$4 sm:$0xff]   ;;  %v1776_v6 = vld [vmem:[%s1948_s6 + $0x118] ss:$20 sps:$4 sm:$0xff]   ;;  %v1783_v12 = vld [vmem:[%s1948_s6 + $0x60] ss:$20 sps:$4 sm:$0xff]  }
  0x1e   : > { %1549 = vmatpush3.bf16.msra.mxu1 %v1714_v23  ;;  %1486 = vmatprep.subr.bf16.mxu0 %v1715_v24  ;;  %v1772_v4 = vld [vmem:[%s1948_s6 + $0x11c] ss:$20 sps:$4 sm:$0xff]   ;;  %v1781_v10 = vld [vmem:[%s1948_s6 + $0x38] ss:$20 sps:$4 sm:$0xff]   ;;  %v1784_v13 = vld [vmem:[%s1948_s6 + $0x100] ss:$20 sps:$4 sm:$0xff]  }
  0x1f   : > { %1550 = vmatprep.subr.bf16.mxu1 %v1716_v25  ;;  %v1779_v8 = vld [vmem:[%s1948_s6 + $0x10] ss:$20 sps:$4 sm:$0xff]   ;;  %v1782_v11 = vld [vmem:[%s1948_s6 + $0xd8] ss:$20 sps:$4 sm:$0xff]   ;;  %v1785_v14 = vld [vmem:[%s1948_s6 + $0x88] ss:$20 sps:$4 sm:$0xff]  }
  0x20   : > { %v1780_v9 = vld [vmem:[%s1948_s6 + $0xb0] ss:$20 sps:$4 sm:$0xff]   ;;  %v1786_v15 = vld [vmem:[%s1948_s6 + $0x128] ss:$20 sps:$4 sm:$0xff]   ;;  %v2023_v18 = vld [vmem:[%s2096_s2] ss:$0 sm:$0xff] }
  0x21   : > { %1487 = vmatpush3.bf16.msra.mxu0 %v1717_v26  ;;  %s1311_s6 = sshll.u32 %s2103_s23, 2 }
  0x22   : > { %1551 = vmatpush3.bf16.msra.mxu1 %v1718_v27  ;;  %1488 = vmatprep.subr.bf16.mxu0 %v1719_v28  ;;  %s2070_s9 = scalar_lea.vmem %s2097_s3, %s1311_s6 }
  0x23   : > { %1552 = vmatprep.subr.bf16.mxu1 %v1720_v29 }
  0x25   : > { %1489 = vmatpush3.bf16.msra.mxu0 %v1721_v30 }
  0x26   : > { %1553 = vmatpush3.bf16.msra.mxu1 %v1722_v31  ;;  %1618 = vmatprep.subr.bf16.mxu0 %v1729_v36 }
  0x27   : > { %1650 = vmatprep.subr.bf16.mxu1 %v1729_v36 }
  0x28   : > { %845 = vmatmul.mubr.bf16.vlgmr.msra.gmra.mrb[0].mxu0 %v1723_v32 }
  0x29   : > { %942 = vmatmul.mubr.bf16.vlgmr.msra.gmra.mrb[0].mxu1 %v1726_v34  ;;  %1619 = vmatpush3.bf16.msra.mxu0 %v1729_v36 }
  0x2a   : > { %1658 = vmatpush3.bf16.msra.mxu1 %v1729_v36  ;;  %852 = vmatprep.mubr.bf16.mxu0 %v1730_v37 }
  0x2b   : > { %949 = vmatprep.mubr.bf16.mxu1 %v1732_v38  ;;  %1620 = vmatprep.subr.bf16.mxu0 %v1736_v39 }
  0x2c   : > { %1651 = vmatprep.subr.bf16.mxu1 %v1736_v39 }
  0x2d   : > { %1621 = vmatpush3.bf16.msra.mxu0 %v1736_v39 }
  0x2e   : > { %1659 = vmatpush3.bf16.msra.mxu1 %v1736_v39  ;;  %1622 = vmatprep.subr.bf16.mxu0 %v1743_v44 }
  0x2f   : > { %1652 = vmatprep.subr.bf16.mxu1 %v1743_v44 }
  0x30   : > { %853 = vmatmul.mubr.bf16.gmra.mrb[4].mxu0 %v1734_v40 }
  0x31   : > { %950 = vmatmul.mubr.bf16.gmra.mrb[4].mxu1 %v1735_v41  ;;  %860 = vmatprep.mubr.bf16.mxu0 %v1737_v42 }
  0x32   : > { %957 = vmatprep.mubr.bf16.mxu1 %v1739_v43  ;;  %1623 = vmatpush3.bf16.msra.mxu0 %v1743_v44 }
  0x33   : > { %1660 = vmatpush3.bf16.msra.mxu1 %v1743_v44  ;;  %1624 = vmatprep.subr.bf16.mxu0 %v1750_v45 }
  0x34   : > { %1653 = vmatprep.subr.bf16.mxu1 %v1750_v45 }
  0x36   : > { %1625 = vmatpush3.bf16.msra.mxu0 %v1750_v45 }
  0x37   : > { %1661 = vmatpush3.bf16.msra.mxu1 %v1750_v45  ;;  %1626 = vmatprep.subr.bf16.mxu0 %v1757_v50 }
  0x38   : > { %861 = vmatmul.mubr.bf16.gmra.mrb[8].mxu0 %v1741_v46  ;;  %1654 = vmatprep.subr.bf16.mxu1 %v1757_v50 }
  0x39   : > { %958 = vmatmul.mubr.bf16.gmra.mrb[8].mxu1 %v1742_v47  ;;  %868 = vmatprep.mubr.bf16.mxu0 %v1744_v48 }
  0x3a   : > { %965 = vmatprep.mubr.bf16.mxu1 %v1746_v49  ;;  %1627 = vmatpush3.bf16.msra.mxu0 %v1757_v50 }
  0x3b   : > { %1662 = vmatpush3.bf16.msra.mxu1 %v1757_v50  ;;  %1628 = vmatprep.subr.bf16.mxu0 %v1764_v51 }
  0x3c   : > { %1655 = vmatprep.subr.bf16.mxu1 %v1764_v51 }
  0x3e   : > { %1629 = vmatpush3.bf16.msra.mxu0 %v1764_v51 }
  0x3f   : > { %1663 = vmatpush3.bf16.msra.mxu1 %v1764_v51  ;;  %1630 = vmatprep.subr.bf16.mxu0 %v1771_v55 }
  0x40   : > { %869 = vmatmul.mubr.bf16.gmra.mrb[12].mxu0 %v1748_v52  ;;  %1656 = vmatprep.subr.bf16.mxu1 %v1771_v55 }
  0x41   : > { %966 = vmatmul.mubr.bf16.gmra.mrb[12].mxu1 %v1749_v53  ;;  %876 = vmatprep.mubr.bf16.mxu0 %v1751_v54 }
  0x42   : > { %973 = vmatprep.mubr.bf16.mxu1 %v1753_v56  ;;  %1631 = vmatpush3.bf16.msra.mxu0 %v1771_v55 }
  0x43   : > { %1664 = vmatpush3.bf16.msra.mxu1 %v1771_v55  ;;  %1632 = vmatprep.subr.bf16.mxu0 %v1778_v57 }
  0x44   : > { %1657 = vmatprep.subr.bf16.mxu1 %v1778_v57 }
  0x46   : > { %1633 = vmatpush3.bf16.msra.mxu0 %v1778_v57 }
  0x47   : > { %1665 = vmatpush3.bf16.msra.mxu1 %v1778_v57 }
  0x48   : > { %877 = vmatmul.mubr.bf16.gmra.mrb[16].mxu0 %v1755_v58 }
  0x49   : > { %974 = vmatmul.mubr.bf16.gmra.mrb[16].mxu1 %v1756_v59  ;;  %884 = vmatprep.mubr.bf16.mxu0 %v1758_v60 }
  0x4a   : > { %981 = vmatprep.mubr.bf16.mxu1 %v1760_v61 }
  0x50   : > { %885 = vmatmul.mubr.bf16.gmra.mrb[20].mxu0 %v1762_v62 }
  0x51   : > { %982 = vmatmul.mubr.bf16.gmra.mrb[20].mxu1 %v1763_v63  ;;  %892 = vmatprep.mubr.bf16.mxu0 %v1765_v0 }
  0x52   : > { %989 = vmatprep.mubr.bf16.mxu1 %v1767_v1 }
  0x58   : > { %893 = vmatmul.mubr.bf16.gmra.mrb[24].mxu0 %v1769_v2 }
  0x59   : > { %990 = vmatmul.mubr.bf16.gmra.mrb[24].mxu1 %v1770_v3  ;;  %900 = vmatprep.mubr.bf16.mxu0 %v1772_v4 }
  0x5a   : > { %997 = vmatprep.mubr.bf16.mxu1 %v1774_v5 }
  0x60   : > { %901 = vmatmul.mubr.bf16.gmra.mrb[28].mxu0 %v1776_v6 }
  0x61   : > { %998 = vmatmul.mubr.bf16.gmra.mrb[28].mxu1 %v1777_v7  ;;  %1634 = vmatprep.mubr.bf16.mxu0 %v1779_v8 }
  0x62   : > { %1642 = vmatprep.mubr.bf16.mxu1 %v1780_v9 }
  0x68   : > { %1635 = vmatmul.mubr.bf16.vlgmr.msra.gmra.mrb[32].mxu0 %v1781_v10 }
  0x69   : > { %1643 = vmatmul.mubr.bf16.vlgmr.msra.gmra.mrb[32].mxu1 %v1782_v11  ;;  %1638 = vmatprep.mubr.bf16.mxu0 %v1783_v12 }
  0x6a   : > { %1646 = vmatprep.mubr.bf16.mxu1 %v1784_v13 }
  0x70   : > { %1639 = vmatmul.mubr.bf16.gmra.mrb[36].mxu0 %v1785_v14 }
  0x71   : > { %1647 = vmatmul.mubr.bf16.gmra.mrb[36].mxu1 %v1786_v15 }
  0xfb   : > { %v1490_v16 = vpop.f32.mrb[0].mxu0 }
  0xfc   : > { %v1554_v17 = vpop.f32.mrb[0].mxu1  ;;  %v1491_v19 = vpop.f32.mrb[1].mxu0 }
  0xfd   : > { %v1492_v20 = vadd.f32 %v1491_v19, %v1490_v16  ;;  %v1555_v21 = vpop.f32.mrb[1].mxu1  ;;  %v1493_v22 = vpop.f32.mrb[2].mxu0 }
  0xfe   : > { %v1556_v23 = vadd.f32 %v1555_v21, %v1554_v17  ;;  %v1557_v24 = vpop.f32.mrb[2].mxu1  ;;  %v1494_v25 = vpop.f32.mrb[3].mxu0 }
  0xff   : > { %v847_v26 = vadd.f32 %v1492_v20, %v2023_v18  ;;  %v1495_v27 = vadd.f32 %v1494_v25, %v1493_v22  ;;  %v1558_v28 = vpop.f32.mrb[3].mxu1 }
 0x100   : > { %v1559_v29 = vadd.f32 %v1558_v28, %v1557_v24 }
 0x101   : > { %v850_v30 = vadd.f32 %v1495_v27, %v2023_v18  ;;  %v2027_v31 = vadd.f32 %v1556_v23, %v847_v26 }
 0x103   : > { %v1496_v32 = vpop.f32.mrb[4].mxu0  ;;  %v2029_v33 = vadd.f32 %v1559_v29, %v850_v30 }
 0x104   : > { %v1560_v34 = vpop.f32.mrb[4].mxu1  ;;  %v1497_v35 = vpop.f32.mrb[5].mxu0 }
 0x105   : > { %v1498_v36 = vadd.f32 %v1497_v35, %v1496_v32  ;;  %v1561_v37 = vpop.f32.mrb[5].mxu1  ;;  %v1499_v38 = vpop.f32.mrb[6].mxu0 }
 0x106   : > { %v1562_v39 = vadd.f32 %v1561_v37, %v1560_v34  ;;  %v1563_v40 = vpop.f32.mrb[6].mxu1  ;;  %v1500_v41 = vpop.f32.mrb[7].mxu0 }
 0x107   : > { %v855_v42 = vadd.f32 %v1498_v36, %v2023_v18  ;;  %v1501_v43 = vadd.f32 %v1500_v41, %v1499_v38  ;;  %v1564_v44 = vpop.f32.mrb[7].mxu1 }
 0x108   : > { %v1565_v45 = vadd.f32 %v1564_v44, %v1563_v40 }
 0x109   : > { %v858_v46 = vadd.f32 %v1501_v43, %v2023_v18  ;;  %v2033_v47 = vadd.f32 %v1562_v39, %v855_v42 }
 0x10b   : > { %v1502_v48 = vpop.f32.mrb[8].mxu0  ;;  %v2035_v49 = vadd.f32 %v1565_v45, %v858_v46 }
 0x10c   : > { %v1566_v50 = vpop.f32.mrb[8].mxu1  ;;  %v1503_v51 = vpop.f32.mrb[9].mxu0 }
 0x10d   : > { %v1504_v52 = vadd.f32 %v1503_v51, %v1502_v48  ;;  %v1567_v53 = vpop.f32.mrb[9].mxu1  ;;  %v1505_v54 = vpop.f32.mrb[10].mxu0 }
 0x10e   : > { %v1568_v55 = vadd.f32 %v1567_v53, %v1566_v50  ;;  %v1569_v56 = vpop.f32.mrb[10].mxu1  ;;  %v1506_v57 = vpop.f32.mrb[11].mxu0 }
 0x10f   : > { %v863_v58 = vadd.f32 %v1504_v52, %v2023_v18  ;;  %v1507_v59 = vadd.f32 %v1506_v57, %v1505_v54  ;;  %v1570_v60 = vpop.f32.mrb[11].mxu1 }
 0x110   : > { %v1571_v61 = vadd.f32 %v1570_v60, %v1569_v56 }
 0x111   : > { %v866_v62 = vadd.f32 %v1507_v59, %v2023_v18  ;;  %v2039_v63 = vadd.f32 %v1568_v55, %v863_v58 }
 0x113   : > { %v1508_v0 = vpop.f32.mrb[12].mxu0  ;;  %v2041_v1 = vadd.f32 %v1571_v61, %v866_v62 }
 0x114   : > { %v1572_v2 = vpop.f32.mrb[12].mxu1  ;;  %v1509_v3 = vpop.f32.mrb[13].mxu0 }
 0x115   : > { %v1510_v4 = vadd.f32 %v1509_v3, %v1508_v0  ;;  %v1573_v5 = vpop.f32.mrb[13].mxu1  ;;  %v1511_v6 = vpop.f32.mrb[14].mxu0 }
 0x116   : > { %v1574_v7 = vadd.f32 %v1573_v5, %v1572_v2  ;;  %v1575_v8 = vpop.f32.mrb[14].mxu1  ;;  %v1512_v9 = vpop.f32.mrb[15].mxu0 }
 0x117   : > { %v871_v10 = vadd.f32 %v1510_v4, %v2023_v18  ;;  %v1513_v11 = vadd.f32 %v1512_v9, %v1511_v6  ;;  %v1576_v12 = vpop.f32.mrb[15].mxu1 }
 0x118   : > { %v1577_v13 = vadd.f32 %v1576_v12, %v1575_v8 }
 0x119   : > { %v874_v14 = vadd.f32 %v1513_v11, %v2023_v18  ;;  %v2045_v15 = vadd.f32 %v1574_v7, %v871_v10 }
 0x11b   : > { %v1514_v16 = vpop.f32.mrb[16].mxu0  ;;  %v2047_v17 = vadd.f32 %v1577_v13, %v874_v14 }
 0x11c   : > { %v1578_v19 = vpop.f32.mrb[16].mxu1  ;;  %v1515_v20 = vpop.f32.mrb[17].mxu0 }
 0x11d   : > { %v1516_v21 = vadd.f32 %v1515_v20, %v1514_v16  ;;  %v1579_v22 = vpop.f32.mrb[17].mxu1  ;;  %v1517_v23 = vpop.f32.mrb[18].mxu0 }
 0x11e   : > { %v1580_v24 = vadd.f32 %v1579_v22, %v1578_v19  ;;  %v1581_v25 = vpop.f32.mrb[18].mxu1  ;;  %v1518_v26 = vpop.f32.mrb[19].mxu0 }
 0x11f   : > { %v879_v27 = vadd.f32 %v1516_v21, %v2023_v18  ;;  %v1519_v28 = vadd.f32 %v1518_v26, %v1517_v23  ;;  %v1582_v29 = vpop.f32.mrb[19].mxu1 }
 0x120   : > { %v1583_v30 = vadd.f32 %v1582_v29, %v1581_v25 }
 0x121   : > { %v882_v32 = vadd.f32 %v1519_v28, %v2023_v18  ;;  %v976_v34 = vadd.f32 %v1580_v24, %v879_v27 }
 0x123   : > { %v1520_v35 = vpop.f32.mrb[20].mxu0  ;;  %v2051_v36 = vadd.f32 %v1583_v30, %v882_v32 }
 0x124   : > { %v1584_v37 = vpop.f32.mrb[20].mxu1  ;;  %v1521_v38 = vpop.f32.mrb[21].mxu0 }
 0x125   : > { %v1522_v39 = vadd.f32 %v1521_v38, %v1520_v35  ;;  %v1585_v40 = vpop.f32.mrb[21].mxu1  ;;  %v1523_v41 = vpop.f32.mrb[22].mxu0 }
 0x126   : > { %v1586_v42 = vadd.f32 %v1585_v40, %v1584_v37  ;;  %v1587_v43 = vpop.f32.mrb[22].mxu1  ;;  %v1524_v44 = vpop.f32.mrb[23].mxu0 }
 0x127   : > { %v887_v45 = vadd.f32 %v1522_v39, %v2023_v18  ;;  %v1525_v46 = vadd.f32 %v1524_v44, %v1523_v41  ;;  %v1588_v48 = vpop.f32.mrb[23].mxu1 }
 0x128   : > { %v1589_v50 = vadd.f32 %v1588_v48, %v1587_v43 }
 0x129   : > { %v890_v51 = vadd.f32 %v1525_v46, %v2023_v18  ;;  %v984_v52 = vadd.f32 %v1586_v42, %v887_v45 }
 0x12b   : > { %v1526_v53 = vpop.f32.mrb[24].mxu0  ;;  %v987_v54 = vadd.f32 %v1589_v50, %v890_v51 }
 0x12c   : > { %v1590_v55 = vpop.f32.mrb[24].mxu1  ;;  %v1527_v56 = vpop.f32.mrb[25].mxu0 }
 0x12d   : > { %v1528_v57 = vadd.f32 %v1527_v56, %v1526_v53  ;;  %v1591_v58 = vpop.f32.mrb[25].mxu1  ;;  %v1529_v59 = vpop.f32.mrb[26].mxu0 }
 0x12e   : > { %v1592_v60 = vadd.f32 %v1591_v58, %v1590_v55  ;;  %v1593_v61 = vpop.f32.mrb[26].mxu1  ;;  %v1530_v62 = vpop.f32.mrb[27].mxu0 }
 0x12f   : > { %v895_v0 = vadd.f32 %v1528_v57, %v2023_v18  ;;  %v1531_v2 = vadd.f32 %v1530_v62, %v1529_v59  ;;  %v1594_v3 = vpop.f32.mrb[27].mxu1 }
 0x130   : > { %v1595_v4 = vadd.f32 %v1594_v3, %v1593_v61 }
 0x131   : > { %v898_v5 = vadd.f32 %v1531_v2, %v2023_v18  ;;  %v992_v6 = vadd.f32 %v1592_v60, %v895_v0 }
 0x133   : > { %v1532_v7 = vpop.f32.mrb[28].mxu0  ;;  %v2057_v8 = vadd.f32 %v1595_v4, %v898_v5 }
 0x134   : > { %v1596_v9 = vpop.f32.mrb[28].mxu1  ;;  %v1533_v10 = vpop.f32.mrb[29].mxu0 }
 0x135   : > { %v1534_v11 = vadd.f32 %v1533_v10, %v1532_v7  ;;  %v1597_v12 = vpop.f32.mrb[29].mxu1  ;;  %v1535_v13 = vpop.f32.mrb[30].mxu0 }
 0x136   : > { %v1598_v14 = vadd.f32 %v1597_v12, %v1596_v9  ;;  %v1599_v16 = vpop.f32.mrb[30].mxu1  ;;  %v1536_v19 = vpop.f32.mrb[31].mxu0 }
 0x137   : > { %v903_v20 = vadd.f32 %v1534_v11, %v2023_v18  ;;  %v1537_v21 = vadd.f32 %v1536_v19, %v1535_v13  ;;  %v1600_v22 = vpop.f32.mrb[31].mxu1 }
 0x138   : > { %v1601_v23 = vadd.f32 %v1600_v22, %v1599_v16 }
 0x139   : > { %v906_v24 = vadd.f32 %v1537_v21, %v2023_v18  ;;  %v1000_v25 = vadd.f32 %v1598_v14, %v903_v20 }
 0x13b   : > { %v1636_v26 = vpop.f32.mrb[32].mxu0  ;;  %v1003_v27 = vadd.f32 %v1601_v23, %v906_v24 }
 0x13c   : > { %v1049_v28 = vadd.f32 %v1636_v26, %v2033_v47  ;;  %v1644_v29 = vpop.f32.mrb[32].mxu1  ;;  %v1040_v30 = vpop.f32.mrb[33].mxu0 }
 0x13d   : > { %v1081_v32 = vadd.f32 %v1644_v29, %v984_v52  ;;  %v1041_v35 = vadd.f32 %v1040_v30, %v2027_v31  ;;  %v1072_v37 = vpop.f32.mrb[33].mxu1  ;;  %v1637_v38 = vpop.f32.mrb[34].mxu0 }
 0x13e   : > { %v1073_v39 = vadd.f32 %v1072_v37, %v976_v34  ;;  %v1052_v40 = vadd.f32 %v1637_v38, %v2035_v49  ;;  %v1645_v41 = vpop.f32.mrb[34].mxu1  ;;  %v1043_v42 = vpop.f32.mrb[35].mxu0  ;;  %v1105_v45 = vmax.f32 %v1049_v28, 0.0 }
 0x13f   : > { %v1084_v43 = vadd.f32 %v1645_v41, %v987_v54  ;;  %v1044_v18 = vadd.f32 %v1043_v42, %v2029_v33  ;;  %v1075_v44 = vpop.f32.mrb[35].mxu1  ;;  %v1113_v48 = vmax.f32 %v1081_v32, 0.0  ;;  %v1103_v50 = vmax.f32 %v1041_v35, 0.0 }
 0x140   : > { %v1106_v46 = vmax.f32 %v1052_v40, 0.0  ;;  %v1076_v47 = vadd.f32 %v1075_v44, %v2051_v36  ;;  %v1111_v34 = vmax.f32 %v1073_v39, 0.0 }
 0x141   : > { %v1114_v31 = vmax.f32 %v1084_v43, 0.0  ;;  %v1104_v49 = vmax.f32 %v1044_v18, 0.0 }
 0x142   : > { %v1435_v51 = vpack.c.bf16 %v1106_v46, %v1105_v45  ;;  %v1112_v33 = vmax.f32 %v1076_v47, 0.0 }
 0x143   : > { %v1455_v52 = vpack.c.bf16 %v1114_v31, %v1113_v48  ;;  %v1430_v53 = vpack.c.bf16 %v1104_v49, %v1103_v50  ;;  %v1640_v54 = vpop.f32.mrb[36].mxu0 }
 0x144   : > { %1467 = vst [vmem:[%s2070_s9 + $0x8] sm:$0xff] %v1435_v51   ;;  %v1450_v36 = vpack.c.bf16 %v1112_v33, %v1111_v34  ;;  %v1065_v55 = vadd.f32 %v1640_v54, %v2045_v15  ;;  %v1648_v56 = vpop.f32.mrb[36].mxu1  ;;  %v1056_v57 = vpop.f32.mrb[37].mxu0 }
 0x145   : > { %1471 = vst [vmem:[%s2070_s9 + $0x28] sm:$0xff] %v1455_v52   ;;  %1431 = vst [vmem:[%s2070_s9] sm:$0xff] %v1430_v53   ;;  %v1097_v58 = vadd.f32 %v1648_v56, %v1000_v25  ;;  %v1057_v59 = vadd.f32 %v1056_v57, %v2039_v63  ;;  %v1088_v60 = vpop.f32.mrb[37].mxu1  ;;  %v1641_v61 = vpop.f32.mrb[38].mxu0 }
 0x146   : > { %1470 = vst [vmem:[%s2070_s9 + $0x20] sm:$0xff] %v1450_v36   ;;  %v1089_v62 = vadd.f32 %v1088_v60, %v992_v6  ;;  %v1068_v0 = vadd.f32 %v1641_v61, %v2047_v17  ;;  %v1649_v2 = vpop.f32.mrb[38].mxu1  ;;  %v1059_v3 = vpop.f32.mrb[39].mxu0  ;;  %v1109_v7 = vmax.f32 %v1065_v55, 0.0 }
 0x147   : > { %v1100_v4 = vadd.f32 %v1649_v2, %v1003_v27  ;;  %v1060_v5 = vadd.f32 %v1059_v3, %v2041_v1  ;;  %v1091_v15 = vpop.f32.mrb[39].mxu1  ;;  %v1117_v10 = vmax.f32 %v1097_v58, 0.0  ;;  %v1107_v11 = vmax.f32 %v1057_v59, 0.0 }
 0x148   : > { %v1110_v9 = vmax.f32 %v1068_v0, 0.0  ;;  %v1092_v63 = vadd.f32 %v1091_v15, %v2057_v8  ;;  %v1115_v13 = vmax.f32 %v1089_v62, 0.0 }
 0x149   : > { %v1118_v12 = vmax.f32 %v1100_v4, 0.0  ;;  %v1108_v6 = vmax.f32 %v1060_v5, 0.0 }
 0x14a   : > { %v1445_v17 = vpack.c.bf16 %v1110_v9, %v1109_v7  ;;  %v1116_v14 = vmax.f32 %v1092_v63, 0.0 }
 0x14b   : > { %v1465_v16 = vpack.c.bf16 %v1118_v12, %v1117_v10  ;;  %v1440_v19 = vpack.c.bf16 %v1108_v6, %v1107_v11 }
 0x14c   : > { %1469 = vst [vmem:[%s2070_s9 + $0x18] sm:$0xff] %v1445_v17   ;;  %v1460_v20 = vpack.c.bf16 %v1116_v14, %v1115_v13 }
 0x14d   : > { %1473 = vst [vmem:[%s2070_s9 + $0x38] sm:$0xff] %v1465_v16   ;;  %1468 = vst [vmem:[%s2070_s9 + $0x10] sm:$0xff] %v1440_v19  }
 0x14e   : > { %1472 = vst [vmem:[%s2070_s9 + $0x30] sm:$0xff] %v1460_v20  }
 0x14f PF: > { %s13_s14 = sadd.s32 1, %s1809_s14   ;;  %s2098_s12 = smov %s1805_s13 }
 0x150   : > { %p10_p5 = scmp.ge.s32.totalorder %s13_s14, 4   ;;  %s2099_s13 = smov %s2101_s15 }
 0x152   :  { %12 = sbr.rel (!%p10_p5) target bundleno = 2 (0x2), region = 68 }

// kernel: _lambda_.26
= control target key start
LH: loop header
LB: loop body
LE: loop exit
PB: predicated region body
PF: predicated region fallthrough
CT: control target
= control target key end

     0   :  { %s1070_s12 = smov 0   ;;  %s1072_s13 = smov 0   ;;  %s1204_s0 = inlined_call_operand.vmem [shape: bf16[256,256], index: 0, kind: input, shape index: {}]   ;;  %s1205_s1 = inlined_call_operand.vmem [shape: bf16[256,128], index: 1, kind: input, shape index: {}]   ;;  %s1206_s2 = inlined_call_operand.vmem [shape: f32[1,128], index: 2, kind: input, shape index: {}]   ;;  %s1207_s3 = inlined_call_operand.vmem [shape: bf16[256,128], index: 3, kind: output, shape index: {}]  }
   0x1   :  { %s1074_s14 = smov 0  }
   0x2 LB: > { %s25_s15 = sadd.s32 1, %s1044_s13  ;;  %p761_p0 = scmp.ge.s32.totalorder %s1048_s14, 1  ;;  %s1048_s14 = sphi %s1074_s14, %s13_s14   ;;  %s1044_s13 = sphi %s1072_s13, %s1209_s13   ;;  %s1040_s12 = sphi %s1070_s12, %s1208_s12  }
   0x3   : > { %p27_p1 = scmp.ge.s32.totalorder %s25_s15, 2  ;;  %p170_p2 = scmp.lt.s32.totalorder %s1048_s14, 3 }
   0x5   : > { %s1211_s15 = smov (%p27_p1, %s25_s15), 0  ;;  %p171_p3 = pnand %p761_p0, %p170_p2 }
   0x6   : > { %v986_v0 = vld [vmem:[%s1205_s1 + $0x40] sm:$0xff] (!%p171_p3)   ;;  %s762_s18 = sshll.u32 (!%p171_p3), %s1040_s12, 4  ;;  %v988_v2 = vld [vmem:[%s1205_s1 + $0x48] sm:$0xff] (!%p171_p3)   ;;  %v990_v4 = vld [vmem:[%s1205_s1 + $0x50] sm:$0xff] (!%p171_p3)  }
   0x7   : > { %174 = sbr.rel (%p171_p3) target bundleno = 288 (0x120), region = 32  ;;  %v987_v1 = vld [vmem:[%s1205_s1] sm:$0xff] (!%p171_p3)   ;;  %882 = vmatprep.subr.bf16.mxu0 (!%p171_p3), %v986_v0  ;;  %946 = vmatprep.subr.bf16.mxu1 (!%p171_p3), %v986_v0  ;;  %v989_v3 = vld [vmem:[%s1205_s1 + $0x8] sm:$0xff] (!%p171_p3)   ;;  %p206_p4 = scmp.lt.s32.totalorder (!%p171_p3), %s762_s18, 31  ;;  %v991_v5 = vld [vmem:[%s1205_s1 + $0x10] sm:$0xff] (!%p171_p3)  }
   0x8   : > { %883 = vmatpush3.bf16.msra.mxu0 (!%p171_p3), %v987_v1  ;;  %954 = vmatpush3.bf16.msra.mxu1 (!%p171_p3), %v987_v1  ;;  %v992_v6 = vld [vmem:[%s1205_s1 + $0x58] sm:$0xff] (!%p171_p3)   ;;  %v994_v8 = vld [vmem:[%s1205_s1 + $0x60] sm:$0xff] (!%p171_p3)   ;;  %v996_v10 = vld [vmem:[%s1205_s1 + $0x68] sm:$0xff] (!%p171_p3)  }
   0x9   : > { %884 = vmatprep.subr.bf16.mxu0 (!%p171_p3), %v988_v2  ;;  %947 = vmatprep.subr.bf16.mxu1 (!%p171_p3), %v988_v2  ;;  %v993_v7 = vld [vmem:[%s1205_s1 + $0x18] sm:$0xff] (!%p171_p3)   ;;  %v995_v9 = vld [vmem:[%s1205_s1 + $0x20] sm:$0xff] (!%p171_p3)   ;;  %v997_v13 = vld [vmem:[%s1205_s1 + $0x28] sm:$0xff] (!%p171_p3)  }
   0xa   : > { %v998_v14 = vld [vmem:[%s1205_s1 + $0x70] sm:$0xff] (!%p171_p3)   ;;  %v1000_v16 = vld [vmem:[%s1205_s1 + $0x78] sm:$0xff] (!%p171_p3)   ;;  %v1163_v34 = vld [vmem:[%s1206_s2] ss:$0 sm:$0xff] (!%p171_p3) }
   0xb   : > { %v999_v15 = vld [vmem:[%s1205_s1 + $0x30] sm:$0xff] (!%p171_p3)   ;;  %v1001_v17 = vld [vmem:[%s1205_s1 + $0x38] sm:$0xff] (!%p171_p3)  }
   0xc   : > { %885 = vmatpush3.bf16.msra.mxu0 (!%p171_p3), %v989_v3  ;;  %955 = vmatpush3.bf16.msra.mxu1 (!%p171_p3), %v989_v3 }
   0xd   : > { %886 = vmatprep.subr.bf16.mxu0 (!%p171_p3), %v990_v4  ;;  %948 = vmatprep.subr.bf16.mxu1 (!%p171_p3), %v990_v4 }
   0xe   : > { %s1213_s18 = smov (!%p206_p4, %s762_s18), 31 }
   0xf   : > { %s818_s6 = sshll.u32 %s1213_s18, 3  ;;  %s766_s5 = sshll.u32 %s1213_s18, 2 }
  0x10   : > { %887 = vmatpush3.bf16.msra.mxu0 %v991_v5  ;;  %956 = vmatpush3.bf16.msra.mxu1 %v991_v5  ;;  %s1121_s11 = scalar_lea.vmem %s1204_s0, %s818_s6  ;;  %s1173_s8 = scalar_lea.vmem %s1207_s3, %s766_s5 }
  0x11   : > { %888 = vmatprep.subr.bf16.mxu0 %v992_v6  ;;  %949 = vmatprep.subr.bf16.mxu1 %v992_v6  ;;  %v1004_v11 = vld [vmem:[%s1121_s11 + $0x4] ss:$8 sps:$4 sm:$0xff]   ;;  %v1002_v18 = vld [vmem:[%s1121_s11] ss:$8 sps:$4 sm:$0xff]   ;;  %v1008_v20 = vld [vmem:[%s1121_s11 + $0x14] ss:$8 sps:$4 sm:$0xff]  }
  0x12   : > { %v1007_v12 = vld [vmem:[%s1121_s11 + $0x44] ss:$8 sps:$4 sm:$0xff]   ;;  %492 = vmatprep.mubr.bf16.mxu0 %v1004_v11  ;;  %v1005_v19 = vld [vmem:[%s1121_s11 + $0x40] ss:$8 sps:$4 sm:$0xff]   ;;  %v1010_v21 = vld [vmem:[%s1121_s11 + $0x54] ss:$8 sps:$4 sm:$0xff]  }
  0x13   : > { %524 = vmatprep.mubr.bf16.mxu1 %v1007_v12  ;;  %v1012_v22 = vld [vmem:[%s1121_s11 + $0x10] ss:$8 sps:$4 sm:$0xff]   ;;  %v1014_v24 = vld [vmem:[%s1121_s11 + $0x24] ss:$8 sps:$4 sm:$0xff]   ;;  %v1018_v26 = vld [vmem:[%s1121_s11 + $0x20] ss:$8 sps:$4 sm:$0xff]  }
  0x14   : > { %889 = vmatpush3.bf16.msra.mxu0 %v993_v7  ;;  %957 = vmatpush3.bf16.msra.mxu1 %v993_v7  ;;  %v1013_v23 = vld [vmem:[%s1121_s11 + $0x50] ss:$8 sps:$4 sm:$0xff]   ;;  %v1016_v25 = vld [vmem:[%s1121_s11 + $0x64] ss:$8 sps:$4 sm:$0xff]   ;;  %v1019_v27 = vld [vmem:[%s1121_s11 + $0x60] ss:$8 sps:$4 sm:$0xff]  }
  0x15   : > { %890 = vmatprep.subr.bf16.mxu0 %v994_v8  ;;  %950 = vmatprep.subr.bf16.mxu1 %v994_v8  ;;  %v1020_v28 = vld [vmem:[%s1121_s11 + $0x34] ss:$8 sps:$4 sm:$0xff]   ;;  %v1024_v30 = vld [vmem:[%s1121_s11 + $0x30] ss:$8 sps:$4 sm:$0xff]  }
  0x16   : > { %v1022_v29 = vld [vmem:[%s1121_s11 + $0x74] ss:$8 sps:$4 sm:$0xff]   ;;  %v1025_v31 = vld [vmem:[%s1121_s11 + $0x70] ss:$8 sps:$4 sm:$0xff]  }
  0x18   : > { %891 = vmatpush3.bf16.msra.mxu0 %v995_v9  ;;  %958 = vmatpush3.bf16.msra.mxu1 %v995_v9 }
  0x19   : > { %892 = vmatprep.subr.bf16.mxu0 %v996_v10  ;;  %951 = vmatprep.subr.bf16.mxu1 %v996_v10 }
  0x1c   : > { %893 = vmatpush3.bf16.msra.mxu0 %v997_v13  ;;  %959 = vmatpush3.bf16.msra.mxu1 %v997_v13 }
  0x1d   : > { %894 = vmatprep.subr.bf16.mxu0 %v998_v14  ;;  %952 = vmatprep.subr.bf16.mxu1 %v998_v14 }
  0x20   : > { %895 = vmatpush3.bf16.msra.mxu0 %v999_v15  ;;  %960 = vmatpush3.bf16.msra.mxu1 %v999_v15 }
  0x21   : > { %896 = vmatprep.subr.bf16.mxu0 %v1000_v16  ;;  %953 = vmatprep.subr.bf16.mxu1 %v1000_v16 }
  0x24   : > { %897 = vmatpush3.bf16.msra.mxu0 %v1001_v17  ;;  %961 = vmatpush3.bf16.msra.mxu1 %v1001_v17 }
  0x27   : > { %493 = vmatmul.mubr.bf16.vlgmr.msra.gmra.mrb[0].mxu0 %v1002_v18  ;;  %525 = vmatmul.mubr.bf16.vlgmr.msra.gmra.mrb[0].mxu1 %v1005_v19 }
  0x28   : > { %500 = vmatprep.mubr.bf16.mxu0 %v1008_v20  ;;  %532 = vmatprep.mubr.bf16.mxu1 %v1010_v21 }
  0x2f   : > { %501 = vmatmul.mubr.bf16.gmra.mrb[4].mxu0 %v1012_v22  ;;  %533 = vmatmul.mubr.bf16.gmra.mrb[4].mxu1 %v1013_v23 }
  0x30   : > { %508 = vmatprep.mubr.bf16.mxu0 %v1014_v24  ;;  %540 = vmatprep.mubr.bf16.mxu1 %v1016_v25 }
  0x37   : > { %509 = vmatmul.mubr.bf16.gmra.mrb[8].mxu0 %v1018_v26  ;;  %541 = vmatmul.mubr.bf16.gmra.mrb[8].mxu1 %v1019_v27 }
  0x38   : > { %516 = vmatprep.mubr.bf16.mxu0 %v1020_v28  ;;  %548 = vmatprep.mubr.bf16.mxu1 %v1022_v29 }
  0x3f   : > { %517 = vmatmul.mubr.bf16.gmra.mrb[12].mxu0 %v1024_v30  ;;  %549 = vmatmul.mubr.bf16.gmra.mrb[12].mxu1 %v1025_v31 }
  0xfa   : > { %v898_v32 = vpop.f32.mrb[0].mxu0  ;;  %v922_v33 = vpop.f32.mrb[0].mxu1 }
  0xfb   : > { %v899_v35 = vpop.f32.mrb[1].mxu0  ;;  %v923_v36 = vpop.f32.mrb[1].mxu1 }
  0xfc   : > { %v900_v37 = vadd.f32 %v899_v35, %v898_v32  ;;  %v924_v38 = vadd.f32 %v923_v36, %v922_v33  ;;  %v901_v39 = vpop.f32.mrb[2].mxu0  ;;  %v925_v40 = vpop.f32.mrb[2].mxu1 }
  0xfd   : > { %v902_v41 = vpop.f32.mrb[3].mxu0  ;;  %v926_v42 = vpop.f32.mrb[3].mxu1 }
  0xfe   : > { %v495_v43 = vadd.f32 %v900_v37, %v1163_v34  ;;  %v527_v44 = vadd.f32 %v924_v38, %v1163_v34  ;;  %v903_v45 = vadd.f32 %v902_v41, %v901_v39  ;;  %v927_v46 = vadd.f32 %v926_v42, %v925_v40 }
 0x100   : > { %v498_v47 = vadd.f32 %v903_v45, %v1163_v34  ;;  %v530_v48 = vadd.f32 %v927_v46, %v1163_v34  ;;  %v557_v49 = vmax.f32 %v495_v43, 0.0  ;;  %v565_v50 = vmax.f32 %v527_v44, 0.0 }
 0x102   : > { %v558_v51 = vmax.f32 %v498_v47, 0.0  ;;  %v566_v52 = vmax.f32 %v530_v48, 0.0  ;;  %v904_v53 = vpop.f32.mrb[4].mxu0  ;;  %v928_v54 = vpop.f32.mrb[4].mxu1 }
 0x103   : > { %v905_v55 = vpop.f32.mrb[5].mxu0  ;;  %v929_v56 = vpop.f32.mrb[5].mxu1 }
 0x104   : > { %v838_v57 = vpack.c.bf16 %v558_v51, %v557_v49  ;;  %v858_v58 = vpack.c.bf16 %v566_v52, %v565_v50  ;;  %v906_v59 = vadd.f32 %v905_v55, %v904_v53  ;;  %v930_v60 = vadd.f32 %v929_v56, %v928_v54  ;;  %v907_v61 = vpop.f32.mrb[6].mxu0  ;;  %v931_v62 = vpop.f32.mrb[6].mxu1 }
 0x105   : > { %v908_v63 = vpop.f32.mrb[7].mxu0  ;;  %v932_v0 = vpop.f32.mrb[7].mxu1 }
 0x106   : > { %839 = vst [vmem:[%s1173_s8] sm:$0xff] %v838_v57   ;;  %878 = vst [vmem:[%s1173_s8 + $0x20] sm:$0xff] %v858_v58   ;;  %v503_v1 = vadd.f32 %v906_v59, %v1163_v34  ;;  %v535_v2 = vadd.f32 %v930_v60, %v1163_v34  ;;  %v909_v3 = vadd.f32 %v908_v63, %v907_v61 }
 0x107   : > { %v933_v4 = vadd.f32 %v932_v0, %v931_v62 }
 0x108   : > { %v506_v5 = vadd.f32 %v909_v3, %v1163_v34  ;;  %v559_v7 = vmax.f32 %v503_v1, 0.0  ;;  %v567_v8 = vmax.f32 %v535_v2, 0.0 }
 0x109   : > { %v538_v6 = vadd.f32 %v933_v4, %v1163_v34 }
 0x10a   : > { %v560_v9 = vmax.f32 %v506_v5, 0.0  ;;  %v910_v11 = vpop.f32.mrb[8].mxu0  ;;  %v934_v12 = vpop.f32.mrb[8].mxu1 }
 0x10b   : > { %v568_v10 = vmax.f32 %v538_v6, 0.0  ;;  %v911_v13 = vpop.f32.mrb[9].mxu0  ;;  %v935_v14 = vpop.f32.mrb[9].mxu1 }
 0x10c   : > { %v843_v15 = vpack.c.bf16 %v560_v9, %v559_v7  ;;  %v912_v17 = vadd.f32 %v911_v13, %v910_v11  ;;  %v936_v18 = vadd.f32 %v935_v14, %v934_v12  ;;  %v913_v19 = vpop.f32.mrb[10].mxu0  ;;  %v937_v20 = vpop.f32.mrb[10].mxu1 }
 0x10d   : > { %v863_v16 = vpack.c.bf16 %v568_v10, %v567_v8  ;;  %v914_v21 = vpop.f32.mrb[11].mxu0  ;;  %v938_v22 = vpop.f32.mrb[11].mxu1 }
 0x10e   : > { %875 = vst [vmem:[%s1173_s8 + $0x8] sm:$0xff] %v843_v15   ;;  %v511_v23 = vadd.f32 %v912_v17, %v1163_v34  ;;  %v543_v24 = vadd.f32 %v936_v18, %v1163_v34  ;;  %v915_v25 = vadd.f32 %v914_v21, %v913_v19  ;;  %v939_v26 = vadd.f32 %v938_v22, %v937_v20 }
 0x10f   : > { %879 = vst [vmem:[%s1173_s8 + $0x28] sm:$0xff] %v863_v16  }
 0x110   : > { %v514_v27 = vadd.f32 %v915_v25, %v1163_v34  ;;  %v546_v28 = vadd.f32 %v939_v26, %v1163_v34  ;;  %v561_v29 = vmax.f32 %v511_v23, 0.0  ;;  %v569_v30 = vmax.f32 %v543_v24, 0.0 }
 0x112   : > { %v562_v31 = vmax.f32 %v514_v27, 0.0  ;;  %v570_v32 = vmax.f32 %v546_v28, 0.0  ;;  %v916_v33 = vpop.f32.mrb[12].mxu0  ;;  %v940_v35 = vpop.f32.mrb[12].mxu1 }
 0x113   : > { %v917_v36 = vpop.f32.mrb[13].mxu0  ;;  %v941_v37 = vpop.f32.mrb[13].mxu1 }
 0x114   : > { %v848_v38 = vpack.c.bf16 %v562_v31, %v561_v29  ;;  %v868_v39 = vpack.c.bf16 %v570_v32, %v569_v30  ;;  %v918_v40 = vadd.f32 %v917_v36, %v916_v33  ;;  %v942_v41 = vadd.f32 %v941_v37, %v940_v35  ;;  %v919_v42 = vpop.f32.mrb[14].mxu0  ;;  %v943_v43 = vpop.f32.mrb[14].mxu1 }
 0x115   : > { %v920_v44 = vpop.f32.mrb[15].mxu0  ;;  %v944_v45 = vpop.f32.mrb[15].mxu1 }
 0x116   : > { %876 = vst [vmem:[%s1173_s8 + $0x10] sm:$0xff] %v848_v38   ;;  %880 = vst [vmem:[%s1173_s8 + $0x30] sm:$0xff] %v868_v39   ;;  %v519_v46 = vadd.f32 %v918_v40, %v1163_v34  ;;  %v551_v47 = vadd.f32 %v942_v41, %v1163_v34  ;;  %v921_v48 = vadd.f32 %v920_v44, %v919_v42 }
 0x117   : > { %v945_v49 = vadd.f32 %v944_v45, %v943_v43 }
 0x118   : > { %v522_v50 = vadd.f32 %v921_v48, %v1163_v34  ;;  %v563_v52 = vmax.f32 %v519_v46, 0.0  ;;  %v571_v53 = vmax.f32 %v551_v47, 0.0 }
 0x119   : > { %v554_v51 = vadd.f32 %v945_v49, %v1163_v34 }
 0x11a   : > { %v564_v54 = vmax.f32 %v522_v50, 0.0 }
 0x11b   : > { %v572_v55 = vmax.f32 %v554_v51, 0.0 }
 0x11c   : > { %v853_v56 = vpack.c.bf16 %v564_v54, %v563_v52 }
 0x11d   : > { %v873_v57 = vpack.c.bf16 %v572_v55, %v571_v53 }
 0x11e   : > { %877 = vst [vmem:[%s1173_s8 + $0x18] sm:$0xff] %v853_v56  }
 0x11f   : > { %881 = vst [vmem:[%s1173_s8 + $0x38] sm:$0xff] %v873_v57  }
 0x120 PF: > { %s13_s14 = sadd.s32 1, %s1048_s14   ;;  %s1208_s12 = smov %s1044_s13 }
 0x121   : > { %p10_p5 = scmp.ge.s32.totalorder %s13_s14, 4   ;;  %s1209_s13 = smov %s1211_s15 }
 0x123   :  { %12 = sbr.rel (!%p10_p5) target bundleno = 2 (0x2), region = 68 }

// kernel: _lambda_.29
= control target key start
LH: loop header
LB: loop body
LE: loop exit
PB: predicated region body
PF: predicated region fallthrough
CT: control target
= control target key end

     0   :  { %s2745_s12 = smov 0   ;;  %s2747_s13 = smov 0   ;;  %s3184_s0 = inlined_call_operand.vmem [shape: bf16[256,1152], index: 0, kind: input, shape index: {}]   ;;  %s3185_s1 = inlined_call_operand.vmem [shape: bf16[1152,128], index: 1, kind: input, shape index: {}]   ;;  %s3186_s2 = inlined_call_operand.vmem [shape: f32[1,128], index: 2, kind: input, shape index: {}]   ;;  %s3187_s3 = inlined_call_operand.vmem [shape: bf16[256,128], index: 3, kind: output, shape index: {}]  }
   0x1   :  { %s2749_s14 = smov 0  }
   0x2 LB: > { %s25_s15 = sadd.s32 1, %s2719_s13  ;;  %p1949_p0 = scmp.ge.s32.totalorder %s2723_s14, 1  ;;  %s2723_s14 = sphi %s2749_s14, %s13_s14   ;;  %s2719_s13 = sphi %s2747_s13, %s3189_s13   ;;  %s2715_s12 = sphi %s2745_s12, %s3188_s12  }
   0x3   : > { %p27_p1 = scmp.ge.s32.totalorder %s25_s15, 2  ;;  %p170_p2 = scmp.lt.s32.totalorder %s2723_s14, 3 }
   0x5   : > { %s3191_s15 = smov (%p27_p1, %s25_s15), 0  ;;  %p171_p3 = pnand %p1949_p0, %p170_p2 }
   0x6   : > { %v2525_v0 = vld [vmem:[%s3185_s1 + $0x40] sm:$0xff] (!%p171_p3)   ;;  %v2529_v4 = vld [vmem:[%s3185_s1 + $0x48] sm:$0xff] (!%p171_p3)   ;;  %v2533_v8 = vld [vmem:[%s3185_s1 + $0x50] sm:$0xff] (!%p171_p3)   ;;  %s1950_s23 = sshll.u32 (!%p171_p3), %s2715_s12, 4 }
   0x7   : > { %174 = sbr.rel (%p171_p3) target bundleno = 399 (0x18f), region = 32  ;;  %v2526_v1 = vld [vmem:[%s3185_s1 + $0xc0] sm:$0xff] (!%p171_p3)   ;;  %2180 = vmatprep.subr.bf16.mxu0 (!%p171_p3), %v2525_v0  ;;  %v2530_v5 = vld [vmem:[%s3185_s1 + $0xc8] sm:$0xff] (!%p171_p3)   ;;  %v2534_v9 = vld [vmem:[%s3185_s1 + $0xd0] sm:$0xff] (!%p171_p3)   ;;  %p206_p4 = scmp.lt.s32.totalorder (!%p171_p3), %s1950_s23, 31 }
   0x8   : > { %v2527_v2 = vld [vmem:[%s3185_s1] sm:$0xff] (!%p171_p3)   ;;  %2244 = vmatprep.subr.bf16.mxu1 (!%p171_p3), %v2526_v1  ;;  %v2531_v6 = vld [vmem:[%s3185_s1 + $0x8] sm:$0xff] (!%p171_p3)   ;;  %v2535_v10 = vld [vmem:[%s3185_s1 + $0x10] sm:$0xff] (!%p171_p3)  }
   0x9   : > { %v2528_v3 = vld [vmem:[%s3185_s1 + $0x80] sm:$0xff] (!%p171_p3)   ;;  %2181 = vmatpush3.bf16.msra.mxu0 (!%p171_p3), %v2527_v2  ;;  %v2532_v7 = vld [vmem:[%s3185_s1 + $0x88] sm:$0xff] (!%p171_p3)   ;;  %v2536_v11 = vld [vmem:[%s3185_s1 + $0x90] sm:$0xff] (!%p171_p3)  }
   0xa   : > { %2245 = vmatpush3.bf16.msra.mxu1 (!%p171_p3), %v2528_v3  ;;  %2182 = vmatprep.subr.bf16.mxu0 (!%p171_p3), %v2529_v4  ;;  %v2537_v12 = vld [vmem:[%s3185_s1 + $0x58] sm:$0xff] (!%p171_p3)   ;;  %v2541_v16 = vld [vmem:[%s3185_s1 + $0x60] sm:$0xff] (!%p171_p3)   ;;  %v2545_v20 = vld [vmem:[%s3185_s1 + $0x68] sm:$0xff] (!%p171_p3)  }
   0xb   : > { %2246 = vmatprep.subr.bf16.mxu1 (!%p171_p3), %v2530_v5  ;;  %v2538_v13 = vld [vmem:[%s3185_s1 + $0xd8] sm:$0xff] (!%p171_p3)   ;;  %v2542_v17 = vld [vmem:[%s3185_s1 + $0xe0] sm:$0xff] (!%p171_p3)   ;;  %v2546_v21 = vld [vmem:[%s3185_s1 + $0xe8] sm:$0xff] (!%p171_p3)  }
   0xc   : > { %v2539_v14 = vld [vmem:[%s3185_s1 + $0x18] sm:$0xff] (!%p171_p3)   ;;  %v2543_v18 = vld [vmem:[%s3185_s1 + $0x20] sm:$0xff] (!%p171_p3)   ;;  %v2547_v22 = vld [vmem:[%s3185_s1 + $0x28] sm:$0xff] (!%p171_p3)  }
   0xd   : > { %2183 = vmatpush3.bf16.msra.mxu0 (!%p171_p3), %v2531_v6  ;;  %v2540_v15 = vld [vmem:[%s3185_s1 + $0x98] sm:$0xff] (!%p171_p3)   ;;  %v2544_v19 = vld [vmem:[%s3185_s1 + $0xa0] sm:$0xff] (!%p171_p3)   ;;  %v2548_v23 = vld [vmem:[%s3185_s1 + $0xa8] sm:$0xff] (!%p171_p3)  }
   0xe   : > { %2247 = vmatpush3.bf16.msra.mxu1 %v2532_v7  ;;  %2184 = vmatprep.subr.bf16.mxu0 %v2533_v8  ;;  %s3193_s23 = smov (!%p206_p4, %s1950_s23), 31  ;;  %v2549_v24 = vld [vmem:[%s3185_s1 + $0x70] sm:$0xff]   ;;  %v2553_v28 = vld [vmem:[%s3185_s1 + $0x78] sm:$0xff]   ;;  %v2563_v36 = vld [vmem:[%s3185_s1 + $0x140] sm:$0xff]  }
   0xf   : > { %2248 = vmatprep.subr.bf16.mxu1 %v2534_v9  ;;  %v2550_v25 = vld [vmem:[%s3185_s1 + $0xf0] sm:$0xff]   ;;  %s2500_s22 = smul.u32 36, %s3193_s23  ;;  %v2554_v29 = vld [vmem:[%s3185_s1 + $0xf8] sm:$0xff]   ;;  %v2564_v37 = vld [vmem:[%s3185_s1 + $0x1c0] sm:$0xff]  }
  0x10   : > { %v2551_v26 = vld [vmem:[%s3185_s1 + $0x30] sm:$0xff]   ;;  %v2555_v30 = vld [vmem:[%s3185_s1 + $0x38] sm:$0xff]   ;;  %v2565_v38 = vld [vmem:[%s3185_s1 + $0x100] sm:$0xff]  }
  0x11   : > { %2185 = vmatpush3.bf16.msra.mxu0 %v2535_v10  ;;  %v2552_v27 = vld [vmem:[%s3185_s1 + $0xb0] sm:$0xff]   ;;  %s2862_s6 = scalar_lea.vmem %s3184_s0, %s2500_s22  ;;  %v2556_v31 = vld [vmem:[%s3185_s1 + $0xb8] sm:$0xff]   ;;  %v2566_v39 = vld [vmem:[%s3185_s1 + $0x180] sm:$0xff]  }
  0x12   : > { %2249 = vmatpush3.bf16.msra.mxu1 %v2536_v11  ;;  %2186 = vmatprep.subr.bf16.mxu0 %v2537_v12  ;;  %v2557_v32 = vld [vmem:[%s2862_s6] ss:$36 sps:$4 sm:$0xff]   ;;  %v2560_v34 = vld [vmem:[%s2862_s6 + $0x8] ss:$36 sps:$4 sm:$0xff]   ;;  %v2569_v41 = vld [vmem:[%s2862_s6 + $0x54] ss:$36 sps:$4 sm:$0xff]  }
  0x13   : > { %2250 = vmatprep.subr.bf16.mxu1 %v2538_v13  ;;  %v2559_v33 = vld [vmem:[%s2862_s6 + $0x4] ss:$36 sps:$4 sm:$0xff]   ;;  %v2562_v35 = vld [vmem:[%s2862_s6 + $0xc] ss:$36 sps:$4 sm:$0xff]   ;;  %v2577_v48 = vld [vmem:[%s2862_s6 + $0x94] ss:$36 sps:$4 sm:$0xff]  }
  0x14   : > { %1292 = vmatprep.mubr.bf16.mxu0 %v2559_v33  ;;  %1389 = vmatprep.mubr.bf16.mxu1 %v2562_v35  ;;  %v2567_v40 = vld [vmem:[%s2862_s6 + $0x4c] ss:$36 sps:$4 sm:$0xff]   ;;  %v2579_v49 = vld [vmem:[%s2862_s6 + $0x9c] ss:$36 sps:$4 sm:$0xff]   ;;  %v2589_v57 = vld [vmem:[%s2862_s6 + $0xe4] ss:$36 sps:$4 sm:$0xff]  }
  0x15   : > { %2187 = vmatpush3.bf16.msra.mxu0 %v2539_v14  ;;  %v2571_v42 = vld [vmem:[%s2862_s6 + $0x48] ss:$36 sps:$4 sm:$0xff]   ;;  %v2572_v43 = vld [vmem:[%s2862_s6 + $0x50] ss:$36 sps:$4 sm:$0xff]   ;;  %v2582_v51 = vld [vmem:[%s2862_s6 + $0x98] ss:$36 sps:$4 sm:$0xff]  }
  0x16   : > { %2251 = vmatpush3.bf16.msra.mxu1 %v2540_v15  ;;  %2188 = vmatprep.subr.bf16.mxu0 %v2541_v16  ;;  %v2573_v44 = vld [vmem:[%s3185_s1 + $0x148] sm:$0xff]   ;;  %v2581_v50 = vld [vmem:[%s2862_s6 + $0x90] ss:$36 sps:$4 sm:$0xff]   ;;  %v2587_v56 = vld [vmem:[%s2862_s6 + $0xdc] ss:$36 sps:$4 sm:$0xff]  }
  0x17   : > { %2252 = vmatprep.subr.bf16.mxu1 %v2542_v17  ;;  %v2574_v45 = vld [vmem:[%s3185_s1 + $0x1c8] sm:$0xff]   ;;  %v2583_v52 = vld [vmem:[%s3185_s1 + $0x150] sm:$0xff]   ;;  %v2591_v58 = vld [vmem:[%s2862_s6 + $0xd8] ss:$36 sps:$4 sm:$0xff]  }
  0x18   : > { %v2575_v46 = vld [vmem:[%s3185_s1 + $0x108] sm:$0xff]   ;;  %v2584_v53 = vld [vmem:[%s3185_s1 + $0x1d0] sm:$0xff]   ;;  %v2592_v59 = vld [vmem:[%s2862_s6 + $0xe0] ss:$36 sps:$4 sm:$0xff]  }
  0x19   : > { %2189 = vmatpush3.bf16.msra.mxu0 %v2543_v18  ;;  %v2576_v47 = vld [vmem:[%s3185_s1 + $0x188] sm:$0xff]   ;;  %v2585_v54 = vld [vmem:[%s3185_s1 + $0x110] sm:$0xff]   ;;  %v2593_v60 = vld [vmem:[%s3185_s1 + $0x158] sm:$0xff]  }
  0x1a   : > { %2253 = vmatpush3.bf16.msra.mxu1 %v2544_v19  ;;  %2190 = vmatprep.subr.bf16.mxu0 %v2545_v20  ;;  %v2586_v55 = vld [vmem:[%s3185_s1 + $0x190] sm:$0xff]   ;;  %v2594_v61 = vld [vmem:[%s3185_s1 + $0x1d8] sm:$0xff]   ;;  %v2597_v0 = vld [vmem:[%s2862_s6 + $0x124] ss:$36 sps:$4 sm:$0xff]  }
  0x1b   : > { %2254 = vmatprep.subr.bf16.mxu1 %v2546_v21  ;;  %v2595_v62 = vld [vmem:[%s3185_s1 + $0x118] sm:$0xff]   ;;  %v2599_v1 = vld [vmem:[%s2862_s6 + $0x12c] ss:$36 sps:$4 sm:$0xff]   ;;  %v2601_v2 = vld [vmem:[%s2862_s6 + $0x120] ss:$36 sps:$4 sm:$0xff]  }
  0x1c   : > { %v2596_v63 = vld [vmem:[%s3185_s1 + $0x198] sm:$0xff]   ;;  %v2603_v3 = vld [vmem:[%s3185_s1 + $0x160] sm:$0xff]   ;;  %v2602_v4 = vld [vmem:[%s2862_s6 + $0x128] ss:$36 sps:$4 sm:$0xff]  }
  0x1d   : > { %2191 = vmatpush3.bf16.msra.mxu0 %v2547_v22  ;;  %v2604_v5 = vld [vmem:[%s3185_s1 + $0x1e0] sm:$0xff]   ;;  %v2607_v8 = vld [vmem:[%s2862_s6 + $0x16c] ss:$36 sps:$4 sm:$0xff]   ;;  %v2609_v9 = vld [vmem:[%s2862_s6 + $0x174] ss:$36 sps:$4 sm:$0xff]  }
  0x1e   : > { %2255 = vmatpush3.bf16.msra.mxu1 %v2548_v23  ;;  %2192 = vmatprep.subr.bf16.mxu0 %v2549_v24  ;;  %v2605_v6 = vld [vmem:[%s3185_s1 + $0x120] sm:$0xff]   ;;  %v2613_v10 = vld [vmem:[%s3185_s1 + $0x168] sm:$0xff]   ;;  %v2612_v15 = vld [vmem:[%s2862_s6 + $0x170] ss:$36 sps:$4 sm:$0xff]  }
  0x1f   : > { %2256 = vmatprep.subr.bf16.mxu1 %v2550_v25  ;;  %v2606_v7 = vld [vmem:[%s3185_s1 + $0x1a0] sm:$0xff]   ;;  %v2614_v11 = vld [vmem:[%s3185_s1 + $0x1e8] sm:$0xff]   ;;  %v2617_v16 = vld [vmem:[%s2862_s6 + $0x1b4] ss:$36 sps:$4 sm:$0xff]  }
  0x20   : > { %v2611_v12 = vld [vmem:[%s2862_s6 + $0x168] ss:$36 sps:$4 sm:$0xff]   ;;  %v2619_v17 = vld [vmem:[%s2862_s6 + $0x1bc] ss:$36 sps:$4 sm:$0xff]   ;;  %v2623_v18 = vld [vmem:[%s3185_s1 + $0x170] sm:$0xff]  }
  0x21   : > { %2193 = vmatpush3.bf16.msra.mxu0 %v2551_v26  ;;  %v2615_v13 = vld [vmem:[%s3185_s1 + $0x128] sm:$0xff]   ;;  %v2624_v19 = vld [vmem:[%s3185_s1 + $0x1f0] sm:$0xff]   ;;  %v2622_v23 = vld [vmem:[%s2862_s6 + $0x1b8] ss:$36 sps:$4 sm:$0xff]  }
  0x22   : > { %2257 = vmatpush3.bf16.msra.mxu1 %v2552_v27  ;;  %2194 = vmatprep.subr.bf16.mxu0 %v2553_v28  ;;  %v2616_v14 = vld [vmem:[%s3185_s1 + $0x1a8] sm:$0xff]   ;;  %v2625_v20 = vld [vmem:[%s3185_s1 + $0x130] sm:$0xff]   ;;  %v2627_v24 = vld [vmem:[%s2862_s6 + $0x1fc] ss:$36 sps:$4 sm:$0xff]  }
  0x23   : > { %2258 = vmatprep.subr.bf16.mxu1 %v2554_v29  ;;  %v2626_v21 = vld [vmem:[%s3185_s1 + $0x1b0] sm:$0xff]   ;;  %v2629_v25 = vld [vmem:[%s2862_s6 + $0x204] ss:$36 sps:$4 sm:$0xff]   ;;  %v2633_v26 = vld [vmem:[%s3185_s1 + $0x178] sm:$0xff]  }
  0x24   : > { %v2621_v22 = vld [vmem:[%s2862_s6 + $0x1b0] ss:$36 sps:$4 sm:$0xff]   ;;  %v2634_v27 = vld [vmem:[%s3185_s1 + $0x1f8] sm:$0xff]  }
  0x25   : > { %2195 = vmatpush3.bf16.msra.mxu0 %v2555_v30  ;;  %v2635_v28 = vld [vmem:[%s3185_s1 + $0x138] sm:$0xff]   ;;  %v2637_v35 = vld [vmem:[%s2862_s6 + $0x10] ss:$36 sps:$4 sm:$0xff]  }
  0x26   : > { %2259 = vmatpush3.bf16.msra.mxu1 %v2556_v31  ;;  %2308 = vmatprep.subr.bf16.mxu0 %v2563_v36  ;;  %v2636_v29 = vld [vmem:[%s3185_s1 + $0x1b8] sm:$0xff]   ;;  %v2632_v31 = vld [vmem:[%s2862_s6 + $0x200] ss:$36 sps:$4 sm:$0xff]  }
  0x27   : > { %2372 = vmatprep.subr.bf16.mxu1 %v2564_v37  ;;  %v2631_v30 = vld [vmem:[%s2862_s6 + $0x1f8] ss:$36 sps:$4 sm:$0xff]  }
  0x28   : > { %1293 = vmatmul.mubr.bf16.vlgmr.msra.gmra.mrb[0].mxu0 %v2557_v32  ;;  %v2643_v32 = vld [vmem:[%s3185_s1 + $0x200] sm:$0xff]   ;;  %v2639_v33 = vld [vmem:[%s2862_s6 + $0x14] ss:$36 sps:$4 sm:$0xff]  }
  0x29   : > { %1390 = vmatmul.mubr.bf16.vlgmr.msra.gmra.mrb[0].mxu1 %v2560_v34  ;;  %2309 = vmatpush3.bf16.msra.mxu0 %v2565_v38  ;;  %v2642_v34 = vld [vmem:[%s2862_s6 + $0x1c] ss:$36 sps:$4 sm:$0xff]   ;;  %v2646_v38 = vld [vmem:[%s2862_s6 + $0x64] ss:$36 sps:$4 sm:$0xff]  }
  0x2a   : > { %2373 = vmatpush3.bf16.msra.mxu1 %v2566_v39  ;;  %1300 = vmatprep.mubr.bf16.mxu0 %v2567_v40  ;;  %v2640_v36 = vld [vmem:[%s2862_s6 + $0x18] ss:$36 sps:$4 sm:$0xff]   ;;  %v2650_v39 = vld [vmem:[%s3185_s1 + $0x208] sm:$0xff]   ;;  %v2657_v40 = vld [vmem:[%s3185_s1 + $0x210] sm:$0xff]  }
  0x2b   : > { %1397 = vmatprep.mubr.bf16.mxu1 %v2569_v41  ;;  %2310 = vmatprep.subr.bf16.mxu0 %v2573_v44  ;;  %v2644_v37 = vld [vmem:[%s2862_s6 + $0x5c] ss:$36 sps:$4 sm:$0xff]   ;;  %v2653_v44 = vld [vmem:[%s2862_s6 + $0xac] ss:$36 sps:$4 sm:$0xff]  }
  0x2c   : > { %2374 = vmatprep.subr.bf16.mxu1 %v2574_v45  ;;  %v2648_v41 = vld [vmem:[%s2862_s6 + $0x58] ss:$36 sps:$4 sm:$0xff]  }
  0x2d   : > { %2311 = vmatpush3.bf16.msra.mxu0 %v2575_v46  ;;  %v2664_v45 = vld [vmem:[%s3185_s1 + $0x218] sm:$0xff]   ;;  %v2671_v46 = vld [vmem:[%s3185_s1 + $0x220] sm:$0xff]  }
  0x2e   : > { %2375 = vmatpush3.bf16.msra.mxu1 %v2576_v47  ;;  %2312 = vmatprep.subr.bf16.mxu0 %v2583_v52  ;;  %v2655_v47 = vld [vmem:[%s2862_s6 + $0xa0] ss:$36 sps:$4 sm:$0xff]   ;;  %v2662_v52 = vld [vmem:[%s2862_s6 + $0xe8] ss:$36 sps:$4 sm:$0xff]  }
  0x2f   : > { %2376 = vmatprep.subr.bf16.mxu1 %v2584_v53  ;;  %v2685_v53 = vld [vmem:[%s3185_s1 + $0x230] sm:$0xff]  }
  0x30   : > { %1301 = vmatmul.mubr.bf16.gmra.mrb[4].mxu0 %v2571_v42  ;;  %v2649_v42 = vld [vmem:[%s2862_s6 + $0x60] ss:$36 sps:$4 sm:$0xff]  }
  0x31   : > { %1398 = vmatmul.mubr.bf16.gmra.mrb[4].mxu1 %v2572_v43  ;;  %1308 = vmatprep.mubr.bf16.mxu0 %v2577_v48  ;;  %v2651_v43 = vld [vmem:[%s2862_s6 + $0xa4] ss:$36 sps:$4 sm:$0xff]  }
  0x32   : > { %1405 = vmatprep.mubr.bf16.mxu1 %v2579_v49  ;;  %2313 = vmatpush3.bf16.msra.mxu0 %v2585_v54  ;;  %v2656_v48 = vld [vmem:[%s2862_s6 + $0xa8] ss:$36 sps:$4 sm:$0xff]   ;;  %v2663_v54 = vld [vmem:[%s2862_s6 + $0xf0] ss:$36 sps:$4 sm:$0xff]  }
  0x33   : > { %2377 = vmatpush3.bf16.msra.mxu1 %v2586_v55  ;;  %2314 = vmatprep.subr.bf16.mxu0 %v2593_v60  ;;  %v2658_v49 = vld [vmem:[%s2862_s6 + $0xec] ss:$36 sps:$4 sm:$0xff]   ;;  %v2665_v55 = vld [vmem:[%s2862_s6 + $0x134] ss:$36 sps:$4 sm:$0xff]   ;;  %v2672_v60 = vld [vmem:[%s2862_s6 + $0x17c] ss:$36 sps:$4 sm:$0xff]  }
  0x34   : > { %2378 = vmatprep.subr.bf16.mxu1 %v2594_v61  ;;  %v2674_v61 = vld [vmem:[%s2862_s6 + $0x184] ss:$36 sps:$4 sm:$0xff]  }
  0x36   : > { %2315 = vmatpush3.bf16.msra.mxu0 %v2595_v62  ;;  %v2676_v62 = vld [vmem:[%s2862_s6 + $0x178] ss:$36 sps:$4 sm:$0xff]  }
  0x37   : > { %2379 = vmatpush3.bf16.msra.mxu1 %v2596_v63  ;;  %2316 = vmatprep.subr.bf16.mxu0 %v2603_v3  ;;  %v2677_v63 = vld [vmem:[%s2862_s6 + $0x180] ss:$36 sps:$4 sm:$0xff]   ;;  %v2684_v3 = vld [vmem:[%s2862_s6 + $0x1c8] ss:$36 sps:$4 sm:$0xff]  }
  0x38   : > { %1309 = vmatmul.mubr.bf16.gmra.mrb[8].mxu0 %v2581_v50  ;;  %2380 = vmatprep.subr.bf16.mxu1 %v2604_v5  ;;  %v2660_v50 = vld [vmem:[%s2862_s6 + $0xf4] ss:$36 sps:$4 sm:$0xff]  }
  0x39   : > { %1406 = vmatmul.mubr.bf16.gmra.mrb[8].mxu1 %v2582_v51  ;;  %1316 = vmatprep.mubr.bf16.mxu0 %v2587_v56  ;;  %v2678_v51 = vld [vmem:[%s3185_s1 + $0x228] sm:$0xff]   ;;  %v2667_v56 = vld [vmem:[%s2862_s6 + $0x13c] ss:$36 sps:$4 sm:$0xff]   ;;  %v2688_v5 = vld [vmem:[%s2862_s6 + $0x214] ss:$36 sps:$4 sm:$0xff]  }
  0x3a   : > { %1413 = vmatprep.mubr.bf16.mxu1 %v2589_v57  ;;  %2317 = vmatpush3.bf16.msra.mxu0 %v2605_v6  ;;  %v2692_v57 = vld [vmem:[%s3185_s1 + $0x238] sm:$0xff]   ;;  %v2690_v6 = vld [vmem:[%s2862_s6 + $0x208] ss:$36 sps:$4 sm:$0xff]  }
  0x3b   : > { %2381 = vmatpush3.bf16.msra.mxu1 %v2606_v7  ;;  %2318 = vmatprep.subr.bf16.mxu0 %v2613_v10  ;;  %v2691_v7 = vld [vmem:[%s2862_s6 + $0x210] ss:$36 sps:$4 sm:$0xff]   ;;  %v2695_v10 = vld [vmem:[%s2862_s6 + $0x68] ss:$36 sps:$4 sm:$0xff]  }
  0x3c   : > { %2382 = vmatprep.subr.bf16.mxu1 %v2614_v11  ;;  %v2696_v11 = vld [vmem:[%s2862_s6 + $0x188] ss:$36 sps:$4 sm:$0xff]  }
  0x3e   : > { %2319 = vmatpush3.bf16.msra.mxu0 %v2615_v13  ;;  %v2698_v13 = vld [vmem:[%s2862_s6 + $0x1d0] ss:$36 sps:$4 sm:$0xff]  }
  0x3f   : > { %2383 = vmatpush3.bf16.msra.mxu1 %v2616_v14  ;;  %2320 = vmatprep.subr.bf16.mxu0 %v2623_v18  ;;  %v2699_v14 = vld [vmem:[%s2862_s6 + $0xf8] ss:$36 sps:$4 sm:$0xff]   ;;  %v3065_v18 = vld [vmem:[%s3186_s2] ss:$0 sm:$0xff] }
  0x40   : > { %1317 = vmatmul.mubr.bf16.gmra.mrb[12].mxu0 %v2591_v58  ;;  %2384 = vmatprep.subr.bf16.mxu1 %v2624_v19  ;;  %v2669_v58 = vld [vmem:[%s2862_s6 + $0x130] ss:$36 sps:$4 sm:$0xff]  }
  0x41   : > { %1414 = vmatmul.mubr.bf16.gmra.mrb[12].mxu1 %v2592_v59  ;;  %1324 = vmatprep.mubr.bf16.mxu0 %v2597_v0  ;;  %v2670_v59 = vld [vmem:[%s2862_s6 + $0x138] ss:$36 sps:$4 sm:$0xff]   ;;  %v2679_v0 = vld [vmem:[%s2862_s6 + $0x1c4] ss:$36 sps:$4 sm:$0xff]  }
  0x42   : > { %1421 = vmatprep.mubr.bf16.mxu1 %v2599_v1  ;;  %2321 = vmatpush3.bf16.msra.mxu0 %v2625_v20  ;;  %v2681_v1 = vld [vmem:[%s2862_s6 + $0x1cc] ss:$36 sps:$4 sm:$0xff]  }
  0x43   : > { %2385 = vmatpush3.bf16.msra.mxu1 %v2626_v21  ;;  %2322 = vmatprep.subr.bf16.mxu0 %v2633_v26 }
  0x44   : > { %2386 = vmatprep.subr.bf16.mxu1 %v2634_v27 }
  0x46   : > { %2323 = vmatpush3.bf16.msra.mxu0 %v2635_v28 }
  0x47   : > { %2387 = vmatpush3.bf16.msra.mxu1 %v2636_v29  ;;  %2452 = vmatprep.subr.bf16.mxu0 %v2643_v32 }
  0x48   : > { %1325 = vmatmul.mubr.bf16.gmra.mrb[16].mxu0 %v2601_v2  ;;  %2484 = vmatprep.subr.bf16.mxu1 %v2643_v32  ;;  %v2683_v2 = vld [vmem:[%s2862_s6 + $0x1c0] ss:$36 sps:$4 sm:$0xff]  }
  0x49   : > { %1422 = vmatmul.mubr.bf16.gmra.mrb[16].mxu1 %v2602_v4  ;;  %1332 = vmatprep.mubr.bf16.mxu0 %v2607_v8  ;;  %v2686_v4 = vld [vmem:[%s2862_s6 + $0x20c] ss:$36 sps:$4 sm:$0xff]   ;;  %v2693_v8 = vld [vmem:[%s2862_s6 + $0x20] ss:$36 sps:$4 sm:$0xff]  }
  0x4a   : > { %1429 = vmatprep.mubr.bf16.mxu1 %v2609_v9  ;;  %v2694_v9 = vld [vmem:[%s2862_s6 + $0x140] ss:$36 sps:$4 sm:$0xff]  }
  0x50   : > { %1333 = vmatmul.mubr.bf16.gmra.mrb[20].mxu0 %v2611_v12  ;;  %v2697_v12 = vld [vmem:[%s2862_s6 + $0xb0] ss:$36 sps:$4 sm:$0xff]  }
  0x51   : > { %1430 = vmatmul.mubr.bf16.gmra.mrb[20].mxu1 %v2612_v15  ;;  %1340 = vmatprep.mubr.bf16.mxu0 %v2617_v16  ;;  %v2700_v15 = vld [vmem:[%s2862_s6 + $0x218] ss:$36 sps:$4 sm:$0xff]   ;;  %s1953_s6 = sshll.u32 %s3193_s23, 2 }
  0x52   : > { %1437 = vmatprep.mubr.bf16.mxu1 %v2619_v17  ;;  %s3160_s7 = scalar_lea.vmem %s3187_s3, %s1953_s6 }
  0x58   : > { %1341 = vmatmul.mubr.bf16.gmra.mrb[24].mxu0 %v2621_v22 }
  0x59   : > { %1438 = vmatmul.mubr.bf16.gmra.mrb[24].mxu1 %v2622_v23  ;;  %1348 = vmatprep.mubr.bf16.mxu0 %v2627_v24 }
  0x5a   : > { %1445 = vmatprep.mubr.bf16.mxu1 %v2629_v25 }
  0x60   : > { %1349 = vmatmul.mubr.bf16.gmra.mrb[28].mxu0 %v2631_v30 }
  0x61   : > { %1446 = vmatmul.mubr.bf16.gmra.mrb[28].mxu1 %v2632_v31  ;;  %1486 = vmatprep.mubr.bf16.mxu0 %v2639_v33 }
  0x62   : > { %1583 = vmatprep.mubr.bf16.mxu1 %v2642_v34 }
  0x68   : > { %1487 = vmatmul.mubr.bf16.vlgmr.msra.gmra.mrb[32].mxu0 %v2637_v35 }
  0x69   : > { %1584 = vmatmul.mubr.bf16.vlgmr.msra.gmra.mrb[32].mxu1 %v2640_v36  ;;  %2453 = vmatpush3.bf16.msra.mxu0 %v2643_v32 }
  0x6a   : > { %2492 = vmatpush3.bf16.msra.mxu1 %v2643_v32  ;;  %1494 = vmatprep.mubr.bf16.mxu0 %v2644_v37 }
  0x6b   : > { %1591 = vmatprep.mubr.bf16.mxu1 %v2646_v38  ;;  %2454 = vmatprep.subr.bf16.mxu0 %v2650_v39 }
  0x6c   : > { %2485 = vmatprep.subr.bf16.mxu1 %v2650_v39 }
  0x6d   : > { %2455 = vmatpush3.bf16.msra.mxu0 %v2650_v39 }
  0x6e   : > { %2493 = vmatpush3.bf16.msra.mxu1 %v2650_v39  ;;  %2456 = vmatprep.subr.bf16.mxu0 %v2657_v40 }
  0x6f   : > { %2486 = vmatprep.subr.bf16.mxu1 %v2657_v40 }
  0x70   : > { %1495 = vmatmul.mubr.bf16.gmra.mrb[36].mxu0 %v2648_v41 }
  0x71   : > { %1592 = vmatmul.mubr.bf16.gmra.mrb[36].mxu1 %v2649_v42  ;;  %1502 = vmatprep.mubr.bf16.mxu0 %v2651_v43 }
  0x72   : > { %1599 = vmatprep.mubr.bf16.mxu1 %v2653_v44  ;;  %2457 = vmatpush3.bf16.msra.mxu0 %v2657_v40 }
  0x73   : > { %2494 = vmatpush3.bf16.msra.mxu1 %v2657_v40  ;;  %2458 = vmatprep.subr.bf16.mxu0 %v2664_v45 }
  0x74   : > { %2487 = vmatprep.subr.bf16.mxu1 %v2664_v45 }
  0x76   : > { %2459 = vmatpush3.bf16.msra.mxu0 %v2664_v45 }
  0x77   : > { %2495 = vmatpush3.bf16.msra.mxu1 %v2664_v45  ;;  %2460 = vmatprep.subr.bf16.mxu0 %v2671_v46 }
  0x78   : > { %1503 = vmatmul.mubr.bf16.gmra.mrb[40].mxu0 %v2655_v47  ;;  %2488 = vmatprep.subr.bf16.mxu1 %v2671_v46 }
  0x79   : > { %1600 = vmatmul.mubr.bf16.gmra.mrb[40].mxu1 %v2656_v48  ;;  %1510 = vmatprep.mubr.bf16.mxu0 %v2658_v49 }
  0x7a   : > { %1607 = vmatprep.mubr.bf16.mxu1 %v2660_v50  ;;  %2461 = vmatpush3.bf16.msra.mxu0 %v2671_v46 }
  0x7b   : > { %2496 = vmatpush3.bf16.msra.mxu1 %v2671_v46  ;;  %2462 = vmatprep.subr.bf16.mxu0 %v2678_v51 }
  0x7c   : > { %2489 = vmatprep.subr.bf16.mxu1 %v2678_v51 }
  0x7e   : > { %2463 = vmatpush3.bf16.msra.mxu0 %v2678_v51 }
  0x7f   : > { %2497 = vmatpush3.bf16.msra.mxu1 %v2678_v51  ;;  %2464 = vmatprep.subr.bf16.mxu0 %v2685_v53 }
  0x80   : > { %1511 = vmatmul.mubr.bf16.gmra.mrb[44].mxu0 %v2662_v52  ;;  %2490 = vmatprep.subr.bf16.mxu1 %v2685_v53 }
  0x81   : > { %1608 = vmatmul.mubr.bf16.gmra.mrb[44].mxu1 %v2663_v54  ;;  %1518 = vmatprep.mubr.bf16.mxu0 %v2665_v55 }
  0x82   : > { %1615 = vmatprep.mubr.bf16.mxu1 %v2667_v56  ;;  %2465 = vmatpush3.bf16.msra.mxu0 %v2685_v53 }
  0x83   : > { %2498 = vmatpush3.bf16.msra.mxu1 %v2685_v53  ;;  %2466 = vmatprep.subr.bf16.mxu0 %v2692_v57 }
  0x84   : > { %2491 = vmatprep.subr.bf16.mxu1 %v2692_v57 }
  0x86   : > { %2467 = vmatpush3.bf16.msra.mxu0 %v2692_v57 }
  0x87   : > { %2499 = vmatpush3.bf16.msra.mxu1 %v2692_v57 }
  0x88   : > { %1519 = vmatmul.mubr.bf16.gmra.mrb[48].mxu0 %v2669_v58 }
  0x89   : > { %1616 = vmatmul.mubr.bf16.gmra.mrb[48].mxu1 %v2670_v59  ;;  %1526 = vmatprep.mubr.bf16.mxu0 %v2672_v60 }
  0x8a   : > { %1623 = vmatprep.mubr.bf16.mxu1 %v2674_v61 }
  0x90   : > { %1527 = vmatmul.mubr.bf16.gmra.mrb[52].mxu0 %v2676_v62 }
  0x91   : > { %1624 = vmatmul.mubr.bf16.gmra.mrb[52].mxu1 %v2677_v63  ;;  %1534 = vmatprep.mubr.bf16.mxu0 %v2679_v0 }
  0x92   : > { %1631 = vmatprep.mubr.bf16.mxu1 %v2681_v1 }
  0x98   : > { %1535 = vmatmul.mubr.bf16.gmra.mrb[56].mxu0 %v2683_v2 }
  0x99   : > { %1632 = vmatmul.mubr.bf16.gmra.mrb[56].mxu1 %v2684_v3  ;;  %1542 = vmatprep.mubr.bf16.mxu0 %v2686_v4 }
  0x9a   : > { %1639 = vmatprep.mubr.bf16.mxu1 %v2688_v5 }
  0xa0   : > { %1543 = vmatmul.mubr.bf16.gmra.mrb[60].mxu0 %v2690_v6 }
  0xa1   : > { %1640 = vmatmul.mubr.bf16.gmra.mrb[60].mxu1 %v2691_v7  ;;  %2468 = vmatprep.mubr.bf16.mxu0 %v2693_v8 }
  0xa2   : > { %2476 = vmatprep.mubr.bf16.mxu1 %v2694_v9 }
  0xa8   : > { %2469 = vmatmul.mubr.bf16.vlgmr.msra.gmra.mrb[64].mxu0 %v2695_v10 }
  0xa9   : > { %2477 = vmatmul.mubr.bf16.vlgmr.msra.gmra.mrb[64].mxu1 %v2696_v11  ;;  %2472 = vmatprep.mubr.bf16.mxu0 %v2697_v12 }
  0xaa   : > { %2480 = vmatprep.mubr.bf16.mxu1 %v2698_v13 }
  0xb0   : > { %2473 = vmatmul.mubr.bf16.gmra.mrb[68].mxu0 %v2699_v14 }
  0xb1   : > { %2481 = vmatmul.mubr.bf16.gmra.mrb[68].mxu1 %v2700_v15 }
  0xfb   : > { %v2196_v16 = vpop.f32.mrb[0].mxu0 }
  0xfc   : > { %v2260_v17 = vpop.f32.mrb[0].mxu1  ;;  %v2197_v19 = vpop.f32.mrb[1].mxu0 }
  0xfd   : > { %v2198_v20 = vadd.f32 %v2197_v19, %v2196_v16  ;;  %v2261_v21 = vpop.f32.mrb[1].mxu1  ;;  %v2199_v22 = vpop.f32.mrb[2].mxu0 }
  0xfe   : > { %v2262_v23 = vadd.f32 %v2261_v21, %v2260_v17  ;;  %v2263_v24 = vpop.f32.mrb[2].mxu1  ;;  %v2200_v25 = vpop.f32.mrb[3].mxu0 }
  0xff   : > { %v1295_v26 = vadd.f32 %v2198_v20, %v3065_v18  ;;  %v2201_v27 = vadd.f32 %v2200_v25, %v2199_v22  ;;  %v2264_v28 = vpop.f32.mrb[3].mxu1 }
 0x100   : > { %v2265_v29 = vadd.f32 %v2264_v28, %v2263_v24 }
 0x101   : > { %v3068_v30 = vadd.f32 %v2262_v23, %v1295_v26  ;;  %v1298_v31 = vadd.f32 %v2201_v27, %v3065_v18 }
 0x103   : > { %v3071_v32 = vadd.f32 %v2265_v29, %v1298_v31  ;;  %v2202_v33 = vpop.f32.mrb[4].mxu0 }
 0x104   : > { %v2266_v34 = vpop.f32.mrb[4].mxu1  ;;  %v2203_v35 = vpop.f32.mrb[5].mxu0 }
 0x105   : > { %v2204_v36 = vadd.f32 %v2203_v35, %v2202_v33  ;;  %v2267_v37 = vpop.f32.mrb[5].mxu1  ;;  %v2205_v38 = vpop.f32.mrb[6].mxu0 }
 0x106   : > { %v2268_v39 = vadd.f32 %v2267_v37, %v2266_v34  ;;  %v2269_v40 = vpop.f32.mrb[6].mxu1  ;;  %v2206_v41 = vpop.f32.mrb[7].mxu0 }
 0x107   : > { %v1303_v42 = vadd.f32 %v2204_v36, %v3065_v18  ;;  %v2207_v43 = vadd.f32 %v2206_v41, %v2205_v38  ;;  %v2270_v44 = vpop.f32.mrb[7].mxu1 }
 0x108   : > { %v2271_v45 = vadd.f32 %v2270_v44, %v2269_v40 }
 0x109   : > { %v3074_v46 = vadd.f32 %v2268_v39, %v1303_v42  ;;  %v1306_v47 = vadd.f32 %v2207_v43, %v3065_v18 }
 0x10b   : > { %v3077_v48 = vadd.f32 %v2271_v45, %v1306_v47  ;;  %v2208_v49 = vpop.f32.mrb[8].mxu0 }
 0x10c   : > { %v2272_v50 = vpop.f32.mrb[8].mxu1  ;;  %v2209_v51 = vpop.f32.mrb[9].mxu0 }
 0x10d   : > { %v2210_v52 = vadd.f32 %v2209_v51, %v2208_v49  ;;  %v2273_v53 = vpop.f32.mrb[9].mxu1  ;;  %v2211_v54 = vpop.f32.mrb[10].mxu0 }
 0x10e   : > { %v2274_v55 = vadd.f32 %v2273_v53, %v2272_v50  ;;  %v2275_v56 = vpop.f32.mrb[10].mxu1  ;;  %v2212_v57 = vpop.f32.mrb[11].mxu0 }
 0x10f   : > { %v1311_v58 = vadd.f32 %v2210_v52, %v3065_v18  ;;  %v2213_v59 = vadd.f32 %v2212_v57, %v2211_v54  ;;  %v2276_v60 = vpop.f32.mrb[11].mxu1 }
 0x110   : > { %v2277_v61 = vadd.f32 %v2276_v60, %v2275_v56 }
 0x111   : > { %v3080_v62 = vadd.f32 %v2274_v55, %v1311_v58  ;;  %v1314_v63 = vadd.f32 %v2213_v59, %v3065_v18 }
 0x113   : > { %v3083_v0 = vadd.f32 %v2277_v61, %v1314_v63  ;;  %v2214_v1 = vpop.f32.mrb[12].mxu0 }
 0x114   : > { %v2278_v2 = vpop.f32.mrb[12].mxu1  ;;  %v2215_v3 = vpop.f32.mrb[13].mxu0 }
 0x115   : > { %v2216_v4 = vadd.f32 %v2215_v3, %v2214_v1  ;;  %v2279_v5 = vpop.f32.mrb[13].mxu1  ;;  %v2217_v6 = vpop.f32.mrb[14].mxu0 }
 0x116   : > { %v2280_v7 = vadd.f32 %v2279_v5, %v2278_v2  ;;  %v2281_v8 = vpop.f32.mrb[14].mxu1  ;;  %v2218_v9 = vpop.f32.mrb[15].mxu0 }
 0x117   : > { %v1319_v10 = vadd.f32 %v2216_v4, %v3065_v18  ;;  %v2219_v11 = vadd.f32 %v2218_v9, %v2217_v6  ;;  %v2282_v12 = vpop.f32.mrb[15].mxu1 }
 0x118   : > { %v2283_v13 = vadd.f32 %v2282_v12, %v2281_v8 }
 0x119   : > { %v3086_v14 = vadd.f32 %v2280_v7, %v1319_v10  ;;  %v1322_v15 = vadd.f32 %v2219_v11, %v3065_v18 }
 0x11b   : > { %v3089_v16 = vadd.f32 %v2283_v13, %v1322_v15  ;;  %v2220_v17 = vpop.f32.mrb[16].mxu0 }
 0x11c   : > { %v2284_v19 = vpop.f32.mrb[16].mxu1  ;;  %v2221_v20 = vpop.f32.mrb[17].mxu0 }
 0x11d   : > { %v2222_v21 = vadd.f32 %v2221_v20, %v2220_v17  ;;  %v2285_v22 = vpop.f32.mrb[17].mxu1  ;;  %v2223_v23 = vpop.f32.mrb[18].mxu0 }
 0x11e   : > { %v2286_v24 = vadd.f32 %v2285_v22, %v2284_v19  ;;  %v2287_v25 = vpop.f32.mrb[18].mxu1  ;;  %v2224_v26 = vpop.f32.mrb[19].mxu0 }
 0x11f   : > { %v1327_v27 = vadd.f32 %v2222_v21, %v3065_v18  ;;  %v2225_v28 = vadd.f32 %v2224_v26, %v2223_v23  ;;  %v2288_v29 = vpop.f32.mrb[19].mxu1 }
 0x120   : > { %v2289_v31 = vadd.f32 %v2288_v29, %v2287_v25 }
 0x121   : > { %v3092_v33 = vadd.f32 %v2286_v24, %v1327_v27  ;;  %v1330_v34 = vadd.f32 %v2225_v28, %v3065_v18 }
 0x123   : > { %v3095_v35 = vadd.f32 %v2289_v31, %v1330_v34  ;;  %v2226_v36 = vpop.f32.mrb[20].mxu0 }
 0x124   : > { %v2290_v37 = vpop.f32.mrb[20].mxu1  ;;  %v2227_v38 = vpop.f32.mrb[21].mxu0 }
 0x125   : > { %v2228_v39 = vadd.f32 %v2227_v38, %v2226_v36  ;;  %v2291_v40 = vpop.f32.mrb[21].mxu1  ;;  %v2229_v41 = vpop.f32.mrb[22].mxu0 }
 0x126   : > { %v2292_v42 = vadd.f32 %v2291_v40, %v2290_v37  ;;  %v2293_v43 = vpop.f32.mrb[22].mxu1  ;;  %v2230_v44 = vpop.f32.mrb[23].mxu0 }
 0x127   : > { %v1335_v45 = vadd.f32 %v2228_v39, %v3065_v18  ;;  %v2231_v47 = vadd.f32 %v2230_v44, %v2229_v41  ;;  %v2294_v49 = vpop.f32.mrb[23].mxu1 }
 0x128   : > { %v2295_v50 = vadd.f32 %v2294_v49, %v2293_v43 }
 0x129   : > { %v3098_v51 = vadd.f32 %v2292_v42, %v1335_v45  ;;  %v1338_v52 = vadd.f32 %v2231_v47, %v3065_v18 }
 0x12b   : > { %v3101_v53 = vadd.f32 %v2295_v50, %v1338_v52  ;;  %v2232_v54 = vpop.f32.mrb[24].mxu0 }
 0x12c   : > { %v2296_v55 = vpop.f32.mrb[24].mxu1  ;;  %v2233_v56 = vpop.f32.mrb[25].mxu0 }
 0x12d   : > { %v2234_v57 = vadd.f32 %v2233_v56, %v2232_v54  ;;  %v2297_v58 = vpop.f32.mrb[25].mxu1  ;;  %v2235_v59 = vpop.f32.mrb[26].mxu0 }
 0x12e   : > { %v2298_v60 = vadd.f32 %v2297_v58, %v2296_v55  ;;  %v2299_v61 = vpop.f32.mrb[26].mxu1  ;;  %v2236_v63 = vpop.f32.mrb[27].mxu0 }
 0x12f   : > { %v1343_v1 = vadd.f32 %v2234_v57, %v3065_v18  ;;  %v2237_v2 = vadd.f32 %v2236_v63, %v2235_v59  ;;  %v2300_v3 = vpop.f32.mrb[27].mxu1 }
 0x130   : > { %v2301_v4 = vadd.f32 %v2300_v3, %v2299_v61 }
 0x131   : > { %v3104_v5 = vadd.f32 %v2298_v60, %v1343_v1  ;;  %v1346_v6 = vadd.f32 %v2237_v2, %v3065_v18 }
 0x133   : > { %v3107_v7 = vadd.f32 %v2301_v4, %v1346_v6  ;;  %v2238_v8 = vpop.f32.mrb[28].mxu0 }
 0x134   : > { %v2302_v9 = vpop.f32.mrb[28].mxu1  ;;  %v2239_v10 = vpop.f32.mrb[29].mxu0 }
 0x135   : > { %v2240_v11 = vadd.f32 %v2239_v10, %v2238_v8  ;;  %v2303_v12 = vpop.f32.mrb[29].mxu1  ;;  %v2241_v13 = vpop.f32.mrb[30].mxu0 }
 0x136   : > { %v2304_v15 = vadd.f32 %v2303_v12, %v2302_v9  ;;  %v2305_v17 = vpop.f32.mrb[30].mxu1  ;;  %v2242_v19 = vpop.f32.mrb[31].mxu0 }
 0x137   : > { %v1351_v20 = vadd.f32 %v2240_v11, %v3065_v18  ;;  %v2243_v21 = vadd.f32 %v2242_v19, %v2241_v13  ;;  %v2306_v22 = vpop.f32.mrb[31].mxu1 }
 0x138   : > { %v2307_v23 = vadd.f32 %v2306_v22, %v2305_v17 }
 0x139   : > { %v3110_v24 = vadd.f32 %v2304_v15, %v1351_v20  ;;  %v1354_v25 = vadd.f32 %v2243_v21, %v3065_v18 }
 0x13b   : > { %v3113_v26 = vadd.f32 %v2307_v23, %v1354_v25  ;;  %v2324_v27 = vpop.f32.mrb[32].mxu0 }
 0x13c   : > { %v2388_v28 = vpop.f32.mrb[32].mxu1  ;;  %v2325_v29 = vpop.f32.mrb[33].mxu0 }
 0x13d   : > { %v2326_v31 = vadd.f32 %v2325_v29, %v2324_v27  ;;  %v2389_v34 = vpop.f32.mrb[33].mxu1  ;;  %v2327_v36 = vpop.f32.mrb[34].mxu0 }
 0x13e   : > { %v2390_v37 = vadd.f32 %v2389_v34, %v2388_v28  ;;  %v2391_v38 = vpop.f32.mrb[34].mxu1  ;;  %v2328_v39 = vpop.f32.mrb[35].mxu0 }
 0x13f   : > { %v1489_v40 = vadd.f32 %v2326_v31, %v3068_v30  ;;  %v2329_v41 = vadd.f32 %v2328_v39, %v2327_v36  ;;  %v2392_v42 = vpop.f32.mrb[35].mxu1 }
 0x140   : > { %v2393_v43 = vadd.f32 %v2392_v42, %v2391_v38 }
 0x141   : > { %v1492_v44 = vadd.f32 %v2329_v41, %v3071_v32  ;;  %v3117_v45 = vadd.f32 %v2390_v37, %v1489_v40 }
 0x143   : > { %v2330_v18 = vpop.f32.mrb[36].mxu0  ;;  %v3119_v47 = vadd.f32 %v2393_v43, %v1492_v44 }
 0x144   : > { %v2394_v49 = vpop.f32.mrb[36].mxu1  ;;  %v2331_v50 = vpop.f32.mrb[37].mxu0 }
 0x145   : > { %v2332_v52 = vadd.f32 %v2331_v50, %v2330_v18  ;;  %v2395_v54 = vpop.f32.mrb[37].mxu1  ;;  %v2333_v55 = vpop.f32.mrb[38].mxu0 }
 0x146   : > { %v2396_v56 = vadd.f32 %v2395_v54, %v2394_v49  ;;  %v2397_v57 = vpop.f32.mrb[38].mxu1  ;;  %v2334_v58 = vpop.f32.mrb[39].mxu0 }
 0x147   : > { %v1497_v30 = vadd.f32 %v2332_v52, %v3074_v46  ;;  %v2335_v59 = vadd.f32 %v2334_v58, %v2333_v55  ;;  %v2398_v60 = vpop.f32.mrb[39].mxu1 }
 0x148   : > { %v2399_v61 = vadd.f32 %v2398_v60, %v2397_v57 }
 0x149   : > { %v1500_v32 = vadd.f32 %v2335_v59, %v3077_v48  ;;  %v3123_v63 = vadd.f32 %v2396_v56, %v1497_v30 }
 0x14b   : > { %v2336_v1 = vpop.f32.mrb[40].mxu0  ;;  %v3125_v2 = vadd.f32 %v2399_v61, %v1500_v32 }
 0x14c   : > { %v2400_v3 = vpop.f32.mrb[40].mxu1  ;;  %v2337_v4 = vpop.f32.mrb[41].mxu0 }
 0x14d   : > { %v2338_v6 = vadd.f32 %v2337_v4, %v2336_v1  ;;  %v2401_v8 = vpop.f32.mrb[41].mxu1  ;;  %v2339_v9 = vpop.f32.mrb[42].mxu0 }
 0x14e   : > { %v2402_v10 = vadd.f32 %v2401_v8, %v2400_v3  ;;  %v2403_v11 = vpop.f32.mrb[42].mxu1  ;;  %v2340_v12 = vpop.f32.mrb[43].mxu0 }
 0x14f   : > { %v1505_v46 = vadd.f32 %v2338_v6, %v3080_v62  ;;  %v2341_v13 = vadd.f32 %v2340_v12, %v2339_v9  ;;  %v2404_v15 = vpop.f32.mrb[43].mxu1 }
 0x150   : > { %v2405_v17 = vadd.f32 %v2404_v15, %v2403_v11 }
 0x151   : > { %v1508_v48 = vadd.f32 %v2341_v13, %v3083_v0  ;;  %v3129_v19 = vadd.f32 %v2402_v10, %v1505_v46 }
 0x153   : > { %v2342_v20 = vpop.f32.mrb[44].mxu0  ;;  %v3131_v21 = vadd.f32 %v2405_v17, %v1508_v48 }
 0x154   : > { %v2406_v22 = vpop.f32.mrb[44].mxu1  ;;  %v2343_v23 = vpop.f32.mrb[45].mxu0 }
 0x155   : > { %v2344_v25 = vadd.f32 %v2343_v23, %v2342_v20  ;;  %v2407_v27 = vpop.f32.mrb[45].mxu1  ;;  %v2345_v28 = vpop.f32.mrb[46].mxu0 }
 0x156   : > { %v2408_v29 = vadd.f32 %v2407_v27, %v2406_v22  ;;  %v2409_v31 = vpop.f32.mrb[46].mxu1  ;;  %v2346_v34 = vpop.f32.mrb[47].mxu0 }
 0x157   : > { %v1513_v62 = vadd.f32 %v2344_v25, %v3086_v14  ;;  %v2347_v36 = vadd.f32 %v2346_v34, %v2345_v28  ;;  %v2410_v37 = vpop.f32.mrb[47].mxu1 }
 0x158   : > { %v2411_v38 = vadd.f32 %v2410_v37, %v2409_v31 }
 0x159   : > { %v1516_v0 = vadd.f32 %v2347_v36, %v3089_v16  ;;  %v3135_v39 = vadd.f32 %v2408_v29, %v1513_v62 }
 0x15b   : > { %v2348_v40 = vpop.f32.mrb[48].mxu0  ;;  %v3137_v41 = vadd.f32 %v2411_v38, %v1516_v0 }
 0x15c   : > { %v2412_v42 = vpop.f32.mrb[48].mxu1  ;;  %v2349_v43 = vpop.f32.mrb[49].mxu0 }
 0x15d   : > { %v2350_v44 = vadd.f32 %v2349_v43, %v2348_v40  ;;  %v2413_v18 = vpop.f32.mrb[49].mxu1  ;;  %v2351_v49 = vpop.f32.mrb[50].mxu0 }
 0x15e   : > { %v2414_v50 = vadd.f32 %v2413_v18, %v2412_v42  ;;  %v2415_v52 = vpop.f32.mrb[50].mxu1  ;;  %v2352_v54 = vpop.f32.mrb[51].mxu0 }
 0x15f   : > { %v1521_v14 = vadd.f32 %v2350_v44, %v3092_v33  ;;  %v2353_v55 = vadd.f32 %v2352_v54, %v2351_v49  ;;  %v2416_v56 = vpop.f32.mrb[51].mxu1 }
 0x160   : > { %v2417_v57 = vadd.f32 %v2416_v56, %v2415_v52 }
 0x161   : > { %v1524_v16 = vadd.f32 %v2353_v55, %v3095_v35  ;;  %v1618_v58 = vadd.f32 %v2414_v50, %v1521_v14 }
 0x163   : > { %v2354_v30 = vpop.f32.mrb[52].mxu0  ;;  %v3141_v59 = vadd.f32 %v2417_v57, %v1524_v16 }
 0x164   : > { %v2418_v60 = vpop.f32.mrb[52].mxu1  ;;  %v2355_v61 = vpop.f32.mrb[53].mxu0 }
 0x165   : > { %v2356_v32 = vadd.f32 %v2355_v61, %v2354_v30  ;;  %v2419_v1 = vpop.f32.mrb[53].mxu1  ;;  %v2357_v3 = vpop.f32.mrb[54].mxu0 }
 0x166   : > { %v2420_v4 = vadd.f32 %v2419_v1, %v2418_v60  ;;  %v2421_v6 = vpop.f32.mrb[54].mxu1  ;;  %v2358_v8 = vpop.f32.mrb[55].mxu0 }
 0x167   : > { %v1529_v9 = vadd.f32 %v2356_v32, %v3098_v51  ;;  %v2359_v33 = vadd.f32 %v2358_v8, %v2357_v3  ;;  %v2422_v10 = vpop.f32.mrb[55].mxu1 }
 0x168   : > { %v2423_v11 = vadd.f32 %v2422_v10, %v2421_v6 }
 0x169   : > { %v1532_v12 = vadd.f32 %v2359_v33, %v3101_v53  ;;  %v1626_v35 = vadd.f32 %v2420_v4, %v1529_v9 }
 0x16b   : > { %v2360_v46 = vpop.f32.mrb[56].mxu0  ;;  %v1629_v13 = vadd.f32 %v2423_v11, %v1532_v12 }
 0x16c   : > { %v2424_v15 = vpop.f32.mrb[56].mxu1  ;;  %v2361_v17 = vpop.f32.mrb[57].mxu0 }
 0x16d   : > { %v2362_v48 = vadd.f32 %v2361_v17, %v2360_v46  ;;  %v2425_v20 = vpop.f32.mrb[57].mxu1  ;;  %v2363_v22 = vpop.f32.mrb[58].mxu0 }
 0x16e   : > { %v2426_v23 = vadd.f32 %v2425_v20, %v2424_v15  ;;  %v2427_v25 = vpop.f32.mrb[58].mxu1  ;;  %v2364_v27 = vpop.f32.mrb[59].mxu0 }
 0x16f   : > { %v1537_v28 = vadd.f32 %v2362_v48, %v3104_v5  ;;  %v2365_v29 = vadd.f32 %v2364_v27, %v2363_v22  ;;  %v2428_v51 = vpop.f32.mrb[59].mxu1 }
 0x170   : > { %v2429_v31 = vadd.f32 %v2428_v51, %v2427_v25 }
 0x171   : > { %v1540_v34 = vadd.f32 %v2365_v29, %v3107_v7  ;;  %v1634_v62 = vadd.f32 %v2426_v23, %v1537_v28 }
 0x173   : > { %v2366_v53 = vpop.f32.mrb[60].mxu0  ;;  %v3147_v36 = vadd.f32 %v2429_v31, %v1540_v34 }
 0x174   : > { %v2430_v37 = vpop.f32.mrb[60].mxu1  ;;  %v2367_v38 = vpop.f32.mrb[61].mxu0 }
 0x175   : > { %v2368_v0 = vadd.f32 %v2367_v38, %v2366_v53  ;;  %v2431_v40 = vpop.f32.mrb[61].mxu1  ;;  %v2369_v42 = vpop.f32.mrb[62].mxu0 }
 0x176   : > { %v2432_v43 = vadd.f32 %v2431_v40, %v2430_v37  ;;  %v2433_v44 = vpop.f32.mrb[62].mxu1  ;;  %v2370_v18 = vpop.f32.mrb[63].mxu0 }
 0x177   : > { %v1545_v49 = vadd.f32 %v2368_v0, %v3110_v24  ;;  %v2371_v5 = vadd.f32 %v2370_v18, %v2369_v42  ;;  %v2434_v50 = vpop.f32.mrb[63].mxu1 }
 0x178   : > { %v2435_v52 = vadd.f32 %v2434_v50, %v2433_v44 }
 0x179   : > { %v1548_v7 = vadd.f32 %v2371_v5, %v3113_v26  ;;  %v1642_v54 = vadd.f32 %v2432_v43, %v1545_v49 }
 0x17b   : > { %v2470_v14 = vpop.f32.mrb[64].mxu0  ;;  %v1645_v55 = vadd.f32 %v2435_v52, %v1548_v7 }
 0x17c   : > { %v1691_v56 = vadd.f32 %v2470_v14, %v3123_v63  ;;  %v2478_v57 = vpop.f32.mrb[64].mxu1  ;;  %v1682_v16 = vpop.f32.mrb[65].mxu0 }
 0x17d   : > { %v1723_v30 = vadd.f32 %v2478_v57, %v1626_v35  ;;  %v1683_v60 = vadd.f32 %v1682_v16, %v3117_v45  ;;  %v1714_v61 = vpop.f32.mrb[65].mxu1  ;;  %v2471_v32 = vpop.f32.mrb[66].mxu0 }
 0x17e   : > { %v1715_v1 = vadd.f32 %v1714_v61, %v1618_v58  ;;  %v1694_v24 = vadd.f32 %v2471_v32, %v3125_v2  ;;  %v2479_v3 = vpop.f32.mrb[66].mxu1  ;;  %v1685_v4 = vpop.f32.mrb[67].mxu0  ;;  %v1747_v9 = vmax.f32 %v1691_v56, 0.0 }
 0x17f   : > { %v1726_v6 = vadd.f32 %v2479_v3, %v1629_v13  ;;  %v1686_v26 = vadd.f32 %v1685_v4, %v3119_v47  ;;  %v1717_v8 = vpop.f32.mrb[67].mxu1  ;;  %v1755_v10 = vmax.f32 %v1723_v30, 0.0  ;;  %v1745_v11 = vmax.f32 %v1683_v60, 0.0 }
 0x180   : > { %v1748_v33 = vmax.f32 %v1694_v24, 0.0  ;;  %v1718_v63 = vadd.f32 %v1717_v8, %v3141_v59  ;;  %v1753_v58 = vmax.f32 %v1715_v1, 0.0 }
 0x181   : > { %v1756_v45 = vmax.f32 %v1726_v6, 0.0  ;;  %v1746_v2 = vmax.f32 %v1686_v26, 0.0 }
 0x182   : > { %v2141_v12 = vpack.c.bf16 %v1748_v33, %v1747_v9  ;;  %v1754_v47 = vmax.f32 %v1718_v63, 0.0 }
 0x183   : > { %v2161_v35 = vpack.c.bf16 %v1756_v45, %v1755_v10  ;;  %v2136_v46 = vpack.c.bf16 %v1746_v2, %v1745_v11  ;;  %v2474_v13 = vpop.f32.mrb[68].mxu0 }
 0x184   : > { %2173 = vst [vmem:[%s3160_s7 + $0x8] sm:$0xff] %v2141_v12   ;;  %v2156_v59 = vpack.c.bf16 %v1754_v47, %v1753_v58  ;;  %v1707_v15 = vadd.f32 %v2474_v13, %v3135_v39  ;;  %v2482_v17 = vpop.f32.mrb[68].mxu1  ;;  %v1698_v48 = vpop.f32.mrb[69].mxu0 }
 0x185   : > { %2177 = vst [vmem:[%s3160_s7 + $0x28] sm:$0xff] %v2161_v35   ;;  %2137 = vst [vmem:[%s3160_s7] sm:$0xff] %v2136_v46   ;;  %v1739_v20 = vadd.f32 %v2482_v17, %v1642_v54  ;;  %v1699_v22 = vadd.f32 %v1698_v48, %v3129_v19  ;;  %v1730_v23 = vpop.f32.mrb[69].mxu1  ;;  %v2475_v25 = vpop.f32.mrb[70].mxu0 }
 0x186   : > { %2176 = vst [vmem:[%s3160_s7 + $0x20] sm:$0xff] %v2156_v59   ;;  %v1731_v27 = vadd.f32 %v1730_v23, %v1634_v62  ;;  %v1710_v28 = vadd.f32 %v2475_v25, %v3137_v41  ;;  %v2483_v29 = vpop.f32.mrb[70].mxu1  ;;  %v1701_v51 = vpop.f32.mrb[71].mxu0  ;;  %v1751_v53 = vmax.f32 %v1707_v15, 0.0 }
 0x187   : > { %v1742_v31 = vadd.f32 %v2483_v29, %v1645_v55  ;;  %v1702_v34 = vadd.f32 %v1701_v51, %v3131_v21  ;;  %v1733_v39 = vpop.f32.mrb[71].mxu1  ;;  %v1759_v38 = vmax.f32 %v1739_v20, 0.0  ;;  %v1749_v0 = vmax.f32 %v1699_v22, 0.0 }
 0x188   : > { %v1752_v37 = vmax.f32 %v1710_v28, 0.0  ;;  %v1734_v19 = vadd.f32 %v1733_v39, %v3147_v36  ;;  %v1757_v42 = vmax.f32 %v1731_v27, 0.0 }
 0x189   : > { %v1760_v40 = vmax.f32 %v1742_v31, 0.0  ;;  %v1750_v62 = vmax.f32 %v1702_v34, 0.0 }
 0x18a   : > { %v2151_v41 = vpack.c.bf16 %v1752_v37, %v1751_v53  ;;  %v1758_v43 = vmax.f32 %v1734_v19, 0.0 }
 0x18b   : > { %v2171_v44 = vpack.c.bf16 %v1760_v40, %v1759_v38  ;;  %v2146_v18 = vpack.c.bf16 %v1750_v62, %v1749_v0 }
 0x18c   : > { %2175 = vst [vmem:[%s3160_s7 + $0x18] sm:$0xff] %v2151_v41   ;;  %v2166_v49 = vpack.c.bf16 %v1758_v43, %v1757_v42 }
 0x18d   : > { %2179 = vst [vmem:[%s3160_s7 + $0x38] sm:$0xff] %v2171_v44   ;;  %2174 = vst [vmem:[%s3160_s7 + $0x10] sm:$0xff] %v2146_v18  }
 0x18e   : > { %2178 = vst [vmem:[%s3160_s7 + $0x30] sm:$0xff] %v2166_v49  }
 0x18f PF: > { %s13_s14 = sadd.s32 1, %s2723_s14   ;;  %s3188_s12 = smov %s2719_s13 }
 0x190   : > { %p10_p5 = scmp.ge.s32.totalorder %s13_s14, 4   ;;  %s3189_s13 = smov %s3191_s15 }
 0x192   :  { %12 = sbr.rel (!%p10_p5) target bundleno = 2 (0x2), region = 68 }

// kernel: _lambda_.30
= control target key start
LH: loop header
LB: loop body
LE: loop exit
PB: predicated region body
PF: predicated region fallthrough
CT: control target
= control target key end

     0   :  { %s3953_s12 = smov 0   ;;  %s3955_s13 = smov 0   ;;  %s4764_s0 = inlined_call_operand.vmem [shape: bf16[256,1408], index: 0, kind: input, shape index: {}]   ;;  %s4765_s1 = inlined_call_operand.vmem [shape: bf16[1408,384], index: 1, kind: input, shape index: {}]   ;;  %s4766_s2 = inlined_call_operand.vmem [shape: f32[1,384], index: 2, kind: input, shape index: {}]   ;;  %s4767_s3 = inlined_call_operand.vmem [shape: f32[256,384], index: 3, kind: output, shape index: {}]  }
   0x1   :  { %s3957_s14 = smov 0   ;;  %s3959_s15 = smov 0  }
   0x2   :  { %s3961_s16 = smov 0   ;;  %s3963_s17 = smov 0  }
   0x3   :  { %s3965_s18 = smov 0   ;;  %s3967_s19 = smov 0  }
   0x4   :  { %s3969_s20 = smov 0  }
   0x5 LB: > { %s3009_s21 = sadd.s32 4294967295, %s3931_s20   ;;  %s22_s22 = sadd.s32 1, %s3923_s18  ;;  %s3931_s20 = sphi %s3969_s20, %s13_s20   ;;  %s3927_s19 = sphi %s3967_s19, %s4776_s19   ;;  %s3923_s18 = sphi %s3965_s18, %s4775_s18   ;;  %s3919_s17 = sphi %s3963_s17, %s4774_s17   ;;  %s3915_s16 = sphi %s3961_s16, %s4773_s16   ;;  %s3911_s15 = sphi %s3959_s15, %s4772_s15   ;;  %s3907_s14 = sphi %s3957_s14, %s4771_s14   ;;  %s3903_s13 = sphi %s3955_s13, %s4770_s13   ;;  %s3899_s12 = sphi %s3953_s12, %s4769_s12  }
   0x6   : > { %p23_p0 = scmp.ge.s32.totalorder %s22_s22, 3  ;;  %s25_s23 = sadd.s32 1, %s3927_s19 }
   0x7   : > { %s58_s24 = sadd.s32 1, %s3911_s15  ;;  %p65_p1 = scmp.ne.s32.totalorder %s3911_s15, %s3907_s14 }
   0x8   : > { %s4778_s22 = smov (%p23_p0, %s22_s22), 0  ;;  %s4780_s23 = smov (!%p23_p0, %s25_s23), %s3927_s19 }
   0x9   : > { %s55_s25 = ssub.s32 %s3923_s18, %s4778_s22  ;;  %p66_p2 = scmp.eq.s32.totalorder %s3931_s20, 0 }
   0xa   : > { %p27_p3 = scmp.ge.s32.totalorder %s4780_s23, 2  ;;  %p56_p4 = scmp.eq.s32.totalorder %s55_s25, 0 }
   0xb   : > { %p67_p5 = por %p66_p2, %p65_p1  ;;  %s112_s26 = sadd.s32 1, %s3903_s13 }
   0xc   : > { %s4782_s23 = smov (%p27_p3, %s4780_s23), 0  ;;  %p122_p6 = scmp.ne.s32.totalorder %s3903_s13, %s3899_s12 }
   0xd   : > { %s4014_s27 = scalar_select %p56_p4, %s3911_s15, %s58_s24  }
   0xe   : > { %s107_s28 = ssub.s32 %s3927_s19, %s4782_s23  ;;  %p123_p7 = scmp.eq.s32.totalorder %s3009_s21, 5 }
   0xf   : > { %s109_s29 = sor.u32 %s107_s28, %s55_s25  ;;  %p3012_p10 = scmp.ge.s32.totalorder %s3931_s20, 6 }
  0x10   : > { %p110_p8 = scmp.eq.s32.totalorder %s109_s29, 0  ;;  %p4020_p9 = por %p123_p7, %p122_p6 }
  0x11   : > { %145 = sbr.rel (%p3012_p10) target bundleno = 145 (0x91), region = 16 }
  0x12   : > { %s4025_s4 = scalar_select %p110_p8, %s3903_s13, %s112_s26  }
  0x18   : > { %158 = sbr.rel (!%p67_p5) target bundleno = 145 (0x91), region = 24  ;;  %s160_s5 = sand.u32 (%p67_p5), 1, %s3911_s15  }
  0x19   : > { %s3013_s6 = sshll.u32 (%p67_p5), %s3923_s18, 2  ;;  %s3569_s7 = smul.u32 (%p67_p5), 704, %s160_s5 }
  0x1a   : > { %s4033_s10 = scalar_lea.vmem (%p67_p5), %s4765_s1, %s3013_s6 }
  0x1b   : > { %v180_v0 = vld [vmem:[%s4033_s10] sm:$0xf] (%p67_p5)  ;;  %v182_v1 = vld [vmem:[%s4033_s10 + $0xc] sm:$0xf] (%p67_p5)  ;;  %v184_v2 = vld [vmem:[%s4033_s10 + $0x18] sm:$0xf] (%p67_p5) }
  0x1c   : > { %v186_v3 = vld [vmem:[%s4033_s10 + $0x24] sm:$0xf] (%p67_p5)  ;;  %v188_v4 = vld [vmem:[%s4033_s10 + $0x30] sm:$0xf] (%p67_p5)  ;;  %s4040_s11 = scalar_lea.vmem (%p67_p5), [#allocation2], %s3569_s7 }
  0x1d   : > { %181 = vst [vmem:[%s4040_s11] sm:$0xf] (%p67_p5), %v180_v0  ;;  %183 = vst [vmem:[%s4040_s11 + $0x4] sm:$0xf] (%p67_p5), %v182_v1  ;;  %v190_v5 = vld [vmem:[%s4033_s10 + $0x3c] sm:$0xf] (%p67_p5) }
  0x1e   : > { %185 = vst [vmem:[%s4040_s11 + $0x8] sm:$0xf] (%p67_p5), %v184_v2  ;;  %187 = vst [vmem:[%s4040_s11 + $0xc] sm:$0xf] (%p67_p5), %v186_v3  ;;  %v192_v6 = vld [vmem:[%s4033_s10 + $0x48] sm:$0xf] (%p67_p5) }
  0x1f   : > { %189 = vst [vmem:[%s4040_s11 + $0x10] sm:$0xf] %v188_v4  ;;  %v194_v7 = vld [vmem:[%s4033_s10 + $0x54] sm:$0xf]  ;;  %191 = vst [vmem:[%s4040_s11 + $0x14] sm:$0xf] %v190_v5 }
  0x20   : > { %193 = vst [vmem:[%s4040_s11 + $0x18] sm:$0xf] %v192_v6  ;;  %195 = vst [vmem:[%s4040_s11 + $0x1c] sm:$0xf] %v194_v7  ;;  %v196_v8 = vld [vmem:[%s4033_s10 + $0x60] sm:$0xf] }
  0x21   : > { %v198_v9 = vld [vmem:[%s4033_s10 + $0x6c] sm:$0xf]  ;;  %v200_v10 = vld [vmem:[%s4033_s10 + $0x78] sm:$0xf]  ;;  %197 = vst [vmem:[%s4040_s11 + $0x20] sm:$0xf] %v196_v8 }
  0x22   : > { %199 = vst [vmem:[%s4040_s11 + $0x24] sm:$0xf] %v198_v9  ;;  %201 = vst [vmem:[%s4040_s11 + $0x28] sm:$0xf] %v200_v10  ;;  %v202_v11 = vld [vmem:[%s4033_s10 + $0x84] sm:$0xf] }
  0x23   : > { %v204_v12 = vld [vmem:[%s4033_s10 + $0x90] sm:$0xf]  ;;  %v206_v13 = vld [vmem:[%s4033_s10 + $0x9c] sm:$0xf]  ;;  %203 = vst [vmem:[%s4040_s11 + $0x2c] sm:$0xf] %v202_v11 }
  0x24   : > { %205 = vst [vmem:[%s4040_s11 + $0x30] sm:$0xf] %v204_v12  ;;  %207 = vst [vmem:[%s4040_s11 + $0x34] sm:$0xf] %v206_v13  ;;  %v208_v14 = vld [vmem:[%s4033_s10 + $0xa8] sm:$0xf] }
  0x25   : > { %v210_v15 = vld [vmem:[%s4033_s10 + $0xb4] sm:$0xf]  ;;  %v212_v16 = vld [vmem:[%s4033_s10 + $0xc0] sm:$0xf]  ;;  %209 = vst [vmem:[%s4040_s11 + $0x38] sm:$0xf] %v208_v14 }
  0x26   : > { %211 = vst [vmem:[%s4040_s11 + $0x3c] sm:$0xf] %v210_v15  ;;  %213 = vst [vmem:[%s4040_s11 + $0x40] sm:$0xf] %v212_v16  ;;  %v214_v17 = vld [vmem:[%s4033_s10 + $0xcc] sm:$0xf] }
  0x27   : > { %v216_v18 = vld [vmem:[%s4033_s10 + $0xd8] sm:$0xf]  ;;  %v218_v19 = vld [vmem:[%s4033_s10 + $0xe4] sm:$0xf]  ;;  %215 = vst [vmem:[%s4040_s11 + $0x44] sm:$0xf] %v214_v17 }
  0x28   : > { %217 = vst [vmem:[%s4040_s11 + $0x48] sm:$0xf] %v216_v18  ;;  %219 = vst [vmem:[%s4040_s11 + $0x4c] sm:$0xf] %v218_v19  ;;  %v220_v20 = vld [vmem:[%s4033_s10 + $0xf0] sm:$0xf] }
  0x29   : > { %v222_v21 = vld [vmem:[%s4033_s10 + $0xfc] sm:$0xf]  ;;  %v224_v22 = vld [vmem:[%s4033_s10 + $0x108] sm:$0xf]  ;;  %221 = vst [vmem:[%s4040_s11 + $0x50] sm:$0xf] %v220_v20 }
  0x2a   : > { %223 = vst [vmem:[%s4040_s11 + $0x54] sm:$0xf] %v222_v21  ;;  %225 = vst [vmem:[%s4040_s11 + $0x58] sm:$0xf] %v224_v22  ;;  %v226_v23 = vld [vmem:[%s4033_s10 + $0x114] sm:$0xf] }
  0x2b   : > { %v228_v24 = vld [vmem:[%s4033_s10 + $0x120] sm:$0xf]  ;;  %v230_v25 = vld [vmem:[%s4033_s10 + $0x12c] sm:$0xf]  ;;  %227 = vst [vmem:[%s4040_s11 + $0x5c] sm:$0xf] %v226_v23 }
  0x2c   : > { %229 = vst [vmem:[%s4040_s11 + $0x60] sm:$0xf] %v228_v24  ;;  %231 = vst [vmem:[%s4040_s11 + $0x64] sm:$0xf] %v230_v25  ;;  %v232_v26 = vld [vmem:[%s4033_s10 + $0x138] sm:$0xf] }
  0x2d   : > { %v234_v27 = vld [vmem:[%s4033_s10 + $0x144] sm:$0xf]  ;;  %v236_v28 = vld [vmem:[%s4033_s10 + $0x150] sm:$0xf]  ;;  %233 = vst [vmem:[%s4040_s11 + $0x68] sm:$0xf] %v232_v26 }
  0x2e   : > { %235 = vst [vmem:[%s4040_s11 + $0x6c] sm:$0xf] %v234_v27  ;;  %237 = vst [vmem:[%s4040_s11 + $0x70] sm:$0xf] %v236_v28  ;;  %v238_v29 = vld [vmem:[%s4033_s10 + $0x15c] sm:$0xf] }
  0x2f   : > { %v240_v30 = vld [vmem:[%s4033_s10 + $0x168] sm:$0xf]  ;;  %v242_v31 = vld [vmem:[%s4033_s10 + $0x174] sm:$0xf]  ;;  %239 = vst [vmem:[%s4040_s11 + $0x74] sm:$0xf] %v238_v29 }
  0x30   : > { %241 = vst [vmem:[%s4040_s11 + $0x78] sm:$0xf] %v240_v30  ;;  %243 = vst [vmem:[%s4040_s11 + $0x7c] sm:$0xf] %v242_v31  ;;  %v244_v32 = vld [vmem:[%s4033_s10 + $0x180] sm:$0xf] }
  0x31   : > { %v246_v33 = vld [vmem:[%s4033_s10 + $0x18c] sm:$0xf]  ;;  %v248_v34 = vld [vmem:[%s4033_s10 + $0x198] sm:$0xf]  ;;  %245 = vst [vmem:[%s4040_s11 + $0x80] sm:$0xf] %v244_v32 }
  0x32   : > { %247 = vst [vmem:[%s4040_s11 + $0x84] sm:$0xf] %v246_v33  ;;  %249 = vst [vmem:[%s4040_s11 + $0x88] sm:$0xf] %v248_v34  ;;  %v250_v35 = vld [vmem:[%s4033_s10 + $0x1a4] sm:$0xf] }
  0x33   : > { %v252_v36 = vld [vmem:[%s4033_s10 + $0x1b0] sm:$0xf]  ;;  %v254_v37 = vld [vmem:[%s4033_s10 + $0x1bc] sm:$0xf]  ;;  %251 = vst [vmem:[%s4040_s11 + $0x8c] sm:$0xf] %v250_v35 }
  0x34   : > { %253 = vst [vmem:[%s4040_s11 + $0x90] sm:$0xf] %v252_v36  ;;  %255 = vst [vmem:[%s4040_s11 + $0x94] sm:$0xf] %v254_v37  ;;  %v256_v38 = vld [vmem:[%s4033_s10 + $0x1c8] sm:$0xf] }
  0x35   : > { %v258_v39 = vld [vmem:[%s4033_s10 + $0x1d4] sm:$0xf]  ;;  %v260_v40 = vld [vmem:[%s4033_s10 + $0x1e0] sm:$0xf]  ;;  %257 = vst [vmem:[%s4040_s11 + $0x98] sm:$0xf] %v256_v38 }
  0x36   : > { %259 = vst [vmem:[%s4040_s11 + $0x9c] sm:$0xf] %v258_v39  ;;  %261 = vst [vmem:[%s4040_s11 + $0xa0] sm:$0xf] %v260_v40  ;;  %v262_v41 = vld [vmem:[%s4033_s10 + $0x1ec] sm:$0xf] }
  0x37   : > { %v264_v42 = vld [vmem:[%s4033_s10 + $0x1f8] sm:$0xf]  ;;  %v266_v43 = vld [vmem:[%s4033_s10 + $0x204] sm:$0xf]  ;;  %263 = vst [vmem:[%s4040_s11 + $0xa4] sm:$0xf] %v262_v41 }
  0x38   : > { %265 = vst [vmem:[%s4040_s11 + $0xa8] sm:$0xf] %v264_v42  ;;  %267 = vst [vmem:[%s4040_s11 + $0xac] sm:$0xf] %v266_v43  ;;  %v268_v44 = vld [vmem:[%s4033_s10 + $0x210] sm:$0xf] }
  0x39   : > { %v270_v45 = vld [vmem:[%s4033_s10 + $0x21c] sm:$0xf]  ;;  %v272_v46 = vld [vmem:[%s4033_s10 + $0x228] sm:$0xf]  ;;  %269 = vst [vmem:[%s4040_s11 + $0xb0] sm:$0xf] %v268_v44 }
  0x3a   : > { %271 = vst [vmem:[%s4040_s11 + $0xb4] sm:$0xf] %v270_v45  ;;  %273 = vst [vmem:[%s4040_s11 + $0xb8] sm:$0xf] %v272_v46  ;;  %v274_v47 = vld [vmem:[%s4033_s10 + $0x234] sm:$0xf] }
  0x3b   : > { %v276_v48 = vld [vmem:[%s4033_s10 + $0x240] sm:$0xf]  ;;  %v278_v49 = vld [vmem:[%s4033_s10 + $0x24c] sm:$0xf]  ;;  %275 = vst [vmem:[%s4040_s11 + $0xbc] sm:$0xf] %v274_v47 }
  0x3c   : > { %277 = vst [vmem:[%s4040_s11 + $0xc0] sm:$0xf] %v276_v48  ;;  %279 = vst [vmem:[%s4040_s11 + $0xc4] sm:$0xf] %v278_v49  ;;  %v280_v50 = vld [vmem:[%s4033_s10 + $0x258] sm:$0xf] }
  0x3d   : > { %v282_v51 = vld [vmem:[%s4033_s10 + $0x264] sm:$0xf]  ;;  %v284_v52 = vld [vmem:[%s4033_s10 + $0x270] sm:$0xf]  ;;  %281 = vst [vmem:[%s4040_s11 + $0xc8] sm:$0xf] %v280_v50 }
  0x3e   : > { %283 = vst [vmem:[%s4040_s11 + $0xcc] sm:$0xf] %v282_v51  ;;  %285 = vst [vmem:[%s4040_s11 + $0xd0] sm:$0xf] %v284_v52  ;;  %v286_v53 = vld [vmem:[%s4033_s10 + $0x27c] sm:$0xf] }
  0x3f   : > { %v288_v54 = vld [vmem:[%s4033_s10 + $0x288] sm:$0xf]  ;;  %v290_v55 = vld [vmem:[%s4033_s10 + $0x294] sm:$0xf]  ;;  %287 = vst [vmem:[%s4040_s11 + $0xd4] sm:$0xf] %v286_v53 }
  0x40   : > { %289 = vst [vmem:[%s4040_s11 + $0xd8] sm:$0xf] %v288_v54  ;;  %291 = vst [vmem:[%s4040_s11 + $0xdc] sm:$0xf] %v290_v55  ;;  %v292_v56 = vld [vmem:[%s4033_s10 + $0x2a0] sm:$0xf] }
  0x41   : > { %v294_v57 = vld [vmem:[%s4033_s10 + $0x2ac] sm:$0xf]  ;;  %v296_v58 = vld [vmem:[%s4033_s10 + $0x2b8] sm:$0xf]  ;;  %293 = vst [vmem:[%s4040_s11 + $0xe0] sm:$0xf] %v292_v56 }
  0x42   : > { %295 = vst [vmem:[%s4040_s11 + $0xe4] sm:$0xf] %v294_v57  ;;  %297 = vst [vmem:[%s4040_s11 + $0xe8] sm:$0xf] %v296_v58  ;;  %v298_v59 = vld [vmem:[%s4033_s10 + $0x2c4] sm:$0xf] }
  0x43   : > { %v300_v60 = vld [vmem:[%s4033_s10 + $0x2d0] sm:$0xf]  ;;  %v302_v61 = vld [vmem:[%s4033_s10 + $0x2dc] sm:$0xf]  ;;  %299 = vst [vmem:[%s4040_s11 + $0xec] sm:$0xf] %v298_v59 }
  0x44   : > { %301 = vst [vmem:[%s4040_s11 + $0xf0] sm:$0xf] %v300_v60  ;;  %303 = vst [vmem:[%s4040_s11 + $0xf4] sm:$0xf] %v302_v61  ;;  %v304_v62 = vld [vmem:[%s4033_s10 + $0x2e8] sm:$0xf] }
  0x45   : > { %v306_v63 = vld [vmem:[%s4033_s10 + $0x2f4] sm:$0xf]  ;;  %v308_v0 = vld [vmem:[%s4033_s10 + $0x300] sm:$0xf]  ;;  %305 = vst [vmem:[%s4040_s11 + $0xf8] sm:$0xf] %v304_v62 }
  0x46   : > { %307 = vst [vmem:[%s4040_s11 + $0xfc] sm:$0xf] %v306_v63  ;;  %309 = vst [vmem:[%s4040_s11 + $0x100] sm:$0xf] %v308_v0  ;;  %v310_v1 = vld [vmem:[%s4033_s10 + $0x30c] sm:$0xf] }
  0x47   : > { %v312_v2 = vld [vmem:[%s4033_s10 + $0x318] sm:$0xf]  ;;  %v314_v3 = vld [vmem:[%s4033_s10 + $0x324] sm:$0xf]  ;;  %311 = vst [vmem:[%s4040_s11 + $0x104] sm:$0xf] %v310_v1 }
  0x48   : > { %313 = vst [vmem:[%s4040_s11 + $0x108] sm:$0xf] %v312_v2  ;;  %315 = vst [vmem:[%s4040_s11 + $0x10c] sm:$0xf] %v314_v3  ;;  %v316_v4 = vld [vmem:[%s4033_s10 + $0x330] sm:$0xf] }
  0x49   : > { %v318_v5 = vld [vmem:[%s4033_s10 + $0x33c] sm:$0xf]  ;;  %v320_v6 = vld [vmem:[%s4033_s10 + $0x348] sm:$0xf]  ;;  %317 = vst [vmem:[%s4040_s11 + $0x110] sm:$0xf] %v316_v4 }
  0x4a   : > { %319 = vst [vmem:[%s4040_s11 + $0x114] sm:$0xf] %v318_v5  ;;  %321 = vst [vmem:[%s4040_s11 + $0x118] sm:$0xf] %v320_v6  ;;  %v322_v7 = vld [vmem:[%s4033_s10 + $0x354] sm:$0xf] }
  0x4b   : > { %v324_v8 = vld [vmem:[%s4033_s10 + $0x360] sm:$0xf]  ;;  %v326_v9 = vld [vmem:[%s4033_s10 + $0x36c] sm:$0xf]  ;;  %323 = vst [vmem:[%s4040_s11 + $0x11c] sm:$0xf] %v322_v7 }
  0x4c   : > { %325 = vst [vmem:[%s4040_s11 + $0x120] sm:$0xf] %v324_v8  ;;  %327 = vst [vmem:[%s4040_s11 + $0x124] sm:$0xf] %v326_v9  ;;  %v328_v10 = vld [vmem:[%s4033_s10 + $0x378] sm:$0xf] }
  0x4d   : > { %v330_v11 = vld [vmem:[%s4033_s10 + $0x384] sm:$0xf]  ;;  %v332_v12 = vld [vmem:[%s4033_s10 + $0x390] sm:$0xf]  ;;  %329 = vst [vmem:[%s4040_s11 + $0x128] sm:$0xf] %v328_v10 }
  0x4e   : > { %331 = vst [vmem:[%s4040_s11 + $0x12c] sm:$0xf] %v330_v11  ;;  %333 = vst [vmem:[%s4040_s11 + $0x130] sm:$0xf] %v332_v12  ;;  %v334_v13 = vld [vmem:[%s4033_s10 + $0x39c] sm:$0xf] }
  0x4f   : > { %v336_v14 = vld [vmem:[%s4033_s10 + $0x3a8] sm:$0xf]  ;;  %v338_v15 = vld [vmem:[%s4033_s10 + $0x3b4] sm:$0xf]  ;;  %335 = vst [vmem:[%s4040_s11 + $0x134] sm:$0xf] %v334_v13 }
  0x50   : > { %337 = vst [vmem:[%s4040_s11 + $0x138] sm:$0xf] %v336_v14  ;;  %339 = vst [vmem:[%s4040_s11 + $0x13c] sm:$0xf] %v338_v15  ;;  %v340_v16 = vld [vmem:[%s4033_s10 + $0x3c0] sm:$0xf] }
  0x51   : > { %v342_v17 = vld [vmem:[%s4033_s10 + $0x3cc] sm:$0xf]  ;;  %v344_v18 = vld [vmem:[%s4033_s10 + $0x3d8] sm:$0xf]  ;;  %341 = vst [vmem:[%s4040_s11 + $0x140] sm:$0xf] %v340_v16 }
  0x52   : > { %343 = vst [vmem:[%s4040_s11 + $0x144] sm:$0xf] %v342_v17  ;;  %345 = vst [vmem:[%s4040_s11 + $0x148] sm:$0xf] %v344_v18  ;;  %v346_v19 = vld [vmem:[%s4033_s10 + $0x3e4] sm:$0xf] }
  0x53   : > { %v348_v20 = vld [vmem:[%s4033_s10 + $0x3f0] sm:$0xf]  ;;  %v350_v21 = vld [vmem:[%s4033_s10 + $0x3fc] sm:$0xf]  ;;  %347 = vst [vmem:[%s4040_s11 + $0x14c] sm:$0xf] %v346_v19 }
  0x54   : > { %349 = vst [vmem:[%s4040_s11 + $0x150] sm:$0xf] %v348_v20  ;;  %351 = vst [vmem:[%s4040_s11 + $0x154] sm:$0xf] %v350_v21  ;;  %v352_v22 = vld [vmem:[%s4033_s10 + $0x408] sm:$0xf] }
  0x55   : > { %v354_v23 = vld [vmem:[%s4033_s10 + $0x414] sm:$0xf]  ;;  %v356_v24 = vld [vmem:[%s4033_s10 + $0x420] sm:$0xf]  ;;  %353 = vst [vmem:[%s4040_s11 + $0x158] sm:$0xf] %v352_v22 }
  0x56   : > { %355 = vst [vmem:[%s4040_s11 + $0x15c] sm:$0xf] %v354_v23  ;;  %357 = vst [vmem:[%s4040_s11 + $0x160] sm:$0xf] %v356_v24  ;;  %v358_v25 = vld [vmem:[%s4033_s10 + $0x42c] sm:$0xf] }
  0x57   : > { %v360_v26 = vld [vmem:[%s4033_s10 + $0x438] sm:$0xf]  ;;  %v362_v27 = vld [vmem:[%s4033_s10 + $0x444] sm:$0xf]  ;;  %359 = vst [vmem:[%s4040_s11 + $0x164] sm:$0xf] %v358_v25 }
  0x58   : > { %361 = vst [vmem:[%s4040_s11 + $0x168] sm:$0xf] %v360_v26  ;;  %363 = vst [vmem:[%s4040_s11 + $0x16c] sm:$0xf] %v362_v27  ;;  %v364_v28 = vld [vmem:[%s4033_s10 + $0x450] sm:$0xf] }
  0x59   : > { %v366_v29 = vld [vmem:[%s4033_s10 + $0x45c] sm:$0xf]  ;;  %v368_v30 = vld [vmem:[%s4033_s10 + $0x468] sm:$0xf]  ;;  %365 = vst [vmem:[%s4040_s11 + $0x170] sm:$0xf] %v364_v28 }
  0x5a   : > { %367 = vst [vmem:[%s4040_s11 + $0x174] sm:$0xf] %v366_v29  ;;  %369 = vst [vmem:[%s4040_s11 + $0x178] sm:$0xf] %v368_v30  ;;  %v370_v31 = vld [vmem:[%s4033_s10 + $0x474] sm:$0xf] }
  0x5b   : > { %v372_v32 = vld [vmem:[%s4033_s10 + $0x480] sm:$0xf]  ;;  %v374_v33 = vld [vmem:[%s4033_s10 + $0x48c] sm:$0xf]  ;;  %371 = vst [vmem:[%s4040_s11 + $0x17c] sm:$0xf] %v370_v31 }
  0x5c   : > { %373 = vst [vmem:[%s4040_s11 + $0x180] sm:$0xf] %v372_v32  ;;  %375 = vst [vmem:[%s4040_s11 + $0x184] sm:$0xf] %v374_v33  ;;  %v376_v34 = vld [vmem:[%s4033_s10 + $0x498] sm:$0xf] }
  0x5d   : > { %v378_v35 = vld [vmem:[%s4033_s10 + $0x4a4] sm:$0xf]  ;;  %v380_v36 = vld [vmem:[%s4033_s10 + $0x4b0] sm:$0xf]  ;;  %377 = vst [vmem:[%s4040_s11 + $0x188] sm:$0xf] %v376_v34 }
  0x5e   : > { %379 = vst [vmem:[%s4040_s11 + $0x18c] sm:$0xf] %v378_v35  ;;  %381 = vst [vmem:[%s4040_s11 + $0x190] sm:$0xf] %v380_v36  ;;  %v382_v37 = vld [vmem:[%s4033_s10 + $0x4bc] sm:$0xf] }
  0x5f   : > { %v384_v38 = vld [vmem:[%s4033_s10 + $0x4c8] sm:$0xf]  ;;  %v386_v39 = vld [vmem:[%s4033_s10 + $0x4d4] sm:$0xf]  ;;  %383 = vst [vmem:[%s4040_s11 + $0x194] sm:$0xf] %v382_v37 }
  0x60   : > { %385 = vst [vmem:[%s4040_s11 + $0x198] sm:$0xf] %v384_v38  ;;  %387 = vst [vmem:[%s4040_s11 + $0x19c] sm:$0xf] %v386_v39  ;;  %v388_v40 = vld [vmem:[%s4033_s10 + $0x4e0] sm:$0xf] }
  0x61   : > { %v390_v41 = vld [vmem:[%s4033_s10 + $0x4ec] sm:$0xf]  ;;  %v392_v42 = vld [vmem:[%s4033_s10 + $0x4f8] sm:$0xf]  ;;  %389 = vst [vmem:[%s4040_s11 + $0x1a0] sm:$0xf] %v388_v40 }
  0x62   : > { %391 = vst [vmem:[%s4040_s11 + $0x1a4] sm:$0xf] %v390_v41  ;;  %393 = vst [vmem:[%s4040_s11 + $0x1a8] sm:$0xf] %v392_v42  ;;  %v394_v43 = vld [vmem:[%s4033_s10 + $0x504] sm:$0xf] }
  0x63   : > { %v396_v44 = vld [vmem:[%s4033_s10 + $0x510] sm:$0xf]  ;;  %v398_v45 = vld [vmem:[%s4033_s10 + $0x51c] sm:$0xf]  ;;  %395 = vst [vmem:[%s4040_s11 + $0x1ac] sm:$0xf] %v394_v43 }
  0x64   : > { %397 = vst [vmem:[%s4040_s11 + $0x1b0] sm:$0xf] %v396_v44  ;;  %399 = vst [vmem:[%s4040_s11 + $0x1b4] sm:$0xf] %v398_v45  ;;  %v400_v46 = vld [vmem:[%s4033_s10 + $0x528] sm:$0xf] }
  0x65   : > { %v402_v47 = vld [vmem:[%s4033_s10 + $0x534] sm:$0xf]  ;;  %v404_v48 = vld [vmem:[%s4033_s10 + $0x540] sm:$0xf]  ;;  %401 = vst [vmem:[%s4040_s11 + $0x1b8] sm:$0xf] %v400_v46 }
  0x66   : > { %403 = vst [vmem:[%s4040_s11 + $0x1bc] sm:$0xf] %v402_v47  ;;  %405 = vst [vmem:[%s4040_s11 + $0x1c0] sm:$0xf] %v404_v48  ;;  %v406_v49 = vld [vmem:[%s4033_s10 + $0x54c] sm:$0xf] }
  0x67   : > { %v408_v50 = vld [vmem:[%s4033_s10 + $0x558] sm:$0xf]  ;;  %v410_v51 = vld [vmem:[%s4033_s10 + $0x564] sm:$0xf]  ;;  %407 = vst [vmem:[%s4040_s11 + $0x1c4] sm:$0xf] %v406_v49 }
  0x68   : > { %409 = vst [vmem:[%s4040_s11 + $0x1c8] sm:$0xf] %v408_v50  ;;  %411 = vst [vmem:[%s4040_s11 + $0x1cc] sm:$0xf] %v410_v51  ;;  %v412_v52 = vld [vmem:[%s4033_s10 + $0x570] sm:$0xf] }
  0x69   : > { %v414_v53 = vld [vmem:[%s4033_s10 + $0x57c] sm:$0xf]  ;;  %v416_v54 = vld [vmem:[%s4033_s10 + $0x588] sm:$0xf]  ;;  %413 = vst [vmem:[%s4040_s11 + $0x1d0] sm:$0xf] %v412_v52 }
  0x6a   : > { %415 = vst [vmem:[%s4040_s11 + $0x1d4] sm:$0xf] %v414_v53  ;;  %417 = vst [vmem:[%s4040_s11 + $0x1d8] sm:$0xf] %v416_v54  ;;  %v418_v55 = vld [vmem:[%s4033_s10 + $0x594] sm:$0xf] }
  0x6b   : > { %v420_v56 = vld [vmem:[%s4033_s10 + $0x5a0] sm:$0xf]  ;;  %v422_v57 = vld [vmem:[%s4033_s10 + $0x5ac] sm:$0xf]  ;;  %419 = vst [vmem:[%s4040_s11 + $0x1dc] sm:$0xf] %v418_v55 }
  0x6c   : > { %421 = vst [vmem:[%s4040_s11 + $0x1e0] sm:$0xf] %v420_v56  ;;  %423 = vst [vmem:[%s4040_s11 + $0x1e4] sm:$0xf] %v422_v57  ;;  %v424_v58 = vld [vmem:[%s4033_s10 + $0x5b8] sm:$0xf] }
  0x6d   : > { %v426_v59 = vld [vmem:[%s4033_s10 + $0x5c4] sm:$0xf]  ;;  %v428_v60 = vld [vmem:[%s4033_s10 + $0x5d0] sm:$0xf]  ;;  %425 = vst [vmem:[%s4040_s11 + $0x1e8] sm:$0xf] %v424_v58 }
  0x6e   : > { %427 = vst [vmem:[%s4040_s11 + $0x1ec] sm:$0xf] %v426_v59  ;;  %429 = vst [vmem:[%s4040_s11 + $0x1f0] sm:$0xf] %v428_v60  ;;  %v430_v61 = vld [vmem:[%s4033_s10 + $0x5dc] sm:$0xf] }
  0x6f   : > { %v432_v62 = vld [vmem:[%s4033_s10 + $0x5e8] sm:$0xf]  ;;  %v434_v63 = vld [vmem:[%s4033_s10 + $0x5f4] sm:$0xf]  ;;  %431 = vst [vmem:[%s4040_s11 + $0x1f4] sm:$0xf] %v430_v61 }
  0x70   : > { %433 = vst [vmem:[%s4040_s11 + $0x1f8] sm:$0xf] %v432_v62  ;;  %435 = vst [vmem:[%s4040_s11 + $0x1fc] sm:$0xf] %v434_v63  ;;  %v436_v0 = vld [vmem:[%s4033_s10 + $0x600] sm:$0xf] }
  0x71   : > { %v438_v1 = vld [vmem:[%s4033_s10 + $0x60c] sm:$0xf]  ;;  %v440_v2 = vld [vmem:[%s4033_s10 + $0x618] sm:$0xf]  ;;  %437 = vst [vmem:[%s4040_s11 + $0x200] sm:$0xf] %v436_v0 }
  0x72   : > { %439 = vst [vmem:[%s4040_s11 + $0x204] sm:$0xf] %v438_v1  ;;  %441 = vst [vmem:[%s4040_s11 + $0x208] sm:$0xf] %v440_v2  ;;  %v442_v3 = vld [vmem:[%s4033_s10 + $0x624] sm:$0xf] }
  0x73   : > { %v444_v4 = vld [vmem:[%s4033_s10 + $0x630] sm:$0xf]  ;;  %v446_v5 = vld [vmem:[%s4033_s10 + $0x63c] sm:$0xf]  ;;  %443 = vst [vmem:[%s4040_s11 + $0x20c] sm:$0xf] %v442_v3 }
  0x74   : > { %445 = vst [vmem:[%s4040_s11 + $0x210] sm:$0xf] %v444_v4  ;;  %447 = vst [vmem:[%s4040_s11 + $0x214] sm:$0xf] %v446_v5  ;;  %v448_v6 = vld [vmem:[%s4033_s10 + $0x648] sm:$0xf] }
  0x75   : > { %v450_v7 = vld [vmem:[%s4033_s10 + $0x654] sm:$0xf]  ;;  %v452_v8 = vld [vmem:[%s4033_s10 + $0x660] sm:$0xf]  ;;  %449 = vst [vmem:[%s4040_s11 + $0x218] sm:$0xf] %v448_v6 }
  0x76   : > { %451 = vst [vmem:[%s4040_s11 + $0x21c] sm:$0xf] %v450_v7  ;;  %453 = vst [vmem:[%s4040_s11 + $0x220] sm:$0xf] %v452_v8  ;;  %v454_v9 = vld [vmem:[%s4033_s10 + $0x66c] sm:$0xf] }
  0x77   : > { %v456_v10 = vld [vmem:[%s4033_s10 + $0x678] sm:$0xf]  ;;  %v458_v11 = vld [vmem:[%s4033_s10 + $0x684] sm:$0xf]  ;;  %455 = vst [vmem:[%s4040_s11 + $0x224] sm:$0xf] %v454_v9 }
  0x78   : > { %457 = vst [vmem:[%s4040_s11 + $0x228] sm:$0xf] %v456_v10  ;;  %459 = vst [vmem:[%s4040_s11 + $0x22c] sm:$0xf] %v458_v11  ;;  %v460_v12 = vld [vmem:[%s4033_s10 + $0x690] sm:$0xf] }
  0x79   : > { %v462_v13 = vld [vmem:[%s4033_s10 + $0x69c] sm:$0xf]  ;;  %v464_v14 = vld [vmem:[%s4033_s10 + $0x6a8] sm:$0xf]  ;;  %461 = vst [vmem:[%s4040_s11 + $0x230] sm:$0xf] %v460_v12 }
  0x7a   : > { %463 = vst [vmem:[%s4040_s11 + $0x234] sm:$0xf] %v462_v13  ;;  %465 = vst [vmem:[%s4040_s11 + $0x238] sm:$0xf] %v464_v14  ;;  %v466_v15 = vld [vmem:[%s4033_s10 + $0x6b4] sm:$0xf] }
  0x7b   : > { %v468_v16 = vld [vmem:[%s4033_s10 + $0x6c0] sm:$0xf]  ;;  %v470_v17 = vld [vmem:[%s4033_s10 + $0x6cc] sm:$0xf]  ;;  %467 = vst [vmem:[%s4040_s11 + $0x23c] sm:$0xf] %v466_v15 }
  0x7c   : > { %469 = vst [vmem:[%s4040_s11 + $0x240] sm:$0xf] %v468_v16  ;;  %471 = vst [vmem:[%s4040_s11 + $0x244] sm:$0xf] %v470_v17  ;;  %v472_v18 = vld [vmem:[%s4033_s10 + $0x6d8] sm:$0xf] }
  0x7d   : > { %v474_v19 = vld [vmem:[%s4033_s10 + $0x6e4] sm:$0xf]  ;;  %v476_v20 = vld [vmem:[%s4033_s10 + $0x6f0] sm:$0xf]  ;;  %473 = vst [vmem:[%s4040_s11 + $0x248] sm:$0xf] %v472_v18 }
  0x7e   : > { %475 = vst [vmem:[%s4040_s11 + $0x24c] sm:$0xf] %v474_v19  ;;  %477 = vst [vmem:[%s4040_s11 + $0x250] sm:$0xf] %v476_v20  ;;  %v478_v21 = vld [vmem:[%s4033_s10 + $0x6fc] sm:$0xf] }
  0x7f   : > { %v480_v22 = vld [vmem:[%s4033_s10 + $0x708] sm:$0xf]  ;;  %v482_v23 = vld [vmem:[%s4033_s10 + $0x714] sm:$0xf]  ;;  %479 = vst [vmem:[%s4040_s11 + $0x254] sm:$0xf] %v478_v21 }
  0x80   : > { %481 = vst [vmem:[%s4040_s11 + $0x258] sm:$0xf] %v480_v22  ;;  %483 = vst [vmem:[%s4040_s11 + $0x25c] sm:$0xf] %v482_v23  ;;  %v484_v24 = vld [vmem:[%s4033_s10 + $0x720] sm:$0xf] }
  0x81   : > { %v486_v25 = vld [vmem:[%s4033_s10 + $0x72c] sm:$0xf]  ;;  %v488_v26 = vld [vmem:[%s4033_s10 + $0x738] sm:$0xf]  ;;  %485 = vst [vmem:[%s4040_s11 + $0x260] sm:$0xf] %v484_v24 }
  0x82   : > { %487 = vst [vmem:[%s4040_s11 + $0x264] sm:$0xf] %v486_v25  ;;  %489 = vst [vmem:[%s4040_s11 + $0x268] sm:$0xf] %v488_v26  ;;  %v490_v27 = vld [vmem:[%s4033_s10 + $0x744] sm:$0xf] }
  0x83   : > { %v492_v28 = vld [vmem:[%s4033_s10 + $0x750] sm:$0xf]  ;;  %v494_v29 = vld [vmem:[%s4033_s10 + $0x75c] sm:$0xf]  ;;  %491 = vst [vmem:[%s4040_s11 + $0x26c] sm:$0xf] %v490_v27 }
  0x84   : > { %493 = vst [vmem:[%s4040_s11 + $0x270] sm:$0xf] %v492_v28  ;;  %495 = vst [vmem:[%s4040_s11 + $0x274] sm:$0xf] %v494_v29  ;;  %v496_v30 = vld [vmem:[%s4033_s10 + $0x768] sm:$0xf] }
  0x85   : > { %v498_v31 = vld [vmem:[%s4033_s10 + $0x774] sm:$0xf]  ;;  %v500_v32 = vld [vmem:[%s4033_s10 + $0x780] sm:$0xf]  ;;  %497 = vst [vmem:[%s4040_s11 + $0x278] sm:$0xf] %v496_v30 }
  0x86   : > { %499 = vst [vmem:[%s4040_s11 + $0x27c] sm:$0xf] %v498_v31  ;;  %501 = vst [vmem:[%s4040_s11 + $0x280] sm:$0xf] %v500_v32  ;;  %v502_v33 = vld [vmem:[%s4033_s10 + $0x78c] sm:$0xf] }
  0x87   : > { %v504_v34 = vld [vmem:[%s4033_s10 + $0x798] sm:$0xf]  ;;  %v506_v35 = vld [vmem:[%s4033_s10 + $0x7a4] sm:$0xf]  ;;  %503 = vst [vmem:[%s4040_s11 + $0x284] sm:$0xf] %v502_v33 }
  0x88   : > { %505 = vst [vmem:[%s4040_s11 + $0x288] sm:$0xf] %v504_v34  ;;  %507 = vst [vmem:[%s4040_s11 + $0x28c] sm:$0xf] %v506_v35  ;;  %v508_v36 = vld [vmem:[%s4033_s10 + $0x7b0] sm:$0xf] }
  0x89   : > { %v510_v37 = vld [vmem:[%s4033_s10 + $0x7bc] sm:$0xf]  ;;  %v512_v38 = vld [vmem:[%s4033_s10 + $0x7c8] sm:$0xf]  ;;  %509 = vst [vmem:[%s4040_s11 + $0x290] sm:$0xf] %v508_v36 }
  0x8a   : > { %511 = vst [vmem:[%s4040_s11 + $0x294] sm:$0xf] %v510_v37  ;;  %513 = vst [vmem:[%s4040_s11 + $0x298] sm:$0xf] %v512_v38  ;;  %v514_v39 = vld [vmem:[%s4033_s10 + $0x7d4] sm:$0xf] }
  0x8b   : > { %v516_v40 = vld [vmem:[%s4033_s10 + $0x7e0] sm:$0xf]  ;;  %v518_v41 = vld [vmem:[%s4033_s10 + $0x7ec] sm:$0xf]  ;;  %515 = vst [vmem:[%s4040_s11 + $0x29c] sm:$0xf] %v514_v39 }
  0x8c   : > { %517 = vst [vmem:[%s4040_s11 + $0x2a0] sm:$0xf] %v516_v40  ;;  %519 = vst [vmem:[%s4040_s11 + $0x2a4] sm:$0xf] %v518_v41  ;;  %v520_v42 = vld [vmem:[%s4033_s10 + $0x7f8] sm:$0xf] }
  0x8d   : > { %v522_v43 = vld [vmem:[%s4033_s10 + $0x804] sm:$0xf]  ;;  %v524_v44 = vld [vmem:[%s4033_s10 + $0x810] sm:$0xf]  ;;  %521 = vst [vmem:[%s4040_s11 + $0x2a8] sm:$0xf] %v520_v42 }
  0x8e   : > { %523 = vst [vmem:[%s4040_s11 + $0x2ac] sm:$0xf] %v522_v43  ;;  %525 = vst [vmem:[%s4040_s11 + $0x2b0] sm:$0xf] %v524_v44  ;;  %v526_v45 = vld [vmem:[%s4033_s10 + $0x81c] sm:$0xf] }
  0x8f   : > { %v528_v46 = vld [vmem:[%s4033_s10 + $0x828] sm:$0xf]  ;;  %v530_v47 = vld [vmem:[%s4033_s10 + $0x834] sm:$0xf]  ;;  %527 = vst [vmem:[%s4040_s11 + $0x2b4] sm:$0xf] %v526_v45 }
  0x90   : > { %529 = vst [vmem:[%s4040_s11 + $0x2b8] sm:$0xf] %v528_v46  ;;  %531 = vst [vmem:[%s4040_s11 + $0x2bc] sm:$0xf] %v530_v47 }
  0x91 PF: > { %p3014_p11 = scmp.ge.s32.totalorder %s3931_s20, 1  ;;  %p911_p12 = scmp.lt.s32.totalorder %s3931_s20, 7 }
  0x93   : > { %p912_p13 = pnand %p3014_p11, %p911_p12 }
  0x94   : > { %s918_s21 = sand.u32 (!%p912_p13), 1, %s3907_s14   ;;  %s3016_s14 = sshll.u32 (!%p912_p13), %s3919_s17, 4 }
  0x95   : > { %915 = sbr.rel (%p912_p13) target bundleno = 600 (0x258), region = 69  ;;  %p950_p0 = scmp.lt.s32.totalorder (!%p912_p13), %s3016_s14, 31 }
  0x96   : > { %s3570_s24 = smul.u32 (!%p912_p13), 704, %s918_s21  ;;  %p956_p1 = scmp.lt.s32.totalorder (!%p912_p13), %s3915_s16, 2 }
  0x97   : > { %s946_s10 = sand.u32 (!%p912_p13), 1, %s3899_s12  }
  0x98   : > { %s4392_s25 = scalar_lea.vmem (!%p912_p13), [#allocation2], %s3570_s24  ;;  %s3015_s11 = sshll.u32 (!%p912_p13), %s946_s10, 7 }
  0x99   : > { %v3645_v48 = vld [vmem:[%s4392_s25 + $0x40] sm:$0xff] (!%p912_p13)   ;;  %v3649_v52 = vld [vmem:[%s4392_s25 + $0x48] sm:$0xff] (!%p912_p13)   ;;  %v3653_v56 = vld [vmem:[%s4392_s25 + $0x50] sm:$0xff] (!%p912_p13)   ;;  %s4682_s21 = scalar_lea.vmem (!%p912_p13), [#allocation3], %s3015_s11 }
  0x9a   : > { %v3646_v49 = vld [vmem:[%s4392_s25] sm:$0xff] (!%p912_p13)   ;;  %3201 = vmatprep.subr.bf16.mxu0 (!%p912_p13), %v3645_v48  ;;  %v3650_v53 = vld [vmem:[%s4392_s25 + $0x8] sm:$0xff] (!%p912_p13)   ;;  %v3654_v57 = vld [vmem:[%s4392_s25 + $0x10] sm:$0xff] (!%p912_p13)  }
  0x9b   : > { %v3647_v50 = vld [vmem:[%s4392_s25 + $0xc0] sm:$0xff] (!%p912_p13)   ;;  %3202 = vmatpush3.bf16.msra.mxu0 (!%p912_p13), %v3646_v49  ;;  %v3651_v54 = vld [vmem:[%s4392_s25 + $0xc8] sm:$0xff] (!%p912_p13)   ;;  %v3655_v58 = vld [vmem:[%s4392_s25 + $0xd0] sm:$0xff] (!%p912_p13)  }
  0x9c   : > { %v3648_v51 = vld [vmem:[%s4392_s25 + $0x80] sm:$0xff]   ;;  %3265 = vmatprep.subr.bf16.mxu1 %v3647_v50  ;;  %3203 = vmatprep.subr.bf16.mxu0 %v3649_v52  ;;  %v3652_v55 = vld [vmem:[%s4392_s25 + $0x88] sm:$0xff]   ;;  %v3656_v59 = vld [vmem:[%s4392_s25 + $0x90] sm:$0xff]   ;;  %s4784_s14 = smov (!%p950_p0, %s3016_s14), 31  ;;  %s3572_s12 = smul.u32 (%p4020_p9), 48, %s3919_s17 }
  0x9d   : > { %3266 = vmatpush3.bf16.msra.mxu1 %v3648_v51  ;;  %v3657_v60 = vld [vmem:[%s4392_s25 + $0x58] sm:$0xff]   ;;  %v3661_v0 = vld [vmem:[%s4392_s25 + $0x60] sm:$0xff]   ;;  %v3665_v4 = vld [vmem:[%s4392_s25 + $0x68] sm:$0xff]   ;;  %s3571_s26 = smul.u32 44, %s4784_s14 }
  0x9e   : > { %3267 = vmatprep.subr.bf16.mxu1 %v3651_v54  ;;  %v3658_v61 = vld [vmem:[%s4392_s25 + $0x18] sm:$0xff]   ;;  %v3662_v1 = vld [vmem:[%s4392_s25 + $0x20] sm:$0xff]   ;;  %v3666_v5 = vld [vmem:[%s4392_s25 + $0x28] sm:$0xff]   ;;  %s957_s6 = scalar_select %p956_p1, %s3915_s16, 2 }
  0x9f   : > { %3204 = vmatpush3.bf16.msra.mxu0 %v3650_v53  ;;  %v3659_v62 = vld [vmem:[%s4392_s25 + $0xd8] sm:$0xff]   ;;  %v3663_v2 = vld [vmem:[%s4392_s25 + $0xe0] sm:$0xff]   ;;  %v3667_v6 = vld [vmem:[%s4392_s25 + $0xe8] sm:$0xff]   ;;  %s4427_s5 = scalar_lea.vmem %s4764_s0, %s3571_s26  ;;  %s2823_s30 = sadd.s32 (%p4020_p9), %s3915_s16, %s3572_s12 }
  0xa0   : > { %3205 = vmatprep.subr.bf16.mxu0 %v3653_v56  ;;  %v3660_v63 = vld [vmem:[%s4392_s25 + $0x98] sm:$0xff]   ;;  %v3664_v3 = vld [vmem:[%s4392_s25 + $0xa0] sm:$0xff]   ;;  %v3668_v7 = vld [vmem:[%s4392_s25 + $0xa8] sm:$0xff]   ;;  %s958_s9 = scalar_lea.vmem %s4766_s2, %s957_s6  ;;  %s3198_s24 = sshll.u32 (%p4020_p9), %s2823_s30, 3 }
  0xa1   : > { %3268 = vmatpush3.bf16.msra.mxu1 %v3652_v55  ;;  %v3669_v8 = vld [vmem:[%s4392_s25 + $0x70] sm:$0xff]   ;;  %v3673_v12 = vld [vmem:[%s4392_s25 + $0x78] sm:$0xff]   ;;  %v3676_v15 = vld [vmem:[%s4427_s5] ss:$44 sps:$4 sm:$0xff]   ;;  %s2825_s17 = scalar_lea.vmem (%p4020_p9), %s4767_s3, %s3198_s24 }
  0xa2   : > { %3269 = vmatprep.subr.bf16.mxu1 %v3655_v58  ;;  %v3670_v9 = vld [vmem:[%s4392_s25 + $0x30] sm:$0xff]   ;;  %v3674_v13 = vld [vmem:[%s4392_s25 + $0x38] sm:$0xff]   ;;  %v3680_v18 = vld [vmem:[%s4392_s25 + $0x140] sm:$0xff]  }
  0xa3   : > { %3206 = vmatpush3.bf16.msra.mxu0 %v3654_v57  ;;  %v3671_v10 = vld [vmem:[%s4392_s25 + $0xf0] sm:$0xff]   ;;  %v3675_v14 = vld [vmem:[%s4392_s25 + $0xf8] sm:$0xff]   ;;  %v3684_v21 = vld [vmem:[%s4392_s25 + $0x100] sm:$0xff]  }
  0xa4   : > { %3207 = vmatprep.subr.bf16.mxu0 %v3657_v60  ;;  %v3672_v11 = vld [vmem:[%s4392_s25 + $0xb0] sm:$0xff]   ;;  %v3679_v17 = vld [vmem:[%s4392_s25 + $0xb8] sm:$0xff]   ;;  %v3688_v24 = vld [vmem:[%s4392_s25 + $0x148] sm:$0xff]  }
  0xa5   : > { %3270 = vmatpush3.bf16.msra.mxu1 %v3656_v59  ;;  %v3678_v16 = vld [vmem:[%s4427_s5 + $0x4] ss:$44 sps:$4 sm:$0xff]   ;;  %v3681_v19 = vld [vmem:[%s4427_s5 + $0x8] ss:$44 sps:$4 sm:$0xff]   ;;  %v3683_v20 = vld [vmem:[%s4427_s5 + $0xc] ss:$44 sps:$4 sm:$0xff]  }
  0xa6   : > { %3271 = vmatprep.subr.bf16.mxu1 %v3659_v62  ;;  %2248 = vmatprep.mubr.bf16.mxu0 %v3678_v16  ;;  %v3685_v22 = vld [vmem:[%s4427_s5 + $0x5c] ss:$44 sps:$4 sm:$0xff]   ;;  %v3687_v23 = vld [vmem:[%s4427_s5 + $0x58] ss:$44 sps:$4 sm:$0xff]   ;;  %v3692_v27 = vld [vmem:[%s4427_s5 + $0x60] ss:$44 sps:$4 sm:$0xff]  }
  0xa7   : > { %3208 = vmatpush3.bf16.msra.mxu0 %v3658_v61  ;;  %2345 = vmatprep.mubr.bf16.mxu1 %v3683_v20  ;;  %v3689_v25 = vld [vmem:[%s4427_s5 + $0x64] ss:$44 sps:$4 sm:$0xff]   ;;  %v3691_v26 = vld [vmem:[%s4392_s25 + $0x108] sm:$0xff]   ;;  %v3693_v28 = vld [vmem:[%s4427_s5 + $0xb4] ss:$44 sps:$4 sm:$0xff]  }
  0xa8   : > { %3209 = vmatprep.subr.bf16.mxu0 %v3661_v0  ;;  %v3696_v29 = vld [vmem:[%s4392_s25 + $0x150] sm:$0xff]   ;;  %v3697_v30 = vld [vmem:[%s4427_s5 + $0xbc] ss:$44 sps:$4 sm:$0xff]   ;;  %v3701_v33 = vld [vmem:[%s4427_s5 + $0x10c] ss:$44 sps:$4 sm:$0xff]  }
  0xa9   : > { %3272 = vmatpush3.bf16.msra.mxu1 %v3660_v63  ;;  %v3699_v31 = vld [vmem:[%s4392_s25 + $0x110] sm:$0xff]   ;;  %v3704_v34 = vld [vmem:[%s4392_s25 + $0x158] sm:$0xff]   ;;  %v3712_v38 = vld [vmem:[%s4392_s25 + $0x160] sm:$0xff]  }
  0xaa   : > { %3273 = vmatprep.subr.bf16.mxu1 %v3663_v2  ;;  %v3695_v32 = vld [vmem:[%s4427_s5 + $0xb0] ss:$44 sps:$4 sm:$0xff]   ;;  %v3700_v35 = vld [vmem:[%s4427_s5 + $0xb8] ss:$44 sps:$4 sm:$0xff]   ;;  %v3705_v37 = vld [vmem:[%s4427_s5 + $0x114] ss:$44 sps:$4 sm:$0xff]  }
  0xab   : > { %3210 = vmatpush3.bf16.msra.mxu0 %v3662_v1  ;;  %v3707_v36 = vld [vmem:[%s4392_s25 + $0x118] sm:$0xff]   ;;  %v3703_v39 = vld [vmem:[%s4427_s5 + $0x108] ss:$44 sps:$4 sm:$0xff]   ;;  %v3715_v40 = vld [vmem:[%s4392_s25 + $0x120] sm:$0xff]  }
  0xac   : > { %3211 = vmatprep.subr.bf16.mxu0 %v3665_v4  ;;  %v3709_v41 = vld [vmem:[%s4427_s5 + $0x164] ss:$44 sps:$4 sm:$0xff]   ;;  %v3719_v45 = vld [vmem:[%s4392_s25 + $0x1c8] sm:$0xff]   ;;  %v3731_v55 = vld [vmem:[%s4392_s25 + $0x1d8] sm:$0xff]  }
  0xad   : > { %3274 = vmatpush3.bf16.msra.mxu1 %v3664_v3  ;;  %v3708_v42 = vld [vmem:[%s4427_s5 + $0x110] ss:$44 sps:$4 sm:$0xff]   ;;  %v3717_v43 = vld [vmem:[%s4392_s25 + $0x1c0] sm:$0xff]   ;;  %v3713_v46 = vld [vmem:[%s4427_s5 + $0x16c] ss:$44 sps:$4 sm:$0xff]  }
  0xae   : > { %3275 = vmatprep.subr.bf16.mxu1 %v3667_v6  ;;  %v3718_v44 = vld [vmem:[%s4392_s25 + $0x180] sm:$0xff]   ;;  %v3722_v47 = vld [vmem:[%s4392_s25 + $0x188] sm:$0xff]   ;;  %v3729_v53 = vld [vmem:[%s4392_s25 + $0x1d0] sm:$0xff]  }
  0xaf   : > { %3212 = vmatpush3.bf16.msra.mxu0 %v3666_v5  ;;  %v3724_v48 = vld [vmem:[%s4392_s25 + $0x168] sm:$0xff]   ;;  %v3730_v54 = vld [vmem:[%s4392_s25 + $0x190] sm:$0xff]   ;;  %v3734_v57 = vld [vmem:[%s4392_s25 + $0x198] sm:$0xff]  }
  0xb0   : > { %3213 = vmatprep.subr.bf16.mxu0 %v3669_v8  ;;  %v3711_v49 = vld [vmem:[%s4427_s5 + $0x160] ss:$44 sps:$4 sm:$0xff]   ;;  %v3720_v50 = vld [vmem:[%s4427_s5 + $0x1bc] ss:$44 sps:$4 sm:$0xff]   ;;  %v3725_v56 = vld [vmem:[%s4427_s5 + $0x1c4] ss:$44 sps:$4 sm:$0xff]  }
  0xb1   : > { %3276 = vmatpush3.bf16.msra.mxu1 %v3668_v7  ;;  %v3727_v51 = vld [vmem:[%s4392_s25 + $0x128] sm:$0xff]   ;;  %v3736_v58 = vld [vmem:[%s4392_s25 + $0x170] sm:$0xff]   ;;  %v3723_v59 = vld [vmem:[%s4427_s5 + $0x1b8] ss:$44 sps:$4 sm:$0xff]  }
  0xb2   : > { %3277 = vmatprep.subr.bf16.mxu1 %v3671_v10  ;;  %v3716_v52 = vld [vmem:[%s4427_s5 + $0x168] ss:$44 sps:$4 sm:$0xff]   ;;  %v3728_v60 = vld [vmem:[%s4427_s5 + $0x1c0] ss:$44 sps:$4 sm:$0xff]   ;;  %v3735_v3 = vld [vmem:[%s4427_s5 + $0x210] ss:$44 sps:$4 sm:$0xff]  }
  0xb3   : > { %3214 = vmatpush3.bf16.msra.mxu0 %v3670_v9  ;;  %v3732_v61 = vld [vmem:[%s4427_s5 + $0x214] ss:$44 sps:$4 sm:$0xff]   ;;  %v3737_v63 = vld [vmem:[%s4427_s5 + $0x21c] ss:$44 sps:$4 sm:$0xff]   ;;  %v3744_v6 = vld [vmem:[%s4427_s5 + $0x26c] ss:$44 sps:$4 sm:$0xff]  }
  0xb4   : > { %3215 = vmatprep.subr.bf16.mxu0 %v3673_v12  ;;  %v3739_v62 = vld [vmem:[%s4392_s25 + $0x130] sm:$0xff]   ;;  %v3741_v0 = vld [vmem:[%s4392_s25 + $0x1e0] sm:$0xff]   ;;  %v3743_v2 = vld [vmem:[%s4392_s25 + $0x1e8] sm:$0xff]  }
  0xb5   : > { %3278 = vmatpush3.bf16.msra.mxu1 %v3672_v11  ;;  %v3742_v1 = vld [vmem:[%s4392_s25 + $0x1a0] sm:$0xff]   ;;  %v3746_v4 = vld [vmem:[%s4392_s25 + $0x1a8] sm:$0xff]   ;;  %v3748_v5 = vld [vmem:[%s4392_s25 + $0x178] sm:$0xff]  }
  0xb6   : > { %3279 = vmatprep.subr.bf16.mxu1 %v3675_v14  ;;  %v3740_v7 = vld [vmem:[%s4427_s5 + $0x218] ss:$44 sps:$4 sm:$0xff]   ;;  %v3749_v9 = vld [vmem:[%s4427_s5 + $0x274] ss:$44 sps:$4 sm:$0xff]  }
  0xb7   : > { %3216 = vmatpush3.bf16.msra.mxu0 %v3674_v13  ;;  %v3751_v8 = vld [vmem:[%s4392_s25 + $0x138] sm:$0xff]   ;;  %v3753_v10 = vld [vmem:[%s4392_s25 + $0x1f0] sm:$0xff]   ;;  %v3764_v20 = vld [vmem:[%s4392_s25 + $0x200] sm:$0xff]  }
  0xb8   : > { %3329 = vmatprep.subr.bf16.mxu0 %v3680_v18  ;;  %v3754_v11 = vld [vmem:[%s4392_s25 + $0x1b0] sm:$0xff]   ;;  %v3755_v12 = vld [vmem:[%s4392_s25 + $0x1f8] sm:$0xff]  }
  0xb9   : > { %3280 = vmatpush3.bf16.msra.mxu1 %v3679_v17  ;;  %v3747_v13 = vld [vmem:[%s4427_s5 + $0x268] ss:$44 sps:$4 sm:$0xff]   ;;  %v3759_v14 = vld [vmem:[%s4392_s25 + $0x1b8] sm:$0xff]  }
  0xba   : > { %2249 = vmatmul.mubr.bf16.vlgmr.msra.gmra.mrb[0].mxu0 %v3676_v15  ;;  %3393 = vmatprep.subr.bf16.mxu1 %v3717_v43  ;;  %v3760_v15 = vld [vmem:[%s4392_s25 + $0x240] sm:$0xff]   ;;  %v3752_v17 = vld [vmem:[%s4427_s5 + $0x270] ss:$44 sps:$4 sm:$0xff]   ;;  %v3805_v43 = vld [vmem:[%s4392_s25 + $0x228] sm:$0xff]  }
  0xbb   : > { %3330 = vmatpush3.bf16.msra.mxu0 %v3684_v21  ;;  %2256 = vmatprep.mubr.bf16.mxu0 %v3685_v22  ;;  %v3758_v16 = vld [vmem:[%s4427_s5 + $0x14] ss:$44 sps:$4 sm:$0xff]   ;;  %v3763_v18 = vld [vmem:[%s4427_s5 + $0x1c] ss:$44 sps:$4 sm:$0xff]   ;;  %v3765_v21 = vld [vmem:[%s4427_s5 + $0x6c] ss:$44 sps:$4 sm:$0xff]  }
  0xbc   : > { %2346 = vmatmul.mubr.bf16.vlgmr.msra.gmra.mrb[0].mxu1 %v3681_v19  ;;  %3331 = vmatprep.subr.bf16.mxu0 %v3688_v24  ;;  %v3756_v19 = vld [vmem:[%s4427_s5 + $0x10] ss:$44 sps:$4 sm:$0xff]   ;;  %v3768_v22 = vld [vmem:[%s4392_s25 + $0x248] sm:$0xff]   ;;  %v3769_v24 = vld [vmem:[%s4427_s5 + $0x74] ss:$44 sps:$4 sm:$0xff]  }
  0xbd   : > { %2353 = vmatprep.mubr.bf16.mxu1 %v3689_v25  ;;  %3394 = vmatpush3.bf16.msra.mxu1 %v3718_v44  ;;  %v3771_v25 = vld [vmem:[%s4392_s25 + $0x208] sm:$0xff]   ;;  %v3807_v44 = vld [vmem:[%s4392_s25 + $0x290] sm:$0xff]  }
  0xbe   : > { %3395 = vmatprep.subr.bf16.mxu1 %v3719_v45  ;;  %v3783_v45 = vld [vmem:[%s4427_s5 + $0x118] ss:$44 sps:$4 sm:$0xff]  }
  0xbf   : > { %3332 = vmatpush3.bf16.msra.mxu0 %v3691_v26  ;;  %v3776_v26 = vld [vmem:[%s4392_s25 + $0x250] sm:$0xff]  }
  0xc0   : > { %3333 = vmatprep.subr.bf16.mxu0 %v3696_v29  ;;  %v3779_v29 = vld [vmem:[%s4392_s25 + $0x210] sm:$0xff]  }
  0xc1   : > { %3396 = vmatpush3.bf16.msra.mxu1 %v3722_v47  ;;  %v3812_v47 = vld [vmem:[%s4392_s25 + $0x298] sm:$0xff]  }
  0xc2   : > { %2257 = vmatmul.mubr.bf16.gmra.mrb[4].mxu0 %v3687_v23  ;;  %3397 = vmatprep.subr.bf16.mxu1 %v3729_v53  ;;  %v3761_v23 = vld [vmem:[%s4427_s5 + $0x18] ss:$44 sps:$4 sm:$0xff]  }
  0xc3   : > { %2264 = vmatprep.mubr.bf16.mxu0 %v3693_v28  ;;  %3334 = vmatpush3.bf16.msra.mxu0 %v3699_v31  ;;  %v3773_v28 = vld [vmem:[%s4427_s5 + $0xc4] ss:$44 sps:$4 sm:$0xff]   ;;  %v3821_v53 = vld [vmem:[%s4392_s25 + $0x278] sm:$0xff]  }
  0xc4   : > { %2354 = vmatmul.mubr.bf16.gmra.mrb[4].mxu1 %v3692_v27  ;;  %3335 = vmatprep.subr.bf16.mxu0 %v3704_v34  ;;  %v3767_v27 = vld [vmem:[%s4427_s5 + $0x68] ss:$44 sps:$4 sm:$0xff]   ;;  %v3772_v31 = vld [vmem:[%s4427_s5 + $0x70] ss:$44 sps:$4 sm:$0xff]   ;;  %v3792_v34 = vld [vmem:[%s4392_s25 + $0x260] sm:$0xff]  }
  0xc5   : > { %2361 = vmatprep.mubr.bf16.mxu1 %v3697_v30  ;;  %3398 = vmatpush3.bf16.msra.mxu1 %v3730_v54  ;;  %v3784_v30 = vld [vmem:[%s4392_s25 + $0x258] sm:$0xff]   ;;  %v3822_v54 = vld [vmem:[%s4392_s25 + $0x2a8] sm:$0xff]  }
  0xc6   : > { %3399 = vmatprep.subr.bf16.mxu1 %v3731_v55  ;;  %v3791_v55 = vld [vmem:[%s4427_s5 + $0x170] ss:$44 sps:$4 sm:$0xff]  }
  0xc7   : > { %3336 = vmatpush3.bf16.msra.mxu0 %v3707_v36  ;;  %v3775_v36 = vld [vmem:[%s4427_s5 + $0xc0] ss:$44 sps:$4 sm:$0xff]  }
  0xc8   : > { %3337 = vmatprep.subr.bf16.mxu0 %v3712_v38  ;;  %v3795_v38 = vld [vmem:[%s4392_s25 + $0x220] sm:$0xff]  }
  0xc9   : > { %3400 = vmatpush3.bf16.msra.mxu1 %v3734_v57  ;;  %v3825_v57 = vld [vmem:[%s4392_s25 + $0x238] sm:$0xff]  }
  0xca   : > { %2265 = vmatmul.mubr.bf16.gmra.mrb[8].mxu0 %v3695_v32  ;;  %3401 = vmatprep.subr.bf16.mxu1 %v3741_v0  ;;  %v3777_v32 = vld [vmem:[%s4427_s5 + $0xcc] ss:$44 sps:$4 sm:$0xff]   ;;  %v3806_v0 = vld [vmem:[%s4427_s5 + $0x1d0] ss:$44 sps:$4 sm:$0xff]  }
  0xcb   : > { %2272 = vmatprep.mubr.bf16.mxu0 %v3701_v33  ;;  %3338 = vmatpush3.bf16.msra.mxu0 %v3715_v40  ;;  %v3787_v33 = vld [vmem:[%s4392_s25 + $0x218] sm:$0xff]   ;;  %v3802_v40 = vld [vmem:[%s4392_s25 + $0x288] sm:$0xff]  }
  0xcc   : > { %2362 = vmatmul.mubr.bf16.gmra.mrb[8].mxu1 %v3700_v35  ;;  %3339 = vmatprep.subr.bf16.mxu0 %v3724_v48  ;;  %v3797_v35 = vld [vmem:[%s4392_s25 + $0x280] sm:$0xff]  }
  0xcd   : > { %2369 = vmatprep.mubr.bf16.mxu1 %v3705_v37  ;;  %3402 = vmatpush3.bf16.msra.mxu1 %v3742_v1  ;;  %v3781_v37 = vld [vmem:[%s4427_s5 + $0x11c] ss:$44 sps:$4 sm:$0xff]   ;;  %v3789_v48 = vld [vmem:[%s4427_s5 + $0x174] ss:$44 sps:$4 sm:$0xff]   ;;  %v3813_v1 = vld [vmem:[%s4427_s5 + $0x22c] ss:$44 sps:$4 sm:$0xff]  }
  0xce   : > { %3403 = vmatprep.subr.bf16.mxu1 %v3743_v2  ;;  %v3810_v2 = vld [vmem:[%s4427_s5 + $0x220] ss:$44 sps:$4 sm:$0xff]  }
  0xcf   : > { %3340 = vmatpush3.bf16.msra.mxu0 %v3727_v51  ;;  %v3817_v51 = vld [vmem:[%s4392_s25 + $0x2a0] sm:$0xff]  }
  0xd0   : > { %3341 = vmatprep.subr.bf16.mxu0 %v3736_v58  ;;  %v3796_v58 = vld [vmem:[%s4427_s5 + $0x178] ss:$44 sps:$4 sm:$0xff]  }
  0xd1   : > { %3404 = vmatpush3.bf16.msra.mxu1 %v3746_v4  ;;  %v3816_v4 = vld [vmem:[%s4427_s5 + $0x228] ss:$44 sps:$4 sm:$0xff]  }
  0xd2   : > { %2273 = vmatmul.mubr.bf16.gmra.mrb[12].mxu0 %v3703_v39  ;;  %3405 = vmatprep.subr.bf16.mxu1 %v3753_v10  ;;  %v3780_v39 = vld [vmem:[%s4427_s5 + $0xc8] ss:$44 sps:$4 sm:$0xff]   ;;  %v3828_v10 = vld [vmem:[%s4427_s5 + $0x20] ss:$44 sps:$4 sm:$0xff]  }
  0xd3   : > { %2280 = vmatprep.mubr.bf16.mxu0 %v3709_v41  ;;  %3342 = vmatpush3.bf16.msra.mxu0 %v3739_v62  ;;  %v3801_v41 = vld [vmem:[%s4392_s25 + $0x268] sm:$0xff]  }
  0xd4   : > { %2370 = vmatmul.mubr.bf16.gmra.mrb[12].mxu1 %v3708_v42  ;;  %3343 = vmatprep.subr.bf16.mxu0 %v3748_v5  ;;  %v3785_v42 = vld [vmem:[%s4427_s5 + $0x124] ss:$44 sps:$4 sm:$0xff]   ;;  %v3800_v62 = vld [vmem:[%s4427_s5 + $0x1c8] ss:$44 sps:$4 sm:$0xff]  }
  0xd5   : > { %2377 = vmatprep.mubr.bf16.mxu1 %v3713_v46  ;;  %3406 = vmatpush3.bf16.msra.mxu1 %v3754_v11  ;;  %v3811_v46 = vld [vmem:[%s4392_s25 + $0x270] sm:$0xff]   ;;  %v3834_v11 = vld [vmem:[%s4427_s5 + $0x7c] ss:$44 sps:$4 sm:$0xff]  }
  0xd6   : > { %3407 = vmatprep.subr.bf16.mxu1 %v3755_v12  ;;  %v3823_v5 = vld [vmem:[%s4427_s5 + $0x284] ss:$44 sps:$4 sm:$0xff]   ;;  %v3833_v12 = vld [vmem:[%s4427_s5 + $0x80] ss:$44 sps:$4 sm:$0xff]  }
  0xd7   : > { %3344 = vmatpush3.bf16.msra.mxu0 %v3751_v8  ;;  %v3826_v8 = vld [vmem:[%s4427_s5 + $0x280] ss:$44 sps:$4 sm:$0xff]  }
  0xd8   : > { %3457 = vmatprep.subr.bf16.mxu0 %v3760_v15  ;;  %v3837_v15 = vld [vmem:[%s4427_s5 + $0xd4] ss:$44 sps:$4 sm:$0xff]  }
  0xd9   : > { %3408 = vmatpush3.bf16.msra.mxu1 %v3759_v14  ;;  %v3836_v14 = vld [vmem:[%s4427_s5 + $0x78] ss:$44 sps:$4 sm:$0xff]  }
  0xda   : > { %2281 = vmatmul.mubr.bf16.gmra.mrb[16].mxu0 %v3711_v49  ;;  %3537 = vmatprep.subr.bf16.mxu1 %v3797_v35  ;;  %v3788_v49 = vld [vmem:[%s4427_s5 + $0x120] ss:$44 sps:$4 sm:$0xff]  }
  0xdb   : > { %2288 = vmatprep.mubr.bf16.mxu0 %v3720_v50  ;;  %v3815_v50 = vld [vmem:[%s4392_s25 + $0x230] sm:$0xff]  }
  0xdc   : > { %2378 = vmatmul.mubr.bf16.gmra.mrb[16].mxu1 %v3716_v52  ;;  %v3793_v52 = vld [vmem:[%s4427_s5 + $0x17c] ss:$44 sps:$4 sm:$0xff]  }
  0xdd   : > { %2385 = vmatprep.mubr.bf16.mxu1 %v3725_v56  ;;  %v3798_v56 = vld [vmem:[%s4427_s5 + $0x1cc] ss:$44 sps:$4 sm:$0xff]  }
  0xe2   : > { %2289 = vmatmul.mubr.bf16.gmra.mrb[20].mxu0 %v3723_v59  ;;  %v3827_v59 = vld [vmem:[%s4392_s25 + $0x2b0] sm:$0xff]  }
  0xe3   : > { %2296 = vmatprep.mubr.bf16.mxu0 %v3732_v61  ;;  %v3831_v61 = vld [vmem:[%s4392_s25 + $0x2b8] sm:$0xff]  }
  0xe4   : > { %2386 = vmatmul.mubr.bf16.gmra.mrb[20].mxu1 %v3728_v60  ;;  %v3803_v60 = vld [vmem:[%s4427_s5 + $0x1d4] ss:$44 sps:$4 sm:$0xff]  }
  0xe5   : > { %2393 = vmatprep.mubr.bf16.mxu1 %v3737_v63  ;;  %v3808_v63 = vld [vmem:[%s4427_s5 + $0x224] ss:$44 sps:$4 sm:$0xff]  }
  0xea   : > { %2297 = vmatmul.mubr.bf16.gmra.mrb[24].mxu0 %v3735_v3  ;;  %v3818_v3 = vld [vmem:[%s4427_s5 + $0x27c] ss:$44 sps:$4 sm:$0xff]  }
  0xeb   : > { %2304 = vmatprep.mubr.bf16.mxu0 %v3744_v6  ;;  %v3820_v6 = vld [vmem:[%s4427_s5 + $0x278] ss:$44 sps:$4 sm:$0xff]  }
  0xec   : > { %2394 = vmatmul.mubr.bf16.gmra.mrb[24].mxu1 %v3740_v7  ;;  %v3830_v7 = vld [vmem:[%s4427_s5 + $0x24] ss:$44 sps:$4 sm:$0xff]  }
  0xed   : > { %2401 = vmatprep.mubr.bf16.mxu1 %v3749_v9  ;;  %v3832_v9 = vld [vmem:[%s4427_s5 + $0x28] ss:$44 sps:$4 sm:$0xff]  }
  0xf2   : > { %2305 = vmatmul.mubr.bf16.gmra.mrb[28].mxu0 %v3747_v13  ;;  %v3840_v13 = vld [vmem:[%s4427_s5 + $0xd8] ss:$44 sps:$4 sm:$0xff]  }
  0xf3   : > { %2442 = vmatprep.mubr.bf16.mxu0 %v3758_v16  ;;  %v3841_v16 = vld [vmem:[%s4427_s5 + $0x130] ss:$44 sps:$4 sm:$0xff]  }
  0xf4   : > { %2402 = vmatmul.mubr.bf16.gmra.mrb[28].mxu1 %v3752_v17  ;;  %v3848_v17 = vld [vmem:[%s4427_s5 + $0x188] ss:$44 sps:$4 sm:$0xff]  }
  0xf5   : > { %2539 = vmatprep.mubr.bf16.mxu1 %v3763_v18  ;;  %v3839_v18 = vld [vmem:[%s4427_s5 + $0xd0] ss:$44 sps:$4 sm:$0xff]  }
  0xfa   : > { %2443 = vmatmul.mubr.bf16.vlgmr.msra.gmra.mrb[32].mxu0 %v3756_v19  ;;  %v3842_v19 = vld [vmem:[%s4427_s5 + $0x12c] ss:$44 sps:$4 sm:$0xff]  }
  0xfb   : > { %3458 = vmatpush3.bf16.msra.mxu0 %v3764_v20  ;;  %2450 = vmatprep.mubr.bf16.mxu0 %v3765_v21  ;;  %v3849_v20 = vld [vmem:[%s4427_s5 + $0x1e0] ss:$44 sps:$4 sm:$0xff]   ;;  %v3856_v21 = vld [vmem:[%s4427_s5 + $0x238] ss:$44 sps:$4 sm:$0xff]  }
  0xfc   : > { %3459 = vmatprep.subr.bf16.mxu0 %v3768_v22  ;;  %2540 = vmatmul.mubr.bf16.vlgmr.msra.gmra.mrb[32].mxu1 %v3761_v23  ;;  %v3844_v22 = vld [vmem:[%s4427_s5 + $0x128] ss:$44 sps:$4 sm:$0xff]   ;;  %v3845_v23 = vld [vmem:[%s4427_s5 + $0x184] ss:$44 sps:$4 sm:$0xff]  }
  0xfd   : > { %2547 = vmatprep.mubr.bf16.mxu1 %v3769_v24  ;;  %3538 = vmatpush3.bf16.msra.mxu1 %v3797_v35  ;;  %v3857_v24 = vld [vmem:[%s4427_s5 + $0x290] ss:$44 sps:$4 sm:$0xff]  }
  0xfe   : > { %3539 = vmatprep.subr.bf16.mxu1 %v3802_v40 }
  0xff   : > { %3460 = vmatpush3.bf16.msra.mxu0 %v3771_v25  ;;  %v3847_v25 = vld [vmem:[%s4427_s5 + $0x180] ss:$44 sps:$4 sm:$0xff]  }
 0x100   : > { %3461 = vmatprep.subr.bf16.mxu0 %v3776_v26  ;;  %v3850_v26 = vld [vmem:[%s4427_s5 + $0x1dc] ss:$44 sps:$4 sm:$0xff]  }
 0x101   : > { %3540 = vmatpush3.bf16.msra.mxu1 %v3802_v40 }
 0x102   : > { %2451 = vmatmul.mubr.bf16.gmra.mrb[36].mxu0 %v3767_v27  ;;  %3541 = vmatprep.subr.bf16.mxu1 %v3807_v44  ;;  %v3852_v27 = vld [vmem:[%s4427_s5 + $0x1d8] ss:$44 sps:$4 sm:$0xff]  }
 0x103   : > { %2458 = vmatprep.mubr.bf16.mxu0 %v3773_v28  ;;  %3462 = vmatpush3.bf16.msra.mxu0 %v3779_v29  ;;  %v3853_v28 = vld [vmem:[%s4427_s5 + $0x234] ss:$44 sps:$4 sm:$0xff]   ;;  %v3855_v29 = vld [vmem:[%s4427_s5 + $0x230] ss:$44 sps:$4 sm:$0xff]  }
 0x104   : > { %3463 = vmatprep.subr.bf16.mxu0 %v3784_v30  ;;  %2548 = vmatmul.mubr.bf16.gmra.mrb[36].mxu1 %v3772_v31  ;;  %v3858_v30 = vld [vmem:[%s4427_s5 + $0x28c] ss:$44 sps:$4 sm:$0xff]   ;;  %v3860_v31 = vld [vmem:[%s4427_s5 + $0x288] ss:$44 sps:$4 sm:$0xff]  }
 0x105   : > { %2555 = vmatprep.mubr.bf16.mxu1 %v3777_v32  ;;  %3542 = vmatpush3.bf16.msra.mxu1 %v3807_v44 }
 0x106   : > { %3543 = vmatprep.subr.bf16.mxu1 %v3812_v47 }
 0x107   : > { %3464 = vmatpush3.bf16.msra.mxu0 %v3787_v33  ;;  %v4581_v33 = vld [vmem:[%s958_s9] ss:$0 sm:$0xff] }
 0x108   : > { %3465 = vmatprep.subr.bf16.mxu0 %v3792_v34 }
 0x109   : > { %3544 = vmatpush3.bf16.msra.mxu1 %v3812_v47 }
 0x10a   : > { %2459 = vmatmul.mubr.bf16.gmra.mrb[40].mxu0 %v3775_v36  ;;  %3545 = vmatprep.subr.bf16.mxu1 %v3817_v51 }
 0x10b   : > { %2466 = vmatprep.mubr.bf16.mxu0 %v3781_v37  ;;  %3466 = vmatpush3.bf16.msra.mxu0 %v3795_v38 }
 0x10c   : > { %3467 = vmatprep.subr.bf16.mxu0 %v3801_v41  ;;  %2556 = vmatmul.mubr.bf16.gmra.mrb[40].mxu1 %v3780_v39 }
 0x10d   : > { %2563 = vmatprep.mubr.bf16.mxu1 %v3785_v42  ;;  %3546 = vmatpush3.bf16.msra.mxu1 %v3817_v51 }
 0x10e   : > { %3547 = vmatprep.subr.bf16.mxu1 %v3822_v54 }
 0x10f   : > { %3468 = vmatpush3.bf16.msra.mxu0 %v3805_v43 }
 0x110   : > { %3469 = vmatprep.subr.bf16.mxu0 %v3811_v46 }
 0x111   : > { %3548 = vmatpush3.bf16.msra.mxu1 %v3822_v54 }
 0x112   : > { %2467 = vmatmul.mubr.bf16.gmra.mrb[44].mxu0 %v3783_v45  ;;  %3549 = vmatprep.subr.bf16.mxu1 %v3827_v59 }
 0x113   : > { %2474 = vmatprep.mubr.bf16.mxu0 %v3789_v48  ;;  %3470 = vmatpush3.bf16.msra.mxu0 %v3815_v50 }
 0x114   : > { %2564 = vmatmul.mubr.bf16.gmra.mrb[44].mxu1 %v3788_v49  ;;  %3471 = vmatprep.subr.bf16.mxu0 %v3821_v53 }
 0x115   : > { %2571 = vmatprep.mubr.bf16.mxu1 %v3793_v52  ;;  %3550 = vmatpush3.bf16.msra.mxu1 %v3827_v59 }
 0x116   : > { %3551 = vmatprep.subr.bf16.mxu1 %v3831_v61 }
 0x117   : > { %3472 = vmatpush3.bf16.msra.mxu0 %v3825_v57 }
 0x119   : > { %3552 = vmatpush3.bf16.msra.mxu1 %v3831_v61 }
 0x11a   : > { %2475 = vmatmul.mubr.bf16.gmra.mrb[48].mxu0 %v3791_v55 }
 0x11b   : > { %2482 = vmatprep.mubr.bf16.mxu0 %v3798_v56 }
 0x11c   : > { %2572 = vmatmul.mubr.bf16.gmra.mrb[48].mxu1 %v3796_v58 }
 0x11d   : > { %2579 = vmatprep.mubr.bf16.mxu1 %v3803_v60 }
 0x122   : > { %2483 = vmatmul.mubr.bf16.gmra.mrb[52].mxu0 %v3800_v62 }
 0x123   : > { %2490 = vmatprep.mubr.bf16.mxu0 %v3808_v63 }
 0x124   : > { %2580 = vmatmul.mubr.bf16.gmra.mrb[52].mxu1 %v3806_v0 }
 0x125   : > { %2587 = vmatprep.mubr.bf16.mxu1 %v3813_v1 }
 0x12a   : > { %2491 = vmatmul.mubr.bf16.gmra.mrb[56].mxu0 %v3810_v2 }
 0x12b   : > { %2498 = vmatprep.mubr.bf16.mxu0 %v3818_v3 }
 0x12c   : > { %2588 = vmatmul.mubr.bf16.gmra.mrb[56].mxu1 %v3816_v4 }
 0x12d   : > { %2595 = vmatprep.mubr.bf16.mxu1 %v3823_v5 }
 0x132   : > { %2499 = vmatmul.mubr.bf16.gmra.mrb[60].mxu0 %v3820_v6 }
 0x133   : > { %2636 = vmatprep.mubr.bf16.mxu0 %v3830_v7 }
 0x134   : > { %2596 = vmatmul.mubr.bf16.gmra.mrb[60].mxu1 %v3826_v8 }
 0x135   : > { %3553 = vmatprep.mubr.bf16.mxu1 %v3832_v9 }
 0x13a   : > { %2637 = vmatmul.mubr.bf16.vlgmr.msra.gmra.mrb[64].mxu0 %v3828_v10 }
 0x13b   : > { %2644 = vmatprep.mubr.bf16.mxu0 %v3834_v11 }
 0x13c   : > { %3554 = vmatmul.mubr.bf16.vlgmr.msra.gmra.mrb[64].mxu1 %v3833_v12 }
 0x13d   : > { %3557 = vmatprep.mubr.bf16.mxu1 %v3840_v13 }
 0x142   : > { %2645 = vmatmul.mubr.bf16.gmra.mrb[68].mxu0 %v3836_v14 }
 0x143   : > { %2652 = vmatprep.mubr.bf16.mxu0 %v3837_v15 }
 0x144   : > { %3558 = vmatmul.mubr.bf16.gmra.mrb[68].mxu1 %v3841_v16 }
 0x145   : > { %3561 = vmatprep.mubr.bf16.mxu1 %v3848_v17 }
 0x14a   : > { %2653 = vmatmul.mubr.bf16.gmra.mrb[72].mxu0 %v3839_v18 }
 0x14b   : > { %2660 = vmatprep.mubr.bf16.mxu0 %v3842_v19 }
 0x14c   : > { %3562 = vmatmul.mubr.bf16.gmra.mrb[72].mxu1 %v3849_v20 }
 0x14d   : > { %3565 = vmatprep.mubr.bf16.mxu1 %v3856_v21 }
 0x152   : > { %2661 = vmatmul.mubr.bf16.gmra.mrb[76].mxu0 %v3844_v22 }
 0x153   : > { %2668 = vmatprep.mubr.bf16.mxu0 %v3845_v23 }
 0x154   : > { %3566 = vmatmul.mubr.bf16.gmra.mrb[76].mxu1 %v3857_v24 }
 0x15a   : > { %2669 = vmatmul.mubr.bf16.gmra.mrb[80].mxu0 %v3847_v25 }
 0x15b   : > { %2676 = vmatprep.mubr.bf16.mxu0 %v3850_v26 }
 0x162   : > { %2677 = vmatmul.mubr.bf16.gmra.mrb[84].mxu0 %v3852_v27 }
 0x163   : > { %2684 = vmatprep.mubr.bf16.mxu0 %v3853_v28 }
 0x16a   : > { %2685 = vmatmul.mubr.bf16.gmra.mrb[88].mxu0 %v3855_v29 }
 0x16b   : > { %2692 = vmatprep.mubr.bf16.mxu0 %v3858_v30 }
 0x172   : > { %2693 = vmatmul.mubr.bf16.gmra.mrb[92].mxu0 %v3860_v31 }
 0x18d   : > { %v3217_v32 = vpop.f32.mrb[0].mxu0 }
 0x18e   : > { %v3218_v34 = vpop.f32.mrb[1].mxu0 }
 0x18f   : > { %v3219_v35 = vadd.f32 %v3218_v34, %v3217_v32  ;;  %v3220_v36 = vpop.f32.mrb[2].mxu0  ;;  %v3281_v37 = vpop.f32.mrb[0].mxu1 }
 0x190   : > { %v3221_v38 = vpop.f32.mrb[3].mxu0  ;;  %v3282_v41 = vpop.f32.mrb[1].mxu1 }
 0x191   : > { %v2251_v39 = vadd.f32 %v3219_v35, %v4581_v33  ;;  %v3222_v40 = vadd.f32 %v3221_v38, %v3220_v36  ;;  %v3283_v42 = vadd.f32 %v3282_v41, %v3281_v37  ;;  %v3284_v43 = vpop.f32.mrb[2].mxu1 }
 0x192   : > { %v3285_v45 = vpop.f32.mrb[3].mxu1 }
 0x193   : > { %v2254_v44 = vadd.f32 %v3222_v40, %v4581_v33  ;;  %v4585_v46 = vadd.f32 %v3283_v42, %v2251_v39  ;;  %v3286_v47 = vadd.f32 %v3285_v45, %v3284_v43 }
 0x195   : > { %v3223_v48 = vpop.f32.mrb[4].mxu0  ;;  %v4587_v49 = vadd.f32 %v3286_v47, %v2254_v44 }
 0x196   : > { %v3224_v50 = vpop.f32.mrb[5].mxu0 }
 0x197   : > { %v3225_v51 = vadd.f32 %v3224_v50, %v3223_v48  ;;  %v3226_v52 = vpop.f32.mrb[6].mxu0  ;;  %v3287_v53 = vpop.f32.mrb[4].mxu1 }
 0x198   : > { %v3227_v54 = vpop.f32.mrb[7].mxu0  ;;  %v3288_v57 = vpop.f32.mrb[5].mxu1 }
 0x199   : > { %v2259_v55 = vadd.f32 %v3225_v51, %v4581_v33  ;;  %v3228_v56 = vadd.f32 %v3227_v54, %v3226_v52  ;;  %v3289_v58 = vadd.f32 %v3288_v57, %v3287_v53  ;;  %v3290_v59 = vpop.f32.mrb[6].mxu1 }
 0x19a   : > { %v3291_v61 = vpop.f32.mrb[7].mxu1 }
 0x19b   : > { %v2262_v60 = vadd.f32 %v3228_v56, %v4581_v33  ;;  %v4591_v62 = vadd.f32 %v3289_v58, %v2259_v55  ;;  %v3292_v63 = vadd.f32 %v3291_v61, %v3290_v59 }
 0x19d   : > { %v3229_v0 = vpop.f32.mrb[8].mxu0  ;;  %v4593_v1 = vadd.f32 %v3292_v63, %v2262_v60 }
 0x19e   : > { %v3230_v2 = vpop.f32.mrb[9].mxu0 }
 0x19f   : > { %v3231_v3 = vadd.f32 %v3230_v2, %v3229_v0  ;;  %v3232_v4 = vpop.f32.mrb[10].mxu0  ;;  %v3293_v5 = vpop.f32.mrb[8].mxu1 }
 0x1a0   : > { %v3233_v6 = vpop.f32.mrb[11].mxu0  ;;  %v3294_v9 = vpop.f32.mrb[9].mxu1 }
 0x1a1   : > { %v2267_v7 = vadd.f32 %v3231_v3, %v4581_v33  ;;  %v3234_v8 = vadd.f32 %v3233_v6, %v3232_v4  ;;  %v3295_v10 = vadd.f32 %v3294_v9, %v3293_v5  ;;  %v3296_v11 = vpop.f32.mrb[10].mxu1 }
 0x1a2   : > { %v3297_v13 = vpop.f32.mrb[11].mxu1 }
 0x1a3   : > { %v2270_v12 = vadd.f32 %v3234_v8, %v4581_v33  ;;  %v4597_v14 = vadd.f32 %v3295_v10, %v2267_v7  ;;  %v3298_v15 = vadd.f32 %v3297_v13, %v3296_v11 }
 0x1a5   : > { %v3235_v16 = vpop.f32.mrb[12].mxu0  ;;  %v4599_v17 = vadd.f32 %v3298_v15, %v2270_v12 }
 0x1a6   : > { %v3236_v18 = vpop.f32.mrb[13].mxu0 }
 0x1a7   : > { %v3237_v19 = vadd.f32 %v3236_v18, %v3235_v16  ;;  %v3238_v20 = vpop.f32.mrb[14].mxu0  ;;  %v3299_v21 = vpop.f32.mrb[12].mxu1 }
 0x1a8   : > { %v3239_v22 = vpop.f32.mrb[15].mxu0  ;;  %v3300_v25 = vpop.f32.mrb[13].mxu1 }
 0x1a9   : > { %v2275_v23 = vadd.f32 %v3237_v19, %v4581_v33  ;;  %v3240_v24 = vadd.f32 %v3239_v22, %v3238_v20  ;;  %v3301_v26 = vadd.f32 %v3300_v25, %v3299_v21  ;;  %v3302_v27 = vpop.f32.mrb[14].mxu1 }
 0x1aa   : > { %v3303_v29 = vpop.f32.mrb[15].mxu1 }
 0x1ab   : > { %v2278_v28 = vadd.f32 %v3240_v24, %v4581_v33  ;;  %v4603_v30 = vadd.f32 %v3301_v26, %v2275_v23  ;;  %v3304_v31 = vadd.f32 %v3303_v29, %v3302_v27 }
 0x1ad   : > { %v3241_v32 = vpop.f32.mrb[16].mxu0  ;;  %v4605_v34 = vadd.f32 %v3304_v31, %v2278_v28 }
 0x1ae   : > { %v3242_v35 = vpop.f32.mrb[17].mxu0 }
 0x1af   : > { %v3243_v36 = vadd.f32 %v3242_v35, %v3241_v32  ;;  %v3244_v37 = vpop.f32.mrb[18].mxu0  ;;  %v3305_v38 = vpop.f32.mrb[16].mxu1 }
 0x1b0   : > { %v3245_v39 = vpop.f32.mrb[19].mxu0  ;;  %v3306_v42 = vpop.f32.mrb[17].mxu1 }
 0x1b1   : > { %v2283_v40 = vadd.f32 %v3243_v36, %v4581_v33  ;;  %v3246_v41 = vadd.f32 %v3245_v39, %v3244_v37  ;;  %v3307_v43 = vadd.f32 %v3306_v42, %v3305_v38  ;;  %v3308_v44 = vpop.f32.mrb[18].mxu1 }
 0x1b2   : > { %v3309_v47 = vpop.f32.mrb[19].mxu1 }
 0x1b3   : > { %v2286_v45 = vadd.f32 %v3246_v41, %v4581_v33  ;;  %v4609_v48 = vadd.f32 %v3307_v43, %v2283_v40  ;;  %v3310_v50 = vadd.f32 %v3309_v47, %v3308_v44 }
 0x1b5   : > { %v3247_v51 = vpop.f32.mrb[20].mxu0  ;;  %v4611_v52 = vadd.f32 %v3310_v50, %v2286_v45 }
 0x1b6   : > { %v3248_v53 = vpop.f32.mrb[21].mxu0 }
 0x1b7   : > { %v3249_v54 = vadd.f32 %v3248_v53, %v3247_v51  ;;  %v3250_v55 = vpop.f32.mrb[22].mxu0  ;;  %v3311_v56 = vpop.f32.mrb[20].mxu1 }
 0x1b8   : > { %v3251_v57 = vpop.f32.mrb[23].mxu0  ;;  %v3312_v60 = vpop.f32.mrb[21].mxu1 }
 0x1b9   : > { %v2291_v58 = vadd.f32 %v3249_v54, %v4581_v33  ;;  %v3252_v59 = vadd.f32 %v3251_v57, %v3250_v55  ;;  %v3313_v61 = vadd.f32 %v3312_v60, %v3311_v56  ;;  %v3314_v63 = vpop.f32.mrb[22].mxu1 }
 0x1ba   : > { %v3315_v2 = vpop.f32.mrb[23].mxu1 }
 0x1bb   : > { %v2294_v0 = vadd.f32 %v3252_v59, %v4581_v33  ;;  %v4615_v3 = vadd.f32 %v3313_v61, %v2291_v58  ;;  %v3316_v4 = vadd.f32 %v3315_v2, %v3314_v63 }
 0x1bd   : > { %v3253_v5 = vpop.f32.mrb[24].mxu0  ;;  %v4617_v6 = vadd.f32 %v3316_v4, %v2294_v0 }
 0x1be   : > { %v3254_v7 = vpop.f32.mrb[25].mxu0 }
 0x1bf   : > { %v3255_v8 = vadd.f32 %v3254_v7, %v3253_v5  ;;  %v3256_v9 = vpop.f32.mrb[26].mxu0  ;;  %v3317_v10 = vpop.f32.mrb[24].mxu1 }
 0x1c0   : > { %v3257_v11 = vpop.f32.mrb[27].mxu0  ;;  %v3318_v15 = vpop.f32.mrb[25].mxu1 }
 0x1c1   : > { %v2299_v12 = vadd.f32 %v3255_v8, %v4581_v33  ;;  %v3258_v13 = vadd.f32 %v3257_v11, %v3256_v9  ;;  %v3319_v16 = vadd.f32 %v3318_v15, %v3317_v10  ;;  %v3320_v18 = vpop.f32.mrb[26].mxu1 }
 0x1c2   : > { %v3321_v20 = vpop.f32.mrb[27].mxu1 }
 0x1c3   : > { %v2302_v19 = vadd.f32 %v3258_v13, %v4581_v33  ;;  %v4621_v21 = vadd.f32 %v3319_v16, %v2299_v12  ;;  %v3322_v22 = vadd.f32 %v3321_v20, %v3320_v18 }
 0x1c5   : > { %v3259_v23 = vpop.f32.mrb[28].mxu0  ;;  %v4623_v24 = vadd.f32 %v3322_v22, %v2302_v19 }
 0x1c6   : > { %v3260_v25 = vpop.f32.mrb[29].mxu0 }
 0x1c7   : > { %v3261_v26 = vadd.f32 %v3260_v25, %v3259_v23  ;;  %v3262_v27 = vpop.f32.mrb[30].mxu0  ;;  %v3323_v28 = vpop.f32.mrb[28].mxu1 }
 0x1c8   : > { %v3263_v29 = vpop.f32.mrb[31].mxu0  ;;  %v3324_v35 = vpop.f32.mrb[29].mxu1 }
 0x1c9   : > { %v2307_v31 = vadd.f32 %v3261_v26, %v4581_v33  ;;  %v3264_v32 = vadd.f32 %v3263_v29, %v3262_v27  ;;  %v3325_v36 = vadd.f32 %v3324_v35, %v3323_v28  ;;  %v3326_v37 = vpop.f32.mrb[30].mxu1 }
 0x1ca   : > { %v3327_v39 = vpop.f32.mrb[31].mxu1 }
 0x1cb   : > { %v2310_v38 = vadd.f32 %v3264_v32, %v4581_v33  ;;  %v4627_v40 = vadd.f32 %v3325_v36, %v2307_v31  ;;  %v3328_v41 = vadd.f32 %v3327_v39, %v3326_v37 }
 0x1cd   : > { %v3345_v42 = vpop.f32.mrb[32].mxu0  ;;  %v4629_v43 = vadd.f32 %v3328_v41, %v2310_v38 }
 0x1ce   : > { %v3346_v44 = vpop.f32.mrb[33].mxu0 }
 0x1cf   : > { %v3347_v45 = vadd.f32 %v3346_v44, %v3345_v42  ;;  %v3348_v47 = vpop.f32.mrb[34].mxu0  ;;  %v3409_v50 = vpop.f32.mrb[32].mxu1 }
 0x1d0   : > { %v3349_v51 = vpop.f32.mrb[35].mxu0  ;;  %v3410_v55 = vpop.f32.mrb[33].mxu1 }
 0x1d1   : > { %v2445_v53 = vadd.f32 %v3347_v45, %v4585_v46  ;;  %v3350_v54 = vadd.f32 %v3349_v51, %v3348_v47  ;;  %v3411_v56 = vadd.f32 %v3410_v55, %v3409_v50  ;;  %v3412_v57 = vpop.f32.mrb[34].mxu1 }
 0x1d2   : > { %v3413_v58 = vpop.f32.mrb[35].mxu1 }
 0x1d3   : > { %v2448_v33 = vadd.f32 %v3350_v54, %v4587_v49  ;;  %v4633_v59 = vadd.f32 %v3411_v56, %v2445_v53  ;;  %v3414_v60 = vadd.f32 %v3413_v58, %v3412_v57 }
 0x1d5   : > { %v3351_v61 = vpop.f32.mrb[36].mxu0  ;;  %v4635_v63 = vadd.f32 %v3414_v60, %v2448_v33 }
 0x1d6   : > { %v3352_v0 = vpop.f32.mrb[37].mxu0 }
 0x1d7   : > { %v3353_v2 = vadd.f32 %v3352_v0, %v3351_v61  ;;  %v3354_v4 = vpop.f32.mrb[38].mxu0  ;;  %v3415_v5 = vpop.f32.mrb[36].mxu1 }
 0x1d8   : > { %v3355_v7 = vpop.f32.mrb[39].mxu0  ;;  %v3416_v9 = vpop.f32.mrb[37].mxu1 }
 0x1d9   : > { %v2453_v46 = vadd.f32 %v3353_v2, %v4591_v62  ;;  %v3356_v8 = vadd.f32 %v3355_v7, %v3354_v4  ;;  %v3417_v10 = vadd.f32 %v3416_v9, %v3415_v5  ;;  %v3418_v11 = vpop.f32.mrb[38].mxu1 }
 0x1da   : > { %v3419_v12 = vpop.f32.mrb[39].mxu1 }
 0x1db   : > { %v2456_v49 = vadd.f32 %v3356_v8, %v4593_v1  ;;  %v4639_v13 = vadd.f32 %v3417_v10, %v2453_v46  ;;  %v3420_v15 = vadd.f32 %v3419_v12, %v3418_v11 }
 0x1dd   : > { %v3357_v16 = vpop.f32.mrb[40].mxu0  ;;  %v4641_v18 = vadd.f32 %v3420_v15, %v2456_v49 }
 0x1de   : > { %v3358_v19 = vpop.f32.mrb[41].mxu0 }
 0x1df   : > { %v3359_v20 = vadd.f32 %v3358_v19, %v3357_v16  ;;  %v3360_v22 = vpop.f32.mrb[42].mxu0  ;;  %v3421_v23 = vpop.f32.mrb[40].mxu1 }
 0x1e0   : > { %v3361_v25 = vpop.f32.mrb[43].mxu0  ;;  %v3422_v27 = vpop.f32.mrb[41].mxu1 }
 0x1e1   : > { %v2461_v62 = vadd.f32 %v3359_v20, %v4597_v14  ;;  %v3362_v26 = vadd.f32 %v3361_v25, %v3360_v22  ;;  %v3423_v28 = vadd.f32 %v3422_v27, %v3421_v23  ;;  %v3424_v29 = vpop.f32.mrb[42].mxu1 }
 0x1e2   : > { %v3425_v31 = vpop.f32.mrb[43].mxu1 }
 0x1e3   : > { %v2464_v1 = vadd.f32 %v3362_v26, %v4599_v17  ;;  %v4645_v32 = vadd.f32 %v3423_v28, %v2461_v62  ;;  %v3426_v35 = vadd.f32 %v3425_v31, %v3424_v29 }
 0x1e5   : > { %v3363_v36 = vpop.f32.mrb[44].mxu0  ;;  %v4647_v37 = vadd.f32 %v3426_v35, %v2464_v1 }
 0x1e6   : > { %v3364_v38 = vpop.f32.mrb[45].mxu0 }
 0x1e7   : > { %v3365_v39 = vadd.f32 %v3364_v38, %v3363_v36  ;;  %v3366_v41 = vpop.f32.mrb[46].mxu0  ;;  %v3427_v42 = vpop.f32.mrb[44].mxu1 }
 0x1e8   : > { %v3367_v44 = vpop.f32.mrb[47].mxu0  ;;  %v3428_v47 = vpop.f32.mrb[45].mxu1 }
 0x1e9   : > { %v2469_v14 = vadd.f32 %v3365_v39, %v4603_v30  ;;  %v3368_v45 = vadd.f32 %v3367_v44, %v3366_v41  ;;  %v3429_v50 = vadd.f32 %v3428_v47, %v3427_v42  ;;  %v3430_v51 = vpop.f32.mrb[46].mxu1 }
 0x1ea   : > { %v3431_v53 = vpop.f32.mrb[47].mxu1 }
 0x1eb   : > { %v2472_v17 = vadd.f32 %v3368_v45, %v4605_v34  ;;  %v4651_v54 = vadd.f32 %v3429_v50, %v2469_v14  ;;  %v3432_v55 = vadd.f32 %v3431_v53, %v3430_v51 }
 0x1ed   : > { %v3369_v56 = vpop.f32.mrb[48].mxu0  ;;  %v4653_v57 = vadd.f32 %v3432_v55, %v2472_v17 }
 0x1ee   : > { %v3370_v33 = vpop.f32.mrb[49].mxu0 }
 0x1ef   : > { %v3371_v58 = vadd.f32 %v3370_v33, %v3369_v56  ;;  %v3372_v60 = vpop.f32.mrb[50].mxu0  ;;  %v3433_v61 = vpop.f32.mrb[48].mxu1 }
 0x1f0   : > { %v3373_v0 = vpop.f32.mrb[51].mxu0  ;;  %v3434_v4 = vpop.f32.mrb[49].mxu1 }
 0x1f1   : > { %v2477_v30 = vadd.f32 %v3371_v58, %v4609_v48  ;;  %v3374_v2 = vadd.f32 %v3373_v0, %v3372_v60  ;;  %v3435_v5 = vadd.f32 %v3434_v4, %v3433_v61  ;;  %v3436_v7 = vpop.f32.mrb[50].mxu1 }
 0x1f2   : > { %v3437_v46 = vpop.f32.mrb[51].mxu1 }
 0x1f3   : > { %v2480_v34 = vadd.f32 %v3374_v2, %v4611_v52  ;;  %v4657_v8 = vadd.f32 %v3435_v5, %v2477_v30  ;;  %v3438_v9 = vadd.f32 %v3437_v46, %v3436_v7 }
 0x1f5   : > { %v3375_v10 = vpop.f32.mrb[52].mxu0  ;;  %v4659_v11 = vadd.f32 %v3438_v9, %v2480_v34 }
 0x1f6   : > { %v3376_v49 = vpop.f32.mrb[53].mxu0 }
 0x1f7   : > { %v3377_v12 = vadd.f32 %v3376_v49, %v3375_v10  ;;  %v3378_v15 = vpop.f32.mrb[54].mxu0  ;;  %v3439_v16 = vpop.f32.mrb[52].mxu1 }
 0x1f8   : > { %v3379_v19 = vpop.f32.mrb[55].mxu0  ;;  %v3440_v22 = vpop.f32.mrb[53].mxu1 }
 0x1f9   : > { %v2485_v48 = vadd.f32 %v3377_v12, %v4615_v3  ;;  %v3380_v20 = vadd.f32 %v3379_v19, %v3378_v15  ;;  %v3441_v23 = vadd.f32 %v3440_v22, %v3439_v16  ;;  %v3442_v25 = vpop.f32.mrb[54].mxu1 }
 0x1fa   : > { %v3443_v62 = vpop.f32.mrb[55].mxu1 }
 0x1fb   : > { %v2488_v52 = vadd.f32 %v3380_v20, %v4617_v6  ;;  %v4663_v26 = vadd.f32 %v3441_v23, %v2485_v48  ;;  %v3444_v27 = vadd.f32 %v3443_v62, %v3442_v25 }
 0x1fd   : > { %v3381_v28 = vpop.f32.mrb[56].mxu0  ;;  %v4665_v29 = vadd.f32 %v3444_v27, %v2488_v52 }
 0x1fe   : > { %v3382_v1 = vpop.f32.mrb[57].mxu0 }
 0x1ff   : > { %v3383_v31 = vadd.f32 %v3382_v1, %v3381_v28  ;;  %v3384_v35 = vpop.f32.mrb[58].mxu0  ;;  %v3445_v36 = vpop.f32.mrb[56].mxu1 }
 0x200   : > { %v3385_v38 = vpop.f32.mrb[59].mxu0  ;;  %v3446_v41 = vpop.f32.mrb[57].mxu1 }
 0x201   : > { %v2493_v3 = vadd.f32 %v3383_v31, %v4621_v21  ;;  %v3386_v39 = vadd.f32 %v3385_v38, %v3384_v35  ;;  %v3447_v42 = vadd.f32 %v3446_v41, %v3445_v36  ;;  %v3448_v44 = vpop.f32.mrb[58].mxu1 }
 0x202   : > { %v3449_v14 = vpop.f32.mrb[59].mxu1 }
 0x203   : > { %v2496_v6 = vadd.f32 %v3386_v39, %v4623_v24  ;;  %v4669_v45 = vadd.f32 %v3447_v42, %v2493_v3  ;;  %v3450_v47 = vadd.f32 %v3449_v14, %v3448_v44 }
 0x205   : > { %v3387_v50 = vpop.f32.mrb[60].mxu0  ;;  %v4671_v51 = vadd.f32 %v3450_v47, %v2496_v6 }
 0x206   : > { %v3388_v17 = vpop.f32.mrb[61].mxu0 }
 0x207   : > { %v3389_v53 = vadd.f32 %v3388_v17, %v3387_v50  ;;  %v3390_v55 = vpop.f32.mrb[62].mxu0  ;;  %v3451_v56 = vpop.f32.mrb[60].mxu1 }
 0x208   : > { %v3391_v33 = vpop.f32.mrb[63].mxu0  ;;  %v3452_v60 = vpop.f32.mrb[61].mxu1 }
 0x209   : > { %v2501_v21 = vadd.f32 %v3389_v53, %v4627_v40  ;;  %v3392_v58 = vadd.f32 %v3391_v33, %v3390_v55  ;;  %v3453_v61 = vadd.f32 %v3452_v60, %v3451_v56  ;;  %v3454_v0 = vpop.f32.mrb[62].mxu1 }
 0x20a   : > { %v3455_v30 = vpop.f32.mrb[63].mxu1 }
 0x20b   : > { %v2504_v24 = vadd.f32 %v3392_v58, %v4629_v43  ;;  %v4675_v2 = vadd.f32 %v3453_v61, %v2501_v21  ;;  %v3456_v4 = vadd.f32 %v3455_v30, %v3454_v0 }
 0x20d   : > { %v3473_v5 = vpop.f32.mrb[64].mxu0  ;;  %v4678_v7 = vadd.f32 %v3456_v4, %v2504_v24 }
 0x20e   : > { %v3474_v34 = vpop.f32.mrb[65].mxu0 }
 0x20f   : > { %v3475_v46 = vadd.f32 %v3474_v34, %v3473_v5  ;;  %v3476_v9 = vpop.f32.mrb[66].mxu0  ;;  %v3555_v40 = vpop.f32.mrb[64].mxu1 }
 0x210   : > { %v3477_v10 = vpop.f32.mrb[67].mxu0  ;;  %v2735_v15 = vpop.f32.mrb[65].mxu1 }
 0x211   : > { %v3478_v49 = vadd.f32 %v3477_v10, %v3476_v9  ;;  %v2639_v12 = vadd.f32 %v3475_v46, %v4633_v59  ;;  %v3556_v16 = vpop.f32.mrb[66].mxu1 }
 0x212   : > { %v2738_v48 = vpop.f32.mrb[67].mxu1 }
 0x213   : > { %v2736_v43 = vadd.f32 %v2735_v15, %v2639_v12  ;;  %v2642_v19 = vadd.f32 %v3478_v49, %v4635_v63 }
 0x215   : > { %2798 = vst [vmem:[%s4682_s21] sm:$0xff] %v2736_v43  ;;  %v2739_v20 = vadd.f32 %v2738_v48, %v2642_v19  ;;  %v3479_v22 = vpop.f32.mrb[68].mxu0 }
 0x216   : > { %v3480_v23 = vpop.f32.mrb[69].mxu0 }
 0x217   : > { %2799 = vst [vmem:[%s4682_s21 + $0x8] sm:$0xff] %v2739_v20  ;;  %v3481_v25 = vadd.f32 %v3480_v23, %v3479_v22  ;;  %v3482_v52 = vpop.f32.mrb[70].mxu0  ;;  %v3559_v62 = vpop.f32.mrb[68].mxu1 }
 0x218   : > { %v3483_v59 = vpop.f32.mrb[71].mxu0  ;;  %v2751_v63 = vpop.f32.mrb[69].mxu1 }
 0x219   : > { %v2647_v27 = vadd.f32 %v3481_v25, %v4639_v13  ;;  %v3484_v28 = vadd.f32 %v3483_v59, %v3482_v52  ;;  %v3560_v1 = vpop.f32.mrb[70].mxu1 }
 0x21a   : > { %v2754_v36 = vpop.f32.mrb[71].mxu1 }
 0x21b   : > { %v2744_v31 = vadd.f32 %v3555_v40, %v2647_v27  ;;  %v2650_v35 = vadd.f32 %v3484_v28, %v4641_v18 }
 0x21d   : > { %2800 = vst [vmem:[%s4682_s21 + $0x10] sm:$0xff] %v2744_v31  ;;  %v2747_v38 = vadd.f32 %v3556_v16, %v2650_v35  ;;  %v3485_v3 = vpop.f32.mrb[72].mxu0 }
 0x21e   : > { %v3486_v39 = vpop.f32.mrb[73].mxu0 }
 0x21f   : > { %2801 = vst [vmem:[%s4682_s21 + $0x18] sm:$0xff] %v2747_v38  ;;  %v3487_v41 = vadd.f32 %v3486_v39, %v3485_v3  ;;  %v3488_v42 = vpop.f32.mrb[74].mxu0  ;;  %v3563_v6 = vpop.f32.mrb[72].mxu1 }
 0x220   : > { %v3489_v44 = vpop.f32.mrb[75].mxu0  ;;  %v2767_v47 = vpop.f32.mrb[73].mxu1 }
 0x221   : > { %v3490_v14 = vadd.f32 %v3489_v44, %v3488_v42  ;;  %v2655_v13 = vadd.f32 %v3487_v41, %v4645_v32  ;;  %v3564_v50 = vpop.f32.mrb[74].mxu1 }
 0x222   : > { %v2770_v53 = vpop.f32.mrb[75].mxu1 }
 0x223   : > { %v2752_v17 = vadd.f32 %v2751_v63, %v2655_v13  ;;  %v2658_v18 = vadd.f32 %v3490_v14, %v4647_v37 }
 0x225   : > { %2802 = vst [vmem:[%s4682_s21 + $0x20] sm:$0xff] %v2752_v17  ;;  %v2755_v55 = vadd.f32 %v2754_v36, %v2658_v18  ;;  %v3491_v56 = vpop.f32.mrb[76].mxu0 }
 0x226   : > { %v3492_v33 = vpop.f32.mrb[77].mxu0  ;;  %v2889_v13 = vld [vmem:[%s4682_s21 + $0x18] sm:$0xff] (%p4020_p9) }
 0x227   : > { %2803 = vst [vmem:[%s4682_s21 + $0x28] sm:$0xff] %v2755_v55  ;;  %v3493_v21 = vadd.f32 %v3492_v33, %v3491_v56  ;;  %v3494_v58 = vpop.f32.mrb[78].mxu0  ;;  %v3567_v61 = vpop.f32.mrb[76].mxu1  ;;  %2890 = vst [vmem:[%s2825_s17 + $0x48] sm:$0xff] (%p4020_p9), %v2889_v13 }
 0x228   : > { %v3495_v60 = vpop.f32.mrb[79].mxu0  ;;  %v2783_v24 = vpop.f32.mrb[77].mxu1 }
 0x229   : > { %v2663_v0 = vadd.f32 %v3493_v21, %v4651_v54  ;;  %v3496_v32 = vadd.f32 %v3495_v60, %v3494_v58  ;;  %v3568_v30 = vpop.f32.mrb[78].mxu1 }
 0x22a   : > { %v2786_v5 = vpop.f32.mrb[79].mxu1 }
 0x22b   : > { %v2760_v4 = vadd.f32 %v3559_v62, %v2663_v0  ;;  %v2666_v37 = vadd.f32 %v3496_v32, %v4653_v57 }
 0x22d   : > { %2804 = vst [vmem:[%s4682_s21 + $0x30] sm:$0xff] %v2760_v4  ;;  %v2763_v34 = vadd.f32 %v3560_v1, %v2666_v37  ;;  %v3497_v46 = vpop.f32.mrb[80].mxu0 }
 0x22e   : > { %v3498_v9 = vpop.f32.mrb[81].mxu0 }
 0x22f   : > { %2805 = vst [vmem:[%s4682_s21 + $0x38] sm:$0xff] %v2763_v34  ;;  %v3499_v10 = vadd.f32 %v3498_v9, %v3497_v46  ;;  %v3500_v40 = vpop.f32.mrb[82].mxu0 }
 0x230   : > { %v3501_v49 = vpop.f32.mrb[83].mxu0 }
 0x231   : > { %v3502_v12 = vadd.f32 %v3501_v49, %v3500_v40  ;;  %v2671_v54 = vadd.f32 %v3499_v10, %v4657_v8 }
 0x233   : > { %v2768_v15 = vadd.f32 %v2767_v47, %v2671_v54  ;;  %v2674_v16 = vadd.f32 %v3502_v12, %v4659_v11  ;;  %v2891_v47 = vld [vmem:[%s4682_s21 + $0x20] sm:$0xff] (%p4020_p9) }
 0x234   : > { %v2895_v17 = vld [vmem:[%s4682_s21 + $0x30] sm:$0xff] (%p4020_p9)  ;;  %2892 = vst [vmem:[%s2825_s17 + $0x60] sm:$0xff] (%p4020_p9), %v2891_v47 }
 0x235   : > { %2806 = vst [vmem:[%s4682_s21 + $0x40] sm:$0xff] %v2768_v15  ;;  %v2771_v57 = vadd.f32 %v2770_v53, %v2674_v16  ;;  %v3503_v43 = vpop.f32.mrb[84].mxu0  ;;  %2896 = vst [vmem:[%s2825_s17 + $0x90] sm:$0xff] (%p4020_p9), %v2895_v17 }
 0x236   : > { %v3504_v19 = vpop.f32.mrb[85].mxu0  ;;  %v2897_v18 = vld [vmem:[%s4682_s21 + $0x38] sm:$0xff] (%p4020_p9) }
 0x237   : > { %2807 = vst [vmem:[%s4682_s21 + $0x48] sm:$0xff] %v2771_v57  ;;  %v3505_v48 = vadd.f32 %v3504_v19, %v3503_v43  ;;  %v3506_v20 = vpop.f32.mrb[86].mxu0  ;;  %2898 = vst [vmem:[%s2825_s17 + $0xa8] sm:$0xff] (%p4020_p9), %v2897_v18 }
 0x238   : > { %v3507_v22 = vpop.f32.mrb[87].mxu0 }
 0x239   : > { %v2679_v23 = vadd.f32 %v3505_v48, %v4663_v26  ;;  %v3508_v25 = vadd.f32 %v3507_v22, %v3506_v20 }
 0x23b   : > { %v2776_v52 = vadd.f32 %v3563_v6, %v2679_v23  ;;  %v2682_v59 = vadd.f32 %v3508_v25, %v4665_v29 }
 0x23c   : > { %v2899_v53 = vld [vmem:[%s4682_s21 + $0x40] sm:$0xff] (%p4020_p9) }
 0x23d   : > { %2808 = vst [vmem:[%s4682_s21 + $0x50] sm:$0xff] %v2776_v52  ;;  %v2779_v8 = vadd.f32 %v3564_v50, %v2682_v59  ;;  %v3509_v11 = vpop.f32.mrb[88].mxu0  ;;  %v2893_v50 = vld [vmem:[%s4682_s21 + $0x28] sm:$0xff] (%p4020_p9)  ;;  %2900 = vst [vmem:[%s2825_s17 + $0xc0] sm:$0xff] (%p4020_p9), %v2899_v53 }
 0x23e   : > { %v3510_v62 = vpop.f32.mrb[89].mxu0  ;;  %v2901_v55 = vld [vmem:[%s4682_s21 + $0x48] sm:$0xff] (%p4020_p9)  ;;  %2894 = vst [vmem:[%s2825_s17 + $0x78] sm:$0xff] (%p4020_p9), %v2893_v50 }
 0x23f   : > { %2809 = vst [vmem:[%s4682_s21 + $0x58] sm:$0xff] %v2779_v8  ;;  %v3511_v27 = vadd.f32 %v3510_v62, %v3509_v11  ;;  %v3512_v28 = vpop.f32.mrb[90].mxu0  ;;  %2902 = vst [vmem:[%s2825_s17 + $0xd8] sm:$0xff] (%p4020_p9), %v2901_v55 }
 0x240   : > { %v3513_v63 = vpop.f32.mrb[91].mxu0 }
 0x241   : > { %v3514_v1 = vadd.f32 %v3513_v63, %v3512_v28  ;;  %v2687_v31 = vadd.f32 %v3511_v27, %v4669_v45 }
 0x243   : > { %v2784_v35 = vadd.f32 %v2783_v24, %v2687_v31  ;;  %v2690_v26 = vadd.f32 %v3514_v1, %v4671_v51  ;;  %v2883_v51 = vld [vmem:[%s4682_s21] sm:$0xff] (%p4020_p9) }
 0x244   : > { %v2903_v56 = vld [vmem:[%s4682_s21 + $0x50] sm:$0xff] (%p4020_p9)  ;;  %2884 = vst [vmem:[%s2825_s17] sm:$0xff] (%p4020_p9), %v2883_v51 }
 0x245   : > { %2810 = vst [vmem:[%s4682_s21 + $0x60] sm:$0xff] %v2784_v35  ;;  %v2787_v36 = vadd.f32 %v2786_v5, %v2690_v26  ;;  %v3515_v29 = vpop.f32.mrb[92].mxu0  ;;  %2904 = vst [vmem:[%s2825_s17 + $0xf0] sm:$0xff] (%p4020_p9), %v2903_v56 }
 0x246   : > { %v3516_v38 = vpop.f32.mrb[93].mxu0  ;;  %v2905_v33 = vld [vmem:[%s4682_s21 + $0x58] sm:$0xff] (%p4020_p9) }
 0x247   : > { %2811 = vst [vmem:[%s4682_s21 + $0x68] sm:$0xff] %v2787_v36  ;;  %v3517_v3 = vadd.f32 %v3516_v38, %v3515_v29  ;;  %v3518_v39 = vpop.f32.mrb[94].mxu0  ;;  %2906 = vst [vmem:[%s2825_s17 + $0x108] sm:$0xff] (%p4020_p9), %v2905_v33 }
 0x248   : > { %v3519_v41 = vpop.f32.mrb[95].mxu0 }
 0x249   : > { %v2695_v42 = vadd.f32 %v3517_v3, %v4675_v2  ;;  %v3520_v44 = vadd.f32 %v3519_v41, %v3518_v39  ;;  %2820 = sbr.rel (!%p4020_p9) target bundleno = 600 (0x258), region = 77  ;;  %v2885_v2 = vld [vmem:[%s4682_s21 + $0x8] sm:$0xff] (%p4020_p9) }
 0x24a   : > { %2886 = vst [vmem:[%s2825_s17 + $0x18] sm:$0xff] (%p4020_p9), %v2885_v2 }
 0x24b   : > { %v2792_v6 = vadd.f32 %v3567_v61, %v2695_v42  ;;  %v2698_v14 = vadd.f32 %v3520_v44, %v4678_v7  ;;  %v2887_v7 = vld [vmem:[%s4682_s21 + $0x10] sm:$0xff] (%p4020_p9) }
 0x24c   : > { %v2907_v21 = vld [vmem:[%s4682_s21 + $0x60] sm:$0xff] (%p4020_p9)  ;;  %2888 = vst [vmem:[%s2825_s17 + $0x30] sm:$0xff] (%p4020_p9), %v2887_v7 }
 0x24d   : > { %2812 = vst [vmem:[%s4682_s21 + $0x70] sm:$0xff] %v2792_v6  ;;  %v2795_v45 = vadd.f32 %v3568_v30, %v2698_v14  ;;  %2908 = vst [vmem:[%s2825_s17 + $0x120] sm:$0xff] (%p4020_p9), %v2907_v21 }
 0x24e   : > { %v2909_v58 = vld [vmem:[%s4682_s21 + $0x68] sm:$0xff] (%p4020_p9) }
 0x24f   : > { %2813 = vst [vmem:[%s4682_s21 + $0x78] sm:$0xff] %v2795_v45  ;;  %2910 = vst [vmem:[%s2825_s17 + $0x138] sm:$0xff] (%p4020_p9), %v2909_v58 }
 0x254   : > { %v2911_v60 = vld [vmem:[%s4682_s21 + $0x70] sm:$0xff] }
 0x255   : > { %2912 = vst [vmem:[%s2825_s17 + $0x150] sm:$0xff] %v2911_v60 }
 0x256   : > { %v2913_v61 = vld [vmem:[%s4682_s21 + $0x78] sm:$0xff] }
 0x257   : > { %2914 = vst [vmem:[%s2825_s17 + $0x168] sm:$0xff] %v2913_v61 }
 0x258 PF: > { %s13_s20 = sadd.s32 1, %s3931_s20   ;;  %s4769_s12 = smov %s3903_s13 }
 0x259   : > { %p10_p2 = scmp.ge.s32.totalorder %s13_s20, 8   ;;  %s4770_s13 = smov %s4025_s4 }
 0x25a   : > { %s4771_s14 = smov %s3911_s15  ;;  %s4772_s15 = smov %s4014_s27 }
 0x25b   : > { %s4773_s16 = smov %s3923_s18  ;;  %s4774_s17 = smov %s3927_s19 }
 0x25c   : > { %s4775_s18 = smov %s4778_s22  ;;  %s4776_s19 = smov %s4782_s23 }
 0x25d   :  { %12 = sbr.rel (!%p10_p2) target bundleno = 5 (0x5), region = 152 }

// kernel: _lambda_.32
= control target key start
LH: loop header
LB: loop body
LE: loop exit
PB: predicated region body
PF: predicated region fallthrough
CT: control target
= control target key end

     0   :  { %s2113_s12 = smov 0   ;;  %s2115_s13 = smov 0   ;;  %s2466_s0 = inlined_call_operand.vmem [shape: bf16[256,896], index: 0, kind: input, shape index: {}]   ;;  %s2467_s1 = inlined_call_operand.vmem [shape: bf16[896,128], index: 1, kind: input, shape index: {}]   ;;  %s2468_s2 = inlined_call_operand.vmem [shape: f32[1,128], index: 2, kind: input, shape index: {}]   ;;  %s2469_s3 = inlined_call_operand.vmem [shape: f32[256,128], index: 3, kind: output, shape index: {}]  }
   0x1   :  { %s2117_s14 = smov 0  }
   0x2 LB: > { %s25_s15 = sadd.s32 1, %s2087_s13  ;;  %p1548_p0 = scmp.ge.s32.totalorder %s2091_s14, 1  ;;  %s2091_s14 = sphi %s2117_s14, %s13_s14   ;;  %s2087_s13 = sphi %s2115_s13, %s2471_s13   ;;  %s2083_s12 = sphi %s2113_s12, %s2470_s12  }
   0x3   : > { %p27_p1 = scmp.ge.s32.totalorder %s25_s15, 2  ;;  %p170_p2 = scmp.lt.s32.totalorder %s2091_s14, 3 }
   0x5   : > { %s2473_s15 = smov (%p27_p1, %s25_s15), 0  ;;  %p171_p3 = pnand %p1548_p0, %p170_p2 }
   0x6   : > { %v1933_v0 = vld [vmem:[%s2467_s1 + $0x40] sm:$0xff] (!%p171_p3)   ;;  %v1937_v4 = vld [vmem:[%s2467_s1 + $0x48] sm:$0xff] (!%p171_p3)   ;;  %v1941_v8 = vld [vmem:[%s2467_s1 + $0x50] sm:$0xff] (!%p171_p3)   ;;  %s1549_s21 = sshll.u32 (!%p171_p3), %s2083_s12, 4 }
   0x7   : > { %174 = sbr.rel (%p171_p3) target bundleno = 381 (0x17d), region = 32  ;;  %v1934_v1 = vld [vmem:[%s2467_s1] sm:$0xff] (!%p171_p3)   ;;  %1668 = vmatprep.subr.bf16.mxu0 (!%p171_p3), %v1933_v0  ;;  %v1938_v5 = vld [vmem:[%s2467_s1 + $0x8] sm:$0xff] (!%p171_p3)   ;;  %v1942_v9 = vld [vmem:[%s2467_s1 + $0x10] sm:$0xff] (!%p171_p3)   ;;  %p206_p4 = scmp.lt.s32.totalorder (!%p171_p3), %s1549_s21, 31 }
   0x8   : > { %v1935_v2 = vld [vmem:[%s2467_s1 + $0xc0] sm:$0xff] (!%p171_p3)   ;;  %1669 = vmatpush3.bf16.msra.mxu0 (!%p171_p3), %v1934_v1  ;;  %v1939_v6 = vld [vmem:[%s2467_s1 + $0xc8] sm:$0xff] (!%p171_p3)   ;;  %v1943_v10 = vld [vmem:[%s2467_s1 + $0xd0] sm:$0xff] (!%p171_p3)  }
   0x9   : > { %v1936_v3 = vld [vmem:[%s2467_s1 + $0x80] sm:$0xff] (!%p171_p3)   ;;  %1732 = vmatprep.subr.bf16.mxu1 (!%p171_p3), %v1935_v2  ;;  %1670 = vmatprep.subr.bf16.mxu0 (!%p171_p3), %v1937_v4  ;;  %v1940_v7 = vld [vmem:[%s2467_s1 + $0x88] sm:$0xff] (!%p171_p3)   ;;  %v1944_v11 = vld [vmem:[%s2467_s1 + $0x90] sm:$0xff] (!%p171_p3)  }
   0xa   : > { %1733 = vmatpush3.bf16.msra.mxu1 (!%p171_p3), %v1936_v3  ;;  %v1945_v12 = vld [vmem:[%s2467_s1 + $0x58] sm:$0xff] (!%p171_p3)   ;;  %v1949_v16 = vld [vmem:[%s2467_s1 + $0x60] sm:$0xff] (!%p171_p3)   ;;  %v1953_v20 = vld [vmem:[%s2467_s1 + $0x68] sm:$0xff] (!%p171_p3)  }
   0xb   : > { %1734 = vmatprep.subr.bf16.mxu1 (!%p171_p3), %v1939_v6  ;;  %v1946_v13 = vld [vmem:[%s2467_s1 + $0x18] sm:$0xff] (!%p171_p3)   ;;  %v1950_v17 = vld [vmem:[%s2467_s1 + $0x20] sm:$0xff] (!%p171_p3)   ;;  %v1954_v21 = vld [vmem:[%s2467_s1 + $0x28] sm:$0xff] (!%p171_p3)  }
   0xc   : > { %1671 = vmatpush3.bf16.msra.mxu0 (!%p171_p3), %v1938_v5  ;;  %v1947_v14 = vld [vmem:[%s2467_s1 + $0xd8] sm:$0xff] (!%p171_p3)   ;;  %v1951_v18 = vld [vmem:[%s2467_s1 + $0xe0] sm:$0xff] (!%p171_p3)   ;;  %v1955_v22 = vld [vmem:[%s2467_s1 + $0xe8] sm:$0xff] (!%p171_p3)  }
   0xd   : > { %1672 = vmatprep.subr.bf16.mxu0 (!%p171_p3), %v1941_v8  ;;  %v1948_v15 = vld [vmem:[%s2467_s1 + $0x98] sm:$0xff] (!%p171_p3)   ;;  %v1952_v19 = vld [vmem:[%s2467_s1 + $0xa0] sm:$0xff] (!%p171_p3)   ;;  %v1956_v23 = vld [vmem:[%s2467_s1 + $0xa8] sm:$0xff] (!%p171_p3)  }
   0xe   : > { %1735 = vmatpush3.bf16.msra.mxu1 %v1940_v7  ;;  %s2475_s21 = smov (!%p206_p4, %s1549_s21), 31  ;;  %v1957_v24 = vld [vmem:[%s2467_s1 + $0x70] sm:$0xff]   ;;  %v1961_v28 = vld [vmem:[%s2467_s1 + $0x78] sm:$0xff]   ;;  %v1968_v34 = vld [vmem:[%s2467_s1 + $0x140] sm:$0xff]  }
   0xf   : > { %1736 = vmatprep.subr.bf16.mxu1 %v1943_v10  ;;  %s1908_s20 = smul.u32 28, %s2475_s21  ;;  %v1958_v25 = vld [vmem:[%s2467_s1 + $0x30] sm:$0xff]   ;;  %v1962_v29 = vld [vmem:[%s2467_s1 + $0x38] sm:$0xff]   ;;  %v1972_v37 = vld [vmem:[%s2467_s1 + $0x100] sm:$0xff]  }
  0x10   : > { %1673 = vmatpush3.bf16.msra.mxu0 %v1942_v9  ;;  %v1959_v26 = vld [vmem:[%s2467_s1 + $0xf0] sm:$0xff]   ;;  %v1963_v30 = vld [vmem:[%s2467_s1 + $0xf8] sm:$0xff]   ;;  %v1976_v40 = vld [vmem:[%s2467_s1 + $0x148] sm:$0xff]  }
  0x11   : > { %1674 = vmatprep.subr.bf16.mxu0 %v1945_v12  ;;  %v1960_v27 = vld [vmem:[%s2467_s1 + $0xb0] sm:$0xff]   ;;  %s2227_s4 = scalar_lea.vmem %s2466_s0, %s1908_s20  ;;  %v1967_v33 = vld [vmem:[%s2467_s1 + $0xb8] sm:$0xff]   ;;  %v1979_v42 = vld [vmem:[%s2467_s1 + $0x108] sm:$0xff]  }
  0x12   : > { %1737 = vmatpush3.bf16.msra.mxu1 %v1944_v11  ;;  %v1964_v31 = vld [vmem:[%s2227_s4] ss:$28 sps:$4 sm:$0xff]   ;;  %v1969_v35 = vld [vmem:[%s2227_s4 + $0x8] ss:$28 sps:$4 sm:$0xff]   ;;  %v1975_v39 = vld [vmem:[%s2227_s4 + $0x38] ss:$28 sps:$4 sm:$0xff]  }
  0x13   : > { %1738 = vmatprep.subr.bf16.mxu1 %v1947_v14  ;;  %v1966_v32 = vld [vmem:[%s2227_s4 + $0x4] ss:$28 sps:$4 sm:$0xff]   ;;  %v1971_v36 = vld [vmem:[%s2227_s4 + $0xc] ss:$28 sps:$4 sm:$0xff]   ;;  %v1973_v38 = vld [vmem:[%s2227_s4 + $0x3c] ss:$28 sps:$4 sm:$0xff]  }
  0x14   : > { %1675 = vmatpush3.bf16.msra.mxu0 %v1946_v13  ;;  %1068 = vmatprep.mubr.bf16.mxu0 %v1966_v32  ;;  %v1977_v41 = vld [vmem:[%s2227_s4 + $0x44] ss:$28 sps:$4 sm:$0xff]   ;;  %v1981_v44 = vld [vmem:[%s2227_s4 + $0x74] ss:$28 sps:$4 sm:$0xff]   ;;  %v1985_v46 = vld [vmem:[%s2227_s4 + $0x7c] ss:$28 sps:$4 sm:$0xff]  }
  0x15   : > { %1676 = vmatprep.subr.bf16.mxu0 %v1949_v16  ;;  %1165 = vmatprep.mubr.bf16.mxu1 %v1971_v36  ;;  %v1980_v43 = vld [vmem:[%s2227_s4 + $0x40] ss:$28 sps:$4 sm:$0xff]   ;;  %v1984_v45 = vld [vmem:[%s2467_s1 + $0x150] sm:$0xff]   ;;  %v1989_v49 = vld [vmem:[%s2227_s4 + $0xac] ss:$28 sps:$4 sm:$0xff]  }
  0x16   : > { %1739 = vmatpush3.bf16.msra.mxu1 %v1948_v15  ;;  %v1987_v47 = vld [vmem:[%s2467_s1 + $0x110] sm:$0xff]   ;;  %v1992_v50 = vld [vmem:[%s2467_s1 + $0x158] sm:$0xff]   ;;  %v2000_v54 = vld [vmem:[%s2467_s1 + $0x160] sm:$0xff]  }
  0x17   : > { %1740 = vmatprep.subr.bf16.mxu1 %v1951_v18  ;;  %v1983_v48 = vld [vmem:[%s2227_s4 + $0x70] ss:$28 sps:$4 sm:$0xff]   ;;  %v1988_v51 = vld [vmem:[%s2227_s4 + $0x78] ss:$28 sps:$4 sm:$0xff]   ;;  %v1991_v55 = vld [vmem:[%s2227_s4 + $0xa8] ss:$28 sps:$4 sm:$0xff]  }
  0x18   : > { %1677 = vmatpush3.bf16.msra.mxu0 %v1950_v17  ;;  %v1995_v52 = vld [vmem:[%s2467_s1 + $0x118] sm:$0xff]   ;;  %v1993_v53 = vld [vmem:[%s2227_s4 + $0xb4] ss:$28 sps:$4 sm:$0xff]   ;;  %v2003_v56 = vld [vmem:[%s2467_s1 + $0x120] sm:$0xff]  }
  0x19   : > { %1678 = vmatprep.subr.bf16.mxu0 %v1953_v20  ;;  %v1997_v57 = vld [vmem:[%s2227_s4 + $0xe4] ss:$28 sps:$4 sm:$0xff]   ;;  %v1996_v59 = vld [vmem:[%s2227_s4 + $0xb0] ss:$28 sps:$4 sm:$0xff]   ;;  %v2006_v3 = vld [vmem:[%s2227_s4 + $0x11c] ss:$28 sps:$4 sm:$0xff]  }
  0x1a   : > { %1741 = vmatpush3.bf16.msra.mxu1 %v1952_v19  ;;  %v2005_v58 = vld [vmem:[%s2467_s1 + $0x180] sm:$0xff]   ;;  %v2001_v60 = vld [vmem:[%s2227_s4 + $0xec] ss:$28 sps:$4 sm:$0xff]   ;;  %v2015_v0 = vld [vmem:[%s2467_s1 + $0x190] sm:$0xff]  }
  0x1b   : > { %1742 = vmatprep.subr.bf16.mxu1 %v1955_v22  ;;  %v2009_v61 = vld [vmem:[%s2467_s1 + $0x168] sm:$0xff]   ;;  %v1999_v1 = vld [vmem:[%s2227_s4 + $0xe0] ss:$28 sps:$4 sm:$0xff]   ;;  %v2019_v4 = vld [vmem:[%s2467_s1 + $0x170] sm:$0xff]  }
  0x1c   : > { %1679 = vmatpush3.bf16.msra.mxu0 %v1954_v21  ;;  %v2010_v62 = vld [vmem:[%s2467_s1 + $0x188] sm:$0xff]   ;;  %v2020_v5 = vld [vmem:[%s2467_s1 + $0x198] sm:$0xff]   ;;  %v2011_v6 = vld [vmem:[%s2227_s4 + $0x124] ss:$28 sps:$4 sm:$0xff]  }
  0x1d   : > { %1680 = vmatprep.subr.bf16.mxu0 %v1957_v24  ;;  %v2013_v63 = vld [vmem:[%s2467_s1 + $0x128] sm:$0xff]   ;;  %v2023_v7 = vld [vmem:[%s2467_s1 + $0x130] sm:$0xff]   ;;  %v2025_v8 = vld [vmem:[%s2467_s1 + $0x1a0] sm:$0xff]  }
  0x1e   : > { %1743 = vmatpush3.bf16.msra.mxu1 %v1956_v23  ;;  %v2004_v2 = vld [vmem:[%s2227_s4 + $0xe8] ss:$28 sps:$4 sm:$0xff]   ;;  %v2008_v9 = vld [vmem:[%s2227_s4 + $0x118] ss:$28 sps:$4 sm:$0xff]   ;;  %v2014_v11 = vld [vmem:[%s2227_s4 + $0x120] ss:$28 sps:$4 sm:$0xff]  }
  0x1f   : > { %1744 = vmatprep.subr.bf16.mxu1 %v1959_v26  ;;  %v2029_v10 = vld [vmem:[%s2467_s1 + $0x178] sm:$0xff]   ;;  %v2016_v12 = vld [vmem:[%s2227_s4 + $0x154] ss:$28 sps:$4 sm:$0xff]   ;;  %v2030_v13 = vld [vmem:[%s2467_s1 + $0x1a8] sm:$0xff]  }
  0x20   : > { %1681 = vmatpush3.bf16.msra.mxu0 %v1958_v25  ;;  %v2033_v14 = vld [vmem:[%s2467_s1 + $0x138] sm:$0xff]   ;;  %v2035_v16 = vld [vmem:[%s2467_s1 + $0x1b0] sm:$0xff]   ;;  %v2026_v18 = vld [vmem:[%s2227_s4 + $0x18c] ss:$28 sps:$4 sm:$0xff]  }
  0x21   : > { %1682 = vmatprep.subr.bf16.mxu0 %v1961_v28  ;;  %v2021_v15 = vld [vmem:[%s2227_s4 + $0x15c] ss:$28 sps:$4 sm:$0xff]   ;;  %v2018_v17 = vld [vmem:[%s2227_s4 + $0x150] ss:$28 sps:$4 sm:$0xff]   ;;  %v2028_v22 = vld [vmem:[%s2227_s4 + $0x188] ss:$28 sps:$4 sm:$0xff]  }
  0x22   : > { %1745 = vmatpush3.bf16.msra.mxu1 %v1960_v27  ;;  %v2039_v19 = vld [vmem:[%s2467_s1 + $0x1b8] sm:$0xff]   ;;  %v2031_v21 = vld [vmem:[%s2227_s4 + $0x194] ss:$28 sps:$4 sm:$0xff]   ;;  %v2042_v27 = vld [vmem:[%s2227_s4 + $0x4c] ss:$28 sps:$4 sm:$0xff]  }
  0x23   : > { %1746 = vmatprep.subr.bf16.mxu1 %v1963_v30  ;;  %v2024_v20 = vld [vmem:[%s2227_s4 + $0x158] ss:$28 sps:$4 sm:$0xff]   ;;  %v2034_v24 = vld [vmem:[%s2227_s4 + $0x190] ss:$28 sps:$4 sm:$0xff]   ;;  %v2044_v30 = vld [vmem:[%s2227_s4 + $0x48] ss:$28 sps:$4 sm:$0xff]  }
  0x24   : > { %1683 = vmatpush3.bf16.msra.mxu0 %v1962_v29  ;;  %v2038_v23 = vld [vmem:[%s2227_s4 + $0x14] ss:$28 sps:$4 sm:$0xff]   ;;  %v2048_v29 = vld [vmem:[%s2227_s4 + $0x88] ss:$28 sps:$4 sm:$0xff]   ;;  %v2049_v32 = vld [vmem:[%s2227_s4 + $0xc0] ss:$28 sps:$4 sm:$0xff]  }
  0x25   : > { %1796 = vmatprep.subr.bf16.mxu0 %v1968_v34  ;;  %v2040_v25 = vld [vmem:[%s2227_s4 + $0x18] ss:$28 sps:$4 sm:$0xff]   ;;  %v2036_v26 = vld [vmem:[%s2227_s4 + $0x10] ss:$28 sps:$4 sm:$0xff]   ;;  %v2047_v34 = vld [vmem:[%s2227_s4 + $0x80] ss:$28 sps:$4 sm:$0xff]  }
  0x26   : > { %1747 = vmatpush3.bf16.msra.mxu1 %v1967_v33  ;;  %v2041_v28 = vld [vmem:[%s2227_s4 + $0x50] ss:$28 sps:$4 sm:$0xff]   ;;  %v2056_v33 = vld [vmem:[%s2227_s4 + $0xf8] ss:$28 sps:$4 sm:$0xff]  }
  0x27   : > { %1069 = vmatmul.mubr.bf16.vlgmr.msra.gmra.mrb[0].mxu0 %v1964_v31  ;;  %1876 = vmatprep.subr.bf16.mxu1 %v2005_v58  ;;  %v2045_v31 = vld [vmem:[%s2227_s4 + $0x84] ss:$28 sps:$4 sm:$0xff]   ;;  %v2057_v36 = vld [vmem:[%s2227_s4 + $0x130] ss:$28 sps:$4 sm:$0xff]  }
  0x28   : > { %1797 = vmatpush3.bf16.msra.mxu0 %v1972_v37  ;;  %1076 = vmatprep.mubr.bf16.mxu0 %v1973_v38  ;;  %v2064_v37 = vld [vmem:[%s2227_s4 + $0x168] ss:$28 sps:$4 sm:$0xff]   ;;  %v2052_v38 = vld [vmem:[%s2227_s4 + $0xb8] ss:$28 sps:$4 sm:$0xff]  }
  0x29   : > { %1166 = vmatmul.mubr.bf16.vlgmr.msra.gmra.mrb[0].mxu1 %v1969_v35  ;;  %1798 = vmatprep.subr.bf16.mxu0 %v1976_v40  ;;  %v2050_v35 = vld [vmem:[%s2227_s4 + $0xbc] ss:$28 sps:$4 sm:$0xff]  }
  0x2a   : > { %1173 = vmatprep.mubr.bf16.mxu1 %v1977_v41  ;;  %1877 = vmatpush3.bf16.msra.mxu1 %v2005_v58  ;;  %v2065_v40 = vld [vmem:[%s2227_s4 + $0x1a0] ss:$28 sps:$4 sm:$0xff]   ;;  %v2055_v41 = vld [vmem:[%s2227_s4 + $0xf0] ss:$28 sps:$4 sm:$0xff]  }
  0x2b   : > { %1878 = vmatprep.subr.bf16.mxu1 %v2010_v62 }
  0x2c   : > { %1799 = vmatpush3.bf16.msra.mxu0 %v1979_v42  ;;  %v2058_v42 = vld [vmem:[%s2227_s4 + $0x12c] ss:$28 sps:$4 sm:$0xff]  }
  0x2d   : > { %1800 = vmatprep.subr.bf16.mxu0 %v1984_v45  ;;  %v2063_v45 = vld [vmem:[%s2227_s4 + $0x160] ss:$28 sps:$4 sm:$0xff]  }
  0x2e   : > { %1879 = vmatpush3.bf16.msra.mxu1 %v2010_v62 }
  0x2f   : > { %1077 = vmatmul.mubr.bf16.gmra.mrb[4].mxu0 %v1975_v39  ;;  %1880 = vmatprep.subr.bf16.mxu1 %v2015_v0  ;;  %v2053_v39 = vld [vmem:[%s2227_s4 + $0xf4] ss:$28 sps:$4 sm:$0xff]  }
  0x30   : > { %1084 = vmatprep.mubr.bf16.mxu0 %v1981_v44  ;;  %1801 = vmatpush3.bf16.msra.mxu0 %v1987_v47  ;;  %v2061_v44 = vld [vmem:[%s2227_s4 + $0x164] ss:$28 sps:$4 sm:$0xff]   ;;  %v2068_v47 = vld [vmem:[%s2227_s4 + $0x198] ss:$28 sps:$4 sm:$0xff]  }
  0x31   : > { %1174 = vmatmul.mubr.bf16.gmra.mrb[4].mxu1 %v1980_v43  ;;  %1802 = vmatprep.subr.bf16.mxu0 %v1992_v50  ;;  %v2060_v43 = vld [vmem:[%s2227_s4 + $0x128] ss:$28 sps:$4 sm:$0xff]  }
  0x32   : > { %1181 = vmatprep.mubr.bf16.mxu1 %v1985_v46  ;;  %1881 = vmatpush3.bf16.msra.mxu1 %v2015_v0  ;;  %v2066_v46 = vld [vmem:[%s2227_s4 + $0x19c] ss:$28 sps:$4 sm:$0xff]   ;;  %s1552_s4 = sshll.u32 %s2475_s21, 3 }
  0x33   : > { %1882 = vmatprep.subr.bf16.mxu1 %v2020_v5  ;;  %s2424_s24 = scalar_lea.vmem %s2469_s3, %s1552_s4 }
  0x34   : > { %1803 = vmatpush3.bf16.msra.mxu0 %v1995_v52 }
  0x35   : > { %1804 = vmatprep.subr.bf16.mxu0 %v2000_v54 }
  0x36   : > { %1883 = vmatpush3.bf16.msra.mxu1 %v2020_v5 }
  0x37   : > { %1085 = vmatmul.mubr.bf16.gmra.mrb[8].mxu0 %v1983_v48  ;;  %1884 = vmatprep.subr.bf16.mxu1 %v2025_v8 }
  0x38   : > { %1092 = vmatprep.mubr.bf16.mxu0 %v1989_v49  ;;  %1805 = vmatpush3.bf16.msra.mxu0 %v2003_v56  ;;  %v2369_v49 = vld [vmem:[%s2468_s2] ss:$0 sm:$0xff] }
  0x39   : > { %1182 = vmatmul.mubr.bf16.gmra.mrb[8].mxu1 %v1988_v51  ;;  %1806 = vmatprep.subr.bf16.mxu0 %v2009_v61 }
  0x3a   : > { %1189 = vmatprep.mubr.bf16.mxu1 %v1993_v53  ;;  %1885 = vmatpush3.bf16.msra.mxu1 %v2025_v8 }
  0x3b   : > { %1886 = vmatprep.subr.bf16.mxu1 %v2030_v13 }
  0x3c   : > { %1807 = vmatpush3.bf16.msra.mxu0 %v2013_v63 }
  0x3d   : > { %1808 = vmatprep.subr.bf16.mxu0 %v2019_v4 }
  0x3e   : > { %1887 = vmatpush3.bf16.msra.mxu1 %v2030_v13 }
  0x3f   : > { %1093 = vmatmul.mubr.bf16.gmra.mrb[12].mxu0 %v1991_v55  ;;  %1888 = vmatprep.subr.bf16.mxu1 %v2035_v16 }
  0x40   : > { %1100 = vmatprep.mubr.bf16.mxu0 %v1997_v57  ;;  %1809 = vmatpush3.bf16.msra.mxu0 %v2023_v7 }
  0x41   : > { %1190 = vmatmul.mubr.bf16.gmra.mrb[12].mxu1 %v1996_v59  ;;  %1810 = vmatprep.subr.bf16.mxu0 %v2029_v10 }
  0x42   : > { %1197 = vmatprep.mubr.bf16.mxu1 %v2001_v60  ;;  %1889 = vmatpush3.bf16.msra.mxu1 %v2035_v16 }
  0x43   : > { %1890 = vmatprep.subr.bf16.mxu1 %v2039_v19 }
  0x44   : > { %1811 = vmatpush3.bf16.msra.mxu0 %v2033_v14 }
  0x46   : > { %1891 = vmatpush3.bf16.msra.mxu1 %v2039_v19 }
  0x47   : > { %1101 = vmatmul.mubr.bf16.gmra.mrb[16].mxu0 %v1999_v1 }
  0x48   : > { %1108 = vmatprep.mubr.bf16.mxu0 %v2006_v3 }
  0x49   : > { %1198 = vmatmul.mubr.bf16.gmra.mrb[16].mxu1 %v2004_v2 }
  0x4a   : > { %1205 = vmatprep.mubr.bf16.mxu1 %v2011_v6 }
  0x4f   : > { %1109 = vmatmul.mubr.bf16.gmra.mrb[20].mxu0 %v2008_v9 }
  0x50   : > { %1116 = vmatprep.mubr.bf16.mxu0 %v2016_v12 }
  0x51   : > { %1206 = vmatmul.mubr.bf16.gmra.mrb[20].mxu1 %v2014_v11 }
  0x52   : > { %1213 = vmatprep.mubr.bf16.mxu1 %v2021_v15 }
  0x57   : > { %1117 = vmatmul.mubr.bf16.gmra.mrb[24].mxu0 %v2018_v17 }
  0x58   : > { %1124 = vmatprep.mubr.bf16.mxu0 %v2026_v18 }
  0x59   : > { %1214 = vmatmul.mubr.bf16.gmra.mrb[24].mxu1 %v2024_v20 }
  0x5a   : > { %1221 = vmatprep.mubr.bf16.mxu1 %v2031_v21 }
  0x5f   : > { %1125 = vmatmul.mubr.bf16.gmra.mrb[28].mxu0 %v2028_v22 }
  0x60   : > { %1262 = vmatprep.mubr.bf16.mxu0 %v2038_v23 }
  0x61   : > { %1222 = vmatmul.mubr.bf16.gmra.mrb[28].mxu1 %v2034_v24 }
  0x62   : > { %1892 = vmatprep.mubr.bf16.mxu1 %v2040_v25 }
  0x67   : > { %1263 = vmatmul.mubr.bf16.vlgmr.msra.gmra.mrb[32].mxu0 %v2036_v26 }
  0x68   : > { %1270 = vmatprep.mubr.bf16.mxu0 %v2042_v27 }
  0x69   : > { %1893 = vmatmul.mubr.bf16.vlgmr.msra.gmra.mrb[32].mxu1 %v2041_v28 }
  0x6a   : > { %1896 = vmatprep.mubr.bf16.mxu1 %v2048_v29 }
  0x6f   : > { %1271 = vmatmul.mubr.bf16.gmra.mrb[36].mxu0 %v2044_v30 }
  0x70   : > { %1278 = vmatprep.mubr.bf16.mxu0 %v2045_v31 }
  0x71   : > { %1897 = vmatmul.mubr.bf16.gmra.mrb[36].mxu1 %v2049_v32 }
  0x72   : > { %1900 = vmatprep.mubr.bf16.mxu1 %v2056_v33 }
  0x77   : > { %1279 = vmatmul.mubr.bf16.gmra.mrb[40].mxu0 %v2047_v34 }
  0x78   : > { %1286 = vmatprep.mubr.bf16.mxu0 %v2050_v35 }
  0x79   : > { %1901 = vmatmul.mubr.bf16.gmra.mrb[40].mxu1 %v2057_v36 }
  0x7a   : > { %1904 = vmatprep.mubr.bf16.mxu1 %v2064_v37 }
  0x7f   : > { %1287 = vmatmul.mubr.bf16.gmra.mrb[44].mxu0 %v2052_v38 }
  0x80   : > { %1294 = vmatprep.mubr.bf16.mxu0 %v2053_v39 }
  0x81   : > { %1905 = vmatmul.mubr.bf16.gmra.mrb[44].mxu1 %v2065_v40 }
  0x87   : > { %1295 = vmatmul.mubr.bf16.gmra.mrb[48].mxu0 %v2055_v41 }
  0x88   : > { %1302 = vmatprep.mubr.bf16.mxu0 %v2058_v42 }
  0x8f   : > { %1303 = vmatmul.mubr.bf16.gmra.mrb[52].mxu0 %v2060_v43 }
  0x90   : > { %1310 = vmatprep.mubr.bf16.mxu0 %v2061_v44 }
  0x97   : > { %1311 = vmatmul.mubr.bf16.gmra.mrb[56].mxu0 %v2063_v45 }
  0x98   : > { %1318 = vmatprep.mubr.bf16.mxu0 %v2066_v46 }
  0x9f   : > { %1319 = vmatmul.mubr.bf16.gmra.mrb[60].mxu0 %v2068_v47 }
  0xfa   : > { %v1684_v48 = vpop.f32.mrb[0].mxu0 }
  0xfb   : > { %v1685_v50 = vpop.f32.mrb[1].mxu0 }
  0xfc   : > { %v1686_v51 = vadd.f32 %v1685_v50, %v1684_v48  ;;  %v1687_v52 = vpop.f32.mrb[2].mxu0  ;;  %v1748_v53 = vpop.f32.mrb[0].mxu1 }
  0xfd   : > { %v1688_v54 = vpop.f32.mrb[3].mxu0  ;;  %v1749_v57 = vpop.f32.mrb[1].mxu1 }
  0xfe   : > { %v1071_v55 = vadd.f32 %v1686_v51, %v2369_v49  ;;  %v1689_v56 = vadd.f32 %v1688_v54, %v1687_v52  ;;  %v1750_v58 = vadd.f32 %v1749_v57, %v1748_v53  ;;  %v1751_v59 = vpop.f32.mrb[2].mxu1 }
  0xff   : > { %v1752_v61 = vpop.f32.mrb[3].mxu1 }
 0x100   : > { %v1074_v60 = vadd.f32 %v1689_v56, %v2369_v49  ;;  %v2373_v62 = vadd.f32 %v1750_v58, %v1071_v55  ;;  %v1753_v63 = vadd.f32 %v1752_v61, %v1751_v59 }
 0x102   : > { %v1690_v0 = vpop.f32.mrb[4].mxu0  ;;  %v2375_v1 = vadd.f32 %v1753_v63, %v1074_v60 }
 0x103   : > { %v1691_v2 = vpop.f32.mrb[5].mxu0 }
 0x104   : > { %v1692_v3 = vadd.f32 %v1691_v2, %v1690_v0  ;;  %v1693_v4 = vpop.f32.mrb[6].mxu0  ;;  %v1754_v5 = vpop.f32.mrb[4].mxu1 }
 0x105   : > { %v1694_v6 = vpop.f32.mrb[7].mxu0  ;;  %v1755_v9 = vpop.f32.mrb[5].mxu1 }
 0x106   : > { %v1079_v7 = vadd.f32 %v1692_v3, %v2369_v49  ;;  %v1695_v8 = vadd.f32 %v1694_v6, %v1693_v4  ;;  %v1756_v10 = vadd.f32 %v1755_v9, %v1754_v5  ;;  %v1757_v11 = vpop.f32.mrb[6].mxu1 }
 0x107   : > { %v1758_v13 = vpop.f32.mrb[7].mxu1 }
 0x108   : > { %v1082_v12 = vadd.f32 %v1695_v8, %v2369_v49  ;;  %v2379_v14 = vadd.f32 %v1756_v10, %v1079_v7  ;;  %v1759_v15 = vadd.f32 %v1758_v13, %v1757_v11 }
 0x10a   : > { %v1696_v16 = vpop.f32.mrb[8].mxu0  ;;  %v2381_v17 = vadd.f32 %v1759_v15, %v1082_v12 }
 0x10b   : > { %v1697_v18 = vpop.f32.mrb[9].mxu0 }
 0x10c   : > { %v1698_v19 = vadd.f32 %v1697_v18, %v1696_v16  ;;  %v1699_v20 = vpop.f32.mrb[10].mxu0  ;;  %v1760_v21 = vpop.f32.mrb[8].mxu1 }
 0x10d   : > { %v1700_v22 = vpop.f32.mrb[11].mxu0  ;;  %v1761_v25 = vpop.f32.mrb[9].mxu1 }
 0x10e   : > { %v1087_v23 = vadd.f32 %v1698_v19, %v2369_v49  ;;  %v1701_v24 = vadd.f32 %v1700_v22, %v1699_v20  ;;  %v1762_v26 = vadd.f32 %v1761_v25, %v1760_v21  ;;  %v1763_v27 = vpop.f32.mrb[10].mxu1 }
 0x10f   : > { %v1764_v29 = vpop.f32.mrb[11].mxu1 }
 0x110   : > { %v1090_v28 = vadd.f32 %v1701_v24, %v2369_v49  ;;  %v2385_v30 = vadd.f32 %v1762_v26, %v1087_v23  ;;  %v1765_v31 = vadd.f32 %v1764_v29, %v1763_v27 }
 0x112   : > { %v1702_v32 = vpop.f32.mrb[12].mxu0  ;;  %v2387_v33 = vadd.f32 %v1765_v31, %v1090_v28 }
 0x113   : > { %v1703_v34 = vpop.f32.mrb[13].mxu0 }
 0x114   : > { %v1704_v35 = vadd.f32 %v1703_v34, %v1702_v32  ;;  %v1705_v36 = vpop.f32.mrb[14].mxu0  ;;  %v1766_v37 = vpop.f32.mrb[12].mxu1 }
 0x115   : > { %v1706_v38 = vpop.f32.mrb[15].mxu0  ;;  %v1767_v41 = vpop.f32.mrb[13].mxu1 }
 0x116   : > { %v1095_v39 = vadd.f32 %v1704_v35, %v2369_v49  ;;  %v1707_v40 = vadd.f32 %v1706_v38, %v1705_v36  ;;  %v1768_v42 = vadd.f32 %v1767_v41, %v1766_v37  ;;  %v1769_v43 = vpop.f32.mrb[14].mxu1 }
 0x117   : > { %v1770_v45 = vpop.f32.mrb[15].mxu1 }
 0x118   : > { %v1098_v44 = vadd.f32 %v1707_v40, %v2369_v49  ;;  %v2391_v46 = vadd.f32 %v1768_v42, %v1095_v39  ;;  %v1771_v47 = vadd.f32 %v1770_v45, %v1769_v43 }
 0x11a   : > { %v1708_v48 = vpop.f32.mrb[16].mxu0  ;;  %v2393_v50 = vadd.f32 %v1771_v47, %v1098_v44 }
 0x11b   : > { %v1709_v51 = vpop.f32.mrb[17].mxu0 }
 0x11c   : > { %v1710_v52 = vadd.f32 %v1709_v51, %v1708_v48  ;;  %v1711_v53 = vpop.f32.mrb[18].mxu0  ;;  %v1772_v54 = vpop.f32.mrb[16].mxu1 }
 0x11d   : > { %v1712_v55 = vpop.f32.mrb[19].mxu0  ;;  %v1773_v58 = vpop.f32.mrb[17].mxu1 }
 0x11e   : > { %v1103_v56 = vadd.f32 %v1710_v52, %v2369_v49  ;;  %v1713_v57 = vadd.f32 %v1712_v55, %v1711_v53  ;;  %v1774_v59 = vadd.f32 %v1773_v58, %v1772_v54  ;;  %v1775_v60 = vpop.f32.mrb[18].mxu1 }
 0x11f   : > { %v1776_v63 = vpop.f32.mrb[19].mxu1 }
 0x120   : > { %v1106_v61 = vadd.f32 %v1713_v57, %v2369_v49  ;;  %v2397_v0 = vadd.f32 %v1774_v59, %v1103_v56  ;;  %v1777_v2 = vadd.f32 %v1776_v63, %v1775_v60 }
 0x122   : > { %v1714_v3 = vpop.f32.mrb[20].mxu0  ;;  %v2399_v4 = vadd.f32 %v1777_v2, %v1106_v61 }
 0x123   : > { %v1715_v5 = vpop.f32.mrb[21].mxu0 }
 0x124   : > { %v1716_v6 = vadd.f32 %v1715_v5, %v1714_v3  ;;  %v1717_v7 = vpop.f32.mrb[22].mxu0  ;;  %v1778_v8 = vpop.f32.mrb[20].mxu1 }
 0x125   : > { %v1718_v9 = vpop.f32.mrb[23].mxu0  ;;  %v1779_v12 = vpop.f32.mrb[21].mxu1 }
 0x126   : > { %v1111_v10 = vadd.f32 %v1716_v6, %v2369_v49  ;;  %v1719_v11 = vadd.f32 %v1718_v9, %v1717_v7  ;;  %v1780_v13 = vadd.f32 %v1779_v12, %v1778_v8  ;;  %v1781_v15 = vpop.f32.mrb[22].mxu1 }
 0x127   : > { %v1782_v18 = vpop.f32.mrb[23].mxu1 }
 0x128   : > { %v1114_v16 = vadd.f32 %v1719_v11, %v2369_v49  ;;  %v2403_v19 = vadd.f32 %v1780_v13, %v1111_v10  ;;  %v1783_v20 = vadd.f32 %v1782_v18, %v1781_v15 }
 0x12a   : > { %v1720_v21 = vpop.f32.mrb[24].mxu0  ;;  %v2405_v22 = vadd.f32 %v1783_v20, %v1114_v16 }
 0x12b   : > { %v1721_v23 = vpop.f32.mrb[25].mxu0 }
 0x12c   : > { %v1722_v24 = vadd.f32 %v1721_v23, %v1720_v21  ;;  %v1723_v25 = vpop.f32.mrb[26].mxu0  ;;  %v1784_v26 = vpop.f32.mrb[24].mxu1 }
 0x12d   : > { %v1724_v27 = vpop.f32.mrb[27].mxu0  ;;  %v1785_v31 = vpop.f32.mrb[25].mxu1 }
 0x12e   : > { %v1119_v28 = vadd.f32 %v1722_v24, %v2369_v49  ;;  %v1725_v29 = vadd.f32 %v1724_v27, %v1723_v25  ;;  %v1786_v32 = vadd.f32 %v1785_v31, %v1784_v26  ;;  %v1787_v34 = vpop.f32.mrb[26].mxu1 }
 0x12f   : > { %v1788_v36 = vpop.f32.mrb[27].mxu1 }
 0x130   : > { %v1122_v35 = vadd.f32 %v1725_v29, %v2369_v49  ;;  %v2409_v37 = vadd.f32 %v1786_v32, %v1119_v28  ;;  %v1789_v38 = vadd.f32 %v1788_v36, %v1787_v34 }
 0x132   : > { %v1726_v39 = vpop.f32.mrb[28].mxu0  ;;  %v2411_v40 = vadd.f32 %v1789_v38, %v1122_v35 }
 0x133   : > { %v1727_v41 = vpop.f32.mrb[29].mxu0 }
 0x134   : > { %v1728_v42 = vadd.f32 %v1727_v41, %v1726_v39  ;;  %v1729_v43 = vpop.f32.mrb[30].mxu0  ;;  %v1790_v44 = vpop.f32.mrb[28].mxu1 }
 0x135   : > { %v1730_v45 = vpop.f32.mrb[31].mxu0  ;;  %v1791_v51 = vpop.f32.mrb[29].mxu1 }
 0x136   : > { %v1127_v47 = vadd.f32 %v1728_v42, %v2369_v49  ;;  %v1731_v48 = vadd.f32 %v1730_v45, %v1729_v43  ;;  %v1792_v52 = vadd.f32 %v1791_v51, %v1790_v44  ;;  %v1793_v53 = vpop.f32.mrb[30].mxu1 }
 0x137   : > { %v1794_v55 = vpop.f32.mrb[31].mxu1 }
 0x138   : > { %v1130_v54 = vadd.f32 %v1731_v48, %v2369_v49  ;;  %v2415_v56 = vadd.f32 %v1792_v52, %v1127_v47  ;;  %v1795_v57 = vadd.f32 %v1794_v55, %v1793_v53 }
 0x13a   : > { %v1812_v58 = vpop.f32.mrb[32].mxu0  ;;  %v2417_v59 = vadd.f32 %v1795_v57, %v1130_v54 }
 0x13b   : > { %v1813_v60 = vpop.f32.mrb[33].mxu0 }
 0x13c   : > { %v1814_v61 = vadd.f32 %v1813_v60, %v1812_v58  ;;  %v1815_v63 = vpop.f32.mrb[34].mxu0  ;;  %v1894_v3 = vpop.f32.mrb[32].mxu1 }
 0x13d   : > { %v1816_v2 = vpop.f32.mrb[35].mxu0  ;;  %v1361_v7 = vpop.f32.mrb[33].mxu1 }
 0x13e   : > { %v1817_v5 = vadd.f32 %v1816_v2, %v1815_v63  ;;  %v1265_v6 = vadd.f32 %v1814_v61, %v2373_v62  ;;  %v1895_v49 = vpop.f32.mrb[34].mxu1 }
 0x13f   : > { %v1364_v10 = vpop.f32.mrb[35].mxu1 }
 0x140   : > { %v1362_v8 = vadd.f32 %v1361_v7, %v1265_v6  ;;  %v1268_v9 = vadd.f32 %v1817_v5, %v2375_v1 }
 0x142   : > { %1424 = vst [vmem:[%s2424_s24] sm:$0xff] %v1362_v8  ;;  %v1365_v11 = vadd.f32 %v1364_v10, %v1268_v9  ;;  %v1818_v12 = vpop.f32.mrb[36].mxu0 }
 0x143   : > { %v1819_v13 = vpop.f32.mrb[37].mxu0 }
 0x144   : > { %1425 = vst [vmem:[%s2424_s24 + $0x8] sm:$0xff] %v1365_v11  ;;  %v1820_v62 = vadd.f32 %v1819_v13, %v1818_v12  ;;  %v1821_v15 = vpop.f32.mrb[38].mxu0  ;;  %v1898_v18 = vpop.f32.mrb[36].mxu1 }
 0x145   : > { %v1822_v16 = vpop.f32.mrb[39].mxu0  ;;  %v1377_v23 = vpop.f32.mrb[37].mxu1 }
 0x146   : > { %v1273_v20 = vadd.f32 %v1820_v62, %v2379_v14  ;;  %v1823_v21 = vadd.f32 %v1822_v16, %v1821_v15  ;;  %v1899_v24 = vpop.f32.mrb[38].mxu1 }
 0x147   : > { %v1380_v26 = vpop.f32.mrb[39].mxu1 }
 0x148   : > { %v1370_v25 = vadd.f32 %v1894_v3, %v1273_v20  ;;  %v1276_v1 = vadd.f32 %v1823_v21, %v2381_v17 }
 0x14a   : > { %1426 = vst [vmem:[%s2424_s24 + $0x10] sm:$0xff] %v1370_v25  ;;  %v1373_v27 = vadd.f32 %v1895_v49, %v1276_v1  ;;  %v1824_v28 = vpop.f32.mrb[40].mxu0 }
 0x14b   : > { %v1825_v29 = vpop.f32.mrb[41].mxu0 }
 0x14c   : > { %1427 = vst [vmem:[%s2424_s24 + $0x18] sm:$0xff] %v1373_v27  ;;  %v1826_v31 = vadd.f32 %v1825_v29, %v1824_v28  ;;  %v1827_v32 = vpop.f32.mrb[42].mxu0  ;;  %v1902_v35 = vpop.f32.mrb[40].mxu1 }
 0x14d   : > { %v1828_v34 = vpop.f32.mrb[43].mxu0  ;;  %v1393_v38 = vpop.f32.mrb[41].mxu1 }
 0x14e   : > { %v1829_v36 = vadd.f32 %v1828_v34, %v1827_v32  ;;  %v1281_v14 = vadd.f32 %v1826_v31, %v2385_v30  ;;  %v1903_v39 = vpop.f32.mrb[42].mxu1 }
 0x14f   : > { %v1396_v42 = vpop.f32.mrb[43].mxu1 }
 0x150   : > { %v1378_v41 = vadd.f32 %v1377_v23, %v1281_v14  ;;  %v1284_v17 = vadd.f32 %v1829_v36, %v2387_v33 }
 0x152   : > { %1428 = vst [vmem:[%s2424_s24 + $0x20] sm:$0xff] %v1378_v41  ;;  %v1381_v43 = vadd.f32 %v1380_v26, %v1284_v17  ;;  %v1830_v44 = vpop.f32.mrb[44].mxu0 }
 0x153   : > { %v1831_v45 = vpop.f32.mrb[45].mxu0 }
 0x154   : > { %1429 = vst [vmem:[%s2424_s24 + $0x28] sm:$0xff] %v1381_v43  ;;  %v1832_v47 = vadd.f32 %v1831_v45, %v1830_v44  ;;  %v1833_v48 = vpop.f32.mrb[46].mxu0  ;;  %v1906_v52 = vpop.f32.mrb[44].mxu1 }
 0x155   : > { %v1834_v51 = vpop.f32.mrb[47].mxu0  ;;  %v1409_v54 = vpop.f32.mrb[45].mxu1 }
 0x156   : > { %v1289_v53 = vadd.f32 %v1832_v47, %v2391_v46  ;;  %v1835_v30 = vadd.f32 %v1834_v51, %v1833_v48  ;;  %v1907_v55 = vpop.f32.mrb[46].mxu1 }
 0x157   : > { %v1412_v58 = vpop.f32.mrb[47].mxu1 }
 0x158   : > { %v1386_v57 = vadd.f32 %v1898_v18, %v1289_v53  ;;  %v1292_v33 = vadd.f32 %v1835_v30, %v2393_v50 }
 0x15a   : > { %1430 = vst [vmem:[%s2424_s24 + $0x30] sm:$0xff] %v1386_v57  ;;  %v1389_v60 = vadd.f32 %v1899_v24, %v1292_v33  ;;  %v1836_v61 = vpop.f32.mrb[48].mxu0 }
 0x15b   : > { %v1837_v63 = vpop.f32.mrb[49].mxu0 }
 0x15c   : > { %1431 = vst [vmem:[%s2424_s24 + $0x38] sm:$0xff] %v1389_v60  ;;  %v1838_v2 = vadd.f32 %v1837_v63, %v1836_v61  ;;  %v1839_v3 = vpop.f32.mrb[50].mxu0 }
 0x15d   : > { %v1840_v5 = vpop.f32.mrb[51].mxu0 }
 0x15e   : > { %v1841_v6 = vadd.f32 %v1840_v5, %v1839_v3  ;;  %v1297_v46 = vadd.f32 %v1838_v2, %v2397_v0 }
 0x160   : > { %v1394_v7 = vadd.f32 %v1393_v38, %v1297_v46  ;;  %v1300_v49 = vadd.f32 %v1841_v6, %v2399_v4 }
 0x162   : > { %1432 = vst [vmem:[%s2424_s24 + $0x40] sm:$0xff] %v1394_v7  ;;  %v1397_v50 = vadd.f32 %v1396_v42, %v1300_v49  ;;  %v1842_v8 = vpop.f32.mrb[52].mxu0 }
 0x163   : > { %v1843_v9 = vpop.f32.mrb[53].mxu0 }
 0x164   : > { %1433 = vst [vmem:[%s2424_s24 + $0x48] sm:$0xff] %v1397_v50  ;;  %v1844_v10 = vadd.f32 %v1843_v9, %v1842_v8  ;;  %v1845_v11 = vpop.f32.mrb[54].mxu0 }
 0x165   : > { %v1846_v12 = vpop.f32.mrb[55].mxu0 }
 0x166   : > { %v1305_v13 = vadd.f32 %v1844_v10, %v2403_v19  ;;  %v1847_v62 = vadd.f32 %v1846_v12, %v1845_v11 }
 0x168   : > { %v1402_v15 = vadd.f32 %v1902_v35, %v1305_v13  ;;  %v1308_v16 = vadd.f32 %v1847_v62, %v2405_v22 }
 0x16a   : > { %1434 = vst [vmem:[%s2424_s24 + $0x50] sm:$0xff] %v1402_v15  ;;  %v1405_v0 = vadd.f32 %v1903_v39, %v1308_v16  ;;  %v1848_v4 = vpop.f32.mrb[56].mxu0 }
 0x16b   : > { %v1849_v18 = vpop.f32.mrb[57].mxu0 }
 0x16c   : > { %1435 = vst [vmem:[%s2424_s24 + $0x58] sm:$0xff] %v1405_v0  ;;  %v1850_v20 = vadd.f32 %v1849_v18, %v1848_v4  ;;  %v1851_v21 = vpop.f32.mrb[58].mxu0 }
 0x16d   : > { %v1852_v23 = vpop.f32.mrb[59].mxu0 }
 0x16e   : > { %v1853_v24 = vadd.f32 %v1852_v23, %v1851_v21  ;;  %v1313_v25 = vadd.f32 %v1850_v20, %v2409_v37 }
 0x170   : > { %v1410_v1 = vadd.f32 %v1409_v54, %v1313_v25  ;;  %v1316_v19 = vadd.f32 %v1853_v24, %v2411_v40 }
 0x172   : > { %1436 = vst [vmem:[%s2424_s24 + $0x60] sm:$0xff] %v1410_v1  ;;  %v1413_v26 = vadd.f32 %v1412_v58, %v1316_v19  ;;  %v1854_v22 = vpop.f32.mrb[60].mxu0 }
 0x173   : > { %v1855_v27 = vpop.f32.mrb[61].mxu0 }
 0x174   : > { %1437 = vst [vmem:[%s2424_s24 + $0x68] sm:$0xff] %v1413_v26  ;;  %v1856_v28 = vadd.f32 %v1855_v27, %v1854_v22  ;;  %v1857_v29 = vpop.f32.mrb[62].mxu0 }
 0x175   : > { %v1858_v31 = vpop.f32.mrb[63].mxu0 }
 0x176   : > { %v1321_v32 = vadd.f32 %v1856_v28, %v2415_v56  ;;  %v1859_v34 = vadd.f32 %v1858_v31, %v1857_v29 }
 0x178   : > { %v1418_v35 = vadd.f32 %v1906_v52, %v1321_v32  ;;  %v1324_v36 = vadd.f32 %v1859_v34, %v2417_v59 }
 0x17a   : > { %1438 = vst [vmem:[%s2424_s24 + $0x70] sm:$0xff] %v1418_v35  ;;  %v1421_v37 = vadd.f32 %v1907_v55, %v1324_v36 }
 0x17c   : > { %1439 = vst [vmem:[%s2424_s24 + $0x78] sm:$0xff] %v1421_v37 }
 0x17d PF: > { %s13_s14 = sadd.s32 1, %s2091_s14   ;;  %s2470_s12 = smov %s2087_s13 }
 0x17e   : > { %p10_p5 = scmp.ge.s32.totalorder %s13_s14, 4   ;;  %s2471_s13 = smov %s2473_s15 }
 0x180   :  { %12 = sbr.rel (!%p10_p5) target bundleno = 2 (0x2), region = 68 }

// kernel: _lambda_.33
= control target key start
LH: loop header
LB: loop body
LE: loop exit
PB: predicated region body
PF: predicated region fallthrough
CT: control target
= control target key end

     0   :  { %s2129_s12 = smov 0   ;;  %s2131_s13 = smov 0   ;;  %s2485_s0 = inlined_call_operand.vmem [shape: bf16[256,896], index: 0, kind: input, shape index: {}]   ;;  %s2486_s1 = inlined_call_operand.vmem [shape: bf16[896,128], index: 1, kind: input, shape index: {}]   ;;  %s2487_s2 = inlined_call_operand.vmem [shape: f32[1,128], index: 2, kind: input, shape index: {}]   ;;  %s2488_s3 = inlined_call_operand.vmem [shape: f32[256,128], index: 3, kind: output, shape index: {}]  }
   0x1   :  { %s2133_s14 = smov 0  }
   0x2 LB: > { %s25_s15 = sadd.s32 1, %s2103_s13  ;;  %p1564_p0 = scmp.ge.s32.totalorder %s2107_s14, 1  ;;  %s2107_s14 = sphi %s2133_s14, %s13_s14   ;;  %s2103_s13 = sphi %s2131_s13, %s2490_s13   ;;  %s2099_s12 = sphi %s2129_s12, %s2489_s12  }
   0x3   : > { %p27_p1 = scmp.ge.s32.totalorder %s25_s15, 2  ;;  %p170_p2 = scmp.lt.s32.totalorder %s2107_s14, 3 }
   0x5   : > { %s2492_s15 = smov (%p27_p1, %s25_s15), 0  ;;  %p171_p3 = pnand %p1564_p0, %p170_p2 }
   0x6   : > { %v1949_v0 = vld [vmem:[%s2486_s1 + $0x40] sm:$0xff] (!%p171_p3)   ;;  %v1953_v4 = vld [vmem:[%s2486_s1 + $0x48] sm:$0xff] (!%p171_p3)   ;;  %v1957_v8 = vld [vmem:[%s2486_s1 + $0x50] sm:$0xff] (!%p171_p3)   ;;  %s1565_s21 = sshll.u32 (!%p171_p3), %s2099_s12, 4 }
   0x7   : > { %174 = sbr.rel (%p171_p3) target bundleno = 383 (0x17f), region = 32  ;;  %v1950_v1 = vld [vmem:[%s2486_s1] sm:$0xff] (!%p171_p3)   ;;  %1684 = vmatprep.subr.bf16.mxu0 (!%p171_p3), %v1949_v0  ;;  %v1954_v5 = vld [vmem:[%s2486_s1 + $0x8] sm:$0xff] (!%p171_p3)   ;;  %v1958_v9 = vld [vmem:[%s2486_s1 + $0x10] sm:$0xff] (!%p171_p3)   ;;  %p206_p4 = scmp.lt.s32.totalorder (!%p171_p3), %s1565_s21, 31 }
   0x8   : > { %v1951_v2 = vld [vmem:[%s2486_s1 + $0xc0] sm:$0xff] (!%p171_p3)   ;;  %1685 = vmatpush3.bf16.msra.mxu0 (!%p171_p3), %v1950_v1  ;;  %v1955_v6 = vld [vmem:[%s2486_s1 + $0xc8] sm:$0xff] (!%p171_p3)   ;;  %v1959_v10 = vld [vmem:[%s2486_s1 + $0xd0] sm:$0xff] (!%p171_p3)  }
   0x9   : > { %v1952_v3 = vld [vmem:[%s2486_s1 + $0x80] sm:$0xff] (!%p171_p3)   ;;  %1748 = vmatprep.subr.bf16.mxu1 (!%p171_p3), %v1951_v2  ;;  %1686 = vmatprep.subr.bf16.mxu0 (!%p171_p3), %v1953_v4  ;;  %v1956_v7 = vld [vmem:[%s2486_s1 + $0x88] sm:$0xff] (!%p171_p3)   ;;  %v1960_v11 = vld [vmem:[%s2486_s1 + $0x90] sm:$0xff] (!%p171_p3)  }
   0xa   : > { %1749 = vmatpush3.bf16.msra.mxu1 (!%p171_p3), %v1952_v3  ;;  %v1961_v12 = vld [vmem:[%s2486_s1 + $0x58] sm:$0xff] (!%p171_p3)   ;;  %v1965_v16 = vld [vmem:[%s2486_s1 + $0x60] sm:$0xff] (!%p171_p3)   ;;  %v1969_v20 = vld [vmem:[%s2486_s1 + $0x68] sm:$0xff] (!%p171_p3)  }
   0xb   : > { %1750 = vmatprep.subr.bf16.mxu1 (!%p171_p3), %v1955_v6  ;;  %v1962_v13 = vld [vmem:[%s2486_s1 + $0x18] sm:$0xff] (!%p171_p3)   ;;  %v1966_v17 = vld [vmem:[%s2486_s1 + $0x20] sm:$0xff] (!%p171_p3)   ;;  %v1970_v21 = vld [vmem:[%s2486_s1 + $0x28] sm:$0xff] (!%p171_p3)  }
   0xc   : > { %1687 = vmatpush3.bf16.msra.mxu0 (!%p171_p3), %v1954_v5  ;;  %v1963_v14 = vld [vmem:[%s2486_s1 + $0xd8] sm:$0xff] (!%p171_p3)   ;;  %v1967_v18 = vld [vmem:[%s2486_s1 + $0xe0] sm:$0xff] (!%p171_p3)   ;;  %v1971_v22 = vld [vmem:[%s2486_s1 + $0xe8] sm:$0xff] (!%p171_p3)  }
   0xd   : > { %1688 = vmatprep.subr.bf16.mxu0 (!%p171_p3), %v1957_v8  ;;  %v1964_v15 = vld [vmem:[%s2486_s1 + $0x98] sm:$0xff] (!%p171_p3)   ;;  %v1968_v19 = vld [vmem:[%s2486_s1 + $0xa0] sm:$0xff] (!%p171_p3)   ;;  %v1972_v23 = vld [vmem:[%s2486_s1 + $0xa8] sm:$0xff] (!%p171_p3)  }
   0xe   : > { %1751 = vmatpush3.bf16.msra.mxu1 %v1956_v7  ;;  %s2494_s21 = smov (!%p206_p4, %s1565_s21), 31  ;;  %v1973_v24 = vld [vmem:[%s2486_s1 + $0x70] sm:$0xff]   ;;  %v1977_v28 = vld [vmem:[%s2486_s1 + $0x78] sm:$0xff]   ;;  %v1984_v34 = vld [vmem:[%s2486_s1 + $0x140] sm:$0xff]  }
   0xf   : > { %1752 = vmatprep.subr.bf16.mxu1 %v1959_v10  ;;  %s1924_s20 = smul.u32 28, %s2494_s21  ;;  %v1974_v25 = vld [vmem:[%s2486_s1 + $0x30] sm:$0xff]   ;;  %v1978_v29 = vld [vmem:[%s2486_s1 + $0x38] sm:$0xff]   ;;  %v1988_v37 = vld [vmem:[%s2486_s1 + $0x100] sm:$0xff]  }
  0x10   : > { %1689 = vmatpush3.bf16.msra.mxu0 %v1958_v9  ;;  %v1975_v26 = vld [vmem:[%s2486_s1 + $0xf0] sm:$0xff]   ;;  %v1979_v30 = vld [vmem:[%s2486_s1 + $0xf8] sm:$0xff]   ;;  %v1992_v40 = vld [vmem:[%s2486_s1 + $0x148] sm:$0xff]  }
  0x11   : > { %1690 = vmatprep.subr.bf16.mxu0 %v1961_v12  ;;  %v1976_v27 = vld [vmem:[%s2486_s1 + $0xb0] sm:$0xff]   ;;  %s2243_s4 = scalar_lea.vmem %s2485_s0, %s1924_s20  ;;  %v1983_v33 = vld [vmem:[%s2486_s1 + $0xb8] sm:$0xff]   ;;  %v1995_v42 = vld [vmem:[%s2486_s1 + $0x108] sm:$0xff]  }
  0x12   : > { %1753 = vmatpush3.bf16.msra.mxu1 %v1960_v11  ;;  %v1980_v31 = vld [vmem:[%s2243_s4] ss:$28 sps:$4 sm:$0xff]   ;;  %v1985_v35 = vld [vmem:[%s2243_s4 + $0x8] ss:$28 sps:$4 sm:$0xff]   ;;  %v1991_v39 = vld [vmem:[%s2243_s4 + $0x38] ss:$28 sps:$4 sm:$0xff]  }
  0x13   : > { %1754 = vmatprep.subr.bf16.mxu1 %v1963_v14  ;;  %v1982_v32 = vld [vmem:[%s2243_s4 + $0x4] ss:$28 sps:$4 sm:$0xff]   ;;  %v1987_v36 = vld [vmem:[%s2243_s4 + $0xc] ss:$28 sps:$4 sm:$0xff]   ;;  %v1989_v38 = vld [vmem:[%s2243_s4 + $0x3c] ss:$28 sps:$4 sm:$0xff]  }
  0x14   : > { %1691 = vmatpush3.bf16.msra.mxu0 %v1962_v13  ;;  %1068 = vmatprep.mubr.bf16.mxu0 %v1982_v32  ;;  %v1993_v41 = vld [vmem:[%s2243_s4 + $0x44] ss:$28 sps:$4 sm:$0xff]   ;;  %v1997_v44 = vld [vmem:[%s2243_s4 + $0x74] ss:$28 sps:$4 sm:$0xff]   ;;  %v2001_v46 = vld [vmem:[%s2243_s4 + $0x7c] ss:$28 sps:$4 sm:$0xff]  }
  0x15   : > { %1692 = vmatprep.subr.bf16.mxu0 %v1965_v16  ;;  %1165 = vmatprep.mubr.bf16.mxu1 %v1987_v36  ;;  %v1996_v43 = vld [vmem:[%s2243_s4 + $0x40] ss:$28 sps:$4 sm:$0xff]   ;;  %v2000_v45 = vld [vmem:[%s2486_s1 + $0x150] sm:$0xff]   ;;  %v2005_v49 = vld [vmem:[%s2243_s4 + $0xac] ss:$28 sps:$4 sm:$0xff]  }
  0x16   : > { %1755 = vmatpush3.bf16.msra.mxu1 %v1964_v15  ;;  %v2003_v47 = vld [vmem:[%s2486_s1 + $0x110] sm:$0xff]   ;;  %v2008_v50 = vld [vmem:[%s2486_s1 + $0x158] sm:$0xff]   ;;  %v2016_v54 = vld [vmem:[%s2486_s1 + $0x160] sm:$0xff]  }
  0x17   : > { %1756 = vmatprep.subr.bf16.mxu1 %v1967_v18  ;;  %v1999_v48 = vld [vmem:[%s2243_s4 + $0x70] ss:$28 sps:$4 sm:$0xff]   ;;  %v2004_v51 = vld [vmem:[%s2243_s4 + $0x78] ss:$28 sps:$4 sm:$0xff]   ;;  %v2007_v55 = vld [vmem:[%s2243_s4 + $0xa8] ss:$28 sps:$4 sm:$0xff]  }
  0x18   : > { %1693 = vmatpush3.bf16.msra.mxu0 %v1966_v17  ;;  %v2011_v52 = vld [vmem:[%s2486_s1 + $0x118] sm:$0xff]   ;;  %v2009_v53 = vld [vmem:[%s2243_s4 + $0xb4] ss:$28 sps:$4 sm:$0xff]   ;;  %v2019_v56 = vld [vmem:[%s2486_s1 + $0x120] sm:$0xff]  }
  0x19   : > { %1694 = vmatprep.subr.bf16.mxu0 %v1969_v20  ;;  %v2013_v57 = vld [vmem:[%s2243_s4 + $0xe4] ss:$28 sps:$4 sm:$0xff]   ;;  %v2012_v59 = vld [vmem:[%s2243_s4 + $0xb0] ss:$28 sps:$4 sm:$0xff]   ;;  %v2022_v3 = vld [vmem:[%s2243_s4 + $0x11c] ss:$28 sps:$4 sm:$0xff]  }
  0x1a   : > { %1757 = vmatpush3.bf16.msra.mxu1 %v1968_v19  ;;  %v2021_v58 = vld [vmem:[%s2486_s1 + $0x180] sm:$0xff]   ;;  %v2017_v60 = vld [vmem:[%s2243_s4 + $0xec] ss:$28 sps:$4 sm:$0xff]   ;;  %v2031_v0 = vld [vmem:[%s2486_s1 + $0x190] sm:$0xff]  }
  0x1b   : > { %1758 = vmatprep.subr.bf16.mxu1 %v1971_v22  ;;  %v2025_v61 = vld [vmem:[%s2486_s1 + $0x168] sm:$0xff]   ;;  %v2015_v1 = vld [vmem:[%s2243_s4 + $0xe0] ss:$28 sps:$4 sm:$0xff]   ;;  %v2035_v4 = vld [vmem:[%s2486_s1 + $0x170] sm:$0xff]  }
  0x1c   : > { %1695 = vmatpush3.bf16.msra.mxu0 %v1970_v21  ;;  %v2026_v62 = vld [vmem:[%s2486_s1 + $0x188] sm:$0xff]   ;;  %v2036_v5 = vld [vmem:[%s2486_s1 + $0x198] sm:$0xff]   ;;  %v2027_v6 = vld [vmem:[%s2243_s4 + $0x124] ss:$28 sps:$4 sm:$0xff]  }
  0x1d   : > { %1696 = vmatprep.subr.bf16.mxu0 %v1973_v24  ;;  %v2029_v63 = vld [vmem:[%s2486_s1 + $0x128] sm:$0xff]   ;;  %v2039_v7 = vld [vmem:[%s2486_s1 + $0x130] sm:$0xff]   ;;  %v2041_v8 = vld [vmem:[%s2486_s1 + $0x1a0] sm:$0xff]  }
  0x1e   : > { %1759 = vmatpush3.bf16.msra.mxu1 %v1972_v23  ;;  %v2020_v2 = vld [vmem:[%s2243_s4 + $0xe8] ss:$28 sps:$4 sm:$0xff]   ;;  %v2024_v9 = vld [vmem:[%s2243_s4 + $0x118] ss:$28 sps:$4 sm:$0xff]   ;;  %v2030_v11 = vld [vmem:[%s2243_s4 + $0x120] ss:$28 sps:$4 sm:$0xff]  }
  0x1f   : > { %1760 = vmatprep.subr.bf16.mxu1 %v1975_v26  ;;  %v2045_v10 = vld [vmem:[%s2486_s1 + $0x178] sm:$0xff]   ;;  %v2032_v12 = vld [vmem:[%s2243_s4 + $0x154] ss:$28 sps:$4 sm:$0xff]   ;;  %v2046_v13 = vld [vmem:[%s2486_s1 + $0x1a8] sm:$0xff]  }
  0x20   : > { %1697 = vmatpush3.bf16.msra.mxu0 %v1974_v25  ;;  %v2049_v14 = vld [vmem:[%s2486_s1 + $0x138] sm:$0xff]   ;;  %v2051_v16 = vld [vmem:[%s2486_s1 + $0x1b0] sm:$0xff]   ;;  %v2042_v18 = vld [vmem:[%s2243_s4 + $0x18c] ss:$28 sps:$4 sm:$0xff]  }
  0x21   : > { %1698 = vmatprep.subr.bf16.mxu0 %v1977_v28  ;;  %v2037_v15 = vld [vmem:[%s2243_s4 + $0x15c] ss:$28 sps:$4 sm:$0xff]   ;;  %v2034_v17 = vld [vmem:[%s2243_s4 + $0x150] ss:$28 sps:$4 sm:$0xff]   ;;  %v2044_v22 = vld [vmem:[%s2243_s4 + $0x188] ss:$28 sps:$4 sm:$0xff]  }
  0x22   : > { %1761 = vmatpush3.bf16.msra.mxu1 %v1976_v27  ;;  %v2055_v19 = vld [vmem:[%s2486_s1 + $0x1b8] sm:$0xff]   ;;  %v2047_v21 = vld [vmem:[%s2243_s4 + $0x194] ss:$28 sps:$4 sm:$0xff]   ;;  %v2058_v27 = vld [vmem:[%s2243_s4 + $0x4c] ss:$28 sps:$4 sm:$0xff]  }
  0x23   : > { %1762 = vmatprep.subr.bf16.mxu1 %v1979_v30  ;;  %v2040_v20 = vld [vmem:[%s2243_s4 + $0x158] ss:$28 sps:$4 sm:$0xff]   ;;  %v2050_v24 = vld [vmem:[%s2243_s4 + $0x190] ss:$28 sps:$4 sm:$0xff]   ;;  %v2060_v30 = vld [vmem:[%s2243_s4 + $0x48] ss:$28 sps:$4 sm:$0xff]  }
  0x24   : > { %1699 = vmatpush3.bf16.msra.mxu0 %v1978_v29  ;;  %v2054_v23 = vld [vmem:[%s2243_s4 + $0x14] ss:$28 sps:$4 sm:$0xff]   ;;  %v2064_v29 = vld [vmem:[%s2243_s4 + $0x88] ss:$28 sps:$4 sm:$0xff]   ;;  %v2065_v32 = vld [vmem:[%s2243_s4 + $0xc0] ss:$28 sps:$4 sm:$0xff]  }
  0x25   : > { %1812 = vmatprep.subr.bf16.mxu0 %v1984_v34  ;;  %v2056_v25 = vld [vmem:[%s2243_s4 + $0x18] ss:$28 sps:$4 sm:$0xff]   ;;  %v2052_v26 = vld [vmem:[%s2243_s4 + $0x10] ss:$28 sps:$4 sm:$0xff]   ;;  %v2063_v34 = vld [vmem:[%s2243_s4 + $0x80] ss:$28 sps:$4 sm:$0xff]  }
  0x26   : > { %1763 = vmatpush3.bf16.msra.mxu1 %v1983_v33  ;;  %v2057_v28 = vld [vmem:[%s2243_s4 + $0x50] ss:$28 sps:$4 sm:$0xff]   ;;  %v2072_v33 = vld [vmem:[%s2243_s4 + $0xf8] ss:$28 sps:$4 sm:$0xff]  }
  0x27   : > { %1069 = vmatmul.mubr.bf16.vlgmr.msra.gmra.mrb[0].mxu0 %v1980_v31  ;;  %1892 = vmatprep.subr.bf16.mxu1 %v2021_v58  ;;  %v2061_v31 = vld [vmem:[%s2243_s4 + $0x84] ss:$28 sps:$4 sm:$0xff]   ;;  %v2073_v36 = vld [vmem:[%s2243_s4 + $0x130] ss:$28 sps:$4 sm:$0xff]  }
  0x28   : > { %1813 = vmatpush3.bf16.msra.mxu0 %v1988_v37  ;;  %1076 = vmatprep.mubr.bf16.mxu0 %v1989_v38  ;;  %v2080_v37 = vld [vmem:[%s2243_s4 + $0x168] ss:$28 sps:$4 sm:$0xff]   ;;  %v2068_v38 = vld [vmem:[%s2243_s4 + $0xb8] ss:$28 sps:$4 sm:$0xff]  }
  0x29   : > { %1166 = vmatmul.mubr.bf16.vlgmr.msra.gmra.mrb[0].mxu1 %v1985_v35  ;;  %1814 = vmatprep.subr.bf16.mxu0 %v1992_v40  ;;  %v2066_v35 = vld [vmem:[%s2243_s4 + $0xbc] ss:$28 sps:$4 sm:$0xff]  }
  0x2a   : > { %1173 = vmatprep.mubr.bf16.mxu1 %v1993_v41  ;;  %1893 = vmatpush3.bf16.msra.mxu1 %v2021_v58  ;;  %v2081_v40 = vld [vmem:[%s2243_s4 + $0x1a0] ss:$28 sps:$4 sm:$0xff]   ;;  %v2071_v41 = vld [vmem:[%s2243_s4 + $0xf0] ss:$28 sps:$4 sm:$0xff]  }
  0x2b   : > { %1894 = vmatprep.subr.bf16.mxu1 %v2026_v62 }
  0x2c   : > { %1815 = vmatpush3.bf16.msra.mxu0 %v1995_v42  ;;  %v2074_v42 = vld [vmem:[%s2243_s4 + $0x12c] ss:$28 sps:$4 sm:$0xff]  }
  0x2d   : > { %1816 = vmatprep.subr.bf16.mxu0 %v2000_v45  ;;  %v2079_v45 = vld [vmem:[%s2243_s4 + $0x160] ss:$28 sps:$4 sm:$0xff]  }
  0x2e   : > { %1895 = vmatpush3.bf16.msra.mxu1 %v2026_v62 }
  0x2f   : > { %1077 = vmatmul.mubr.bf16.gmra.mrb[4].mxu0 %v1991_v39  ;;  %1896 = vmatprep.subr.bf16.mxu1 %v2031_v0  ;;  %v2069_v39 = vld [vmem:[%s2243_s4 + $0xf4] ss:$28 sps:$4 sm:$0xff]  }
  0x30   : > { %1084 = vmatprep.mubr.bf16.mxu0 %v1997_v44  ;;  %1817 = vmatpush3.bf16.msra.mxu0 %v2003_v47  ;;  %v2077_v44 = vld [vmem:[%s2243_s4 + $0x164] ss:$28 sps:$4 sm:$0xff]   ;;  %v2084_v47 = vld [vmem:[%s2243_s4 + $0x198] ss:$28 sps:$4 sm:$0xff]  }
  0x31   : > { %1174 = vmatmul.mubr.bf16.gmra.mrb[4].mxu1 %v1996_v43  ;;  %1818 = vmatprep.subr.bf16.mxu0 %v2008_v50  ;;  %v2076_v43 = vld [vmem:[%s2243_s4 + $0x128] ss:$28 sps:$4 sm:$0xff]  }
  0x32   : > { %1181 = vmatprep.mubr.bf16.mxu1 %v2001_v46  ;;  %1897 = vmatpush3.bf16.msra.mxu1 %v2031_v0  ;;  %v2082_v46 = vld [vmem:[%s2243_s4 + $0x19c] ss:$28 sps:$4 sm:$0xff]   ;;  %s1568_s4 = sshll.u32 %s2494_s21, 3 }
  0x33   : > { %1898 = vmatprep.subr.bf16.mxu1 %v2036_v5  ;;  %s2441_s24 = scalar_lea.vmem %s2488_s3, %s1568_s4 }
  0x34   : > { %1819 = vmatpush3.bf16.msra.mxu0 %v2011_v52 }
  0x35   : > { %1820 = vmatprep.subr.bf16.mxu0 %v2016_v54 }
  0x36   : > { %1899 = vmatpush3.bf16.msra.mxu1 %v2036_v5 }
  0x37   : > { %1085 = vmatmul.mubr.bf16.gmra.mrb[8].mxu0 %v1999_v48  ;;  %1900 = vmatprep.subr.bf16.mxu1 %v2041_v8 }
  0x38   : > { %1092 = vmatprep.mubr.bf16.mxu0 %v2005_v49  ;;  %1821 = vmatpush3.bf16.msra.mxu0 %v2019_v56  ;;  %v2385_v49 = vld [vmem:[%s2487_s2] ss:$0 sm:$0xff] }
  0x39   : > { %1182 = vmatmul.mubr.bf16.gmra.mrb[8].mxu1 %v2004_v51  ;;  %1822 = vmatprep.subr.bf16.mxu0 %v2025_v61 }
  0x3a   : > { %1189 = vmatprep.mubr.bf16.mxu1 %v2009_v53  ;;  %1901 = vmatpush3.bf16.msra.mxu1 %v2041_v8 }
  0x3b   : > { %1902 = vmatprep.subr.bf16.mxu1 %v2046_v13 }
  0x3c   : > { %1823 = vmatpush3.bf16.msra.mxu0 %v2029_v63 }
  0x3d   : > { %1824 = vmatprep.subr.bf16.mxu0 %v2035_v4 }
  0x3e   : > { %1903 = vmatpush3.bf16.msra.mxu1 %v2046_v13 }
  0x3f   : > { %1093 = vmatmul.mubr.bf16.gmra.mrb[12].mxu0 %v2007_v55  ;;  %1904 = vmatprep.subr.bf16.mxu1 %v2051_v16 }
  0x40   : > { %1100 = vmatprep.mubr.bf16.mxu0 %v2013_v57  ;;  %1825 = vmatpush3.bf16.msra.mxu0 %v2039_v7 }
  0x41   : > { %1190 = vmatmul.mubr.bf16.gmra.mrb[12].mxu1 %v2012_v59  ;;  %1826 = vmatprep.subr.bf16.mxu0 %v2045_v10 }
  0x42   : > { %1197 = vmatprep.mubr.bf16.mxu1 %v2017_v60  ;;  %1905 = vmatpush3.bf16.msra.mxu1 %v2051_v16 }
  0x43   : > { %1906 = vmatprep.subr.bf16.mxu1 %v2055_v19 }
  0x44   : > { %1827 = vmatpush3.bf16.msra.mxu0 %v2049_v14 }
  0x46   : > { %1907 = vmatpush3.bf16.msra.mxu1 %v2055_v19 }
  0x47   : > { %1101 = vmatmul.mubr.bf16.gmra.mrb[16].mxu0 %v2015_v1 }
  0x48   : > { %1108 = vmatprep.mubr.bf16.mxu0 %v2022_v3 }
  0x49   : > { %1198 = vmatmul.mubr.bf16.gmra.mrb[16].mxu1 %v2020_v2 }
  0x4a   : > { %1205 = vmatprep.mubr.bf16.mxu1 %v2027_v6 }
  0x4f   : > { %1109 = vmatmul.mubr.bf16.gmra.mrb[20].mxu0 %v2024_v9 }
  0x50   : > { %1116 = vmatprep.mubr.bf16.mxu0 %v2032_v12 }
  0x51   : > { %1206 = vmatmul.mubr.bf16.gmra.mrb[20].mxu1 %v2030_v11 }
  0x52   : > { %1213 = vmatprep.mubr.bf16.mxu1 %v2037_v15 }
  0x57   : > { %1117 = vmatmul.mubr.bf16.gmra.mrb[24].mxu0 %v2034_v17 }
  0x58   : > { %1124 = vmatprep.mubr.bf16.mxu0 %v2042_v18 }
  0x59   : > { %1214 = vmatmul.mubr.bf16.gmra.mrb[24].mxu1 %v2040_v20 }
  0x5a   : > { %1221 = vmatprep.mubr.bf16.mxu1 %v2047_v21 }
  0x5f   : > { %1125 = vmatmul.mubr.bf16.gmra.mrb[28].mxu0 %v2044_v22 }
  0x60   : > { %1262 = vmatprep.mubr.bf16.mxu0 %v2054_v23 }
  0x61   : > { %1222 = vmatmul.mubr.bf16.gmra.mrb[28].mxu1 %v2050_v24 }
  0x62   : > { %1908 = vmatprep.mubr.bf16.mxu1 %v2056_v25 }
  0x67   : > { %1263 = vmatmul.mubr.bf16.vlgmr.msra.gmra.mrb[32].mxu0 %v2052_v26 }
  0x68   : > { %1270 = vmatprep.mubr.bf16.mxu0 %v2058_v27 }
  0x69   : > { %1909 = vmatmul.mubr.bf16.vlgmr.msra.gmra.mrb[32].mxu1 %v2057_v28 }
  0x6a   : > { %1912 = vmatprep.mubr.bf16.mxu1 %v2064_v29 }
  0x6f   : > { %1271 = vmatmul.mubr.bf16.gmra.mrb[36].mxu0 %v2060_v30 }
  0x70   : > { %1278 = vmatprep.mubr.bf16.mxu0 %v2061_v31 }
  0x71   : > { %1913 = vmatmul.mubr.bf16.gmra.mrb[36].mxu1 %v2065_v32 }
  0x72   : > { %1916 = vmatprep.mubr.bf16.mxu1 %v2072_v33 }
  0x77   : > { %1279 = vmatmul.mubr.bf16.gmra.mrb[40].mxu0 %v2063_v34 }
  0x78   : > { %1286 = vmatprep.mubr.bf16.mxu0 %v2066_v35 }
  0x79   : > { %1917 = vmatmul.mubr.bf16.gmra.mrb[40].mxu1 %v2073_v36 }
  0x7a   : > { %1920 = vmatprep.mubr.bf16.mxu1 %v2080_v37 }
  0x7f   : > { %1287 = vmatmul.mubr.bf16.gmra.mrb[44].mxu0 %v2068_v38 }
  0x80   : > { %1294 = vmatprep.mubr.bf16.mxu0 %v2069_v39 }
  0x81   : > { %1921 = vmatmul.mubr.bf16.gmra.mrb[44].mxu1 %v2081_v40 }
  0x87   : > { %1295 = vmatmul.mubr.bf16.gmra.mrb[48].mxu0 %v2071_v41 }
  0x88   : > { %1302 = vmatprep.mubr.bf16.mxu0 %v2074_v42 }
  0x8f   : > { %1303 = vmatmul.mubr.bf16.gmra.mrb[52].mxu0 %v2076_v43 }
  0x90   : > { %1310 = vmatprep.mubr.bf16.mxu0 %v2077_v44 }
  0x97   : > { %1311 = vmatmul.mubr.bf16.gmra.mrb[56].mxu0 %v2079_v45 }
  0x98   : > { %1318 = vmatprep.mubr.bf16.mxu0 %v2082_v46 }
  0x9f   : > { %1319 = vmatmul.mubr.bf16.gmra.mrb[60].mxu0 %v2084_v47 }
  0xfa   : > { %v1700_v48 = vpop.f32.mrb[0].mxu0 }
  0xfb   : > { %v1701_v50 = vpop.f32.mrb[1].mxu0 }
  0xfc   : > { %v1702_v51 = vadd.f32 %v1701_v50, %v1700_v48  ;;  %v1703_v52 = vpop.f32.mrb[2].mxu0  ;;  %v1764_v53 = vpop.f32.mrb[0].mxu1 }
  0xfd   : > { %v1704_v54 = vpop.f32.mrb[3].mxu0  ;;  %v1765_v57 = vpop.f32.mrb[1].mxu1 }
  0xfe   : > { %v1071_v55 = vadd.f32 %v1702_v51, %v2385_v49  ;;  %v1705_v56 = vadd.f32 %v1704_v54, %v1703_v52  ;;  %v1766_v58 = vadd.f32 %v1765_v57, %v1764_v53  ;;  %v1767_v59 = vpop.f32.mrb[2].mxu1 }
  0xff   : > { %v1768_v61 = vpop.f32.mrb[3].mxu1 }
 0x100   : > { %v1074_v60 = vadd.f32 %v1705_v56, %v2385_v49  ;;  %v2389_v62 = vadd.f32 %v1766_v58, %v1071_v55  ;;  %v1769_v63 = vadd.f32 %v1768_v61, %v1767_v59 }
 0x102   : > { %v1706_v0 = vpop.f32.mrb[4].mxu0  ;;  %v2391_v1 = vadd.f32 %v1769_v63, %v1074_v60 }
 0x103   : > { %v1707_v2 = vpop.f32.mrb[5].mxu0 }
 0x104   : > { %v1708_v3 = vadd.f32 %v1707_v2, %v1706_v0  ;;  %v1709_v4 = vpop.f32.mrb[6].mxu0  ;;  %v1770_v5 = vpop.f32.mrb[4].mxu1 }
 0x105   : > { %v1710_v6 = vpop.f32.mrb[7].mxu0  ;;  %v1771_v9 = vpop.f32.mrb[5].mxu1 }
 0x106   : > { %v1079_v7 = vadd.f32 %v1708_v3, %v2385_v49  ;;  %v1711_v8 = vadd.f32 %v1710_v6, %v1709_v4  ;;  %v1772_v10 = vadd.f32 %v1771_v9, %v1770_v5  ;;  %v1773_v11 = vpop.f32.mrb[6].mxu1 }
 0x107   : > { %v1774_v13 = vpop.f32.mrb[7].mxu1 }
 0x108   : > { %v1082_v12 = vadd.f32 %v1711_v8, %v2385_v49  ;;  %v2395_v14 = vadd.f32 %v1772_v10, %v1079_v7  ;;  %v1775_v15 = vadd.f32 %v1774_v13, %v1773_v11 }
 0x10a   : > { %v1712_v16 = vpop.f32.mrb[8].mxu0  ;;  %v2397_v17 = vadd.f32 %v1775_v15, %v1082_v12 }
 0x10b   : > { %v1713_v18 = vpop.f32.mrb[9].mxu0 }
 0x10c   : > { %v1714_v19 = vadd.f32 %v1713_v18, %v1712_v16  ;;  %v1715_v20 = vpop.f32.mrb[10].mxu0  ;;  %v1776_v21 = vpop.f32.mrb[8].mxu1 }
 0x10d   : > { %v1716_v22 = vpop.f32.mrb[11].mxu0  ;;  %v1777_v25 = vpop.f32.mrb[9].mxu1 }
 0x10e   : > { %v1087_v23 = vadd.f32 %v1714_v19, %v2385_v49  ;;  %v1717_v24 = vadd.f32 %v1716_v22, %v1715_v20  ;;  %v1778_v26 = vadd.f32 %v1777_v25, %v1776_v21  ;;  %v1779_v27 = vpop.f32.mrb[10].mxu1 }
 0x10f   : > { %v1780_v29 = vpop.f32.mrb[11].mxu1 }
 0x110   : > { %v1090_v28 = vadd.f32 %v1717_v24, %v2385_v49  ;;  %v2401_v30 = vadd.f32 %v1778_v26, %v1087_v23  ;;  %v1781_v31 = vadd.f32 %v1780_v29, %v1779_v27 }
 0x112   : > { %v1718_v32 = vpop.f32.mrb[12].mxu0  ;;  %v2403_v33 = vadd.f32 %v1781_v31, %v1090_v28 }
 0x113   : > { %v1719_v34 = vpop.f32.mrb[13].mxu0 }
 0x114   : > { %v1720_v35 = vadd.f32 %v1719_v34, %v1718_v32  ;;  %v1721_v36 = vpop.f32.mrb[14].mxu0  ;;  %v1782_v37 = vpop.f32.mrb[12].mxu1 }
 0x115   : > { %v1722_v38 = vpop.f32.mrb[15].mxu0  ;;  %v1783_v41 = vpop.f32.mrb[13].mxu1 }
 0x116   : > { %v1095_v39 = vadd.f32 %v1720_v35, %v2385_v49  ;;  %v1723_v40 = vadd.f32 %v1722_v38, %v1721_v36  ;;  %v1784_v42 = vadd.f32 %v1783_v41, %v1782_v37  ;;  %v1785_v43 = vpop.f32.mrb[14].mxu1 }
 0x117   : > { %v1786_v45 = vpop.f32.mrb[15].mxu1 }
 0x118   : > { %v1098_v44 = vadd.f32 %v1723_v40, %v2385_v49  ;;  %v2407_v46 = vadd.f32 %v1784_v42, %v1095_v39  ;;  %v1787_v47 = vadd.f32 %v1786_v45, %v1785_v43 }
 0x11a   : > { %v1724_v48 = vpop.f32.mrb[16].mxu0  ;;  %v2409_v50 = vadd.f32 %v1787_v47, %v1098_v44 }
 0x11b   : > { %v1725_v51 = vpop.f32.mrb[17].mxu0 }
 0x11c   : > { %v1726_v52 = vadd.f32 %v1725_v51, %v1724_v48  ;;  %v1727_v53 = vpop.f32.mrb[18].mxu0  ;;  %v1788_v54 = vpop.f32.mrb[16].mxu1 }
 0x11d   : > { %v1728_v55 = vpop.f32.mrb[19].mxu0  ;;  %v1789_v58 = vpop.f32.mrb[17].mxu1 }
 0x11e   : > { %v1103_v56 = vadd.f32 %v1726_v52, %v2385_v49  ;;  %v1729_v57 = vadd.f32 %v1728_v55, %v1727_v53  ;;  %v1790_v59 = vadd.f32 %v1789_v58, %v1788_v54  ;;  %v1791_v60 = vpop.f32.mrb[18].mxu1 }
 0x11f   : > { %v1792_v63 = vpop.f32.mrb[19].mxu1 }
 0x120   : > { %v1106_v61 = vadd.f32 %v1729_v57, %v2385_v49  ;;  %v2413_v0 = vadd.f32 %v1790_v59, %v1103_v56  ;;  %v1793_v2 = vadd.f32 %v1792_v63, %v1791_v60 }
 0x122   : > { %v1730_v3 = vpop.f32.mrb[20].mxu0  ;;  %v2415_v4 = vadd.f32 %v1793_v2, %v1106_v61 }
 0x123   : > { %v1731_v5 = vpop.f32.mrb[21].mxu0 }
 0x124   : > { %v1732_v6 = vadd.f32 %v1731_v5, %v1730_v3  ;;  %v1733_v7 = vpop.f32.mrb[22].mxu0  ;;  %v1794_v8 = vpop.f32.mrb[20].mxu1 }
 0x125   : > { %v1734_v9 = vpop.f32.mrb[23].mxu0  ;;  %v1795_v12 = vpop.f32.mrb[21].mxu1 }
 0x126   : > { %v1111_v10 = vadd.f32 %v1732_v6, %v2385_v49  ;;  %v1735_v11 = vadd.f32 %v1734_v9, %v1733_v7  ;;  %v1796_v13 = vadd.f32 %v1795_v12, %v1794_v8  ;;  %v1797_v15 = vpop.f32.mrb[22].mxu1 }
 0x127   : > { %v1798_v18 = vpop.f32.mrb[23].mxu1 }
 0x128   : > { %v1114_v16 = vadd.f32 %v1735_v11, %v2385_v49  ;;  %v2419_v19 = vadd.f32 %v1796_v13, %v1111_v10  ;;  %v1799_v20 = vadd.f32 %v1798_v18, %v1797_v15 }
 0x12a   : > { %v1736_v21 = vpop.f32.mrb[24].mxu0  ;;  %v2421_v22 = vadd.f32 %v1799_v20, %v1114_v16 }
 0x12b   : > { %v1737_v23 = vpop.f32.mrb[25].mxu0 }
 0x12c   : > { %v1738_v24 = vadd.f32 %v1737_v23, %v1736_v21  ;;  %v1739_v25 = vpop.f32.mrb[26].mxu0  ;;  %v1800_v26 = vpop.f32.mrb[24].mxu1 }
 0x12d   : > { %v1740_v27 = vpop.f32.mrb[27].mxu0  ;;  %v1801_v31 = vpop.f32.mrb[25].mxu1 }
 0x12e   : > { %v1119_v28 = vadd.f32 %v1738_v24, %v2385_v49  ;;  %v1741_v29 = vadd.f32 %v1740_v27, %v1739_v25  ;;  %v1802_v32 = vadd.f32 %v1801_v31, %v1800_v26  ;;  %v1803_v34 = vpop.f32.mrb[26].mxu1 }
 0x12f   : > { %v1804_v36 = vpop.f32.mrb[27].mxu1 }
 0x130   : > { %v1122_v35 = vadd.f32 %v1741_v29, %v2385_v49  ;;  %v2425_v37 = vadd.f32 %v1802_v32, %v1119_v28  ;;  %v1805_v38 = vadd.f32 %v1804_v36, %v1803_v34 }
 0x132   : > { %v1742_v39 = vpop.f32.mrb[28].mxu0  ;;  %v2427_v40 = vadd.f32 %v1805_v38, %v1122_v35 }
 0x133   : > { %v1743_v41 = vpop.f32.mrb[29].mxu0 }
 0x134   : > { %v1744_v42 = vadd.f32 %v1743_v41, %v1742_v39  ;;  %v1745_v43 = vpop.f32.mrb[30].mxu0  ;;  %v1806_v44 = vpop.f32.mrb[28].mxu1 }
 0x135   : > { %v1746_v45 = vpop.f32.mrb[31].mxu0  ;;  %v1807_v51 = vpop.f32.mrb[29].mxu1 }
 0x136   : > { %v1127_v47 = vadd.f32 %v1744_v42, %v2385_v49  ;;  %v1747_v48 = vadd.f32 %v1746_v45, %v1745_v43  ;;  %v1808_v52 = vadd.f32 %v1807_v51, %v1806_v44  ;;  %v1809_v53 = vpop.f32.mrb[30].mxu1 }
 0x137   : > { %v1810_v55 = vpop.f32.mrb[31].mxu1 }
 0x138   : > { %v1130_v54 = vadd.f32 %v1747_v48, %v2385_v49  ;;  %v2431_v56 = vadd.f32 %v1808_v52, %v1127_v47  ;;  %v1811_v57 = vadd.f32 %v1810_v55, %v1809_v53 }
 0x13a   : > { %v1828_v58 = vpop.f32.mrb[32].mxu0  ;;  %v2433_v59 = vadd.f32 %v1811_v57, %v1130_v54 }
 0x13b   : > { %v1829_v60 = vpop.f32.mrb[33].mxu0 }
 0x13c   : > { %v1830_v61 = vadd.f32 %v1829_v60, %v1828_v58  ;;  %v1831_v63 = vpop.f32.mrb[34].mxu0  ;;  %v1910_v3 = vpop.f32.mrb[32].mxu1 }
 0x13d   : > { %v1832_v2 = vpop.f32.mrb[35].mxu0  ;;  %v1361_v7 = vpop.f32.mrb[33].mxu1 }
 0x13e   : > { %v1833_v5 = vadd.f32 %v1832_v2, %v1831_v63  ;;  %v1265_v6 = vadd.f32 %v1830_v61, %v2389_v62  ;;  %v1911_v8 = vpop.f32.mrb[34].mxu1 }
 0x13f   : > { %v1364_v10 = vpop.f32.mrb[35].mxu1 }
 0x140   : > { %v1362_v9 = vadd.f32 %v1361_v7, %v1265_v6  ;;  %v1268_v49 = vadd.f32 %v1833_v5, %v2391_v1 }
 0x142   : > { %v1424_v11 = vmax.f32 %v1362_v9, 0.0  ;;  %v1365_v12 = vadd.f32 %v1364_v10, %v1268_v49  ;;  %v1834_v13 = vpop.f32.mrb[36].mxu0 }
 0x143   : > { %v1835_v15 = vpop.f32.mrb[37].mxu0 }
 0x144   : > { %1440 = vst [vmem:[%s2441_s24] sm:$0xff] %v1424_v11  ;;  %v1425_v16 = vmax.f32 %v1365_v12, 0.0  ;;  %v1836_v62 = vadd.f32 %v1835_v15, %v1834_v13  ;;  %v1837_v18 = vpop.f32.mrb[38].mxu0  ;;  %v1914_v21 = vpop.f32.mrb[36].mxu1 }
 0x145   : > { %v1838_v20 = vpop.f32.mrb[39].mxu0  ;;  %v1377_v24 = vpop.f32.mrb[37].mxu1 }
 0x146   : > { %1441 = vst [vmem:[%s2441_s24 + $0x8] sm:$0xff] %v1425_v16  ;;  %v1273_v1 = vadd.f32 %v1836_v62, %v2395_v14  ;;  %v1839_v23 = vadd.f32 %v1838_v20, %v1837_v18  ;;  %v1915_v25 = vpop.f32.mrb[38].mxu1 }
 0x147   : > { %v1380_v28 = vpop.f32.mrb[39].mxu1 }
 0x148   : > { %v1370_v26 = vadd.f32 %v1910_v3, %v1273_v1  ;;  %v1276_v27 = vadd.f32 %v1839_v23, %v2397_v17 }
 0x14a   : > { %v1426_v29 = vmax.f32 %v1370_v26, 0.0  ;;  %v1373_v31 = vadd.f32 %v1911_v8, %v1276_v27  ;;  %v1840_v32 = vpop.f32.mrb[40].mxu0 }
 0x14b   : > { %v1841_v34 = vpop.f32.mrb[41].mxu0 }
 0x14c   : > { %1442 = vst [vmem:[%s2441_s24 + $0x10] sm:$0xff] %v1426_v29  ;;  %v1427_v35 = vmax.f32 %v1373_v31, 0.0  ;;  %v1842_v36 = vadd.f32 %v1841_v34, %v1840_v32  ;;  %v1843_v38 = vpop.f32.mrb[42].mxu0  ;;  %v1918_v41 = vpop.f32.mrb[40].mxu1 }
 0x14d   : > { %v1844_v39 = vpop.f32.mrb[43].mxu0  ;;  %v1393_v43 = vpop.f32.mrb[41].mxu1 }
 0x14e   : > { %1443 = vst [vmem:[%s2441_s24 + $0x18] sm:$0xff] %v1427_v35  ;;  %v1845_v14 = vadd.f32 %v1844_v39, %v1843_v38  ;;  %v1281_v42 = vadd.f32 %v1842_v36, %v2401_v30  ;;  %v1919_v44 = vpop.f32.mrb[42].mxu1 }
 0x14f   : > { %v1396_v47 = vpop.f32.mrb[43].mxu1 }
 0x150   : > { %v1378_v17 = vadd.f32 %v1377_v24, %v1281_v42  ;;  %v1284_v45 = vadd.f32 %v1845_v14, %v2403_v33 }
 0x152   : > { %v1428_v48 = vmax.f32 %v1378_v17, 0.0  ;;  %v1381_v51 = vadd.f32 %v1380_v28, %v1284_v45  ;;  %v1846_v52 = vpop.f32.mrb[44].mxu0 }
 0x153   : > { %v1847_v53 = vpop.f32.mrb[45].mxu0 }
 0x154   : > { %1444 = vst [vmem:[%s2441_s24 + $0x20] sm:$0xff] %v1428_v48  ;;  %v1429_v54 = vmax.f32 %v1381_v51, 0.0  ;;  %v1848_v55 = vadd.f32 %v1847_v53, %v1846_v52  ;;  %v1849_v57 = vpop.f32.mrb[46].mxu0  ;;  %v2452_v60 = vpop.f32.mrb[44].mxu1 }
 0x155   : > { %v1850_v58 = vpop.f32.mrb[47].mxu0  ;;  %v1409_v63 = vpop.f32.mrb[45].mxu1 }
 0x156   : > { %1445 = vst [vmem:[%s2441_s24 + $0x28] sm:$0xff] %v1429_v54  ;;  %v1289_v30 = vadd.f32 %v1848_v55, %v2407_v46  ;;  %v1851_v61 = vadd.f32 %v1850_v58, %v1849_v57  ;;  %v1923_v33 = vpop.f32.mrb[46].mxu1 }
 0x157   : > { %v1412_v5 = vpop.f32.mrb[47].mxu1 }
 0x158   : > { %v1386_v2 = vadd.f32 %v1914_v21, %v1289_v30  ;;  %v1292_v3 = vadd.f32 %v1851_v61, %v2409_v50 }
 0x15a   : > { %v1430_v6 = vmax.f32 %v1386_v2, 0.0  ;;  %v1389_v7 = vadd.f32 %v1915_v25, %v1292_v3  ;;  %v1852_v8 = vpop.f32.mrb[48].mxu0 }
 0x15b   : > { %v1853_v9 = vpop.f32.mrb[49].mxu0 }
 0x15c   : > { %1446 = vst [vmem:[%s2441_s24 + $0x30] sm:$0xff] %v1430_v6  ;;  %v1431_v49 = vmax.f32 %v1389_v7, 0.0  ;;  %v1854_v10 = vadd.f32 %v1853_v9, %v1852_v8  ;;  %v1855_v11 = vpop.f32.mrb[50].mxu0 }
 0x15d   : > { %v1856_v12 = vpop.f32.mrb[51].mxu0 }
 0x15e   : > { %1447 = vst [vmem:[%s2441_s24 + $0x38] sm:$0xff] %v1431_v49  ;;  %v1857_v46 = vadd.f32 %v1856_v12, %v1855_v11  ;;  %v1297_v13 = vadd.f32 %v1854_v10, %v2413_v0 }
 0x160   : > { %v1394_v15 = vadd.f32 %v1393_v43, %v1297_v13  ;;  %v1300_v16 = vadd.f32 %v1857_v46, %v2415_v4 }
 0x162   : > { %v1432_v50 = vmax.f32 %v1394_v15, 0.0  ;;  %v1397_v62 = vadd.f32 %v1396_v47, %v1300_v16  ;;  %v1858_v18 = vpop.f32.mrb[52].mxu0 }
 0x163   : > { %v1859_v20 = vpop.f32.mrb[53].mxu0 }
 0x164   : > { %1448 = vst [vmem:[%s2441_s24 + $0x40] sm:$0xff] %v1432_v50  ;;  %v1433_v21 = vmax.f32 %v1397_v62, 0.0  ;;  %v1860_v1 = vadd.f32 %v1859_v20, %v1858_v18  ;;  %v1861_v23 = vpop.f32.mrb[54].mxu0 }
 0x165   : > { %v1862_v24 = vpop.f32.mrb[55].mxu0 }
 0x166   : > { %1449 = vst [vmem:[%s2441_s24 + $0x48] sm:$0xff] %v1433_v21  ;;  %v1305_v25 = vadd.f32 %v1860_v1, %v2419_v19  ;;  %v1863_v26 = vadd.f32 %v1862_v24, %v1861_v23 }
 0x168   : > { %v1402_v27 = vadd.f32 %v1918_v41, %v1305_v25  ;;  %v1308_v0 = vadd.f32 %v1863_v26, %v2421_v22 }
 0x16a   : > { %v1434_v28 = vmax.f32 %v1402_v27, 0.0  ;;  %v1405_v4 = vadd.f32 %v1919_v44, %v1308_v0  ;;  %v1864_v29 = vpop.f32.mrb[56].mxu0 }
 0x16b   : > { %v1865_v31 = vpop.f32.mrb[57].mxu0 }
 0x16c   : > { %1450 = vst [vmem:[%s2441_s24 + $0x50] sm:$0xff] %v1434_v28  ;;  %v1435_v32 = vmax.f32 %v1405_v4, 0.0  ;;  %v1866_v34 = vadd.f32 %v1865_v31, %v1864_v29  ;;  %v1867_v35 = vpop.f32.mrb[58].mxu0 }
 0x16d   : > { %v1868_v36 = vpop.f32.mrb[59].mxu0 }
 0x16e   : > { %1451 = vst [vmem:[%s2441_s24 + $0x58] sm:$0xff] %v1435_v32  ;;  %v1869_v38 = vadd.f32 %v1868_v36, %v1867_v35  ;;  %v1313_v39 = vadd.f32 %v1866_v34, %v2425_v37 }
 0x170   : > { %v1410_v19 = vadd.f32 %v1409_v63, %v1313_v39  ;;  %v1316_v41 = vadd.f32 %v1869_v38, %v2427_v40 }
 0x172   : > { %v1436_v14 = vmax.f32 %v1410_v19, 0.0  ;;  %v1413_v22 = vadd.f32 %v1412_v5, %v1316_v41  ;;  %v1870_v42 = vpop.f32.mrb[60].mxu0 }
 0x173   : > { %v1871_v43 = vpop.f32.mrb[61].mxu0 }
 0x174   : > { %1452 = vst [vmem:[%s2441_s24 + $0x60] sm:$0xff] %v1436_v14  ;;  %v1437_v44 = vmax.f32 %v1413_v22, 0.0  ;;  %v1872_v17 = vadd.f32 %v1871_v43, %v1870_v42  ;;  %v1873_v45 = vpop.f32.mrb[62].mxu0 }
 0x175   : > { %v1874_v47 = vpop.f32.mrb[63].mxu0 }
 0x176   : > { %1453 = vst [vmem:[%s2441_s24 + $0x68] sm:$0xff] %v1437_v44  ;;  %v1321_v48 = vadd.f32 %v1872_v17, %v2431_v56  ;;  %v1875_v51 = vadd.f32 %v1874_v47, %v1873_v45 }
 0x178   : > { %v1418_v37 = vadd.f32 %v2452_v60, %v1321_v48  ;;  %v1324_v52 = vadd.f32 %v1875_v51, %v2433_v59 }
 0x17a   : > { %v1438_v40 = vmax.f32 %v1418_v37, 0.0  ;;  %v1421_v53 = vadd.f32 %v1923_v33, %v1324_v52 }
 0x17c   : > { %1454 = vst [vmem:[%s2441_s24 + $0x70] sm:$0xff] %v1438_v40  ;;  %v1439_v54 = vmax.f32 %v1421_v53, 0.0 }
 0x17e   : > { %1455 = vst [vmem:[%s2441_s24 + $0x78] sm:$0xff] %v1439_v54 }
 0x17f PF: > { %s13_s14 = sadd.s32 1, %s2107_s14   ;;  %s2489_s12 = smov %s2103_s13 }
 0x180   : > { %p10_p5 = scmp.ge.s32.totalorder %s13_s14, 4   ;;  %s2490_s13 = smov %s2492_s15 }
 0x182   :  { %12 = sbr.rel (!%p10_p5) target bundleno = 2 (0x2), region = 68 }

// kernel: _lambda_.39
= control target key start
LH: loop header
LB: loop body
LE: loop exit
PB: predicated region body
PF: predicated region fallthrough
CT: control target
= control target key end

     0   :  { %8 = vsyncpa [#allocation3], 0  ;;  %s3180_s0 = inlined_call_operand.vmem [shape: bf16[256,896], index: 0, kind: input, shape index: {}]   ;;  %s3181_s1 = inlined_call_operand.vmem [shape: bf16[896,256], index: 1, kind: input, shape index: {}]   ;;  %s3182_s2 = inlined_call_operand.vmem [shape: f32[1,256], index: 2, kind: input, shape index: {}]   ;;  %s3183_s3 = inlined_call_operand.hbm [shape: f32[256,256], index: 3, kind: output, shape index: {}]  }
   0x1   :  { %10 = vsyncpa [#allocation3 + $0x1], 0  ;;  %s2594_s12 = smov 0   ;;  %s2596_s13 = smov 0  }
   0x2   :  { %s2598_s14 = smov 0   ;;  %s2600_s15 = smov 0  }
   0x3   :  { %s2602_s16 = smov 0   ;;  %s2604_s17 = smov 0  }
   0x4 LB: > { %s1869_s18 = sadd.s32 4294967295, %s2568_s17   ;;  %s1870_s19 = sadd.s32 4294967294, %s2568_s17   ;;  %s2568_s17 = sphi %s2604_s17, %s16_s17   ;;  %s2564_s16 = sphi %s2602_s16, %s3190_s16   ;;  %s2560_s15 = sphi %s2600_s15, %s3189_s15   ;;  %s2556_s14 = sphi %s2598_s14, %s3188_s14   ;;  %s2552_s13 = sphi %s2596_s13, %s3187_s13   ;;  %s2548_s12 = sphi %s2594_s12, %s3186_s12  }
   0x5   : > { %s28_s20 = sadd.s32 1, %s2564_s16  ;;  %s115_s21 = sadd.s32 1, %s2556_s14 }
   0x6   : > { %p30_p0 = scmp.ge.s32.totalorder %s28_s20, 2  ;;  %p125_p1 = scmp.ne.s32.totalorder %s2556_s14, %s2552_s13 }
   0x7   : > { %p126_p2 = scmp.eq.s32.totalorder %s1869_s18, 1  ;;  %p131_p3 = scmp.ne.s32.totalorder %s2552_s13, %s2548_s12 }
   0x8   : > { %s3192_s20 = smov (%p30_p0, %s28_s20), 0  ;;  %p132_p5 = scmp.eq.s32.totalorder %s1870_s19, 1 }
   0x9   : > { %p2634_p4 = por %p126_p2, %p125_p1  ;;  %s110_s23 = ssub.s32 %s2564_s16, %s3192_s20 }
   0xa   : > { %p1875_p6 = scmp.ge.s32.totalorder %s2568_s17, 1  ;;  %p113_p7 = scmp.eq.s32.totalorder %s110_s23, 0 }
   0xb   : > { %p2641_p8 = por %p132_p5, %p131_p3  ;;  %p177_p9 = scmp.lt.s32.totalorder %s2568_s17, 3 }
   0xc   : > { %s2647_s25 = scalar_select %p113_p7, %s2556_s14, %s115_s21  }
   0xd   : > { %p178_p10 = pnand %p1875_p6, %p177_p9 }
   0xe   : > { %v2242_v0 = vld [vmem:[%s3181_s1 + $0x4] ss:$8 sps:$4 sm:$0xff] (!%p178_p10)   ;;  %v2246_v2 = vld [vmem:[%s3181_s1] ss:$8 sps:$4 sm:$0xff] (!%p178_p10)   ;;  %v2248_v4 = vld [vmem:[%s3181_s1 + $0x14] ss:$8 sps:$4 sm:$0xff] (!%p178_p10)  }
   0xf   : > { %181 = sbr.rel (%p178_p10) target bundleno = 433 (0x1b1), region = 32  ;;  %v2244_v1 = vld [vmem:[%s3181_s1 + $0x204] ss:$8 sps:$4 sm:$0xff] (!%p178_p10)   ;;  %1268 = vmatprep.subr.bf16.mxu1 (!%p178_p10), %v2242_v0  ;;  %v2247_v3 = vld [vmem:[%s3181_s1 + $0x200] ss:$8 sps:$4 sm:$0xff] (!%p178_p10)   ;;  %s1877_s8 = sshll.u32 (!%p178_p10), %s2560_s15, 4 }
  0x10   : > { %1494 = vmatprep.subr.bf16.mxu0 (!%p178_p10), %v2244_v1  ;;  %1269 = vmatpush1.bf16.msra.mxu1 (!%p178_p10), %v2246_v2  ;;  %v2250_v5 = vld [vmem:[%s3181_s1 + $0x214] ss:$8 sps:$4 sm:$0xff] (!%p178_p10)   ;;  %v2252_v6 = vld [vmem:[%s3181_s1 + $0x10] ss:$8 sps:$4 sm:$0xff] (!%p178_p10)   ;;  %v2254_v8 = vld [vmem:[%s3181_s1 + $0x24] ss:$8 sps:$4 sm:$0xff] (!%p178_p10)  }
  0x11   : > { %1495 = vmatpush1.bf16.msra.mxu0 (!%p178_p10), %v2247_v3  ;;  %1270 = vmatprep.subr.bf16.mxu1 (!%p178_p10), %v2248_v4  ;;  %v2253_v7 = vld [vmem:[%s3181_s1 + $0x210] ss:$8 sps:$4 sm:$0xff] (!%p178_p10)   ;;  %v2256_v9 = vld [vmem:[%s3181_s1 + $0x224] ss:$8 sps:$4 sm:$0xff] (!%p178_p10)   ;;  %v2258_v10 = vld [vmem:[%s3181_s1 + $0x20] ss:$8 sps:$4 sm:$0xff] (!%p178_p10)  }
  0x12   : > { %1496 = vmatprep.subr.bf16.mxu0 (!%p178_p10), %v2250_v5  ;;  %v2259_v11 = vld [vmem:[%s3181_s1 + $0x220] ss:$8 sps:$4 sm:$0xff] (!%p178_p10)   ;;  %v2260_v12 = vld [vmem:[%s3181_s1 + $0x34] ss:$8 sps:$4 sm:$0xff] (!%p178_p10)   ;;  %v2264_v14 = vld [vmem:[%s3181_s1 + $0x30] ss:$8 sps:$4 sm:$0xff] (!%p178_p10)  }
  0x13   : > { %v2262_v13 = vld [vmem:[%s3181_s1 + $0x234] ss:$8 sps:$4 sm:$0xff] (!%p178_p10)   ;;  %v2265_v15 = vld [vmem:[%s3181_s1 + $0x230] ss:$8 sps:$4 sm:$0xff] (!%p178_p10)   ;;  %v2266_v16 = vld [vmem:[%s3181_s1 + $0x44] ss:$8 sps:$4 sm:$0xff] (!%p178_p10)  }
  0x14   : > { %1271 = vmatpush1.bf16.msra.mxu1 (!%p178_p10), %v2252_v6  ;;  %v2268_v17 = vld [vmem:[%s3181_s1 + $0x244] ss:$8 sps:$4 sm:$0xff] (!%p178_p10)   ;;  %v2270_v18 = vld [vmem:[%s3181_s1 + $0x40] ss:$8 sps:$4 sm:$0xff] (!%p178_p10)   ;;  %v2272_v20 = vld [vmem:[%s3181_s1 + $0x54] ss:$8 sps:$4 sm:$0xff] (!%p178_p10)  }
  0x15   : > { %1497 = vmatpush1.bf16.msra.mxu0 (!%p178_p10), %v2253_v7  ;;  %1272 = vmatprep.subr.bf16.mxu1 (!%p178_p10), %v2254_v8  ;;  %v2271_v19 = vld [vmem:[%s3181_s1 + $0x240] ss:$8 sps:$4 sm:$0xff] (!%p178_p10)   ;;  %v2274_v21 = vld [vmem:[%s3181_s1 + $0x254] ss:$8 sps:$4 sm:$0xff] (!%p178_p10)   ;;  %v2276_v22 = vld [vmem:[%s3181_s1 + $0x50] ss:$8 sps:$4 sm:$0xff] (!%p178_p10)  }
  0x16   : > { %1498 = vmatprep.subr.bf16.mxu0 %v2256_v9  ;;  %v2277_v23 = vld [vmem:[%s3181_s1 + $0x250] ss:$8 sps:$4 sm:$0xff]   ;;  %v2278_v24 = vld [vmem:[%s3181_s1 + $0x64] ss:$8 sps:$4 sm:$0xff]   ;;  %v2282_v26 = vld [vmem:[%s3181_s1 + $0x60] ss:$8 sps:$4 sm:$0xff]  }
  0x17   : > { %v2280_v25 = vld [vmem:[%s3181_s1 + $0x264] ss:$8 sps:$4 sm:$0xff]   ;;  %v2283_v27 = vld [vmem:[%s3181_s1 + $0x260] ss:$8 sps:$4 sm:$0xff]   ;;  %v2284_v28 = vld [vmem:[%s3181_s1 + $0x74] ss:$8 sps:$4 sm:$0xff]  }
  0x18   : > { %1273 = vmatpush1.bf16.msra.mxu1 %v2258_v10  ;;  %v2286_v29 = vld [vmem:[%s3181_s1 + $0x274] ss:$8 sps:$4 sm:$0xff]   ;;  %v2288_v30 = vld [vmem:[%s3181_s1 + $0x70] ss:$8 sps:$4 sm:$0xff]   ;;  %v2290_v32 = vld [vmem:[%s3181_s1 + $0x84] ss:$8 sps:$4 sm:$0xff]  }
  0x19   : > { %1499 = vmatpush1.bf16.msra.mxu0 %v2259_v11  ;;  %1274 = vmatprep.subr.bf16.mxu1 %v2260_v12  ;;  %v2289_v31 = vld [vmem:[%s3181_s1 + $0x270] ss:$8 sps:$4 sm:$0xff]   ;;  %p212_p11 = scmp.lt.s32.totalorder %s1877_s8, 31  ;;  %v2292_v33 = vld [vmem:[%s3181_s1 + $0x284] ss:$8 sps:$4 sm:$0xff]   ;;  %s2054_s30 = sshll.u32 %s2560_s15, 12 }
  0x1a   : > { %1500 = vmatprep.subr.bf16.mxu0 %v2262_v13  ;;  %v2294_v34 = vld [vmem:[%s3181_s1 + $0x80] ss:$8 sps:$4 sm:$0xff]   ;;  %v2296_v36 = vld [vmem:[%s3181_s1 + $0x94] ss:$8 sps:$4 sm:$0xff]   ;;  %v2300_v38 = vld [vmem:[%s3181_s1 + $0x90] ss:$8 sps:$4 sm:$0xff]  }
  0x1b   : > { %v2295_v35 = vld [vmem:[%s3181_s1 + $0x280] ss:$8 sps:$4 sm:$0xff]   ;;  %s3194_s8 = smov (!%p212_p11, %s1877_s8), 31  ;;  %v2298_v37 = vld [vmem:[%s3181_s1 + $0x294] ss:$8 sps:$4 sm:$0xff]   ;;  %s2571_s10 = smov [#allocation2]  }
  0x1c   : > { %1275 = vmatpush1.bf16.msra.mxu1 %v2264_v14  ;;  %v2301_v39 = vld [vmem:[%s3181_s1 + $0x290] ss:$8 sps:$4 sm:$0xff]   ;;  %v2302_v40 = vld [vmem:[%s3181_s1 + $0xa4] ss:$8 sps:$4 sm:$0xff]   ;;  %s2183_s23 = smul.u32 28, %s3194_s8  ;;  %s3125_s8 = scalar_lea.hbm %s3183_s3, %s2054_s30 }
  0x1d   : > { %1501 = vmatpush1.bf16.msra.mxu0 %v2265_v15  ;;  %1276 = vmatprep.subr.bf16.mxu1 %v2266_v16  ;;  %v2304_v41 = vld [vmem:[%s3181_s1 + $0x2a4] ss:$8 sps:$4 sm:$0xff]   ;;  %v2306_v42 = vld [vmem:[%s3181_s1 + $0xa0] ss:$8 sps:$4 sm:$0xff]   ;;  %v2308_v44 = vld [vmem:[%s3181_s1 + $0xb4] ss:$8 sps:$4 sm:$0xff]  }
  0x1e   : > { %1502 = vmatprep.subr.bf16.mxu0 %v2268_v17  ;;  %v2307_v43 = vld [vmem:[%s3181_s1 + $0x2a0] ss:$8 sps:$4 sm:$0xff]   ;;  %s2788_s9 = scalar_lea.vmem %s3180_s0, %s2183_s23  ;;  %v2310_v45 = vld [vmem:[%s3181_s1 + $0x2b4] ss:$8 sps:$4 sm:$0xff]   ;;  %v2312_v46 = vld [vmem:[%s3181_s1 + $0xb0] ss:$8 sps:$4 sm:$0xff]  }
  0x1f   : > { %v2313_v47 = vld [vmem:[%s3181_s1 + $0x2b0] ss:$8 sps:$4 sm:$0xff]   ;;  %v2314_v48 = vld [vmem:[%s3181_s1 + $0xc4] ss:$8 sps:$4 sm:$0xff]   ;;  %v2318_v52 = vld [vmem:[%s3181_s1 + $0xc0] ss:$8 sps:$4 sm:$0xff]  }
  0x20   : > { %1277 = vmatpush1.bf16.msra.mxu1 %v2270_v18  ;;  %v2340_v49 = vld [vmem:[%s2788_s9 + $0x4] ss:$28 sps:$4 sm:$0xff]   ;;  %v2343_v51 = vld [vmem:[%s2788_s9 + $0x14] ss:$28 sps:$4 sm:$0xff]   ;;  %v2353_v9 = vld [vmem:[%s2788_s9 + $0x3c] ss:$28 sps:$4 sm:$0xff]  }
  0x21   : > { %1503 = vmatpush1.bf16.msra.mxu0 %v2271_v19  ;;  %1278 = vmatprep.subr.bf16.mxu1 %v2272_v20  ;;  %v2316_v50 = vld [vmem:[%s3181_s1 + $0x2c4] ss:$8 sps:$4 sm:$0xff]   ;;  %v2319_v53 = vld [vmem:[%s3181_s1 + $0x2c0] ss:$8 sps:$4 sm:$0xff]   ;;  %v2320_v54 = vld [vmem:[%s3181_s1 + $0xd4] ss:$8 sps:$4 sm:$0xff]  }
  0x22   : > { %1504 = vmatprep.subr.bf16.mxu0 %v2274_v21  ;;  %1300 = vmatprep.mubr.bf16.mxu1 %v2340_v49  ;;  %v2322_v55 = vld [vmem:[%s3181_s1 + $0x2d4] ss:$8 sps:$4 sm:$0xff]   ;;  %v2324_v56 = vld [vmem:[%s3181_s1 + $0xd0] ss:$8 sps:$4 sm:$0xff]   ;;  %v2326_v58 = vld [vmem:[%s3181_s1 + $0xe4] ss:$8 sps:$4 sm:$0xff]  }
  0x23   : > { %1526 = vmatprep.mubr.bf16.mxu0 %v2343_v51  ;;  %v2325_v57 = vld [vmem:[%s3181_s1 + $0x2d0] ss:$8 sps:$4 sm:$0xff]   ;;  %v2328_v59 = vld [vmem:[%s3181_s1 + $0x2e4] ss:$8 sps:$4 sm:$0xff]   ;;  %v2330_v60 = vld [vmem:[%s3181_s1 + $0xe0] ss:$8 sps:$4 sm:$0xff]  }
  0x24   : > { %1279 = vmatpush1.bf16.msra.mxu1 %v2276_v22  ;;  %v2331_v61 = vld [vmem:[%s3181_s1 + $0x2e0] ss:$8 sps:$4 sm:$0xff]   ;;  %v2332_v62 = vld [vmem:[%s3181_s1 + $0xf4] ss:$8 sps:$4 sm:$0xff]   ;;  %v2336_v0 = vld [vmem:[%s3181_s1 + $0xf0] ss:$8 sps:$4 sm:$0xff]  }
  0x25   : > { %1505 = vmatpush1.bf16.msra.mxu0 %v2277_v23  ;;  %1280 = vmatprep.subr.bf16.mxu1 %v2278_v24  ;;  %v2334_v63 = vld [vmem:[%s3181_s1 + $0x2f4] ss:$8 sps:$4 sm:$0xff]   ;;  %v2337_v1 = vld [vmem:[%s3181_s1 + $0x2f0] ss:$8 sps:$4 sm:$0xff]   ;;  %v2346_v2 = vld [vmem:[%s3181_s1 + $0x104] ss:$8 sps:$4 sm:$0xff]  }
  0x26   : > { %1506 = vmatprep.subr.bf16.mxu0 %v2280_v25  ;;  %v2349_v3 = vld [vmem:[%s3181_s1 + $0x304] ss:$8 sps:$4 sm:$0xff]   ;;  %v2338_v4 = vld [vmem:[%s2788_s9] ss:$28 sps:$4 sm:$0xff]   ;;  %v2350_v12 = vld [vmem:[%s3181_s1 + $0x110] ss:$8 sps:$4 sm:$0xff]  }
  0x27   : > { %v2341_v5 = vld [vmem:[%s2788_s9 + $0x10] ss:$28 sps:$4 sm:$0xff]   ;;  %v2344_v6 = vld [vmem:[%s3181_s1 + $0x100] ss:$8 sps:$4 sm:$0xff]   ;;  %v2352_v8 = vld [vmem:[%s3181_s1 + $0x114] ss:$8 sps:$4 sm:$0xff]  }
  0x28   : > { %1281 = vmatpush1.bf16.msra.mxu1 %v2282_v26  ;;  %v2347_v7 = vld [vmem:[%s3181_s1 + $0x300] ss:$8 sps:$4 sm:$0xff]   ;;  %v2364_v11 = vld [vmem:[%s3181_s1 + $0x314] ss:$8 sps:$4 sm:$0xff]   ;;  %v2360_v13 = vld [vmem:[%s3181_s1 + $0x124] ss:$8 sps:$4 sm:$0xff]  }
  0x29   : > { %1507 = vmatpush1.bf16.msra.mxu0 %v2283_v27  ;;  %1282 = vmatprep.subr.bf16.mxu1 %v2284_v28  ;;  %v2355_v10 = vld [vmem:[%s2788_s9 + $0x4c] ss:$28 sps:$4 sm:$0xff]   ;;  %v2362_v14 = vld [vmem:[%s3181_s1 + $0x310] ss:$8 sps:$4 sm:$0xff]   ;;  %v2367_v19 = vld [vmem:[%s3181_s1 + $0x134] ss:$8 sps:$4 sm:$0xff]  }
  0x2a   : > { %1508 = vmatprep.subr.bf16.mxu0 %v2286_v29  ;;  %v2379_v15 = vld [vmem:[%s3181_s1 + $0x324] ss:$8 sps:$4 sm:$0xff]   ;;  %v2357_v16 = vld [vmem:[%s2788_s9 + $0x38] ss:$28 sps:$4 sm:$0xff]   ;;  %v2358_v17 = vld [vmem:[%s3181_s1 + $0x120] ss:$8 sps:$4 sm:$0xff]  }
  0x2b   : > { %v2361_v18 = vld [vmem:[%s2788_s9 + $0x48] ss:$28 sps:$4 sm:$0xff]   ;;  %v2368_v20 = vld [vmem:[%s2788_s9 + $0x74] ss:$28 sps:$4 sm:$0xff]   ;;  %v2376_v29 = vld [vmem:[%s2788_s9 + $0x80] ss:$28 sps:$4 sm:$0xff]  }
  0x2c   : > { %1283 = vmatpush1.bf16.msra.mxu1 %v2288_v30  ;;  %v2370_v21 = vld [vmem:[%s2788_s9 + $0x84] ss:$28 sps:$4 sm:$0xff]   ;;  %v2394_v23 = vld [vmem:[%s3181_s1 + $0x334] ss:$8 sps:$4 sm:$0xff]   ;;  %v2365_v24 = vld [vmem:[%s3181_s1 + $0x130] ss:$8 sps:$4 sm:$0xff]  }
  0x2d   : > { %1509 = vmatpush1.bf16.msra.mxu0 %v2289_v31  ;;  %1284 = vmatprep.subr.bf16.mxu1 %v2290_v32  ;;  %v2377_v22 = vld [vmem:[%s3181_s1 + $0x320] ss:$8 sps:$4 sm:$0xff]   ;;  %v2372_v25 = vld [vmem:[%s2788_s9 + $0x70] ss:$28 sps:$4 sm:$0xff]   ;;  %v2382_v30 = vld [vmem:[%s3181_s1 + $0x154] ss:$8 sps:$4 sm:$0xff]  }
  0x2e   : > { %1510 = vmatprep.subr.bf16.mxu0 %v2292_v33  ;;  %v2375_v26 = vld [vmem:[%s3181_s1 + $0x144] ss:$8 sps:$4 sm:$0xff]   ;;  %v2392_v27 = vld [vmem:[%s3181_s1 + $0x330] ss:$8 sps:$4 sm:$0xff]   ;;  %v2373_v28 = vld [vmem:[%s3181_s1 + $0x140] ss:$8 sps:$4 sm:$0xff]  }
  0x2f   : > { %v2383_v31 = vld [vmem:[%s2788_s9 + $0xac] ss:$28 sps:$4 sm:$0xff]   ;;  %v2385_v32 = vld [vmem:[%s2788_s9 + $0xbc] ss:$28 sps:$4 sm:$0xff]   ;;  %s208_s23 = sand.u32 1, %s2552_s13   ;;  %s2494_s11 = sshll.u32 %s2571_s10, 4  ;;  %s2495_s11 = int_to_ptr.vmem [resolvable:$false] %s2494_s11 }
  0x30   : > { %1285 = vmatpush1.bf16.msra.mxu1 %v2294_v34  ;;  %v2409_v33 = vld [vmem:[%s3181_s1 + $0x344] ss:$8 sps:$4 sm:$0xff]   ;;  %v2407_v34 = vld [vmem:[%s3181_s1 + $0x340] ss:$8 sps:$4 sm:$0xff]   ;;  %s1876_s29 = sshll.u32 %s208_s23, 8  ;;  %s3134_s15 = scalar_lea.sflag [#allocation3], %s208_s23 }
  0x31   : > { %1511 = vmatpush1.bf16.msra.mxu0 %v2295_v35  ;;  %1286 = vmatprep.subr.bf16.mxu1 %v2296_v36  ;;  %v2380_v35 = vld [vmem:[%s3181_s1 + $0x150] ss:$8 sps:$4 sm:$0xff]   ;;  %v2424_v36 = vld [vmem:[%s3181_s1 + $0x354] ss:$8 sps:$4 sm:$0xff]   ;;  %v2403_v49 = vld [vmem:[%s3181_s1 + $0x180] ss:$8 sps:$4 sm:$0xff]  }
  0x32   : > { %1512 = vmatprep.subr.bf16.mxu0 %v2298_v37  ;;  %v2390_v37 = vld [vmem:[%s3181_s1 + $0x164] ss:$8 sps:$4 sm:$0xff]   ;;  %s2496_s18 = scalar_lea.vmem %s2495_s11, 8192 }
  0x33   : > { %v2406_v51 = vld [vmem:[%s2788_s9 + $0xf0] ss:$28 sps:$4 sm:$0xff]  }
  0x34   : > { %1287 = vmatpush1.bf16.msra.mxu1 %v2300_v38  ;;  %v2387_v38 = vld [vmem:[%s2788_s9 + $0xa8] ss:$28 sps:$4 sm:$0xff]  }
  0x35   : > { %1513 = vmatpush1.bf16.msra.mxu0 %v2301_v39  ;;  %1288 = vmatprep.subr.bf16.mxu1 %v2302_v40  ;;  %v2388_v39 = vld [vmem:[%s3181_s1 + $0x160] ss:$8 sps:$4 sm:$0xff]   ;;  %v2391_v40 = vld [vmem:[%s2788_s9 + $0xb8] ss:$28 sps:$4 sm:$0xff]  }
  0x36   : > { %1514 = vmatprep.subr.bf16.mxu0 %v2304_v41  ;;  %v2397_v41 = vld [vmem:[%s3181_s1 + $0x174] ss:$8 sps:$4 sm:$0xff]  }
  0x38   : > { %1289 = vmatpush1.bf16.msra.mxu1 %v2306_v42  ;;  %v2398_v42 = vld [vmem:[%s2788_s9 + $0xe4] ss:$28 sps:$4 sm:$0xff]  }
  0x39   : > { %1515 = vmatpush1.bf16.msra.mxu0 %v2307_v43  ;;  %1290 = vmatprep.subr.bf16.mxu1 %v2308_v44  ;;  %v2400_v43 = vld [vmem:[%s2788_s9 + $0xf4] ss:$28 sps:$4 sm:$0xff]  }
  0x3a   : > { %1516 = vmatprep.subr.bf16.mxu0 %v2310_v45  ;;  %v2422_v44 = vld [vmem:[%s3181_s1 + $0x350] ss:$8 sps:$4 sm:$0xff]   ;;  %v2439_v45 = vld [vmem:[%s3181_s1 + $0x364] ss:$8 sps:$4 sm:$0xff]  }
  0x3c   : > { %1291 = vmatpush1.bf16.msra.mxu1 %v2312_v46  ;;  %v2395_v46 = vld [vmem:[%s3181_s1 + $0x170] ss:$8 sps:$4 sm:$0xff]  }
  0x3d   : > { %1517 = vmatpush1.bf16.msra.mxu0 %v2313_v47  ;;  %1292 = vmatprep.subr.bf16.mxu1 %v2314_v48  ;;  %v2402_v47 = vld [vmem:[%s2788_s9 + $0xe0] ss:$28 sps:$4 sm:$0xff]   ;;  %v2405_v48 = vld [vmem:[%s3181_s1 + $0x184] ss:$8 sps:$4 sm:$0xff]  }
  0x3e   : > { %1518 = vmatprep.subr.bf16.mxu0 %v2316_v50  ;;  %v2437_v50 = vld [vmem:[%s3181_s1 + $0x360] ss:$8 sps:$4 sm:$0xff]  }
  0x40   : > { %1293 = vmatpush1.bf16.msra.mxu1 %v2318_v52  ;;  %v2412_v52 = vld [vmem:[%s3181_s1 + $0x194] ss:$8 sps:$4 sm:$0xff]  }
  0x41   : > { %1519 = vmatpush1.bf16.msra.mxu0 %v2319_v53  ;;  %1294 = vmatprep.subr.bf16.mxu1 %v2320_v54  ;;  %v2413_v53 = vld [vmem:[%s2788_s9 + $0x11c] ss:$28 sps:$4 sm:$0xff]   ;;  %v2415_v54 = vld [vmem:[%s2788_s9 + $0x12c] ss:$28 sps:$4 sm:$0xff]  }
  0x42   : > { %1520 = vmatprep.subr.bf16.mxu0 %v2322_v55  ;;  %v2454_v55 = vld [vmem:[%s3181_s1 + $0x374] ss:$8 sps:$4 sm:$0xff]  }
  0x44   : > { %1295 = vmatpush1.bf16.msra.mxu1 %v2324_v56  ;;  %v2452_v56 = vld [vmem:[%s3181_s1 + $0x370] ss:$8 sps:$4 sm:$0xff]  }
  0x45   : > { %1521 = vmatpush1.bf16.msra.mxu0 %v2325_v57  ;;  %1296 = vmatprep.subr.bf16.mxu1 %v2326_v58  ;;  %v2410_v57 = vld [vmem:[%s3181_s1 + $0x190] ss:$8 sps:$4 sm:$0xff]  }
  0x46   : > { %1522 = vmatprep.subr.bf16.mxu0 %v2328_v59  ;;  %v2417_v58 = vld [vmem:[%s2788_s9 + $0x118] ss:$28 sps:$4 sm:$0xff]   ;;  %v2420_v59 = vld [vmem:[%s3181_s1 + $0x1a4] ss:$8 sps:$4 sm:$0xff]  }
  0x48   : > { %1297 = vmatpush1.bf16.msra.mxu1 %v2330_v60  ;;  %v2418_v60 = vld [vmem:[%s3181_s1 + $0x1a0] ss:$8 sps:$4 sm:$0xff]  }
  0x49   : > { %1523 = vmatpush1.bf16.msra.mxu0 %v2331_v61  ;;  %1298 = vmatprep.subr.bf16.mxu1 %v2332_v62  ;;  %v2421_v61 = vld [vmem:[%s2788_s9 + $0x128] ss:$28 sps:$4 sm:$0xff]   ;;  %v2427_v62 = vld [vmem:[%s3181_s1 + $0x1b4] ss:$8 sps:$4 sm:$0xff]  }
  0x4a   : > { %1524 = vmatprep.subr.bf16.mxu0 %v2334_v63  ;;  %v2428_v63 = vld [vmem:[%s2788_s9 + $0x154] ss:$28 sps:$4 sm:$0xff]  }
  0x4c   : > { %1299 = vmatpush1.bf16.msra.mxu1 %v2336_v0  ;;  %v2430_v0 = vld [vmem:[%s2788_s9 + $0x164] ss:$28 sps:$4 sm:$0xff]  }
  0x4d   : > { %1525 = vmatpush1.bf16.msra.mxu0 %v2337_v1  ;;  %1381 = vmatprep.subr.bf16.mxu1 %v2346_v2  ;;  %v2425_v1 = vld [vmem:[%s3181_s1 + $0x1b0] ss:$8 sps:$4 sm:$0xff]  }
  0x4e   : > { %1607 = vmatprep.subr.bf16.mxu0 %v2349_v3  ;;  %v2432_v2 = vld [vmem:[%s2788_s9 + $0x150] ss:$28 sps:$4 sm:$0xff]  }
  0x4f   : > { %1301 = vmatmul.mubr.bf16.vlgmr.msra.gmra.mrb[0].mxu1 %v2338_v4  ;;  %v2435_v3 = vld [vmem:[%s3181_s1 + $0x1c4] ss:$8 sps:$4 sm:$0xff]   ;;  %v2433_v4 = vld [vmem:[%s3181_s1 + $0x1c0] ss:$8 sps:$4 sm:$0xff]  }
  0x50   : > { %1527 = vmatmul.mubr.bf16.vlgmr.msra.gmra.mrb[0].mxu0 %v2341_v5  ;;  %1382 = vmatpush1.bf16.msra.mxu1 %v2344_v6  ;;  %v2436_v5 = vld [vmem:[%s2788_s9 + $0x160] ss:$28 sps:$4 sm:$0xff]   ;;  %v2443_v6 = vld [vmem:[%s2788_s9 + $0x18c] ss:$28 sps:$4 sm:$0xff]  }
  0x51   : > { %1608 = vmatpush1.bf16.msra.mxu0 %v2347_v7  ;;  %1383 = vmatprep.subr.bf16.mxu1 %v2352_v8  ;;  %v2442_v7 = vld [vmem:[%s3181_s1 + $0x1d4] ss:$8 sps:$4 sm:$0xff]  }
  0x52   : > { %1310 = vmatprep.mubr.bf16.mxu1 %v2353_v9  ;;  %1536 = vmatprep.mubr.bf16.mxu0 %v2355_v10  ;;  %v2445_v8 = vld [vmem:[%s2788_s9 + $0x19c] ss:$28 sps:$4 sm:$0xff]   ;;  %v2450_v10 = vld [vmem:[%s3181_s1 + $0x1e4] ss:$8 sps:$4 sm:$0xff]  }
  0x53   : > { %1609 = vmatprep.subr.bf16.mxu0 %v2364_v11  ;;  %v2440_v9 = vld [vmem:[%s3181_s1 + $0x1d0] ss:$8 sps:$4 sm:$0xff]   ;;  %v2447_v11 = vld [vmem:[%s2788_s9 + $0x188] ss:$28 sps:$4 sm:$0xff]  }
  0x54   : > { %1384 = vmatpush1.bf16.msra.mxu1 %v2350_v12  ;;  %v2451_v12 = vld [vmem:[%s2788_s9 + $0x198] ss:$28 sps:$4 sm:$0xff]  }
  0x55   : > { %1610 = vmatpush1.bf16.msra.mxu0 %v2362_v14  ;;  %1385 = vmatprep.subr.bf16.mxu1 %v2360_v13  ;;  %v2448_v13 = vld [vmem:[%s3181_s1 + $0x1e0] ss:$8 sps:$4 sm:$0xff]  }
  0x56   : > { %1611 = vmatprep.subr.bf16.mxu0 %v2379_v15  ;;  %v2460_v14 = vld [vmem:[%s2788_s9 + $0xc] ss:$28 sps:$4 sm:$0xff]   ;;  %v2457_v15 = vld [vmem:[%s3181_s1 + $0x1f4] ss:$8 sps:$4 sm:$0xff]  }
  0x57   : > { %1311 = vmatmul.mubr.bf16.gmra.mrb[4].mxu1 %v2357_v16  ;;  %v2455_v16 = vld [vmem:[%s3181_s1 + $0x1f0] ss:$8 sps:$4 sm:$0xff]  }
  0x58   : > { %1537 = vmatmul.mubr.bf16.gmra.mrb[4].mxu0 %v2361_v18  ;;  %1386 = vmatpush1.bf16.msra.mxu1 %v2358_v17  ;;  %v2570_v17 = vmov 0   ;;  %v2458_v18 = vld [vmem:[%s2788_s9 + $0x8] ss:$28 sps:$4 sm:$0xff]  }
  0x59   : > { %1320 = vmatprep.mubr.bf16.mxu1 %v2368_v20  ;;  %1387 = vmatprep.subr.bf16.mxu1 %v2367_v19  ;;  %v2461_v19 = vld [vmem:[%s2788_s9 + $0x18] ss:$28 sps:$4 sm:$0xff]   ;;  %v2462_v20 = vld [vmem:[%s2788_s9 + $0x44] ss:$28 sps:$4 sm:$0xff]  }
  0x5a   : > { %1546 = vmatprep.mubr.bf16.mxu0 %v2370_v21  ;;  %1612 = vmatpush1.bf16.msra.mxu0 %v2377_v22  ;;  %v2464_v21 = vld [vmem:[%s2788_s9 + $0x40] ss:$28 sps:$4 sm:$0xff]   ;;  %v2465_v22 = vld [vmem:[%s2788_s9 + $0x50] ss:$28 sps:$4 sm:$0xff]  }
  0x5b   : > { %1613 = vmatprep.subr.bf16.mxu0 %v2394_v23  ;;  %v2466_v23 = vld [vmem:[%s2788_s9 + $0x7c] ss:$28 sps:$4 sm:$0xff]  }
  0x5c   : > { %1388 = vmatpush1.bf16.msra.mxu1 %v2365_v24  ;;  %v2468_v24 = vld [vmem:[%s2788_s9 + $0x78] ss:$28 sps:$4 sm:$0xff]  }
  0x5d   : > { %1389 = vmatprep.subr.bf16.mxu1 %v2375_v26  ;;  %v2470_v26 = vld [vmem:[%s2788_s9 + $0xb4] ss:$28 sps:$4 sm:$0xff]  }
  0x5e   : > { %1614 = vmatpush1.bf16.msra.mxu0 %v2392_v27  ;;  %v2472_v27 = vld [vmem:[%s2788_s9 + $0xb0] ss:$28 sps:$4 sm:$0xff]  }
  0x5f   : > { %1321 = vmatmul.mubr.bf16.gmra.mrb[8].mxu1 %v2372_v25  ;;  %1615 = vmatprep.subr.bf16.mxu0 %v2409_v33  ;;  %v2469_v25 = vld [vmem:[%s2788_s9 + $0x88] ss:$28 sps:$4 sm:$0xff]   ;;  %v2480_v33 = vld [vmem:[%s2788_s9 + $0x120] ss:$28 sps:$4 sm:$0xff]  }
  0x60   : > { %1547 = vmatmul.mubr.bf16.gmra.mrb[8].mxu0 %v2376_v29  ;;  %1390 = vmatpush1.bf16.msra.mxu1 %v2373_v28  ;;  %v2473_v28 = vld [vmem:[%s2788_s9 + $0xc0] ss:$28 sps:$4 sm:$0xff]   ;;  %v2474_v29 = vld [vmem:[%s2788_s9 + $0xec] ss:$28 sps:$4 sm:$0xff]  }
  0x61   : > { %1330 = vmatprep.mubr.bf16.mxu1 %v2383_v31  ;;  %1391 = vmatprep.subr.bf16.mxu1 %v2382_v30  ;;  %v2476_v30 = vld [vmem:[%s2788_s9 + $0xe8] ss:$28 sps:$4 sm:$0xff]   ;;  %v2477_v31 = vld [vmem:[%s2788_s9 + $0xf8] ss:$28 sps:$4 sm:$0xff]  }
  0x62   : > { %1556 = vmatprep.mubr.bf16.mxu0 %v2385_v32  ;;  %1616 = vmatpush1.bf16.msra.mxu0 %v2407_v34  ;;  %v2478_v32 = vld [vmem:[%s2788_s9 + $0x124] ss:$28 sps:$4 sm:$0xff]   ;;  %v2481_v34 = vld [vmem:[%s2788_s9 + $0x130] ss:$28 sps:$4 sm:$0xff]  }
  0x63   : > { %1617 = vmatprep.subr.bf16.mxu0 %v2424_v36  ;;  %v2484_v36 = vld [vmem:[%s2788_s9 + $0x158] ss:$28 sps:$4 sm:$0xff]  }
  0x64   : > { %1392 = vmatpush1.bf16.msra.mxu1 %v2380_v35  ;;  %v2482_v35 = vld [vmem:[%s2788_s9 + $0x15c] ss:$28 sps:$4 sm:$0xff]  }
  0x65   : > { %1393 = vmatprep.subr.bf16.mxu1 %v2390_v37  ;;  %v2485_v37 = vld [vmem:[%s2788_s9 + $0x168] ss:$28 sps:$4 sm:$0xff]  }
  0x66   : > { %1618 = vmatpush1.bf16.msra.mxu0 %v2422_v44  ;;  %v408_v44 = vld [vmem:[%s3182_s2] sm:$0x3] }
  0x67   : > { %1331 = vmatmul.mubr.bf16.gmra.mrb[12].mxu1 %v2387_v38  ;;  %1619 = vmatprep.subr.bf16.mxu0 %v2439_v45  ;;  %v2486_v38 = vld [vmem:[%s2788_s9 + $0x194] ss:$28 sps:$4 sm:$0xff]  }
  0x68   : > { %1557 = vmatmul.mubr.bf16.gmra.mrb[12].mxu0 %v2391_v40  ;;  %1394 = vmatpush1.bf16.msra.mxu1 %v2388_v39  ;;  %v2488_v39 = vld [vmem:[%s2788_s9 + $0x190] ss:$28 sps:$4 sm:$0xff]   ;;  %v2489_v40 = vld [vmem:[%s2788_s9 + $0x1a0] ss:$28 sps:$4 sm:$0xff]   ;;  %s3061_s9 = scalar_lea.vmem [#allocation2], %s1876_s29 }
  0x69   : > { %1340 = vmatprep.mubr.bf16.mxu1 %v2398_v42  ;;  %1395 = vmatprep.subr.bf16.mxu1 %v2397_v41  ;;  %v410_v41 = vlaneseq  ;;  %s1769_s4 = sshll.u32 %s3061_s9, 4  ;;  %s3127_s4 = int_to_ptr.vmem [resolvable:$true] %s1769_s4 }
  0x6a   : > { %1566 = vmatprep.mubr.bf16.mxu0 %v2400_v43  ;;  %1620 = vmatpush1.bf16.msra.mxu0 %v2437_v50  ;;  %s2490_s7 = scalar_lea.vmem %s3127_s4, 4096  ;;  %p2497_p1 = scmp.lt.s32.totalorder %s3127_s4, %s2495_s11 }
  0x6b   : > { %1621 = vmatprep.subr.bf16.mxu0 %v2454_v55  ;;  %v411_v42 = vshrl.u32 %v410_v41, 7  ;;  %p2491_p12 = scmp.ne.s32.totalorder %s3127_s4, %s2490_s7  ;;  %p2498_p2 = scmp.lt.s32.totalorder %s2496_s18, %s2490_s7 }
  0x6c   : > { %1396 = vmatpush1.bf16.msra.mxu1 %v2395_v46 }
  0x6d   : > { %1397 = vmatprep.subr.bf16.mxu1 %v2405_v48  ;;  %v412_v43 = vsub.s32 0, %v411_v42  ;;  %v416_v45 = vsub.s32 1, %v411_v42  ;;  %p2492_p13 = pnand %p2491_p12, %p2634_p4  ;;  %p2499_p3 = por %p2498_p2, %p2497_p1 }
  0x6e   : > { %1622 = vmatpush1.bf16.msra.mxu0 %v2452_v56 }
  0x6f   : > { %1341 = vmatmul.mubr.bf16.gmra.mrb[16].mxu1 %v2402_v47  ;;  %v3051_v46 = vrot.slane %v408_v44, %v412_v43  ;;  %v3053_v47 = vrot.slane %v408_v44, %v416_v45  ;;  %p2493_p0 = pneg %p2492_p13 }
  0x70   : > { %1567 = vmatmul.mubr.bf16.gmra.mrb[16].mxu0 %v2406_v51  ;;  %1398 = vmatpush1.bf16.msra.mxu1 %v2403_v49 }
  0x71   : > { %1350 = vmatprep.mubr.bf16.mxu1 %v2413_v53  ;;  %1399 = vmatprep.subr.bf16.mxu1 %v2412_v52  ;;  %p2500_p5 = pnand %p2499_p3, %p2493_p0 }
  0x72   : > { %1576 = vmatprep.mubr.bf16.mxu0 %v2415_v54 }
  0x74   : > { %1400 = vmatpush1.bf16.msra.mxu1 %v2410_v57 }
  0x75   : > { %1401 = vmatprep.subr.bf16.mxu1 %v2420_v59 }
  0x77   : > { %1351 = vmatmul.mubr.bf16.gmra.mrb[20].mxu1 %v2417_v58 }
  0x78   : > { %1577 = vmatmul.mubr.bf16.gmra.mrb[20].mxu0 %v2421_v61  ;;  %1402 = vmatpush1.bf16.msra.mxu1 %v2418_v60 }
  0x79   : > { %1360 = vmatprep.mubr.bf16.mxu1 %v2428_v63  ;;  %1403 = vmatprep.subr.bf16.mxu1 %v2427_v62 }
  0x7a   : > { %1586 = vmatprep.mubr.bf16.mxu0 %v2430_v0 }
  0x7c   : > { %1404 = vmatpush1.bf16.msra.mxu1 %v2425_v1 }
  0x7d   : > { %1405 = vmatprep.subr.bf16.mxu1 %v2435_v3 }
  0x7f   : > { %1361 = vmatmul.mubr.bf16.gmra.mrb[24].mxu1 %v2432_v2 }
  0x80   : > { %1587 = vmatmul.mubr.bf16.gmra.mrb[24].mxu0 %v2436_v5  ;;  %1406 = vmatpush1.bf16.msra.mxu1 %v2433_v4 }
  0x81   : > { %1370 = vmatprep.mubr.bf16.mxu1 %v2443_v6  ;;  %1407 = vmatprep.subr.bf16.mxu1 %v2442_v7 }
  0x82   : > { %1596 = vmatprep.mubr.bf16.mxu0 %v2445_v8 }
  0x84   : > { %1408 = vmatpush1.bf16.msra.mxu1 %v2440_v9 }
  0x85   : > { %1409 = vmatprep.subr.bf16.mxu1 %v2450_v10 }
  0x87   : > { %1371 = vmatmul.mubr.bf16.gmra.mrb[28].mxu1 %v2447_v11 }
  0x88   : > { %1597 = vmatmul.mubr.bf16.gmra.mrb[28].mxu0 %v2451_v12  ;;  %1410 = vmatpush1.bf16.msra.mxu1 %v2448_v13 }
  0x89   : > { %1413 = vmatprep.mubr.bf16.mxu1 %v2460_v14  ;;  %1411 = vmatprep.subr.bf16.mxu1 %v2457_v15 }
  0x8a   : > { %1639 = vmatprep.mubr.bf16.mxu0 %v2570_v17 }
  0x8c   : > { %1412 = vmatpush1.bf16.msra.mxu1 %v2455_v16 }
  0x8f   : > { %1414 = vmatmul.mubr.bf16.vlgmr.msra.gmra.mrb[0].mxu1 %v2458_v18 }
  0x90   : > { %1640 = vmatmul.mubr.bf16.vlgmr.msra.gmra.mrb[0].mxu0 %v2461_v19  ;;  %1423 = vmatprep.mubr.bf16.mxu1 %v2462_v20 }
  0x91   : > { %1649 = vmatprep.mubr.bf16.mxu0 %v2570_v17 }
  0x97   : > { %1424 = vmatmul.mubr.bf16.gmra.mrb[4].mxu1 %v2464_v21 }
  0x98   : > { %1650 = vmatmul.mubr.bf16.gmra.mrb[4].mxu0 %v2465_v22  ;;  %1433 = vmatprep.mubr.bf16.mxu1 %v2466_v23 }
  0x99   : > { %1659 = vmatprep.mubr.bf16.mxu0 %v2570_v17 }
  0x9f   : > { %1434 = vmatmul.mubr.bf16.gmra.mrb[8].mxu1 %v2468_v24 }
  0xa0   : > { %1660 = vmatmul.mubr.bf16.gmra.mrb[8].mxu0 %v2469_v25  ;;  %1443 = vmatprep.mubr.bf16.mxu1 %v2470_v26 }
  0xa1   : > { %1669 = vmatprep.mubr.bf16.mxu0 %v2570_v17 }
  0xa7   : > { %1444 = vmatmul.mubr.bf16.gmra.mrb[12].mxu1 %v2472_v27 }
  0xa8   : > { %1670 = vmatmul.mubr.bf16.gmra.mrb[12].mxu0 %v2473_v28  ;;  %1453 = vmatprep.mubr.bf16.mxu1 %v2474_v29 }
  0xa9   : > { %1679 = vmatprep.mubr.bf16.mxu0 %v2570_v17 }
  0xaf   : > { %1454 = vmatmul.mubr.bf16.gmra.mrb[16].mxu1 %v2476_v30 }
  0xb0   : > { %1680 = vmatmul.mubr.bf16.gmra.mrb[16].mxu0 %v2477_v31  ;;  %1463 = vmatprep.mubr.bf16.mxu1 %v2478_v32 }
  0xb1   : > { %1689 = vmatprep.mubr.bf16.mxu0 %v2570_v17 }
  0xb7   : > { %1464 = vmatmul.mubr.bf16.gmra.mrb[20].mxu1 %v2480_v33 }
  0xb8   : > { %1690 = vmatmul.mubr.bf16.gmra.mrb[20].mxu0 %v2481_v34  ;;  %1473 = vmatprep.mubr.bf16.mxu1 %v2482_v35 }
  0xb9   : > { %1699 = vmatprep.mubr.bf16.mxu0 %v2570_v17 }
  0xbf   : > { %1474 = vmatmul.mubr.bf16.gmra.mrb[24].mxu1 %v2484_v36 }
  0xc0   : > { %1700 = vmatmul.mubr.bf16.gmra.mrb[24].mxu0 %v2485_v37  ;;  %1483 = vmatprep.mubr.bf16.mxu1 %v2486_v38 }
  0xc1   : > { %1709 = vmatprep.mubr.bf16.mxu0 %v2570_v17 }
  0xc7   : > { %1484 = vmatmul.mubr.bf16.gmra.mrb[28].mxu1 %v2488_v39 }
  0xc8   : > { %1710 = vmatmul.mubr.bf16.gmra.mrb[28].mxu0 %v2489_v40 }
 0x162   : > { %v1415_v48 = vpop.f32.mrb[0].mxu1 }
 0x163   : > { %v1641_v49 = vpop.f32.mrb[0].mxu0  ;;  %v2055_v50 = vadd.f32 %v1415_v48, %v3051_v46  ;;  %v1417_v51 = vpop.f32.mrb[1].mxu1 }
 0x164   : > { %v1643_v52 = vpop.f32.mrb[1].mxu0  ;;  %v2057_v53 = vadd.f32 %v1417_v51, %v3053_v47  ;;  %v1419_v54 = vpop.f32.mrb[2].mxu1 }
 0x165   : > { %v1645_v55 = vpop.f32.mrb[2].mxu0  ;;  %v2056_v56 = vadd.f32 %v2055_v50, %v1641_v49  ;;  %v2059_v57 = vadd.f32 %v1419_v54, %v3051_v46  ;;  %v1421_v58 = vpop.f32.mrb[3].mxu1 }
 0x166   : > { %v1647_v59 = vpop.f32.mrb[3].mxu0  ;;  %v2058_v60 = vadd.f32 %v2057_v53, %v1643_v52  ;;  %v2061_v61 = vadd.f32 %v1421_v58, %v3053_v47 }
 0x167   : > { %1720 = vst [vmem:[%s3061_s9] sm:$0xff] %v2056_v56  ;;  %v2060_v62 = vadd.f32 %v2059_v57, %v1645_v55 }
 0x168   : > { %1721 = vst [vmem:[%s3061_s9 + $0x8] sm:$0xff] %v2058_v60  ;;  %v2062_v63 = vadd.f32 %v2061_v61, %v1647_v59 }
 0x169   : > { %1722 = vst [vmem:[%s3061_s9 + $0x10] sm:$0xff] %v2060_v62 }
 0x16a   : > { %1723 = vst [vmem:[%s3061_s9 + $0x18] sm:$0xff] %v2062_v63  ;;  %v1425_v0 = vpop.f32.mrb[4].mxu1 }
 0x16b   : > { %v1651_v1 = vpop.f32.mrb[4].mxu0  ;;  %v2063_v2 = vadd.f32 %v1425_v0, %v3051_v46  ;;  %v1427_v3 = vpop.f32.mrb[5].mxu1 }
 0x16c   : > { %v1653_v4 = vpop.f32.mrb[5].mxu0  ;;  %v2065_v5 = vadd.f32 %v1427_v3, %v3053_v47  ;;  %v1429_v6 = vpop.f32.mrb[6].mxu1 }
 0x16d   : > { %v1655_v7 = vpop.f32.mrb[6].mxu0  ;;  %v2064_v8 = vadd.f32 %v2063_v2, %v1651_v1  ;;  %v2067_v9 = vadd.f32 %v1429_v6, %v3051_v46  ;;  %v1431_v10 = vpop.f32.mrb[7].mxu1 }
 0x16e   : > { %v1657_v11 = vpop.f32.mrb[7].mxu0  ;;  %v2066_v12 = vadd.f32 %v2065_v5, %v1653_v4  ;;  %v2069_v13 = vadd.f32 %v1431_v10, %v3053_v47 }
 0x16f   : > { %1724 = vst [vmem:[%s3061_s9 + $0x20] sm:$0xff] %v2064_v8  ;;  %v2068_v14 = vadd.f32 %v2067_v9, %v1655_v7 }
 0x170   : > { %1725 = vst [vmem:[%s3061_s9 + $0x28] sm:$0xff] %v2066_v12  ;;  %v2070_v15 = vadd.f32 %v2069_v13, %v1657_v11 }
 0x171   : > { %1726 = vst [vmem:[%s3061_s9 + $0x30] sm:$0xff] %v2068_v14 }
 0x172   : > { %1727 = vst [vmem:[%s3061_s9 + $0x38] sm:$0xff] %v2070_v15  ;;  %v1435_v16 = vpop.f32.mrb[8].mxu1 }
 0x173   : > { %v1661_v17 = vpop.f32.mrb[8].mxu0  ;;  %v2071_v18 = vadd.f32 %v1435_v16, %v3051_v46  ;;  %v1437_v19 = vpop.f32.mrb[9].mxu1 }
 0x174   : > { %v1663_v20 = vpop.f32.mrb[9].mxu0  ;;  %v2073_v21 = vadd.f32 %v1437_v19, %v3053_v47  ;;  %v1439_v22 = vpop.f32.mrb[10].mxu1 }
 0x175   : > { %v1665_v23 = vpop.f32.mrb[10].mxu0  ;;  %v2072_v24 = vadd.f32 %v2071_v18, %v1661_v17  ;;  %v2075_v25 = vadd.f32 %v1439_v22, %v3051_v46  ;;  %v1441_v26 = vpop.f32.mrb[11].mxu1 }
 0x176   : > { %v1667_v27 = vpop.f32.mrb[11].mxu0  ;;  %v2074_v28 = vadd.f32 %v2073_v21, %v1663_v20  ;;  %v2077_v29 = vadd.f32 %v1441_v26, %v3053_v47 }
 0x177   : > { %1728 = vst [vmem:[%s3061_s9 + $0x40] sm:$0xff] %v2072_v24  ;;  %v2076_v30 = vadd.f32 %v2075_v25, %v1665_v23 }
 0x178   : > { %1729 = vst [vmem:[%s3061_s9 + $0x48] sm:$0xff] %v2074_v28  ;;  %v2078_v31 = vadd.f32 %v2077_v29, %v1667_v27 }
 0x179   : > { %1730 = vst [vmem:[%s3061_s9 + $0x50] sm:$0xff] %v2076_v30 }
 0x17a   : > { %1731 = vst [vmem:[%s3061_s9 + $0x58] sm:$0xff] %v2078_v31  ;;  %v1445_v32 = vpop.f32.mrb[12].mxu1 }
 0x17b   : > { %v1671_v33 = vpop.f32.mrb[12].mxu0  ;;  %v2079_v34 = vadd.f32 %v1445_v32, %v3051_v46  ;;  %v1447_v35 = vpop.f32.mrb[13].mxu1 }
 0x17c   : > { %v1673_v36 = vpop.f32.mrb[13].mxu0  ;;  %v2081_v37 = vadd.f32 %v1447_v35, %v3053_v47  ;;  %v1449_v38 = vpop.f32.mrb[14].mxu1 }
 0x17d   : > { %v1675_v39 = vpop.f32.mrb[14].mxu0  ;;  %v2080_v40 = vadd.f32 %v2079_v34, %v1671_v33  ;;  %v2083_v41 = vadd.f32 %v1449_v38, %v3051_v46  ;;  %v1451_v42 = vpop.f32.mrb[15].mxu1 }
 0x17e   : > { %v1677_v43 = vpop.f32.mrb[15].mxu0  ;;  %v2082_v44 = vadd.f32 %v2081_v37, %v1673_v36  ;;  %v2085_v45 = vadd.f32 %v1451_v42, %v3053_v47 }
 0x17f   : > { %1732 = vst [vmem:[%s3061_s9 + $0x60] sm:$0xff] %v2080_v40  ;;  %v2084_v48 = vadd.f32 %v2083_v41, %v1675_v39 }
 0x180   : > { %1733 = vst [vmem:[%s3061_s9 + $0x68] sm:$0xff] %v2082_v44  ;;  %v2086_v49 = vadd.f32 %v2085_v45, %v1677_v43 }
 0x181   : > { %1734 = vst [vmem:[%s3061_s9 + $0x70] sm:$0xff] %v2084_v48 }
 0x182   : > { %1735 = vst [vmem:[%s3061_s9 + $0x78] sm:$0xff] %v2086_v49  ;;  %v1455_v50 = vpop.f32.mrb[16].mxu1 }
 0x183   : > { %v1681_v51 = vpop.f32.mrb[16].mxu0  ;;  %v2087_v52 = vadd.f32 %v1455_v50, %v3051_v46  ;;  %v1457_v53 = vpop.f32.mrb[17].mxu1 }
 0x184   : > { %v1683_v54 = vpop.f32.mrb[17].mxu0  ;;  %v2089_v55 = vadd.f32 %v1457_v53, %v3053_v47  ;;  %v1459_v56 = vpop.f32.mrb[18].mxu1 }
 0x185   : > { %v1685_v57 = vpop.f32.mrb[18].mxu0  ;;  %v2088_v58 = vadd.f32 %v2087_v52, %v1681_v51  ;;  %v2091_v59 = vadd.f32 %v1459_v56, %v3051_v46  ;;  %v1461_v60 = vpop.f32.mrb[19].mxu1 }
 0x186   : > { %v1687_v61 = vpop.f32.mrb[19].mxu0  ;;  %v2090_v62 = vadd.f32 %v2089_v55, %v1683_v54  ;;  %v2093_v63 = vadd.f32 %v1461_v60, %v3053_v47 }
 0x187   : > { %1736 = vst [vmem:[%s3061_s9 + $0x80] sm:$0xff] %v2088_v58  ;;  %v2092_v0 = vadd.f32 %v2091_v59, %v1685_v57 }
 0x188   : > { %1737 = vst [vmem:[%s3061_s9 + $0x88] sm:$0xff] %v2090_v62  ;;  %v2094_v1 = vadd.f32 %v2093_v63, %v1687_v61 }
 0x189   : > { %1738 = vst [vmem:[%s3061_s9 + $0x90] sm:$0xff] %v2092_v0 }
 0x18a   : > { %1739 = vst [vmem:[%s3061_s9 + $0x98] sm:$0xff] %v2094_v1  ;;  %v1465_v2 = vpop.f32.mrb[20].mxu1 }
 0x18b   : > { %v1691_v3 = vpop.f32.mrb[20].mxu0  ;;  %v2095_v4 = vadd.f32 %v1465_v2, %v3051_v46  ;;  %v1467_v5 = vpop.f32.mrb[21].mxu1 }
 0x18c   : > { %v1693_v6 = vpop.f32.mrb[21].mxu0  ;;  %v2097_v7 = vadd.f32 %v1467_v5, %v3053_v47  ;;  %v1469_v8 = vpop.f32.mrb[22].mxu1 }
 0x18d   : > { %v1695_v9 = vpop.f32.mrb[22].mxu0  ;;  %v2096_v10 = vadd.f32 %v2095_v4, %v1691_v3  ;;  %v2099_v11 = vadd.f32 %v1469_v8, %v3051_v46  ;;  %v1471_v12 = vpop.f32.mrb[23].mxu1 }
 0x18e   : > { %v1697_v13 = vpop.f32.mrb[23].mxu0  ;;  %v2098_v14 = vadd.f32 %v2097_v7, %v1693_v6  ;;  %v2101_v15 = vadd.f32 %v1471_v12, %v3053_v47 }
 0x18f   : > { %1740 = vst [vmem:[%s3061_s9 + $0xa0] sm:$0xff] %v2096_v10  ;;  %v2100_v16 = vadd.f32 %v2099_v11, %v1695_v9 }
 0x190   : > { %1741 = vst [vmem:[%s3061_s9 + $0xa8] sm:$0xff] %v2098_v14  ;;  %v2102_v17 = vadd.f32 %v2101_v15, %v1697_v13 }
 0x191   : > { %1742 = vst [vmem:[%s3061_s9 + $0xb0] sm:$0xff] %v2100_v16 }
 0x192   : > { %1743 = vst [vmem:[%s3061_s9 + $0xb8] sm:$0xff] %v2102_v17  ;;  %v1475_v18 = vpop.f32.mrb[24].mxu1 }
 0x193   : > { %v1701_v19 = vpop.f32.mrb[24].mxu0  ;;  %v2103_v20 = vadd.f32 %v1475_v18, %v3051_v46  ;;  %v1477_v21 = vpop.f32.mrb[25].mxu1 }
 0x194   : > { %v1703_v22 = vpop.f32.mrb[25].mxu0  ;;  %v2105_v23 = vadd.f32 %v1477_v21, %v3053_v47  ;;  %v1479_v24 = vpop.f32.mrb[26].mxu1 }
 0x195   : > { %v1705_v25 = vpop.f32.mrb[26].mxu0  ;;  %v2104_v26 = vadd.f32 %v2103_v20, %v1701_v19  ;;  %v2107_v27 = vadd.f32 %v1479_v24, %v3051_v46  ;;  %v1481_v28 = vpop.f32.mrb[27].mxu1 }
 0x196   : > { %v1707_v29 = vpop.f32.mrb[27].mxu0  ;;  %v2106_v30 = vadd.f32 %v2105_v23, %v1703_v22  ;;  %v2109_v31 = vadd.f32 %v1481_v28, %v3053_v47 }
 0x197   : > { %1744 = vst [vmem:[%s3061_s9 + $0xc0] sm:$0xff] %v2104_v26  ;;  %v2108_v32 = vadd.f32 %v2107_v27, %v1705_v25 }
 0x198   : > { %1745 = vst [vmem:[%s3061_s9 + $0xc8] sm:$0xff] %v2106_v30  ;;  %v2110_v33 = vadd.f32 %v2109_v31, %v1707_v29 }
 0x199   : > { %1746 = vst [vmem:[%s3061_s9 + $0xd0] sm:$0xff] %v2108_v32 }
 0x19a   : > { %1747 = vst [vmem:[%s3061_s9 + $0xd8] sm:$0xff] %v2110_v33  ;;  %v1485_v34 = vpop.f32.mrb[28].mxu1 }
 0x19b   : > { %v1711_v35 = vpop.f32.mrb[28].mxu0  ;;  %v2111_v36 = vadd.f32 %v1485_v34, %v3051_v46  ;;  %v1487_v37 = vpop.f32.mrb[29].mxu1 }
 0x19c   : > { %v1713_v38 = vpop.f32.mrb[29].mxu0  ;;  %v2113_v39 = vadd.f32 %v1487_v37, %v3053_v47  ;;  %v1489_v40 = vpop.f32.mrb[30].mxu1 }
 0x19d   : > { %v1715_v41 = vpop.f32.mrb[30].mxu0  ;;  %v2112_v42 = vadd.f32 %v2111_v36, %v1711_v35  ;;  %v2115_v43 = vadd.f32 %v1489_v40, %v3051_v46  ;;  %v1491_v44 = vpop.f32.mrb[31].mxu1 }
 0x19e   : > { %v1717_v45 = vpop.f32.mrb[31].mxu0  ;;  %v2114_v48 = vadd.f32 %v2113_v39, %v1713_v38  ;;  %v2117_v49 = vadd.f32 %v1491_v44, %v3053_v47 }
 0x19f   : > { %1748 = vst [vmem:[%s3061_s9 + $0xe0] sm:$0xff] %v2112_v42  ;;  %v2116_v50 = vadd.f32 %v2115_v43, %v1715_v41 }
 0x1a0   : > { %1749 = vst [vmem:[%s3061_s9 + $0xe8] sm:$0xff] %v2114_v48  ;;  %v2118_v46 = vadd.f32 %v2117_v49, %v1717_v45 }
 0x1a1   : > { %1750 = vst [vmem:[%s3061_s9 + $0xf0] sm:$0xff] %v2116_v50 }
 0x1a2   : > { %1751 = vst [vmem:[%s3061_s9 + $0xf8] sm:$0xff] %v2118_v46 }
 0x1a3   : > { %2503 = shalt.err (!%p2500_p5)
}
 0x1a4   : > { %s2504_s19 = scalar_lea.hbm %s3125_s8, 4096  ;;  %s2508_s27 = scalar_lea.hbm %s3183_s3, 8192 }
 0x1a5   : > { %p2505_p6 = scmp.ne.s32.totalorder %s3125_s8, %s2504_s19  ;;  %p2509_p10 = scmp.lt.u32.totalorder %s3125_s8, %s3183_s3 }
 0x1a6   : > { %p2510_p11 = scmp.lt.u32.totalorder %s2508_s27, %s2504_s19  ;;  %p2512_p13 = scmp.lt.u32.totalorder %s2504_s19, %s3125_s8 }
 0x1a7   : > { %p2506_p7 = pnand %p2505_p6, %p2634_p4 }
 0x1a8   : > { %p2511_p12 = por %p2510_p11, %p2509_p10 }
 0x1a9   : > { %p2507_p9 = pneg %p2506_p7 }
 0x1aa   : > { %p2513_p0 = por %p2512_p13, %p2511_p12 }
 0x1ac   : > { %p2514_p1 = pnand %p2513_p0, %p2507_p9 }
 0x1ae   : > { %2517 = shalt.err (!%p2514_p1)
}
 0x1af   : > { %s2572_s29 = smov 256   ;;  %s2573_s9 = smov 16  }
 0x1b0   : > { %2184 = dma.vmem_to_hbm [thread:$0]  (%p2634_p4), %s3127_s4, 4096, %s3125_s8, %s3134_s15, %s2572_s29, %s2572_s29, %s2573_s9  }
 0x1b1 PF: > { %p2190_p2 = scmp.ge.s32.totalorder %s2568_s17, 2  ;;  %s1784_s30 = sand.u32 1, %s2548_s12  }
 0x1b2   : > { %s1785_s5 = scalar_lea.sflag [#allocation3], %s1784_s30 }
 0x1b3   : > { %p2187_p3 = pnand %p2190_p2, %p2641_p8 }
 0x1b5   : > { %2543 = dma.done.wait (!%p2187_p3), %s1785_s5, 4096  }
 0x1b6   : > { %2545 = vsyncadd (!%p2187_p3), %s1785_s5, 4294963200  ;;  %s16_s17 = sadd.s32 1, %s2568_s17   ;;  %s3186_s12 = smov %s2552_s13 }
 0x1b7   : > { %p13_p5 = scmp.ge.s32.totalorder %s16_s17, 4   ;;  %s3187_s13 = smov %s2556_s14 }
 0x1b8   : > { %s3188_s14 = smov %s2647_s25  ;;  %s3189_s15 = smov %s2564_s16 }
 0x1b9   : > { %s3190_s16 = smov %s3192_s20  ;;  %15 = sbr.rel (!%p13_p5) target bundleno = 4 (0x4), region = 73 }
 0x1c0   :  { %1790 = vsyncpa [#allocation3], 1 }
 0x1c1   :  { %1792 = vsyncpa [#allocation3 + $0x1], 1 }

</bundles_post_ra>
